<compile_context>
chip_gen: v5e
topology: v5e:2x2
jax: 0.10.0
libtpu: 0.0.40
codegen_flags: <defaults>
</compile_context>

<pallas_src>
import jax
import jax.numpy as jnp
from jax.experimental import pallas as pl
from jax.experimental.pallas import tpu as pltpu


# ----------------------------------------------------------------------------
# helpers
# ----------------------------------------------------------------------------
def _compiler_params(*dim_sems):
    return pltpu.CompilerParams(
        dimension_semantics=tuple(dim_sems),
        vmem_limit_bytes=64 * 1024 * 1024,
    )


def _pick_tile(n, target, align=8):
    """Largest divisor of n that is <= target and a multiple of `align`."""
    if n <= target:
        return n
    for t in range(min(target, n), 0, -1):
        if n % t == 0 and t % align == 0:
            return t
    return n


def _pick_tile_h(h, w, target):
    """Largest divisor of h <= target such that tile_h*W is 8-aligned."""
    for t in range(min(target, h), 0, -1):
        if h % t == 0 and (t * w) % 8 == 0:
            return t
    # TODO(synk): ragged H*W (e.g. 7x7 maps with N>1) needs a 4D out layout.
    return h


def _bn_affine(stats, count, gamma, beta, eps=1e-5):
    """Fold batch statistics into per-channel (scale, shift).

    stats: (nblk, 2, C) per-tile [sum, sum_sq]. Returns (1, C) scale/shift so
    that ReLU(BN_train(y)) == max(y*scale + shift, 0).
    NOTE: single-pass var = E[y^2]-mean^2 (f32, clamped at 0) can lose
    precision for very large-mean activations; acceptable here.
    """
    c = stats.shape[-1]
    s = jnp.sum(stats.reshape(-1, 2, c), axis=0)            # (2, C)
    mean = s[0] / count
    var = jnp.maximum(s[1] / count - mean * mean, 0.0)       # biased (PyTorch)
    scale = gamma.reshape(-1) * jax.lax.rsqrt(var + eps)
    shift = beta.reshape(-1) - mean * scale
    return scale.reshape(1, -1), shift.reshape(1, -1)


# ----------------------------------------------------------------------------
# kernel 1: fused "x pass"
#   From the -inf padded bf16 input (whole image resident per n):
#     y_b1  = x @ W_b1        (branch1 1x1)
#     y_r3  = x @ W_r3        (branch2 1x1 reduce)
#     y_r5  = x @ W_r5        (branch3 1x1 reduce)
#     y_p   = maxpool3x3(x) @ W_p   (branch4, pool fused)
#   All outputs bf16, 2D (M, C) lane-dense blocks; one combined f32 stats block.
# ----------------------------------------------------------------------------
def fused_x_pass(x_pad, w_b1, w_r3, w_r5, w_p, tile_h):
    N, Hp, Wp, Cin = x_pad.shape
    H, W = Hp - 2, Wp - 2
    c1, r3, r5, cp = (w_b1.shape[1], w_r3.shape[1], w_r5.shape[1], w_p.shape[1])
    c_all = c1 + r3 + r5 + cp
    nj = H // tile_h
    rows = tile_h * W
    M = N * H * W

    def kernel(x_ref, wb1_ref, wr3_ref, wr5_ref, wp_ref,
               yb1_ref, yr3_ref, yr5_ref, yp_ref, st_ref):
        j = pl.program_id(1)
        row0 = pl.multiple_of(j * tile_h, tile_h)
        slab = x_ref[:, pl.ds(row0, tile_h + 2), :, :]       # (1, th+2, Wp, Cin)

        # center window (always real data) for the 1x1 convs
        center = slab[:, 1:1 + tile_h, 1:1 + W, :].reshape(rows, Cin)

        # 3x3 / stride 1 maxpool on the -inf padded slab (center tap is valid)
        m = None
        for di in range(3):
            for dj in range(3):
                win = slab[:, di:di + tile_h, dj:dj + W, :]
                m = win if m is None else jnp.maximum(m, win)
        pooled = m.reshape(rows, Cin)

        def emit(lhs, w_ref, y_ref):
            acc = jnp.dot(lhs, w_ref[...], preferred_element_type=jnp.float32)
            y_ref[...] = acc.astype(y_ref.dtype)
            s = jnp.sum(acc, axis=0, keepdims=True)
            sq = jnp.sum(acc * acc, axis=0, keepdims=True)
            return s, sq

        s1, q1 = emit(center, wb1_ref, yb1_ref)
        s3, q3 = emit(center, wr3_ref, yr3_ref)
        s5, q5 = emit(center, wr5_ref, yr5_ref)
        sp, qp = emit(pooled, wp_ref, yp_ref)
        s = jnp.concatenate([s1, s3, s5, sp], axis=1)
        q = jnp.concatenate([q1, q3, q5, qp], axis=1)
        st_ref[...] = jnp.concatenate([s, q], axis=0).reshape(1, 2, c_all)

    row_map = lambda n, j: (n * nj + j, 0)
    st_map = lambda n, j: (n * nj + j, 0, 0)
    const2 = lambda n, j: (0, 0)

    return pl.pallas_call(
        kernel,
        out_shape=(jax.ShapeDtypeStruct((M, c1), jnp.bfloat16),
                   jax.ShapeDtypeStruct((M, r3), jnp.bfloat16),
                   jax.ShapeDtypeStruct((M, r5), jnp.bfloat16),
                   jax.ShapeDtypeStruct((M, cp), jnp.bfloat16),
                   jax.ShapeDtypeStruct((N * nj, 2, c_all), jnp.float32)),
        grid=(N, nj),
        in_specs=[pl.BlockSpec((1, Hp, Wp, Cin), lambda n, j: (n, 0, 0, 0)),
                  pl.BlockSpec((Cin, c1), const2),
                  pl.BlockSpec((Cin, r3), const2),
                  pl.BlockSpec((Cin, r5), const2),
                  pl.BlockSpec((Cin, cp), const2)],
        out_specs=(pl.BlockSpec((rows, c1), row_map),
                   pl.BlockSpec((rows, r3), row_map),
                   pl.BlockSpec((rows, r5), row_map),
                   pl.BlockSpec((rows, cp), row_map),
                   pl.BlockSpec((1, 2, c_all), st_map)),
        compiler_params=_compiler_params("parallel", "arbitrary"),
    )(x_pad, w_b1, w_r3, w_r5, w_p)


# ----------------------------------------------------------------------------
# kernel 2: BN-normalize + ReLU, written directly into a zero-padded NHWC
#   buffer (bf16) so the downstream spatial conv needs no jnp.pad round trip.
# ----------------------------------------------------------------------------
def normalize_pad(y2d, scale, shift, n_imgs, h, w, pad):
    M, C = y2d.shape
    hp, wp = h + 2 * pad, w + 2 * pad
    rows = h * w

    def kernel(y_ref, sc_ref, sh_ref, o_ref):
        o_ref[...] = jnp.zeros_like(o_ref)                   # zero halo
        a = jnp.maximum(y_ref[...].astype(jnp.float32) * sc_ref[...]
                        + sh_ref[...], 0.0)
        o_ref[0, pad:pad + h, pad:pad + w, :] = a.astype(o_ref.dtype).reshape(h, w, C)

    return pl.pallas_call(
        kernel,
        out_shape=jax.ShapeDtypeStruct((n_imgs, hp, wp, C), jnp.bfloat16),
        grid=(n_imgs,),
        in_specs=[pl.BlockSpec((rows, C), lambda n: (n, 0)),
                  pl.BlockSpec((1, C), lambda n: (0, 0)),
                  pl.BlockSpec((1, C), lambda n: (0, 0))],
        out_specs=pl.BlockSpec((1, hp, wp, C), lambda n: (n, 0, 0, 0)),
        compiler_params=_compiler_params("parallel"),
    )(y2d, scale, shift)


# ----------------------------------------------------------------------------
# kernel 3: k x k conv (padding k//2) with the dj taps folded into the matmul
#   contraction dim (K = k*Cin); di taps accumulate in-register.  Emits bf16
#   (M, Cout) lane-dense blocks + per-tile BN partial stats.
#   w_folded has shape (k, k*Cin, Cout).
# ----------------------------------------------------------------------------
def spatial_conv_stats(a_pad, w_folded, k, tile_h):
    N, Hp, Wp, Cr = a_pad.shape
    p = k // 2
    H, W = Hp - 2 * p, Wp - 2 * p
    Cout = w_folded.shape[-1]
    nj = H // tile_h
    rows = tile_h * W
    M = N * H * W

    def kernel(x_ref, w_ref, y_ref, st_ref):
        j = pl.program_id(1)
        row0 = pl.multiple_of(j * tile_h, tile_h)
        acc = jnp.zeros((rows, Cout), jnp.float32)
        for di in range(k):
            slab = x_ref[:, pl.ds(row0 + di, tile_h), :, :]  # (1, th, Wp, Cr)
            lhs = jnp.concatenate(
                [slab[:, :, dj:dj + W, :] for dj in range(k)], axis=-1)
            acc = acc + jnp.dot(lhs.reshape(rows, k * Cr), w_ref[di],
                                preferred_element_type=jnp.float32)
        y_ref[...] = acc.astype(y_ref.dtype)
        s = jnp.sum(acc, axis=0, keepdims=True)
        sq = jnp.sum(acc * acc, axis=0, keepdims=True)
        st_ref[...] = jnp.concatenate([s, sq], axis=0).reshape(1, 2, Cout)

    return pl.pallas_call(
        kernel,
        out_shape=(jax.ShapeDtypeStruct((M, Cout), jnp.bfloat16),
                   jax.ShapeDtypeStruct((N * nj, 2, Cout), jnp.float32)),
        grid=(N, nj),
        in_specs=[pl.BlockSpec((1, Hp, Wp, Cr), lambda n, j: (n, 0, 0, 0)),
                  pl.BlockSpec((k, k * Cr, Cout), lambda n, j: (0, 0, 0))],
        out_specs=(pl.BlockSpec((rows, Cout), lambda n, j: (n * nj + j, 0)),
                   pl.BlockSpec((1, 2, Cout), lambda n, j: (n * nj + j, 0, 0))),
        compiler_params=_compiler_params("parallel", "arbitrary"),
    )(a_pad, w_folded)


# ----------------------------------------------------------------------------
# kernel 4: fused BN + ReLU of all four branches; the full (tile_m, Ctot) row
#   tile is assembled in registers and stored with ONE full-width store.
# ----------------------------------------------------------------------------
def concat_normalize(y1, y3, y5, y4, scale_cat, shift_cat, tile_m):
    M = y1.shape[0]
    ctot = scale_cat.shape[1]
    mt = M // tile_m

    def kernel(y1_ref, y3_ref, y5_ref, y4_ref, sc_ref, sh_ref, o_ref):
        full = jnp.concatenate(
            [y1_ref[...], y3_ref[...], y5_ref[...], y4_ref[...]],
            axis=1).astype(jnp.float32)
        o_ref[...] = jnp.maximum(full * sc_ref[...] + sh_ref[...], 0.0)

    return pl.pallas_call(
        kernel,
        out_shape=jax.ShapeDtypeStruct((M, ctot), jnp.float32),
        grid=(mt,),
        in_specs=[pl.BlockSpec((tile_m, y1.shape[1]), lambda i: (i, 0)),
                  pl.BlockSpec((tile_m, y3.shape[1]), lambda i: (i, 0)),
                  pl.BlockSpec((tile_m, y5.shape[1]), lambda i: (i, 0)),
                  pl.BlockSpec((tile_m, y4.shape[1]), lambda i: (i, 0)),
                  pl.BlockSpec((1, ctot), lambda i: (0, 0)),
                  pl.BlockSpec((1, ctot), lambda i: (0, 0))],
        out_specs=pl.BlockSpec((tile_m, ctot), lambda i: (i, 0)),
        compiler_params=_compiler_params("parallel"),
    )(y1, y3, y5, y4, scale_cat, shift_cat)


# ----------------------------------------------------------------------------
# parameter init (PyTorch-style Conv2d default init; deterministic BN affine)
# ----------------------------------------------------------------------------
def _init_conv_w(key, cin, cout, k):
    fan_in = cin * k * k
    bound = float(fan_in) ** -0.5
    w = jax.random.uniform(key, (cout, cin, k, k), jnp.float32, -bound, bound)
    # Conv bias omitted: with training-mode BatchNorm right after the conv a
    # per-channel bias cancels exactly in (y - mean).
    wt = jnp.transpose(w, (2, 3, 1, 0))                      # (kh, kw, Cin, Cout)
    if k == 1:
        return wt.reshape(cin, cout)                         # (Cin, Cout)
    return wt                                                # (k, k, Cin, Cout)


def _init_bn(cout):
    gamma = 1.0 + 0.05 * jnp.arange(cout, dtype=jnp.float32)
    beta = 0.02 * jnp.arange(cout, dtype=jnp.float32)
    return gamma.reshape(1, cout), beta.reshape(1, cout)


class InceptionPallas:
    """Pallas port of the PyTorch Inception module (GoogLeNet block)."""

    def __init__(self, key, in_channels, out1x1, red3x3, out3x3,
                 red5x5, out5x5, out_pool, tile_m=1024, tile_h=8):
        ks = jax.random.split(key, 6)
        self.w_b1 = _init_conv_w(ks[0], in_channels, out1x1, 1).astype(jnp.bfloat16)
        self.w_r3 = _init_conv_w(ks[1], in_channels, red3x3, 1).astype(jnp.bfloat16)
        self.w_r5 = _init_conv_w(ks[3], in_channels, red5x5, 1).astype(jnp.bfloat16)
        self.w_p = _init_conv_w(ks[5], in_channels, out_pool, 1).astype(jnp.bfloat16)
        w3 = _init_conv_w(ks[2], red3x3, out3x3, 3)           # (3,3,Cin,Cout)
        w5 = _init_conv_w(ks[4], red5x5, out5x5, 5)
        # Fold the dj taps into the contraction dim: (k, k*Cin, Cout).
        self.w3 = w3.reshape(3, 3 * red3x3, out3x3).astype(jnp.bfloat16)
        self.w5 = w5.reshape(5, 5 * red5x5, out5x5).astype(jnp.bfloat16)

        g1, b1 = _init_bn(out1x1)
        gr3, br3 = _init_bn(red3x3)
        gr5, br5 = _init_bn(red5x5)
        gp, bp = _init_bn(out_pool)
        # BN affines matching the fused x-pass stat order [b1 | r3 | r5 | pool].
        self.gA = jnp.concatenate([g1, gr3, gr5, gp], axis=1)
        self.bA = jnp.concatenate([b1, br3, br5, bp], axis=1)
        self.g3, self.be3 = _init_bn(out3x3)
        self.g5, self.be5 = _init_bn(out5x5)

        self.dims = (out1x1, red3x3, out3x3, red5x5, out5x5, out_pool)
        self.tile_m_target = tile_m
        self.tile_h_target = tile_h
        # TODO(synk): BatchNorm running_mean/var momentum updates are
        # training-only bookkeeping (no effect on this forward) and are skipped.

    def __call__(self, x_nchw):
        out1x1, red3x3, out3x3, red5x5, out5x5, out_pool = self.dims
        N, Cin, H, W = x_nchw.shape
        M = N * H * W
        th = _pick_tile_h(H, W, self.tile_h_target)
        tm = _pick_tile(M, self.tile_m_target, align=8)

        # TODO(synk): NCHW<->NHWC transposes stay in XLA; an NHWC-native caller
        # would drop two full activation-sized HBM passes.
        x = jnp.transpose(x_nchw, (0, 2, 3, 1)).astype(jnp.bfloat16)
        # -inf halo (bf16) so the fused 3x3 maxpool is exact at the borders.
        x_pad = jnp.pad(x, ((0, 0), (1, 1), (1, 1), (0, 0)),
                        constant_values=-jnp.inf)

        # --- one pass over x: branch1 / reduces / fused pool+1x1, with stats
        yb1, yr3, yr5, yp, st_a = fused_x_pass(
            x_pad, self.w_b1, self.w_r3, self.w_r5, self.w_p, th)
        sc_a, sh_a = _bn_affine(st_a, M, self.gA, self.bA)
        c1, e3 = out1x1, out1x1 + red3x3
        e5 = e3 + red5x5
        sc_b1, sh_b1 = sc_a[:, :c1], sh_a[:, :c1]
        sc_r3, sh_r3 = sc_a[:, c1:e3], sh_a[:, c1:e3]
        sc_r5, sh_r5 = sc_a[:, e3:e5], sh_a[:, e3:e5]
        sc_p, sh_p = sc_a[:, e5:], sh_a[:, e5:]

        # --- normalize + ReLU the reduce activations into padded NHWC buffers
        a3 = normalize_pad(yr3, sc_r3, sh_r3, N, H, W, 1)
        a5 = normalize_pad(yr5, sc_r5, sh_r5, N, H, W, 2)

        # --- branch2: 3x3 conv, branch3: 5x5 conv (dj-folded matmuls)
        y3, st3 = spatial_conv_stats(a3, self.w3, 3, th)
        y5, st5 = spatial_conv_stats(a5, self.w5, 5, th)
        sc3, sh3 = _bn_affine(st3, M, self.g3, self.be3)
        sc5, sh5 = _bn_affine(st5, M, self.g5, self.be5)

        # --- fused BN+ReLU of all branches into one concatenated output
        scale_cat = jnp.concatenate([sc_b1, sc3, sc5, sc_p], axis=1)
        shift_cat = jnp.concatenate([sh_b1, sh3, sh5, sh_p], axis=1)
        out2d = concat_normalize(yb1, y3, y5, yp, scale_cat, shift_cat, tm)
        out = out2d.reshape(N, H, W, -1)
        return jnp.transpose(out, (0, 3, 1, 2))               # NCHW f32


if __name__ == "__main__":
    key = jax.random.PRNGKey(0)
    k_x, k_p = jax.random.split(key)

    # Small shapes consistent with the module (NCHW input). Real GoogLeNet
    # channel counts (>=128) are what the lane-dense bf16 layout targets.
    N, Cin, H, W = 2, 4, 16, 16
    out1x1, red3x3, out3x3, red5x5, out5x5, out_pool = 8, 4, 8, 4, 8, 8
    x = jax.random.normal(k_x, (N, Cin, H, W), jnp.float32)

    # tile_m=256 / tile_h=8 exercise the multi-tile pipelined path
    # (M=512 -> 2 M-tiles, H=16 -> 2 row-tiles); use ~1024 for production.
    model = InceptionPallas(k_p, Cin, out1x1, red3x3, out3x3,
                            red5x5, out5x5, out_pool, tile_m=256, tile_h=8)
    y = jax.jit(model.__call__)(x)
    y = jax.block_until_ready(y)

    expected = (N, out1x1 + out3x3 + out5x5 + out_pool, H, W)
    assert y.shape == expected, (y.shape, expected)
    assert bool(jnp.all(jnp.isfinite(y))), "non-finite output"
    print("KERNEL_OK")
</pallas_src>

<mosaic_0001>
module attributes {stable_mosaic.version = 11 : i64} {
  func.func @kernel(%arg0: i32, %arg1: i32, %arg2: memref<1x18x18x4xbf16, #tpu.memory_space<vmem>>, %arg3: memref<4x8xbf16, #tpu.memory_space<vmem>>, %arg4: memref<4x4xbf16, #tpu.memory_space<vmem>>, %arg5: memref<4x4xbf16, #tpu.memory_space<vmem>>, %arg6: memref<4x8xbf16, #tpu.memory_space<vmem>>, %arg7: memref<128x8xbf16, #tpu.memory_space<vmem>>, %arg8: memref<128x4xbf16, #tpu.memory_space<vmem>>, %arg9: memref<128x4xbf16, #tpu.memory_space<vmem>>, %arg10: memref<128x8xbf16, #tpu.memory_space<vmem>>, %arg11: memref<1x2x24xf32, #tpu.memory_space<vmem>>) attributes {dimension_semantics = [#tpu.dimension_semantics<parallel>, #tpu.dimension_semantics<arbitrary>], iteration_bounds = array<i64: 2, 2>, scalar_prefetch = 0 : i64, scratch_operands = 0 : i64, tpu.core_type = #tpu.core_type<tc>, window_params = [{transform_indices = @transform_0, window_bounds = array<i64: 1, 18, 18, 4>}, {pipeline_mode = #tpu.pipeline_mode<synchronous>, transform_indices = @transform_1, window_bounds = array<i64: 4, 8>}, {pipeline_mode = #tpu.pipeline_mode<synchronous>, transform_indices = @transform_2, window_bounds = array<i64: 4, 4>}, {pipeline_mode = #tpu.pipeline_mode<synchronous>, transform_indices = @transform_3, window_bounds = array<i64: 4, 4>}, {pipeline_mode = #tpu.pipeline_mode<synchronous>, transform_indices = @transform_4, window_bounds = array<i64: 4, 8>}, {transform_indices = @transform_5, window_bounds = array<i64: 128, 8>}, {transform_indices = @transform_6, window_bounds = array<i64: 128, 4>}, {transform_indices = @transform_7, window_bounds = array<i64: 128, 4>}, {transform_indices = @transform_8, window_bounds = array<i64: 128, 8>}, {transform_indices = @transform_9, window_bounds = array<i64: 1, 2, 24>}]} {
    %c8_i32 = arith.constant 8 : i32
    %0 = arith.muli %arg1, %c8_i32 : i32
    %1 = tpu.assume_multiple %0, 8 : i32
    %c0 = arith.constant 0 : index
    %2 = arith.index_cast %1 : i32 to index
    %c0_0 = arith.constant 0 : index
    %c0_1 = arith.constant 0 : index
    %3 = vector.load %arg2[%c0, %2, %c0_0, %c0_1] : memref<1x18x18x4xbf16, #tpu.memory_space<vmem>>, vector<1x10x18x4xbf16>
    %4 = vector.extract_strided_slice %3 {offsets = [0, 1, 1, 0], sizes = [1, 8, 16, 4], strides = [1, 1, 1, 1]} : vector<1x10x18x4xbf16> to vector<1x8x16x4xbf16>
    %5 = vector.shape_cast %4 : vector<1x8x16x4xbf16> to vector<128x4xbf16>
    %6 = vector.extract_strided_slice %3 {offsets = [0, 0, 0, 0], sizes = [1, 8, 16, 4], strides = [1, 1, 1, 1]} : vector<1x10x18x4xbf16> to vector<1x8x16x4xbf16>
    %7 = vector.extract_strided_slice %3 {offsets = [0, 0, 1, 0], sizes = [1, 8, 16, 4], strides = [1, 1, 1, 1]} : vector<1x10x18x4xbf16> to vector<1x8x16x4xbf16>
    %8 = arith.maximumf %6, %7 : vector<1x8x16x4xbf16>
    %9 = vector.extract_strided_slice %3 {offsets = [0, 0, 2, 0], sizes = [1, 8, 16, 4], strides = [1, 1, 1, 1]} : vector<1x10x18x4xbf16> to vector<1x8x16x4xbf16>
    %10 = arith.maximumf %8, %9 : vector<1x8x16x4xbf16>
    %11 = vector.extract_strided_slice %3 {offsets = [0, 1, 0, 0], sizes = [1, 8, 16, 4], strides = [1, 1, 1, 1]} : vector<1x10x18x4xbf16> to vector<1x8x16x4xbf16>
    %12 = arith.maximumf %10, %11 : vector<1x8x16x4xbf16>
    %13 = vector.extract_strided_slice %3 {offsets = [0, 1, 1, 0], sizes = [1, 8, 16, 4], strides = [1, 1, 1, 1]} : vector<1x10x18x4xbf16> to vector<1x8x16x4xbf16>
    %14 = arith.maximumf %12, %13 : vector<1x8x16x4xbf16>
    %15 = vector.extract_strided_slice %3 {offsets = [0, 1, 2, 0], sizes = [1, 8, 16, 4], strides = [1, 1, 1, 1]} : vector<1x10x18x4xbf16> to vector<1x8x16x4xbf16>
    %16 = arith.maximumf %14, %15 : vector<1x8x16x4xbf16>
    %17 = vector.extract_strided_slice %3 {offsets = [0, 2, 0, 0], sizes = [1, 8, 16, 4], strides = [1, 1, 1, 1]} : vector<1x10x18x4xbf16> to vector<1x8x16x4xbf16>
    %18 = arith.maximumf %16, %17 : vector<1x8x16x4xbf16>
    %19 = vector.extract_strided_slice %3 {offsets = [0, 2, 1, 0], sizes = [1, 8, 16, 4], strides = [1, 1, 1, 1]} : vector<1x10x18x4xbf16> to vector<1x8x16x4xbf16>
    %20 = arith.maximumf %18, %19 : vector<1x8x16x4xbf16>
    %21 = vector.extract_strided_slice %3 {offsets = [0, 2, 2, 0], sizes = [1, 8, 16, 4], strides = [1, 1, 1, 1]} : vector<1x10x18x4xbf16> to vector<1x8x16x4xbf16>
    %22 = arith.maximumf %20, %21 : vector<1x8x16x4xbf16>
    %23 = vector.shape_cast %22 : vector<1x8x16x4xbf16> to vector<128x4xbf16>
    %c0_2 = arith.constant 0 : index
    %c0_3 = arith.constant 0 : index
    %24 = vector.load %arg3[%c0_2, %c0_3] : memref<4x8xbf16, #tpu.memory_space<vmem>>, vector<4x8xbf16>
    %cst = arith.constant dense<0.000000e+00> : vector<128x8xf32>
    %25 = tpu.matmul %5, %24, %cst {dimension_numbers = #tpu.dot_dimension_numbers<[1], [0], [0], [1], [0, 0, 1, 1], [], []>} : vector<128x4xbf16>, vector<4x8xbf16>, vector<128x8xf32> -> vector<128x8xf32>
    %26 = arith.truncf %25 : vector<128x8xf32> to vector<128x8xbf16>
    %c0_4 = arith.constant 0 : index
    %c0_5 = arith.constant 0 : index
    %27 = vector.load %arg7[%c0_4, %c0_5] : memref<128x8xbf16, #tpu.memory_space<vmem>>, vector<128x8xbf16>
    tpu.vector_store %arg7[%c0_4, %c0_5], %26 {strides = array<i32>} : memref<128x8xbf16, #tpu.memory_space<vmem>>, vector<128x8xbf16>,
    %cst_6 = arith.constant dense<0.000000e+00> : vector<8xf32>
    %28 = vector.multi_reduction <add>, %25, %cst_6 [0] : vector<128x8xf32> to vector<8xf32>
    %29 = vector.shape_cast %28 : vector<8xf32> to vector<1x8xf32>
    %30 = arith.mulf %25, %25 : vector<128x8xf32>
    %cst_7 = arith.constant dense<0.000000e+00> : vector<8xf32>
    %31 = vector.multi_reduction <add>, %30, %cst_7 [0] : vector<128x8xf32> to vector<8xf32>
    %32 = vector.shape_cast %31 : vector<8xf32> to vector<1x8xf32>
    %c0_8 = arith.constant 0 : index
    %c0_9 = arith.constant 0 : index
    %33 = vector.load %arg4[%c0_8, %c0_9] : memref<4x4xbf16, #tpu.memory_space<vmem>>, vector<4x4xbf16>
    %cst_10 = arith.constant dense<0.000000e+00> : vector<128x4xf32>
    %34 = tpu.matmul %5, %33, %cst_10 {dimension_numbers = #tpu.dot_dimension_numbers<[1], [0], [0], [1], [0, 0, 1, 1], [], []>} : vector<128x4xbf16>, vector<4x4xbf16>, vector<128x4xf32> -> vector<128x4xf32>
    %35 = arith.truncf %34 : vector<128x4xf32> to vector<128x4xbf16>
    %c0_11 = arith.constant 0 : index
    %c0_12 = arith.constant 0 : index
    %36 = vector.load %arg8[%c0_11, %c0_12] : memref<128x4xbf16, #tpu.memory_space<vmem>>, vector<128x4xbf16>
    tpu.vector_store %arg8[%c0_11, %c0_12], %35 {strides = array<i32>} : memref<128x4xbf16, #tpu.memory_space<vmem>>, vector<128x4xbf16>,
    %cst_13 = arith.constant dense<0.000000e+00> : vector<4xf32>
    %37 = vector.multi_reduction <add>, %34, %cst_13 [0] : vector<128x4xf32> to vector<4xf32>
    %38 = vector.shape_cast %37 : vector<4xf32> to vector<1x4xf32>
    %39 = arith.mulf %34, %34 : vector<128x4xf32>
    %cst_14 = arith.constant dense<0.000000e+00> : vector<4xf32>
    %40 = vector.multi_reduction <add>, %39, %cst_14 [0] : vector<128x4xf32> to vector<4xf32>
    %41 = vector.shape_cast %40 : vector<4xf32> to vector<1x4xf32>
    %c0_15 = arith.constant 0 : index
    %c0_16 = arith.constant 0 : index
    %42 = vector.load %arg5[%c0_15, %c0_16] : memref<4x4xbf16, #tpu.memory_space<vmem>>, vector<4x4xbf16>
    %cst_17 = arith.constant dense<0.000000e+00> : vector<128x4xf32>
    %43 = tpu.matmul %5, %42, %cst_17 {dimension_numbers = #tpu.dot_dimension_numbers<[1], [0], [0], [1], [0, 0, 1, 1], [], []>} : vector<128x4xbf16>, vector<4x4xbf16>, vector<128x4xf32> -> vector<128x4xf32>
    %44 = arith.truncf %43 : vector<128x4xf32> to vector<128x4xbf16>
    %c0_18 = arith.constant 0 : index
    %c0_19 = arith.constant 0 : index
    %45 = vector.load %arg9[%c0_18, %c0_19] : memref<128x4xbf16, #tpu.memory_space<vmem>>, vector<128x4xbf16>
    tpu.vector_store %arg9[%c0_18, %c0_19], %44 {strides = array<i32>} : memref<128x4xbf16, #tpu.memory_space<vmem>>, vector<128x4xbf16>,
    %cst_20 = arith.constant dense<0.000000e+00> : vector<4xf32>
    %46 = vector.multi_reduction <add>, %43, %cst_20 [0] : vector<128x4xf32> to vector<4xf32>
    %47 = vector.shape_cast %46 : vector<4xf32> to vector<1x4xf32>
    %48 = arith.mulf %43, %43 : vector<128x4xf32>
    %cst_21 = arith.constant dense<0.000000e+00> : vector<4xf32>
    %49 = vector.multi_reduction <add>, %48, %cst_21 [0] : vector<128x4xf32> to vector<4xf32>
    %50 = vector.shape_cast %49 : vector<4xf32> to vector<1x4xf32>
    %c0_22 = arith.constant 0 : index
    %c0_23 = arith.constant 0 : index
    %51 = vector.load %arg6[%c0_22, %c0_23] : memref<4x8xbf16, #tpu.memory_space<vmem>>, vector<4x8xbf16>
    %cst_24 = arith.constant dense<0.000000e+00> : vector<128x8xf32>
    %52 = tpu.matmul %23, %51, %cst_24 {dimension_numbers = #tpu.dot_dimension_numbers<[1], [0], [0], [1], [0, 0, 1, 1], [], []>} : vector<128x4xbf16>, vector<4x8xbf16>, vector<128x8xf32> -> vector<128x8xf32>
    %53 = arith.truncf %52 : vector<128x8xf32> to vector<128x8xbf16>
    %c0_25 = arith.constant 0 : index
    %c0_26 = arith.constant 0 : index
    %54 = vector.load %arg10[%c0_25, %c0_26] : memref<128x8xbf16, #tpu.memory_space<vmem>>, vector<128x8xbf16>
    tpu.vector_store %arg10[%c0_25, %c0_26], %53 {strides = array<i32>} : memref<128x8xbf16, #tpu.memory_space<vmem>>, vector<128x8xbf16>,
    %cst_27 = arith.constant dense<0.000000e+00> : vector<8xf32>
    %55 = vector.multi_reduction <add>, %52, %cst_27 [0] : vector<128x8xf32> to vector<8xf32>
    %56 = vector.shape_cast %55 : vector<8xf32> to vector<1x8xf32>
    %57 = arith.mulf %52, %52 : vector<128x8xf32>
    %cst_28 = arith.constant dense<0.000000e+00> : vector<8xf32>
    %58 = vector.multi_reduction <add>, %57, %cst_28 [0] : vector<128x8xf32> to vector<8xf32>
    %59 = vector.shape_cast %58 : vector<8xf32> to vector<1x8xf32>
    %60 = tpu.concatenate %29, %38, %47, %56 in 1 : vector<1x8xf32>, vector<1x4xf32>, vector<1x4xf32>, vector<1x8xf32> -> vector<1x24xf32>
    %61 = tpu.concatenate %32, %41, %50, %59 in 1 : vector<1x8xf32>, vector<1x4xf32>, vector<1x4xf32>, vector<1x8xf32> -> vector<1x24xf32>
    %62 = tpu.concatenate %60, %61 in 0 : vector<1x24xf32>, vector<1x24xf32> -> vector<2x24xf32>
    %63 = vector.shape_cast %62 : vector<2x24xf32> to vector<1x2x24xf32>
    %c0_29 = arith.constant 0 : index
    %c0_30 = arith.constant 0 : index
    %c0_31 = arith.constant 0 : index
    %64 = vector.load %arg11[%c0_29, %c0_30, %c0_31] : memref<1x2x24xf32, #tpu.memory_space<vmem>>, vector<1x2x24xf32>
    tpu.vector_store %arg11[%c0_29, %c0_30, %c0_31], %63 {strides = array<i32>} : memref<1x2x24xf32, #tpu.memory_space<vmem>>, vector<1x2x24xf32>,
    return
  }
  func.func @transform_0(%arg0: i32, %arg1: i32) -> (i32, i32, i32, i32) {
    %c0_i32 = arith.constant 0 : i32
    %c0_i32_0 = arith.constant 0 : i32
    %c0_i32_1 = arith.constant 0 : i32
    %c0_i32_2 = arith.constant 0 : i32
    return %arg0, %c0_i32, %c0_i32_0, %c0_i32_1 : i32, i32, i32, i32
  }
  func.func @transform_1(%arg0: i32, %arg1: i32) -> (i32, i32) {
    %c0_i32 = arith.constant 0 : i32
    %c0_i32_0 = arith.constant 0 : i32
    %c0_i32_1 = arith.constant 0 : i32
    return %c0_i32, %c0_i32_0 : i32, i32
  }
  func.func @transform_2(%arg0: i32, %arg1: i32) -> (i32, i32) {
    %c0_i32 = arith.constant 0 : i32
    %c0_i32_0 = arith.constant 0 : i32
    %c0_i32_1 = arith.constant 0 : i32
    return %c0_i32, %c0_i32_0 : i32, i32
  }
  func.func @transform_3(%arg0: i32, %arg1: i32) -> (i32, i32) {
    %c0_i32 = arith.constant 0 : i32
    %c0_i32_0 = arith.constant 0 : i32
    %c0_i32_1 = arith.constant 0 : i32
    return %c0_i32, %c0_i32_0 : i32, i32
  }
  func.func @transform_4(%arg0: i32, %arg1: i32) -> (i32, i32) {
    %c0_i32 = arith.constant 0 : i32
    %c0_i32_0 = arith.constant 0 : i32
    %c0_i32_1 = arith.constant 0 : i32
    return %c0_i32, %c0_i32_0 : i32, i32
  }
  func.func @transform_5(%arg0: i32, %arg1: i32) -> (i32, i32) {
    %c2_i32 = arith.constant 2 : i32
    %0 = arith.muli %arg0, %c2_i32 : i32
    %1 = arith.addi %0, %arg1 : i32
    %c0_i32 = arith.constant 0 : i32
    %c0_i32_0 = arith.constant 0 : i32
    return %1, %c0_i32 : i32, i32
  }
  func.func @transform_6(%arg0: i32, %arg1: i32) -> (i32, i32) {
    %c2_i32 = arith.constant 2 : i32
    %0 = arith.muli %arg0, %c2_i32 : i32
    %1 = arith.addi %0, %arg1 : i32
    %c0_i32 = arith.constant 0 : i32
    %c0_i32_0 = arith.constant 0 : i32
    return %1, %c0_i32 : i32, i32
  }
  func.func @transform_7(%arg0: i32, %arg1: i32) -> (i32, i32) {
    %c2_i32 = arith.constant 2 : i32
    %0 = arith.muli %arg0, %c2_i32 : i32
    %1 = arith.addi %0, %arg1 : i32
    %c0_i32 = arith.constant 0 : i32
    %c0_i32_0 = arith.constant 0 : i32
    return %1, %c0_i32 : i32, i32
  }
  func.func @transform_8(%arg0: i32, %arg1: i32) -> (i32, i32) {
    %c2_i32 = arith.constant 2 : i32
    %0 = arith.muli %arg0, %c2_i32 : i32
    %1 = arith.addi %0, %arg1 : i32
    %c0_i32 = arith.constant 0 : i32
    %c0_i32_0 = arith.constant 0 : i32
    return %1, %c0_i32 : i32, i32
  }
  func.func @transform_9(%arg0: i32, %arg1: i32) -> (i32, i32, i32) {
    %c2_i32 = arith.constant 2 : i32
    %0 = arith.muli %arg0, %c2_i32 : i32
    %1 = arith.addi %0, %arg1 : i32
    %c0_i32 = arith.constant 0 : i32
    %c0_i32_0 = arith.constant 0 : i32
    %c0_i32_1 = arith.constant 0 : i32
    return %1, %c0_i32, %c0_i32_0 : i32, i32, i32
  }
}

module attributes {stable_mosaic.version = 11 : i64} {
  func.func @kernel(%arg0: i32, %arg1: memref<256x4xbf16, #tpu.memory_space<vmem>>, %arg2: memref<1x4xf32, #tpu.memory_space<vmem>>, %arg3: memref<1x4xf32, #tpu.memory_space<vmem>>, %arg4: memref<1x18x18x4xbf16, #tpu.memory_space<vmem>>) attributes {dimension_semantics = [#tpu.dimension_semantics<parallel>], iteration_bounds = array<i64: 2>, scalar_prefetch = 0 : i64, scratch_operands = 0 : i64, tpu.core_type = #tpu.core_type<tc>, window_params = [{transform_indices = @transform_0, window_bounds = array<i64: 256, 4>}, {pipeline_mode = #tpu.pipeline_mode<synchronous>, transform_indices = @transform_1, window_bounds = array<i64: 1, 4>}, {pipeline_mode = #tpu.pipeline_mode<synchronous>, transform_indices = @transform_2, window_bounds = array<i64: 1, 4>}, {transform_indices = @transform_3, window_bounds = array<i64: 1, 18, 18, 4>}]} {
    %cst = arith.constant 0.000000e+00 : bf16
    %0 = vector.broadcast %cst : bf16 to vector<1x18x18x4xbf16>
    %c0 = arith.constant 0 : index
    %c0_0 = arith.constant 0 : index
    %c0_1 = arith.constant 0 : index
    %c0_2 = arith.constant 0 : index
    %1 = vector.load %arg4[%c0, %c0_0, %c0_1, %c0_2] : memref<1x18x18x4xbf16, #tpu.memory_space<vmem>>, vector<1x18x18x4xbf16>
    tpu.vector_store %arg4[%c0, %c0_0, %c0_1, %c0_2], %0 {strides = array<i32>} : memref<1x18x18x4xbf16, #tpu.memory_space<vmem>>, vector<1x18x18x4xbf16>,
    %c0_3 = arith.constant 0 : index
    %c0_4 = arith.constant 0 : index
    %2 = vector.load %arg1[%c0_3, %c0_4] : memref<256x4xbf16, #tpu.memory_space<vmem>>, vector<256x4xbf16>
    %3 = arith.extf %2 : vector<256x4xbf16> to vector<256x4xf32>
    %c0_5 = arith.constant 0 : index
    %c0_6 = arith.constant 0 : index
    %4 = vector.load %arg2[%c0_5, %c0_6] : memref<1x4xf32, #tpu.memory_space<vmem>>, vector<1x4xf32>
    %5 = vector.broadcast %4 : vector<1x4xf32> to vector<256x4xf32>
    %6 = arith.mulf %3, %5 : vector<256x4xf32>
    %c0_7 = arith.constant 0 : index
    %c0_8 = arith.constant 0 : index
    %7 = vector.load %arg3[%c0_7, %c0_8] : memref<1x4xf32, #tpu.memory_space<vmem>>, vector<1x4xf32>
    %8 = vector.broadcast %7 : vector<1x4xf32> to vector<256x4xf32>
    %9 = arith.addf %6, %8 : vector<256x4xf32>
    %cst_9 = arith.constant 0.000000e+00 : f32
    %10 = vector.broadcast %cst_9 : f32 to vector<256x4xf32>
    %11 = arith.maximumf %9, %10 : vector<256x4xf32>
    %12 = arith.truncf %11 : vector<256x4xf32> to vector<256x4xbf16>
    %13 = vector.shape_cast %12 : vector<256x4xbf16> to vector<16x16x4xbf16>
    %c0_10 = arith.constant 0 : index
    %c1 = arith.constant 1 : index
    %c1_11 = arith.constant 1 : index
    %c0_12 = arith.constant 0 : index
    %14 = vector.load %arg4[%c0_10, %c1, %c1_11, %c0_12] : memref<1x18x18x4xbf16, #tpu.memory_space<vmem>>, vector<1x16x16x4xbf16>
    %15 = vector.shape_cast %14 : vector<1x16x16x4xbf16> to vector<16x16x4xbf16>
    %16 = vector.shape_cast %13 : vector<16x16x4xbf16> to vector<1x16x16x4xbf16>
    tpu.vector_store %arg4[%c0_10, %c1, %c1_11, %c0_12], %16 {strides = array<i32>} : memref<1x18x18x4xbf16, #tpu.memory_space<vmem>>, vector<1x16x16x4xbf16>,
    return
  }
  func.func @transform_0(%arg0: i32) -> (i32, i32) {
    %c0_i32 = arith.constant 0 : i32
    %c0_i32_0 = arith.constant 0 : i32
    return %arg0, %c0_i32 : i32, i32
  }
  func.func @transform_1(%arg0: i32) -> (i32, i32) {
    %c0_i32 = arith.constant 0 : i32
    %c0_i32_0 = arith.constant 0 : i32
    %c0_i32_1 = arith.constant 0 : i32
    return %c0_i32, %c0_i32_0 : i32, i32
  }
  func.func @transform_2(%arg0: i32) -> (i32, i32) {
    %c0_i32 = arith.constant 0 : i32
    %c0_i32_0 = arith.constant 0 : i32
    %c0_i32_1 = arith.constant 0 : i32
    return %c0_i32, %c0_i32_0 : i32, i32
  }
  func.func @transform_3(%arg0: i32) -> (i32, i32, i32, i32) {
    %c0_i32 = arith.constant 0 : i32
    %c0_i32_0 = arith.constant 0 : i32
    %c0_i32_1 = arith.constant 0 : i32
    %c0_i32_2 = arith.constant 0 : i32
    return %arg0, %c0_i32, %c0_i32_0, %c0_i32_1 : i32, i32, i32, i32
  }
}

module attributes {stable_mosaic.version = 11 : i64} {
  func.func @kernel(%arg0: i32, %arg1: i32, %arg2: memref<1x18x18x4xbf16, #tpu.memory_space<vmem>>, %arg3: memref<3x12x8xbf16, #tpu.memory_space<vmem>>, %arg4: memref<128x8xbf16, #tpu.memory_space<vmem>>, %arg5: memref<1x2x8xf32, #tpu.memory_space<vmem>>) attributes {dimension_semantics = [#tpu.dimension_semantics<parallel>, #tpu.dimension_semantics<arbitrary>], iteration_bounds = array<i64: 2, 2>, scalar_prefetch = 0 : i64, scratch_operands = 0 : i64, tpu.core_type = #tpu.core_type<tc>, window_params = [{transform_indices = @transform_0, window_bounds = array<i64: 1, 18, 18, 4>}, {pipeline_mode = #tpu.pipeline_mode<synchronous>, transform_indices = @transform_1, window_bounds = array<i64: 3, 12, 8>}, {transform_indices = @transform_2, window_bounds = array<i64: 128, 8>}, {transform_indices = @transform_3, window_bounds = array<i64: 1, 2, 8>}]} {
    %c8_i32 = arith.constant 8 : i32
    %0 = arith.muli %arg1, %c8_i32 : i32
    %1 = tpu.assume_multiple %0, 8 : i32
    %cst = arith.constant 0.000000e+00 : f32
    %2 = vector.broadcast %cst : f32 to vector<128x8xf32>
    %c0_i32 = arith.constant 0 : i32
    %3 = arith.addi %1, %c0_i32 : i32
    %c0 = arith.constant 0 : index
    %4 = arith.index_cast %3 : i32 to index
    %c0_0 = arith.constant 0 : index
    %c0_1 = arith.constant 0 : index
    %5 = vector.load %arg2[%c0, %4, %c0_0, %c0_1] : memref<1x18x18x4xbf16, #tpu.memory_space<vmem>>, vector<1x8x18x4xbf16>
    %6 = vector.extract_strided_slice %5 {offsets = [0, 0, 0, 0], sizes = [1, 8, 16, 4], strides = [1, 1, 1, 1]} : vector<1x8x18x4xbf16> to vector<1x8x16x4xbf16>
    %7 = vector.extract_strided_slice %5 {offsets = [0, 0, 1, 0], sizes = [1, 8, 16, 4], strides = [1, 1, 1, 1]} : vector<1x8x18x4xbf16> to vector<1x8x16x4xbf16>
    %8 = vector.extract_strided_slice %5 {offsets = [0, 0, 2, 0], sizes = [1, 8, 16, 4], strides = [1, 1, 1, 1]} : vector<1x8x18x4xbf16> to vector<1x8x16x4xbf16>
    %9 = tpu.concatenate %6, %7, %8 in 3 : vector<1x8x16x4xbf16>, vector<1x8x16x4xbf16>, vector<1x8x16x4xbf16> -> vector<1x8x16x12xbf16>
    %10 = vector.shape_cast %9 : vector<1x8x16x12xbf16> to vector<128x12xbf16>
    %c0_2 = arith.constant 0 : index
    %c0_3 = arith.constant 0 : index
    %c0_4 = arith.constant 0 : index
    %11 = vector.load %arg3[%c0_2, %c0_3, %c0_4] : memref<3x12x8xbf16, #tpu.memory_space<vmem>>, vector<1x12x8xbf16>
    %12 = vector.shape_cast %11 : vector<1x12x8xbf16> to vector<12x8xbf16>
    %cst_5 = arith.constant dense<0.000000e+00> : vector<128x8xf32>
    %13 = tpu.matmul %10, %12, %cst_5 {dimension_numbers = #tpu.dot_dimension_numbers<[1], [0], [0], [1], [0, 0, 1, 1], [], []>} : vector<128x12xbf16>, vector<12x8xbf16>, vector<128x8xf32> -> vector<128x8xf32>
    %14 = arith.addf %2, %13 : vector<128x8xf32>
    %c1_i32 = arith.constant 1 : i32
    %15 = arith.addi %1, %c1_i32 : i32
    %c0_6 = arith.constant 0 : index
    %16 = arith.index_cast %15 : i32 to index
    %c0_7 = arith.constant 0 : index
    %c0_8 = arith.constant 0 : index
    %17 = vector.load %arg2[%c0_6, %16, %c0_7, %c0_8] : memref<1x18x18x4xbf16, #tpu.memory_space<vmem>>, vector<1x8x18x4xbf16>
    %18 = vector.extract_strided_slice %17 {offsets = [0, 0, 0, 0], sizes = [1, 8, 16, 4], strides = [1, 1, 1, 1]} : vector<1x8x18x4xbf16> to vector<1x8x16x4xbf16>
    %19 = vector.extract_strided_slice %17 {offsets = [0, 0, 1, 0], sizes = [1, 8, 16, 4], strides = [1, 1, 1, 1]} : vector<1x8x18x4xbf16> to vector<1x8x16x4xbf16>
    %20 = vector.extract_strided_slice %17 {offsets = [0, 0, 2, 0], sizes = [1, 8, 16, 4], strides = [1, 1, 1, 1]} : vector<1x8x18x4xbf16> to vector<1x8x16x4xbf16>
    %21 = tpu.concatenate %18, %19, %20 in 3 : vector<1x8x16x4xbf16>, vector<1x8x16x4xbf16>, vector<1x8x16x4xbf16> -> vector<1x8x16x12xbf16>
    %22 = vector.shape_cast %21 : vector<1x8x16x12xbf16> to vector<128x12xbf16>
    %c1 = arith.constant 1 : index
    %c0_9 = arith.constant 0 : index
    %c0_10 = arith.constant 0 : index
    %23 = vector.load %arg3[%c1, %c0_9, %c0_10] : memref<3x12x8xbf16, #tpu.memory_space<vmem>>, vector<1x12x8xbf16>
    %24 = vector.shape_cast %23 : vector<1x12x8xbf16> to vector<12x8xbf16>
    %cst_11 = arith.constant dense<0.000000e+00> : vector<128x8xf32>
    %25 = tpu.matmul %22, %24, %cst_11 {dimension_numbers = #tpu.dot_dimension_numbers<[1], [0], [0], [1], [0, 0, 1, 1], [], []>} : vector<128x12xbf16>, vector<12x8xbf16>, vector<128x8xf32> -> vector<128x8xf32>
    %26 = arith.addf %14, %25 : vector<128x8xf32>
    %c2_i32 = arith.constant 2 : i32
    %27 = arith.addi %1, %c2_i32 : i32
    %c0_12 = arith.constant 0 : index
    %28 = arith.index_cast %27 : i32 to index
    %c0_13 = arith.constant 0 : index
    %c0_14 = arith.constant 0 : index
    %29 = vector.load %arg2[%c0_12, %28, %c0_13, %c0_14] : memref<1x18x18x4xbf16, #tpu.memory_space<vmem>>, vector<1x8x18x4xbf16>
    %30 = vector.extract_strided_slice %29 {offsets = [0, 0, 0, 0], sizes = [1, 8, 16, 4], strides = [1, 1, 1, 1]} : vector<1x8x18x4xbf16> to vector<1x8x16x4xbf16>
    %31 = vector.extract_strided_slice %29 {offsets = [0, 0, 1, 0], sizes = [1, 8, 16, 4], strides = [1, 1, 1, 1]} : vector<1x8x18x4xbf16> to vector<1x8x16x4xbf16>
    %32 = vector.extract_strided_slice %29 {offsets = [0, 0, 2, 0], sizes = [1, 8, 16, 4], strides = [1, 1, 1, 1]} : vector<1x8x18x4xbf16> to vector<1x8x16x4xbf16>
    %33 = tpu.concatenate %30, %31, %32 in 3 : vector<1x8x16x4xbf16>, vector<1x8x16x4xbf16>, vector<1x8x16x4xbf16> -> vector<1x8x16x12xbf16>
    %34 = vector.shape_cast %33 : vector<1x8x16x12xbf16> to vector<128x12xbf16>
    %c2 = arith.constant 2 : index
    %c0_15 = arith.constant 0 : index
    %c0_16 = arith.constant 0 : index
    %35 = vector.load %arg3[%c2, %c0_15, %c0_16] : memref<3x12x8xbf16, #tpu.memory_space<vmem>>, vector<1x12x8xbf16>
    %36 = vector.shape_cast %35 : vector<1x12x8xbf16> to vector<12x8xbf16>
    %cst_17 = arith.constant dense<0.000000e+00> : vector<128x8xf32>
    %37 = tpu.matmul %34, %36, %cst_17 {dimension_numbers = #tpu.dot_dimension_numbers<[1], [0], [0], [1], [0, 0, 1, 1], [], []>} : vector<128x12xbf16>, vector<12x8xbf16>, vector<128x8xf32> -> vector<128x8xf32>
    %38 = arith.addf %26, %37 : vector<128x8xf32>
    %39 = arith.truncf %38 : vector<128x8xf32> to vector<128x8xbf16>
    %c0_18 = arith.constant 0 : index
    %c0_19 = arith.constant 0 : index
    %40 = vector.load %arg4[%c0_18, %c0_19] : memref<128x8xbf16, #tpu.memory_space<vmem>>, vector<128x8xbf16>
    tpu.vector_store %arg4[%c0_18, %c0_19], %39 {strides = array<i32>} : memref<128x8xbf16, #tpu.memory_space<vmem>>, vector<128x8xbf16>,
    %cst_20 = arith.constant dense<0.000000e+00> : vector<8xf32>
    %41 = vector.multi_reduction <add>, %38, %cst_20 [0] : vector<128x8xf32> to vector<8xf32>
    %42 = vector.shape_cast %41 : vector<8xf32> to vector<1x8xf32>
    %43 = arith.mulf %38, %38 : vector<128x8xf32>
    %cst_21 = arith.constant dense<0.000000e+00> : vector<8xf32>
    %44 = vector.multi_reduction <add>, %43, %cst_21 [0] : vector<128x8xf32> to vector<8xf32>
    %45 = vector.shape_cast %44 : vector<8xf32> to vector<1x8xf32>
    %46 = tpu.concatenate %42, %45 in 0 : vector<1x8xf32>, vector<1x8xf32> -> vector<2x8xf32>
    %47 = vector.shape_cast %46 : vector<2x8xf32> to vector<1x2x8xf32>
    %c0_22 = arith.constant 0 : index
    %c0_23 = arith.constant 0 : index
    %c0_24 = arith.constant 0 : index
    %48 = vector.load %arg5[%c0_22, %c0_23, %c0_24] : memref<1x2x8xf32, #tpu.memory_space<vmem>>, vector<1x2x8xf32>
    tpu.vector_store %arg5[%c0_22, %c0_23, %c0_24], %47 {strides = array<i32>} : memref<1x2x8xf32, #tpu.memory_space<vmem>>, vector<1x2x8xf32>,
    return
  }
  func.func @transform_0(%arg0: i32, %arg1: i32) -> (i32, i32, i32, i32) {
    %c0_i32 = arith.constant 0 : i32
    %c0_i32_0 = arith.constant 0 : i32
    %c0_i32_1 = arith.constant 0 : i32
    %c0_i32_2 = arith.constant 0 : i32
    return %arg0, %c0_i32, %c0_i32_0, %c0_i32_1 : i32, i32, i32, i32
  }
  func.func @transform_1(%arg0: i32, %arg1: i32) -> (i32, i32, i32) {
    %c0_i32 = arith.constant 0 : i32
    %c0_i32_0 = arith.constant 0 : i32
    %c0_i32_1 = arith.constant 0 : i32
    %c0_i32_2 = arith.constant 0 : i32
    return %c0_i32, %c0_i32_0, %c0_i32_1 : i32, i32, i32
  }
  func.func @transform_2(%arg0: i32, %arg1: i32) -> (i32, i32) {
    %c2_i32 = arith.constant 2 : i32
    %0 = arith.muli %arg0, %c2_i32 : i32
    %1 = arith.addi %0, %arg1 : i32
    %c0_i32 = arith.constant 0 : i32
    %c0_i32_0 = arith.constant 0 : i32
    return %1, %c0_i32 : i32, i32
  }
  func.func @transform_3(%arg0: i32, %arg1: i32) -> (i32, i32, i32) {
    %c2_i32 = arith.constant 2 : i32
    %0 = arith.muli %arg0, %c2_i32 : i32
    %1 = arith.addi %0, %arg1 : i32
    %c0_i32 = arith.constant 0 : i32
    %c0_i32_0 = arith.constant 0 : i32
    %c0_i32_1 = arith.constant 0 : i32
    return %1, %c0_i32, %c0_i32_0 : i32, i32, i32
  }
}

module attributes {stable_mosaic.version = 11 : i64} {
  func.func @kernel(%arg0: i32, %arg1: memref<256x4xbf16, #tpu.memory_space<vmem>>, %arg2: memref<1x4xf32, #tpu.memory_space<vmem>>, %arg3: memref<1x4xf32, #tpu.memory_space<vmem>>, %arg4: memref<1x20x20x4xbf16, #tpu.memory_space<vmem>>) attributes {dimension_semantics = [#tpu.dimension_semantics<parallel>], iteration_bounds = array<i64: 2>, scalar_prefetch = 0 : i64, scratch_operands = 0 : i64, tpu.core_type = #tpu.core_type<tc>, window_params = [{transform_indices = @transform_0, window_bounds = array<i64: 256, 4>}, {pipeline_mode = #tpu.pipeline_mode<synchronous>, transform_indices = @transform_1, window_bounds = array<i64: 1, 4>}, {pipeline_mode = #tpu.pipeline_mode<synchronous>, transform_indices = @transform_2, window_bounds = array<i64: 1, 4>}, {transform_indices = @transform_3, window_bounds = array<i64: 1, 20, 20, 4>}]} {
    %cst = arith.constant 0.000000e+00 : bf16
    %0 = vector.broadcast %cst : bf16 to vector<1x20x20x4xbf16>
    %c0 = arith.constant 0 : index
    %c0_0 = arith.constant 0 : index
    %c0_1 = arith.constant 0 : index
    %c0_2 = arith.constant 0 : index
    %1 = vector.load %arg4[%c0, %c0_0, %c0_1, %c0_2] : memref<1x20x20x4xbf16, #tpu.memory_space<vmem>>, vector<1x20x20x4xbf16>
    tpu.vector_store %arg4[%c0, %c0_0, %c0_1, %c0_2], %0 {strides = array<i32>} : memref<1x20x20x4xbf16, #tpu.memory_space<vmem>>, vector<1x20x20x4xbf16>,
    %c0_3 = arith.constant 0 : index
    %c0_4 = arith.constant 0 : index
    %2 = vector.load %arg1[%c0_3, %c0_4] : memref<256x4xbf16, #tpu.memory_space<vmem>>, vector<256x4xbf16>
    %3 = arith.extf %2 : vector<256x4xbf16> to vector<256x4xf32>
    %c0_5 = arith.constant 0 : index
    %c0_6 = arith.constant 0 : index
    %4 = vector.load %arg2[%c0_5, %c0_6] : memref<1x4xf32, #tpu.memory_space<vmem>>, vector<1x4xf32>
    %5 = vector.broadcast %4 : vector<1x4xf32> to vector<256x4xf32>
    %6 = arith.mulf %3, %5 : vector<256x4xf32>
    %c0_7 = arith.constant 0 : index
    %c0_8 = arith.constant 0 : index
    %7 = vector.load %arg3[%c0_7, %c0_8] : memref<1x4xf32, #tpu.memory_space<vmem>>, vector<1x4xf32>
    %8 = vector.broadcast %7 : vector<1x4xf32> to vector<256x4xf32>
    %9 = arith.addf %6, %8 : vector<256x4xf32>
    %cst_9 = arith.constant 0.000000e+00 : f32
    %10 = vector.broadcast %cst_9 : f32 to vector<256x4xf32>
    %11 = arith.maximumf %9, %10 : vector<256x4xf32>
    %12 = arith.truncf %11 : vector<256x4xf32> to vector<256x4xbf16>
    %13 = vector.shape_cast %12 : vector<256x4xbf16> to vector<16x16x4xbf16>
    %c0_10 = arith.constant 0 : index
    %c2 = arith.constant 2 : index
    %c2_11 = arith.constant 2 : index
    %c0_12 = arith.constant 0 : index
    %14 = vector.load %arg4[%c0_10, %c2, %c2_11, %c0_12] : memref<1x20x20x4xbf16, #tpu.memory_space<vmem>>, vector<1x16x16x4xbf16>
    %15 = vector.shape_cast %14 : vector<1x16x16x4xbf16> to vector<16x16x4xbf16>
    %16 = vector.shape_cast %13 : vector<16x16x4xbf16> to vector<1x16x16x4xbf16>
    tpu.vector_store %arg4[%c0_10, %c2, %c2_11, %c0_12], %16 {strides = array<i32>} : memref<1x20x20x4xbf16, #tpu.memory_space<vmem>>, vector<1x16x16x4xbf16>,
    return
  }
  func.func @transform_0(%arg0: i32) -> (i32, i32) {
    %c0_i32 = arith.constant 0 : i32
    %c0_i32_0 = arith.constant 0 : i32
    return %arg0, %c0_i32 : i32, i32
  }
  func.func @transform_1(%arg0: i32) -> (i32, i32) {
    %c0_i32 = arith.constant 0 : i32
    %c0_i32_0 = arith.constant 0 : i32
    %c0_i32_1 = arith.constant 0 : i32
    return %c0_i32, %c0_i32_0 : i32, i32
  }
  func.func @transform_2(%arg0: i32) -> (i32, i32) {
    %c0_i32 = arith.constant 0 : i32
    %c0_i32_0 = arith.constant 0 : i32
    %c0_i32_1 = arith.constant 0 : i32
    return %c0_i32, %c0_i32_0 : i32, i32
  }
  func.func @transform_3(%arg0: i32) -> (i32, i32, i32, i32) {
    %c0_i32 = arith.constant 0 : i32
    %c0_i32_0 = arith.constant 0 : i32
    %c0_i32_1 = arith.constant 0 : i32
    %c0_i32_2 = arith.constant 0 : i32
    return %arg0, %c0_i32, %c0_i32_0, %c0_i32_1 : i32, i32, i32, i32
  }
}

module attributes {stable_mosaic.version = 11 : i64} {
  func.func @kernel(%arg0: i32, %arg1: i32, %arg2: memref<1x20x20x4xbf16, #tpu.memory_space<vmem>>, %arg3: memref<5x20x8xbf16, #tpu.memory_space<vmem>>, %arg4: memref<128x8xbf16, #tpu.memory_space<vmem>>, %arg5: memref<1x2x8xf32, #tpu.memory_space<vmem>>) attributes {dimension_semantics = [#tpu.dimension_semantics<parallel>, #tpu.dimension_semantics<arbitrary>], iteration_bounds = array<i64: 2, 2>, scalar_prefetch = 0 : i64, scratch_operands = 0 : i64, tpu.core_type = #tpu.core_type<tc>, window_params = [{transform_indices = @transform_0, window_bounds = array<i64: 1, 20, 20, 4>}, {pipeline_mode = #tpu.pipeline_mode<synchronous>, transform_indices = @transform_1, window_bounds = array<i64: 5, 20, 8>}, {transform_indices = @transform_2, window_bounds = array<i64: 128, 8>}, {transform_indices = @transform_3, window_bounds = array<i64: 1, 2, 8>}]} {
    %c8_i32 = arith.constant 8 : i32
    %0 = arith.muli %arg1, %c8_i32 : i32
    %1 = tpu.assume_multiple %0, 8 : i32
    %cst = arith.constant 0.000000e+00 : f32
    %2 = vector.broadcast %cst : f32 to vector<128x8xf32>
    %c0_i32 = arith.constant 0 : i32
    %3 = arith.addi %1, %c0_i32 : i32
    %c0 = arith.constant 0 : index
    %4 = arith.index_cast %3 : i32 to index
    %c0_0 = arith.constant 0 : index
    %c0_1 = arith.constant 0 : index
    %5 = vector.load %arg2[%c0, %4, %c0_0, %c0_1] : memref<1x20x20x4xbf16, #tpu.memory_space<vmem>>, vector<1x8x20x4xbf16>
    %6 = vector.extract_strided_slice %5 {offsets = [0, 0, 0, 0], sizes = [1, 8, 16, 4], strides = [1, 1, 1, 1]} : vector<1x8x20x4xbf16> to vector<1x8x16x4xbf16>
    %7 = vector.extract_strided_slice %5 {offsets = [0, 0, 1, 0], sizes = [1, 8, 16, 4], strides = [1, 1, 1, 1]} : vector<1x8x20x4xbf16> to vector<1x8x16x4xbf16>
    %8 = vector.extract_strided_slice %5 {offsets = [0, 0, 2, 0], sizes = [1, 8, 16, 4], strides = [1, 1, 1, 1]} : vector<1x8x20x4xbf16> to vector<1x8x16x4xbf16>
    %9 = vector.extract_strided_slice %5 {offsets = [0, 0, 3, 0], sizes = [1, 8, 16, 4], strides = [1, 1, 1, 1]} : vector<1x8x20x4xbf16> to vector<1x8x16x4xbf16>
    %10 = vector.extract_strided_slice %5 {offsets = [0, 0, 4, 0], sizes = [1, 8, 16, 4], strides = [1, 1, 1, 1]} : vector<1x8x20x4xbf16> to vector<1x8x16x4xbf16>
    %11 = tpu.concatenate %6, %7, %8, %9, %10 in 3 : vector<1x8x16x4xbf16>, vector<1x8x16x4xbf16>, vector<1x8x16x4xbf16>, vector<1x8x16x4xbf16>, vector<1x8x16x4xbf16> -> vector<1x8x16x20xbf16>
    %12 = vector.shape_cast %11 : vector<1x8x16x20xbf16> to vector<128x20xbf16>
    %c0_2 = arith.constant 0 : index
    %c0_3 = arith.constant 0 : index
    %c0_4 = arith.constant 0 : index
    %13 = vector.load %arg3[%c0_2, %c0_3, %c0_4] : memref<5x20x8xbf16, #tpu.memory_space<vmem>>, vector<1x20x8xbf16>
    %14 = vector.shape_cast %13 : vector<1x20x8xbf16> to vector<20x8xbf16>
    %cst_5 = arith.constant dense<0.000000e+00> : vector<128x8xf32>
    %15 = tpu.matmul %12, %14, %cst_5 {dimension_numbers = #tpu.dot_dimension_numbers<[1], [0], [0], [1], [0, 0, 1, 1], [], []>} : vector<128x20xbf16>, vector<20x8xbf16>, vector<128x8xf32> -> vector<128x8xf32>
    %16 = arith.addf %2, %15 : vector<128x8xf32>
    %c1_i32 = arith.constant 1 : i32
    %17 = arith.addi %1, %c1_i32 : i32
    %c0_6 = arith.constant 0 : index
    %18 = arith.index_cast %17 : i32 to index
    %c0_7 = arith.constant 0 : index
    %c0_8 = arith.constant 0 : index
    %19 = vector.load %arg2[%c0_6, %18, %c0_7, %c0_8] : memref<1x20x20x4xbf16, #tpu.memory_space<vmem>>, vector<1x8x20x4xbf16>
    %20 = vector.extract_strided_slice %19 {offsets = [0, 0, 0, 0], sizes = [1, 8, 16, 4], strides = [1, 1, 1, 1]} : vector<1x8x20x4xbf16> to vector<1x8x16x4xbf16>
    %21 = vector.extract_strided_slice %19 {offsets = [0, 0, 1, 0], sizes = [1, 8, 16, 4], strides = [1, 1, 1, 1]} : vector<1x8x20x4xbf16> to vector<1x8x16x4xbf16>
    %22 = vector.extract_strided_slice %19 {offsets = [0, 0, 2, 0], sizes = [1, 8, 16, 4], strides = [1, 1, 1, 1]} : vector<1x8x20x4xbf16> to vector<1x8x16x4xbf16>
    %23 = vector.extract_strided_slice %19 {offsets = [0, 0, 3, 0], sizes = [1, 8, 16, 4], strides = [1, 1, 1, 1]} : vector<1x8x20x4xbf16> to vector<1x8x16x4xbf16>
    %24 = vector.extract_strided_slice %19 {offsets = [0, 0, 4, 0], sizes = [1, 8, 16, 4], strides = [1, 1, 1, 1]} : vector<1x8x20x4xbf16> to vector<1x8x16x4xbf16>
    %25 = tpu.concatenate %20, %21, %22, %23, %24 in 3 : vector<1x8x16x4xbf16>, vector<1x8x16x4xbf16>, vector<1x8x16x4xbf16>, vector<1x8x16x4xbf16>, vector<1x8x16x4xbf16> -> vector<1x8x16x20xbf16>
    %26 = vector.shape_cast %25 : vector<1x8x16x20xbf16> to vector<128x20xbf16>
    %c1 = arith.constant 1 : index
    %c0_9 = arith.constant 0 : index
    %c0_10 = arith.constant 0 : index
    %27 = vector.load %arg3[%c1, %c0_9, %c0_10] : memref<5x20x8xbf16, #tpu.memory_space<vmem>>, vector<1x20x8xbf16>
    %28 = vector.shape_cast %27 : vector<1x20x8xbf16> to vector<20x8xbf16>
    %cst_11 = arith.constant dense<0.000000e+00> : vector<128x8xf32>
    %29 = tpu.matmul %26, %28, %cst_11 {dimension_numbers = #tpu.dot_dimension_numbers<[1], [0], [0], [1], [0, 0, 1, 1], [], []>} : vector<128x20xbf16>, vector<20x8xbf16>, vector<128x8xf32> -> vector<128x8xf32>
    %30 = arith.addf %16, %29 : vector<128x8xf32>
    %c2_i32 = arith.constant 2 : i32
    %31 = arith.addi %1, %c2_i32 : i32
    %c0_12 = arith.constant 0 : index
    %32 = arith.index_cast %31 : i32 to index
    %c0_13 = arith.constant 0 : index
    %c0_14 = arith.constant 0 : index
    %33 = vector.load %arg2[%c0_12, %32, %c0_13, %c0_14] : memref<1x20x20x4xbf16, #tpu.memory_space<vmem>>, vector<1x8x20x4xbf16>
    %34 = vector.extract_strided_slice %33 {offsets = [0, 0, 0, 0], sizes = [1, 8, 16, 4], strides = [1, 1, 1, 1]} : vector<1x8x20x4xbf16> to vector<1x8x16x4xbf16>
    %35 = vector.extract_strided_slice %33 {offsets = [0, 0, 1, 0], sizes = [1, 8, 16, 4], strides = [1, 1, 1, 1]} : vector<1x8x20x4xbf16> to vector<1x8x16x4xbf16>
    %36 = vector.extract_strided_slice %33 {offsets = [0, 0, 2, 0], sizes = [1, 8, 16, 4], strides = [1, 1, 1, 1]} : vector<1x8x20x4xbf16> to vector<1x8x16x4xbf16>
    %37 = vector.extract_strided_slice %33 {offsets = [0, 0, 3, 0], sizes = [1, 8, 16, 4], strides = [1, 1, 1, 1]} : vector<1x8x20x4xbf16> to vector<1x8x16x4xbf16>
    %38 = vector.extract_strided_slice %33 {offsets = [0, 0, 4, 0], sizes = [1, 8, 16, 4], strides = [1, 1, 1, 1]} : vector<1x8x20x4xbf16> to vector<1x8x16x4xbf16>
    %39 = tpu.concatenate %34, %35, %36, %37, %38 in 3 : vector<1x8x16x4xbf16>, vector<1x8x16x4xbf16>, vector<1x8x16x4xbf16>, vector<1x8x16x4xbf16>, vector<1x8x16x4xbf16> -> vector<1x8x16x20xbf16>
    %40 = vector.shape_cast %39 : vector<1x8x16x20xbf16> to vector<128x20xbf16>
    %c2 = arith.constant 2 : index
    %c0_15 = arith.constant 0 : index
    %c0_16 = arith.constant 0 : index
    %41 = vector.load %arg3[%c2, %c0_15, %c0_16] : memref<5x20x8xbf16, #tpu.memory_space<vmem>>, vector<1x20x8xbf16>
    %42 = vector.shape_cast %41 : vector<1x20x8xbf16> to vector<20x8xbf16>
    %cst_17 = arith.constant dense<0.000000e+00> : vector<128x8xf32>
    %43 = tpu.matmul %40, %42, %cst_17 {dimension_numbers = #tpu.dot_dimension_numbers<[1], [0], [0], [1], [0, 0, 1, 1], [], []>} : vector<128x20xbf16>, vector<20x8xbf16>, vector<128x8xf32> -> vector<128x8xf32>
    %44 = arith.addf %30, %43 : vector<128x8xf32>
    %c3_i32 = arith.constant 3 : i32
    %45 = arith.addi %1, %c3_i32 : i32
    %c0_18 = arith.constant 0 : index
    %46 = arith.index_cast %45 : i32 to index
    %c0_19 = arith.constant 0 : index
    %c0_20 = arith.constant 0 : index
    %47 = vector.load %arg2[%c0_18, %46, %c0_19, %c0_20] : memref<1x20x20x4xbf16, #tpu.memory_space<vmem>>, vector<1x8x20x4xbf16>
    %48 = vector.extract_strided_slice %47 {offsets = [0, 0, 0, 0], sizes = [1, 8, 16, 4], strides = [1, 1, 1, 1]} : vector<1x8x20x4xbf16> to vector<1x8x16x4xbf16>
    %49 = vector.extract_strided_slice %47 {offsets = [0, 0, 1, 0], sizes = [1, 8, 16, 4], strides = [1, 1, 1, 1]} : vector<1x8x20x4xbf16> to vector<1x8x16x4xbf16>
    %50 = vector.extract_strided_slice %47 {offsets = [0, 0, 2, 0], sizes = [1, 8, 16, 4], strides = [1, 1, 1, 1]} : vector<1x8x20x4xbf16> to vector<1x8x16x4xbf16>
    %51 = vector.extract_strided_slice %47 {offsets = [0, 0, 3, 0], sizes = [1, 8, 16, 4], strides = [1, 1, 1, 1]} : vector<1x8x20x4xbf16> to vector<1x8x16x4xbf16>
    %52 = vector.extract_strided_slice %47 {offsets = [0, 0, 4, 0], sizes = [1, 8, 16, 4], strides = [1, 1, 1, 1]} : vector<1x8x20x4xbf16> to vector<1x8x16x4xbf16>
    %53 = tpu.concatenate %48, %49, %50, %51, %52 in 3 : vector<1x8x16x4xbf16>, vector<1x8x16x4xbf16>, vector<1x8x16x4xbf16>, vector<1x8x16x4xbf16>, vector<1x8x16x4xbf16> -> vector<1x8x16x20xbf16>
    %54 = vector.shape_cast %53 : vector<1x8x16x20xbf16> to vector<128x20xbf16>
    %c3 = arith.constant 3 : index
    %c0_21 = arith.constant 0 : index
    %c0_22 = arith.constant 0 : index
    %55 = vector.load %arg3[%c3, %c0_21, %c0_22] : memref<5x20x8xbf16, #tpu.memory_space<vmem>>, vector<1x20x8xbf16>
    %56 = vector.shape_cast %55 : vector<1x20x8xbf16> to vector<20x8xbf16>
    %cst_23 = arith.constant dense<0.000000e+00> : vector<128x8xf32>
    %57 = tpu.matmul %54, %56, %cst_23 {dimension_numbers = #tpu.dot_dimension_numbers<[1], [0], [0], [1], [0, 0, 1, 1], [], []>} : vector<128x20xbf16>, vector<20x8xbf16>, vector<128x8xf32> -> vector<128x8xf32>
    %58 = arith.addf %44, %57 : vector<128x8xf32>
    %c4_i32 = arith.constant 4 : i32
    %59 = arith.addi %1, %c4_i32 : i32
    %c0_24 = arith.constant 0 : index
    %60 = arith.index_cast %59 : i32 to index
    %c0_25 = arith.constant 0 : index
    %c0_26 = arith.constant 0 : index
    %61 = vector.load %arg2[%c0_24, %60, %c0_25, %c0_26] : memref<1x20x20x4xbf16, #tpu.memory_space<vmem>>, vector<1x8x20x4xbf16>
    %62 = vector.extract_strided_slice %61 {offsets = [0, 0, 0, 0], sizes = [1, 8, 16, 4], strides = [1, 1, 1, 1]} : vector<1x8x20x4xbf16> to vector<1x8x16x4xbf16>
    %63 = vector.extract_strided_slice %61 {offsets = [0, 0, 1, 0], sizes = [1, 8, 16, 4], strides = [1, 1, 1, 1]} : vector<1x8x20x4xbf16> to vector<1x8x16x4xbf16>
    %64 = vector.extract_strided_slice %61 {offsets = [0, 0, 2, 0], sizes = [1, 8, 16, 4], strides = [1, 1, 1, 1]} : vector<1x8x20x4xbf16> to vector<1x8x16x4xbf16>
    %65 = vector.extract_strided_slice %61 {offsets = [0, 0, 3, 0], sizes = [1, 8, 16, 4], strides = [1, 1, 1, 1]} : vector<1x8x20x4xbf16> to vector<1x8x16x4xbf16>
    %66 = vector.extract_strided_slice %61 {offsets = [0, 0, 4, 0], sizes = [1, 8, 16, 4], strides = [1, 1, 1, 1]} : vector<1x8x20x4xbf16> to vector<1x8x16x4xbf16>
    %67 = tpu.concatenate %62, %63, %64, %65, %66 in 3 : vector<1x8x16x4xbf16>, vector<1x8x16x4xbf16>, vector<1x8x16x4xbf16>, vector<1x8x16x4xbf16>, vector<1x8x16x4xbf16> -> vector<1x8x16x20xbf16>
    %68 = vector.shape_cast %67 : vector<1x8x16x20xbf16> to vector<128x20xbf16>
    %c4 = arith.constant 4 : index
    %c0_27 = arith.constant 0 : index
    %c0_28 = arith.constant 0 : index
    %69 = vector.load %arg3[%c4, %c0_27, %c0_28] : memref<5x20x8xbf16, #tpu.memory_space<vmem>>, vector<1x20x8xbf16>
    %70 = vector.shape_cast %69 : vector<1x20x8xbf16> to vector<20x8xbf16>
    %cst_29 = arith.constant dense<0.000000e+00> : vector<128x8xf32>
    %71 = tpu.matmul %68, %70, %cst_29 {dimension_numbers = #tpu.dot_dimension_numbers<[1], [0], [0], [1], [0, 0, 1, 1], [], []>} : vector<128x20xbf16>, vector<20x8xbf16>, vector<128x8xf32> -> vector<128x8xf32>
    %72 = arith.addf %58, %71 : vector<128x8xf32>
    %73 = arith.truncf %72 : vector<128x8xf32> to vector<128x8xbf16>
    %c0_30 = arith.constant 0 : index
    %c0_31 = arith.constant 0 : index
    %74 = vector.load %arg4[%c0_30, %c0_31] : memref<128x8xbf16, #tpu.memory_space<vmem>>, vector<128x8xbf16>
    tpu.vector_store %arg4[%c0_30, %c0_31], %73 {strides = array<i32>} : memref<128x8xbf16, #tpu.memory_space<vmem>>, vector<128x8xbf16>,
    %cst_32 = arith.constant dense<0.000000e+00> : vector<8xf32>
    %75 = vector.multi_reduction <add>, %72, %cst_32 [0] : vector<128x8xf32> to vector<8xf32>
    %76 = vector.shape_cast %75 : vector<8xf32> to vector<1x8xf32>
    %77 = arith.mulf %72, %72 : vector<128x8xf32>
    %cst_33 = arith.constant dense<0.000000e+00> : vector<8xf32>
    %78 = vector.multi_reduction <add>, %77, %cst_33 [0] : vector<128x8xf32> to vector<8xf32>
    %79 = vector.shape_cast %78 : vector<8xf32> to vector<1x8xf32>
    %80 = tpu.concatenate %76, %79 in 0 : vector<1x8xf32>, vector<1x8xf32> -> vector<2x8xf32>
    %81 = vector.shape_cast %80 : vector<2x8xf32> to vector<1x2x8xf32>
    %c0_34 = arith.constant 0 : index
    %c0_35 = arith.constant 0 : index
    %c0_36 = arith.constant 0 : index
    %82 = vector.load %arg5[%c0_34, %c0_35, %c0_36] : memref<1x2x8xf32, #tpu.memory_space<vmem>>, vector<1x2x8xf32>
    tpu.vector_store %arg5[%c0_34, %c0_35, %c0_36], %81 {strides = array<i32>} : memref<1x2x8xf32, #tpu.memory_space<vmem>>, vector<1x2x8xf32>,
    return
  }
  func.func @transform_0(%arg0: i32, %arg1: i32) -> (i32, i32, i32, i32) {
    %c0_i32 = arith.constant 0 : i32
    %c0_i32_0 = arith.constant 0 : i32
    %c0_i32_1 = arith.constant 0 : i32
    %c0_i32_2 = arith.constant 0 : i32
    return %arg0, %c0_i32, %c0_i32_0, %c0_i32_1 : i32, i32, i32, i32
  }
  func.func @transform_1(%arg0: i32, %arg1: i32) -> (i32, i32, i32) {
    %c0_i32 = arith.constant 0 : i32
    %c0_i32_0 = arith.constant 0 : i32
    %c0_i32_1 = arith.constant 0 : i32
    %c0_i32_2 = arith.constant 0 : i32
    return %c0_i32, %c0_i32_0, %c0_i32_1 : i32, i32, i32
  }
  func.func @transform_2(%arg0: i32, %arg1: i32) -> (i32, i32) {
    %c2_i32 = arith.constant 2 : i32
    %0 = arith.muli %arg0, %c2_i32 : i32
    %1 = arith.addi %0, %arg1 : i32
    %c0_i32 = arith.constant 0 : i32
    %c0_i32_0 = arith.constant 0 : i32
    return %1, %c0_i32 : i32, i32
  }
  func.func @transform_3(%arg0: i32, %arg1: i32) -> (i32, i32, i32) {
    %c2_i32 = arith.constant 2 : i32
    %0 = arith.muli %arg0, %c2_i32 : i32
    %1 = arith.addi %0, %arg1 : i32
    %c0_i32 = arith.constant 0 : i32
    %c0_i32_0 = arith.constant 0 : i32
    %c0_i32_1 = arith.constant 0 : i32
    return %1, %c0_i32, %c0_i32_0 : i32, i32, i32
  }
}

module attributes {stable_mosaic.version = 11 : i64} {
  func.func @kernel(%arg0: i32, %arg1: memref<256x8xbf16, #tpu.memory_space<vmem>>, %arg2: memref<256x8xbf16, #tpu.memory_space<vmem>>, %arg3: memref<256x8xbf16, #tpu.memory_space<vmem>>, %arg4: memref<256x8xbf16, #tpu.memory_space<vmem>>, %arg5: memref<1x32xf32, #tpu.memory_space<vmem>>, %arg6: memref<1x32xf32, #tpu.memory_space<vmem>>, %arg7: memref<256x32xf32, #tpu.memory_space<vmem>>) attributes {dimension_semantics = [#tpu.dimension_semantics<parallel>], iteration_bounds = array<i64: 2>, scalar_prefetch = 0 : i64, scratch_operands = 0 : i64, tpu.core_type = #tpu.core_type<tc>, window_params = [{transform_indices = @transform_0, window_bounds = array<i64: 256, 8>}, {transform_indices = @transform_1, window_bounds = array<i64: 256, 8>}, {transform_indices = @transform_2, window_bounds = array<i64: 256, 8>}, {transform_indices = @transform_3, window_bounds = array<i64: 256, 8>}, {pipeline_mode = #tpu.pipeline_mode<synchronous>, transform_indices = @transform_4, window_bounds = array<i64: 1, 32>}, {pipeline_mode = #tpu.pipeline_mode<synchronous>, transform_indices = @transform_5, window_bounds = array<i64: 1, 32>}, {transform_indices = @transform_6, window_bounds = array<i64: 256, 32>}]} {
    %c0 = arith.constant 0 : index
    %c0_0 = arith.constant 0 : index
    %0 = vector.load %arg1[%c0, %c0_0] : memref<256x8xbf16, #tpu.memory_space<vmem>>, vector<256x8xbf16>
    %c0_1 = arith.constant 0 : index
    %c0_2 = arith.constant 0 : index
    %1 = vector.load %arg2[%c0_1, %c0_2] : memref<256x8xbf16, #tpu.memory_space<vmem>>, vector<256x8xbf16>
    %c0_3 = arith.constant 0 : index
    %c0_4 = arith.constant 0 : index
    %2 = vector.load %arg3[%c0_3, %c0_4] : memref<256x8xbf16, #tpu.memory_space<vmem>>, vector<256x8xbf16>
    %c0_5 = arith.constant 0 : index
    %c0_6 = arith.constant 0 : index
    %3 = vector.load %arg4[%c0_5, %c0_6] : memref<256x8xbf16, #tpu.memory_space<vmem>>, vector<256x8xbf16>
    %4 = tpu.concatenate %0, %1, %2, %3 in 1 : vector<256x8xbf16>, vector<256x8xbf16>, vector<256x8xbf16>, vector<256x8xbf16> -> vector<256x32xbf16>
    %5 = arith.extf %4 : vector<256x32xbf16> to vector<256x32xf32>
    %c0_7 = arith.constant 0 : index
    %c0_8 = arith.constant 0 : index
    %6 = vector.load %arg5[%c0_7, %c0_8] : memref<1x32xf32, #tpu.memory_space<vmem>>, vector<1x32xf32>
    %7 = vector.broadcast %6 : vector<1x32xf32> to vector<256x32xf32>
    %8 = arith.mulf %5, %7 : vector<256x32xf32>
    %c0_9 = arith.constant 0 : index
    %c0_10 = arith.constant 0 : index
    %9 = vector.load %arg6[%c0_9, %c0_10] : memref<1x32xf32, #tpu.memory_space<vmem>>, vector<1x32xf32>
    %10 = vector.broadcast %9 : vector<1x32xf32> to vector<256x32xf32>
    %11 = arith.addf %8, %10 : vector<256x32xf32>
    %cst = arith.constant 0.000000e+00 : f32
    %12 = vector.broadcast %cst : f32 to vector<256x32xf32>
    %13 = arith.maximumf %11, %12 : vector<256x32xf32>
    %c0_11 = arith.constant 0 : index
    %c0_12 = arith.constant 0 : index
    %14 = vector.load %arg7[%c0_11, %c0_12] : memref<256x32xf32, #tpu.memory_space<vmem>>, vector<256x32xf32>
    tpu.vector_store %arg7[%c0_11, %c0_12], %13 {strides = array<i32>} : memref<256x32xf32, #tpu.memory_space<vmem>>, vector<256x32xf32>,
    return
  }
  func.func @transform_0(%arg0: i32) -> (i32, i32) {
    %c0_i32 = arith.constant 0 : i32
    %c0_i32_0 = arith.constant 0 : i32
    return %arg0, %c0_i32 : i32, i32
  }
  func.func @transform_1(%arg0: i32) -> (i32, i32) {
    %c0_i32 = arith.constant 0 : i32
    %c0_i32_0 = arith.constant 0 : i32
    return %arg0, %c0_i32 : i32, i32
  }
  func.func @transform_2(%arg0: i32) -> (i32, i32) {
    %c0_i32 = arith.constant 0 : i32
    %c0_i32_0 = arith.constant 0 : i32
    return %arg0, %c0_i32 : i32, i32
  }
  func.func @transform_3(%arg0: i32) -> (i32, i32) {
    %c0_i32 = arith.constant 0 : i32
    %c0_i32_0 = arith.constant 0 : i32
    return %arg0, %c0_i32 : i32, i32
  }
  func.func @transform_4(%arg0: i32) -> (i32, i32) {
    %c0_i32 = arith.constant 0 : i32
    %c0_i32_0 = arith.constant 0 : i32
    %c0_i32_1 = arith.constant 0 : i32
    return %c0_i32, %c0_i32_0 : i32, i32
  }
  func.func @transform_5(%arg0: i32) -> (i32, i32) {
    %c0_i32 = arith.constant 0 : i32
    %c0_i32_0 = arith.constant 0 : i32
    %c0_i32_1 = arith.constant 0 : i32
    return %c0_i32, %c0_i32_0 : i32, i32
  }
  func.func @transform_6(%arg0: i32) -> (i32, i32) {
    %c0_i32 = arith.constant 0 : i32
    %c0_i32_0 = arith.constant 0 : i32
    return %arg0, %c0_i32 : i32, i32
  }
}

</mosaic_0001>

<bundles_post_ra>
// kernel: a_call__.8
= control target key start
LH: loop header
LB: loop body
LE: loop exit
PB: predicated region body
PF: predicated region fallthrough
CT: control target
= control target key end

     0   :  { %s883_s12 = smov 0   ;;  %s1375_s0 = inlined_call_operand.vmem [shape: bf16[512,4], index: 0, kind: input, shape index: {}]   ;;  %s1376_s1 = inlined_call_operand.vmem [shape: f32[1,4], index: 1, kind: input, shape index: {}]   ;;  %s1377_s2 = inlined_call_operand.vmem [shape: f32[1,4], index: 2, kind: input, shape index: {}]   ;;  %s1378_s3 = inlined_call_operand.vmem [shape: bf16[2,20,20,4], index: 3, kind: output, shape index: {}]  }
   0x1 LB: > { %s705_s13 = sadd.s32 4294967295, %s860_s12   ;;  %p709_p0 = scmp.ge.s32.totalorder %s860_s12, 1  ;;  %s860_s12 = sphi %s883_s12, %s13_s12  }
   0x2   : > { %p138_p1 = scmp.lt.s32.totalorder %s860_s12, 3 }
   0x4   : > { %p139_p2 = pnand %p709_p0, %p138_p1 }
   0x5   : > { %p168_p3 = scmp.lt.s32.totalorder (!%p139_p2), %s705_s13, 1  ;;  %s710_s19 = sshll.u32 (!%p139_p2), %s705_s13, 5 }
   0x6   : > { %142 = sbr.rel (%p139_p2) target bundleno = 124 (0x7c), region = 32  ;;  %p163_p4 = scmp.lt.s32.totalorder (!%p139_p2), %s710_s19, 63 }
   0xb   : > { %s169_s14 = scalar_select %p168_p3, %s705_s13, 1  ;;  %vm174_vm0 = vcmask 27648   ;;  %v862_v0 = vmov 0   ;;  %v971_v3 = vld [vmem:[%s1376_s1] ss:$0 sm:$0xff]  ;;  %vm177_vm1 = vcmask 25600  }
   0xc   : > { %s1382_s19 = smov (!%p163_p4, %s710_s19), 63  ;;  %v990_v7 = vld [vmem:[%s1377_s2] ss:$0 sm:$0xff]  ;;  %vm468_vm2 = vcmask 1040384   ;;  %vm469_vm3 = vcmask 1044484   ;;  %vm600_vm5 = vcmask 27649  }
   0xd   : > { %s842_s15 = smul.u32 240, %s169_s14  ;;  %s711_s20 = sshll.u32 %s1382_s19, 2  ;;  %vm1088_vm4 = vmor %vm468_vm2, %vm469_vm3  ;;  %vm603_vm6 = vcmask 24576  }
   0xe   : > { %s947_s23 = scalar_lea.vmem %s1375_s0, %s711_s20 }
   0xf   : > { %s894_s18 = scalar_lea.vmem %s1378_s3, %s842_s15  ;;  %v764_v1 = vld [vmem:[%s947_s23] sm:$0xff]   ;;  %v827_v4 = vld [vmem:[%s947_s23 + $0x8] sm:$0xff]   ;;  %v828_v9 = vld [vmem:[%s947_s23 + $0x10] sm:$0xff]  }
  0x10   : > { %182 = vst.msk [vmem:[%s894_s18 + $0x18] sm:$0xf] %vm174_vm0, %v862_v0  ;;  %v765_v2 = vunpack.c.l.bf16 %v764_v1  ;;  %v766_v5 = vunpack.c.h.bf16 %v764_v1  ;;  %v769_v8 = vunpack.c.l.bf16 %v827_v4  ;;  %v770_v13 = vunpack.c.h.bf16 %v827_v4  ;;  %v829_v15 = vld [vmem:[%s947_s23 + $0x18] sm:$0xff]   ;;  %v830_v20 = vld [vmem:[%s947_s23 + $0x20] sm:$0xff]   ;;  %v831_v24 = vld [vmem:[%s947_s23 + $0x28] sm:$0xff]  }
  0x11   : > { %175 = vst.msk [vmem:[%s894_s18] sm:$0xf] %vm174_vm0, %v862_v0  ;;  %v773_v14 = vunpack.c.l.bf16 %v828_v9  ;;  %v777_v19 = vunpack.c.l.bf16 %v829_v15  ;;  %v774_v23 = vunpack.c.h.bf16 %v828_v9  ;;  %v781_v26 = vunpack.c.l.bf16 %v830_v20  ;;  %v832_v38 = vld [vmem:[%s947_s23 + $0x30] sm:$0xff]   ;;  %v833_v52 = vld [vmem:[%s947_s23 + $0x38] sm:$0xff]  }
  0x12   : > { %176 = vst.msk [vmem:[%s894_s18 + $0x4] sm:$0xf] %vm174_vm0, %v862_v0  ;;  %v304_v6 = vmul.f32 %v971_v3, %v765_v2  ;;  %v305_v10 = vmul.f32 %v971_v3, %v766_v5  ;;  %v306_v12 = vmul.f32 %v971_v3, %v769_v8  ;;  %v307_v21 = vmul.f32 %v971_v3, %v770_v13 }
  0x13   : > { %179 = vst.msk [vmem:[%s894_s18 + $0xc] sm:$0xf] %vm174_vm0, %v862_v0  ;;  %v308_v22 = vmul.f32 %v971_v3, %v773_v14  ;;  %v310_v29 = vmul.f32 %v971_v3, %v777_v19  ;;  %v778_v30 = vunpack.c.h.bf16 %v829_v15  ;;  %v785_v33 = vunpack.c.l.bf16 %v831_v24 }
  0x14   : > { %180 = vst.msk [vmem:[%s894_s18 + $0x10] sm:$0xf] %vm174_vm0, %v862_v0  ;;  %v340_v11 = vadd.f32 %v990_v7, %v304_v6  ;;  %v341_v16 = vadd.f32 %v990_v7, %v305_v10  ;;  %v342_v18 = vadd.f32 %v990_v7, %v306_v12  ;;  %v343_v31 = vadd.f32 %v990_v7, %v307_v21 }
  0x15   : > { %183 = vst.msk [vmem:[%s894_s18 + $0x1c] sm:$0xf] %vm174_vm0, %v862_v0  ;;  %v344_v32 = vadd.f32 %v990_v7, %v308_v22  ;;  %v309_v34 = vmul.f32 %v971_v3, %v774_v23  ;;  %v312_v36 = vmul.f32 %v971_v3, %v781_v26  ;;  %v782_v37 = vunpack.c.h.bf16 %v830_v20  ;;  %v834_v20 = vld [vmem:[%s947_s23 + $0x40] sm:$0xff]  }
  0x16   : > { %185 = vst.msk [vmem:[%s894_s18 + $0x24] sm:$0xf] %vm174_vm0, %v862_v0  ;;  %v372_v17 = vmax.f32 %v340_v11, 0.0  ;;  %v373_v25 = vmax.f32 %v341_v16, 0.0  ;;  %v374_v28 = vmax.f32 %v342_v18, 0.0  ;;  %v346_v41 = vadd.f32 %v990_v7, %v310_v29 }
  0x17   : > { %186 = vst.msk [vmem:[%s894_s18 + $0x28] sm:$0xf] %vm174_vm0, %v862_v0  ;;  %v311_v42 = vmul.f32 %v971_v3, %v778_v30  ;;  %v375_v43 = vmax.f32 %v343_v31, 0.0  ;;  %v376_v44 = vmax.f32 %v344_v32, 0.0  ;;  %v314_v45 = vmul.f32 %v971_v3, %v785_v33  ;;  %v835_v33 = vld [vmem:[%s947_s23 + $0x48] sm:$0xff]  }
  0x18   : > { %188 = vst.msk [vmem:[%s894_s18 + $0x30] sm:$0xf] %vm174_vm0, %v862_v0  ;;  %v1039_v27 = vpack.c.bf16 %v372_v17, %v372_v17  ;;  %v405_v35 = vpack.c.bf16 %v373_v25, %v373_v25  ;;  %v1060_v40 = vpack.c.bf16 %v374_v28, %v374_v28  ;;  %v786_v46 = vunpack.c.h.bf16 %v831_v24 }
  0x19   : > { %189 = vst.msk [vmem:[%s894_s18 + $0x34] sm:$0xf] %vm174_vm0, %v862_v0  ;;  %v345_v47 = vadd.f32 %v990_v7, %v309_v34  ;;  %v789_v48 = vunpack.c.l.bf16 %v832_v38  ;;  %v348_v50 = vadd.f32 %v990_v7, %v312_v36  ;;  %v313_v51 = vmul.f32 %v971_v3, %v782_v37 }
  0x1a   : > { %191 = vst.msk [vmem:[%s894_s18 + $0x3c] sm:$0xf] %vm174_vm0, %v862_v0  ;;  %v471_v39 = vrot.slane %v1039_v27, 7  ;;  %v473_v49 = vrot.slane %v405_v35, 7  ;;  %v378_v54 = vmax.f32 %v346_v41, 0.0  ;;  %v347_v55 = vadd.f32 %v990_v7, %v311_v42 }
  0x1b   : > { %192 = vst.msk [vmem:[%s894_s18 + $0x40] sm:$0xf] %vm174_vm0, %v862_v0  ;;  %v790_v56 = vunpack.c.h.bf16 %v832_v38  ;;  %v476_v58 = vrot.slane %v1060_v40, 7  ;;  %v407_v59 = vpack.c.bf16 %v375_v43, %v375_v43  ;;  %v350_v60 = vadd.f32 %v990_v7, %v314_v45 }
  0x1c   : > { %194 = vst.msk [vmem:[%s894_s18 + $0x48] sm:$0xf] %vm174_vm0, %v862_v0  ;;  %v472_v53 = vrot.slane %v471_v39, 4  ;;  %v315_v61 = vmul.f32 %v971_v3, %v786_v46  ;;  %v1098_v62 = vpack.c.bf16 %v376_v44, %v376_v44  ;;  %v377_v63 = vmax.f32 %v345_v47, 0.0 }
  0x1d   : > { %195 = vst.msk [vmem:[%s894_s18 + $0x4c] sm:$0xf] %vm174_vm0, %v862_v0  ;;  %v316_v1 = vmul.f32 %v971_v3, %v789_v48  ;;  %v793_v2 = vunpack.c.l.bf16 %v833_v52  ;;  %v380_v4 = vmax.f32 %v348_v50, 0.0  ;;  %v349_v5 = vadd.f32 %v990_v7, %v313_v51  ;;  %v836_v48 = vld [vmem:[%s947_s23 + $0x50] sm:$0xff]  }
  0x1e   : > { %197 = vst.msk [vmem:[%s894_s18 + $0x54] sm:$0xf] %vm174_vm0, %v862_v0  ;;  %v794_v6 = vunpack.c.h.bf16 %v833_v52  ;;  %v1110_v8 = vsel %vm1088_vm4, %v472_v53, %v473_v49  ;;  %v1112_v9 = vpack.c.bf16 %v378_v54, %v378_v54  ;;  %v379_v10 = vmax.f32 %v347_v55, 0.0 }
  0x1f   : > { %198 = vst.msk [vmem:[%s894_s18 + $0x58] sm:$0xf] %vm174_vm0, %v862_v0  ;;  %v317_v11 = vmul.f32 %v971_v3, %v790_v56  ;;  %v477_v12 = vrot.slane %v476_v58, 4  ;;  %v478_v13 = vrot.slane %v407_v59, 7  ;;  %v382_v14 = vmax.f32 %v350_v60, 0.0 }
  0x20   : > { %200 = vst.msk [vmem:[%s894_s18 + $0x60] sm:$0xf] %vm174_vm0, %v862_v0  ;;  %v351_v15 = vadd.f32 %v990_v7, %v315_v61  ;;  %v481_v16 = vrot.slane %v1098_v62, 7  ;;  %v409_v17 = vpack.c.bf16 %v377_v63, %v377_v63  ;;  %v352_v18 = vadd.f32 %v990_v7, %v316_v1 }
  0x21   : > { %201 = vst.msk [vmem:[%s894_s18 + $0x64] sm:$0xf] %vm174_vm0, %v862_v0  ;;  %v318_v19 = vmul.f32 %v971_v3, %v793_v2  ;;  %v475_v21 = vrot.slane %v473_v49, 4  ;;  %v1131_v22 = vpack.c.bf16 %v380_v4, %v380_v4  ;;  %v381_v23 = vmax.f32 %v349_v5, 0.0 }
  0x22   : > { %203 = vst.msk [vmem:[%s894_s18 + $0x6c] sm:$0xf] %vm174_vm0, %v862_v0  ;;  %v319_v24 = vmul.f32 %v971_v3, %v794_v6  ;;  %v486_v25 = vrot.slane %v1112_v9, 7  ;;  %v411_v26 = vpack.c.bf16 %v379_v10, %v379_v10  ;;  %v353_v28 = vadd.f32 %v990_v7, %v317_v11 }
  0x23   : > { %204 = vst.msk [vmem:[%s894_s18 + $0x70] sm:$0xf] %vm174_vm0, %v862_v0  ;;  %v479_v29 = vsel %vm1088_vm4, %v477_v12, %v478_v13  ;;  %v1144_v30 = vpack.c.bf16 %v382_v14, %v382_v14  ;;  %v383_v31 = vmax.f32 %v351_v15, 0.0  ;;  %v797_v32 = vunpack.c.l.bf16 %v834_v20  ;;  %v838_v14 = vld [vmem:[%s947_s23 + $0x60] sm:$0xff]  }
  0x24   : > { %206 = vst.msk [vmem:[%s894_s18 + $0x78] sm:$0xf] %vm174_vm0, %v862_v0  ;;  %v482_v34 = vrot.slane %v481_v16, 4  ;;  %v483_v35 = vrot.slane %v409_v17, 7  ;;  %v384_v36 = vmax.f32 %v352_v18, 0.0  ;;  %v354_v37 = vadd.f32 %v990_v7, %v318_v19 }
  0x25   : > { %207 = vst.msk [vmem:[%s894_s18 + $0x7c] sm:$0xf] %vm174_vm0, %v862_v0  ;;  %v480_v38 = vrot.slane %v478_v13, 4  ;;  %v491_v41 = vrot.slane %v1131_v22, 7  ;;  %v413_v42 = vpack.c.bf16 %v381_v23, %v381_v23  ;;  %v355_v43 = vadd.f32 %v990_v7, %v319_v24 }
  0x26   : > { %209 = vst.msk [vmem:[%s894_s18 + $0x84] sm:$0xf] %vm174_vm0, %v862_v0  ;;  %v487_v44 = vrot.slane %v486_v25, 4  ;;  %v488_v45 = vrot.slane %v411_v26, 7  ;;  %v385_v46 = vmax.f32 %v353_v28, 0.0  ;;  %v801_v47 = vunpack.c.l.bf16 %v835_v33 }
  0x27   : > { %210 = vst.msk [vmem:[%s894_s18 + $0x88] sm:$0xf] %vm174_vm0, %v862_v0  ;;  %v496_v49 = vrot.slane %v1144_v30, 7  ;;  %v415_v50 = vpack.c.bf16 %v383_v31, %v383_v31  ;;  %v320_v51 = vmul.f32 %v971_v3, %v797_v32  ;;  %v798_v52 = vunpack.c.h.bf16 %v834_v20 }
  0x28   : > { %212 = vst.msk [vmem:[%s894_s18 + $0x90] sm:$0xf] %vm174_vm0, %v862_v0  ;;  %v484_v53 = vsel %vm1088_vm4, %v482_v34, %v483_v35  ;;  %v485_v54 = vrot.slane %v483_v35, 4  ;;  %v1174_v55 = vpack.c.bf16 %v384_v36, %v384_v36  ;;  %v386_v56 = vmax.f32 %v354_v37, 0.0 }
  0x29   : > { %213 = vst.msk [vmem:[%s894_s18 + $0x94] sm:$0xf] %vm174_vm0, %v862_v0  ;;  %v492_v59 = vrot.slane %v491_v41, 4  ;;  %v493_v60 = vrot.slane %v413_v42, 7  ;;  %v387_v61 = vmax.f32 %v355_v43, 0.0  ;;  %v805_v63 = vunpack.c.l.bf16 %v836_v48 }
  0x2a   : > { %215 = vst.msk [vmem:[%s894_s18 + $0x9c] sm:$0xf] %vm174_vm0, %v862_v0  ;;  %v489_v1 = vsel %vm1088_vm4, %v487_v44, %v488_v45  ;;  %v417_v2 = vpack.c.bf16 %v385_v46, %v385_v46  ;;  %v322_v27 = vmul.f32 %v971_v3, %v801_v47  ;;  %v497_v4 = vrot.slane %v496_v49, 4  ;;  %v840_v44 = vld [vmem:[%s947_s23 + $0x70] sm:$0xff]  }
  0x2b   : > { %216 = vst.msk [vmem:[%s894_s18 + $0xa0] sm:$0xf] %vm174_vm0, %v862_v0  ;;  %v498_v5 = vrot.slane %v415_v50, 7  ;;  %v356_v6 = vadd.f32 %v990_v7, %v320_v51  ;;  %v321_v10 = vmul.f32 %v971_v3, %v798_v52  ;;  %v501_v11 = vrot.slane %v1174_v55, 7 }
  0x2c   : > { %218 = vst.msk [vmem:[%s894_s18 + $0xa8] sm:$0xf] %vm174_vm0, %v862_v0  ;;  %v1200_v12 = vpack.c.bf16 %v386_v56, %v386_v56  ;;  %v494_v15 = vsel %vm1088_vm4, %v492_v59, %v493_v60  ;;  %v419_v17 = vpack.c.bf16 %v387_v61, %v387_v61  ;;  %v324_v40 = vmul.f32 %v971_v3, %v805_v63  ;;  %v841_v59 = vld [vmem:[%s947_s23 + $0x78] sm:$0xff]  }
  0x2d   : > { %219 = vst.msk [vmem:[%s894_s18 + $0xac] sm:$0xf] %vm174_vm0, %v862_v0  ;;  %v806_v18 = vunpack.c.h.bf16 %v836_v48  ;;  %v503_v19 = vrot.slane %v417_v2, 7  ;;  %v358_v20 = vadd.f32 %v990_v7, %v322_v27  ;;  %v499_v23 = vsel %vm1088_vm4, %v497_v4, %v498_v5 }
  0x2e   : > { %221 = vst.msk [vmem:[%s894_s18 + $0xb4] sm:$0xf] %vm174_vm0, %v862_v0  ;;  %v388_v24 = vmax.f32 %v356_v6, 0.0  ;;  %v357_v26 = vadd.f32 %v990_v7, %v321_v10  ;;  %v813_v28 = vunpack.c.l.bf16 %v838_v14  ;;  %v502_v31 = vrot.slane %v501_v11, 4 }
  0x2f   : > { %222 = vst.msk [vmem:[%s894_s18 + $0xb8] sm:$0xf] %vm174_vm0, %v862_v0  ;;  %v506_v62 = vrot.slane %v1200_v12, 7  ;;  %v508_v34 = vrot.slane %v419_v17, 7  ;;  %v360_v35 = vadd.f32 %v990_v7, %v324_v40  ;;  %v325_v36 = vmul.f32 %v971_v3, %v806_v18 }
  0x30   : > { %224 = vst.msk [vmem:[%s894_s18 + $0xc0] sm:$0xf] %vm174_vm0, %v862_v0  ;;  %v505_v37 = vrot.slane %v503_v19, 4  ;;  %v389_v46 = vmax.f32 %v357_v26, 0.0  ;;  %v328_v47 = vmul.f32 %v971_v3, %v813_v28  ;;  %v814_v48 = vunpack.c.h.bf16 %v838_v14 }
  0x31   : > { %225 = vst.msk [vmem:[%s894_s18 + $0xc4] sm:$0xf] %vm174_vm0, %v862_v0  ;;  %v504_v9 = vsel %vm1088_vm4, %v502_v31, %v503_v19  ;;  %v510_v52 = vrot.slane %v508_v34, 4  ;;  %v821_v56 = vunpack.c.l.bf16 %v840_v44 }
  0x32   : > { %227 = vst.msk [vmem:[%s894_s18 + $0xcc] sm:$0xf] %vm174_vm0, %v862_v0  ;;  %v329_v2 = vmul.f32 %v971_v3, %v814_v48 }
  0x33   : > { %228 = vst.msk [vmem:[%s894_s18 + $0xd0] sm:$0xf] %vm174_vm0, %v862_v0 }
  0x34   : > { %230 = vst.msk [vmem:[%s894_s18 + $0xd8] sm:$0xf] %vm174_vm0, %v862_v0 }
  0x35   : > { %231 = vst.msk [vmem:[%s894_s18 + $0xdc] sm:$0xf] %vm174_vm0, %v862_v0 }
  0x36   : > { %233 = vst.msk [vmem:[%s894_s18 + $0xe4] sm:$0xf] %vm174_vm0, %v862_v0 }
  0x37   : > { %234 = vst.msk [vmem:[%s894_s18 + $0xe8] sm:$0xf] %vm174_vm0, %v862_v0 }
  0x38   : > { %184 = vst.msk [vmem:[%s894_s18 + $0x20] sm:$0x3] %vm177_vm1, %v862_v0 }
  0x39   : > { %178 = vst.msk [vmem:[%s894_s18 + $0x8] sm:$0x3] %vm177_vm1, %v862_v0 }
  0x3a   : > { %181 = vst.msk [vmem:[%s894_s18 + $0x14] sm:$0x3] %vm177_vm1, %v862_v0 }
  0x3b   : > { %187 = vst.msk [vmem:[%s894_s18 + $0x2c] sm:$0x3] %vm177_vm1, %v862_v0 }
  0x3c   : > { %190 = vst.msk [vmem:[%s894_s18 + $0x38] sm:$0x3] %vm177_vm1, %v862_v0 }
  0x3d   : > { %193 = vst.msk [vmem:[%s894_s18 + $0x44] sm:$0x3] %vm177_vm1, %v862_v0 }
  0x3e   : > { %196 = vst.msk [vmem:[%s894_s18 + $0x50] sm:$0x3] %vm177_vm1, %v862_v0 }
  0x3f   : > { %199 = vst.msk [vmem:[%s894_s18 + $0x5c] sm:$0x3] %vm177_vm1, %v862_v0 }
  0x40   : > { %202 = vst.msk [vmem:[%s894_s18 + $0x68] sm:$0x3] %vm177_vm1, %v862_v0 }
  0x41   : > { %205 = vst.msk [vmem:[%s894_s18 + $0x74] sm:$0x3] %vm177_vm1, %v862_v0 }
  0x42   : > { %208 = vst.msk [vmem:[%s894_s18 + $0x80] sm:$0x3] %vm177_vm1, %v862_v0 }
  0x43   : > { %211 = vst.msk [vmem:[%s894_s18 + $0x8c] sm:$0x3] %vm177_vm1, %v862_v0 }
  0x44   : > { %214 = vst.msk [vmem:[%s894_s18 + $0x98] sm:$0x3] %vm177_vm1, %v862_v0 }
  0x45   : > { %217 = vst.msk [vmem:[%s894_s18 + $0xa4] sm:$0x3] %vm177_vm1, %v862_v0 }
  0x46   : > { %220 = vst.msk [vmem:[%s894_s18 + $0xb0] sm:$0x3] %vm177_vm1, %v862_v0 }
  0x47   : > { %223 = vst.msk [vmem:[%s894_s18 + $0xbc] sm:$0x3] %vm177_vm1, %v862_v0 }
  0x48   : > { %226 = vst.msk [vmem:[%s894_s18 + $0xc8] sm:$0x3] %vm177_vm1, %v862_v0 }
  0x49   : > { %229 = vst.msk [vmem:[%s894_s18 + $0xd4] sm:$0x3] %vm177_vm1, %v862_v0 }
  0x4a   : > { %232 = vst.msk [vmem:[%s894_s18 + $0xe0] sm:$0x3] %vm177_vm1, %v862_v0 }
  0x4b   : > { %235 = vst.msk [vmem:[%s894_s18 + $0xec] sm:$0x3] %vm177_vm1, %v862_v0  ;;  %v837_v0 = vld [vmem:[%s947_s23 + $0x58] sm:$0xff]  }
  0x4c   : > { %713 = vst.msk [vmem:[%s894_s18 + $0x18] sm:$0xe] %vm600_vm5, %v471_v39  ;;  %v802_v39 = vunpack.c.h.bf16 %v835_v33  ;;  %v809_v13 = vunpack.c.l.bf16 %v837_v0  ;;  %v810_v32 = vunpack.c.h.bf16 %v837_v0  ;;  %v500_v33 = vrot.slane %v498_v5, 4 }
  0x4d   : > { %714 = vst.msk [vmem:[%s894_s18 + $0x1c] sm:$0xf] %vm174_vm0, %v1110_v8  ;;  %v490_v8 = vrot.slane %v488_v45, 4  ;;  %v1238_v45 = vpack.c.bf16 %v388_v24, %v388_v24  ;;  %v825_v5 = vunpack.c.l.bf16 %v841_v59 }
  0x4e   : > { %715 = vst.msk [vmem:[%s894_s18 + $0x20] sm:$0x1] %vm603_vm6, %v475_v21  ;;  %v323_v21 = vmul.f32 %v971_v3, %v802_v39  ;;  %v327_v51 = vmul.f32 %v971_v3, %v810_v32 }
  0x4f   : > { %716 = vst.msk [vmem:[%s894_s18 + $0x24] sm:$0xe] %vm600_vm5, %v476_v58  ;;  %v495_v58 = vrot.slane %v493_v60, 4  ;;  %v511_v22 = vrot.slane %v1238_v45, 7 }
  0x50   : > { %717 = vst.msk [vmem:[%s894_s18 + $0x28] sm:$0xf] %vm174_vm0, %v479_v29  ;;  %v839_v29 = vld [vmem:[%s947_s23 + $0x68] sm:$0xff]   ;;  %v359_v42 = vadd.f32 %v990_v7, %v323_v21  ;;  %v363_v4 = vadd.f32 %v990_v7, %v327_v51  ;;  %v334_v21 = vmul.f32 %v971_v3, %v825_v5 }
  0x51   : > { %718 = vst.msk [vmem:[%s894_s18 + $0x2c] sm:$0x1] %vm603_vm6, %v480_v38  ;;  %v390_v38 = vmax.f32 %v358_v20, 0.0  ;;  %v817_v43 = vunpack.c.l.bf16 %v839_v29  ;;  %v818_v0 = vunpack.c.h.bf16 %v839_v29  ;;  %v512_v17 = vrot.slane %v511_v22, 4 }
  0x52   : > { %719 = vst.msk [vmem:[%s894_s18 + $0x30] sm:$0xe] %vm600_vm5, %v481_v16  ;;  %v326_v16 = vmul.f32 %v971_v3, %v809_v13  ;;  %v391_v61 = vmax.f32 %v359_v42, 0.0  ;;  %v822_v13 = vunpack.c.h.bf16 %v840_v44  ;;  %v395_v20 = vmax.f32 %v363_v4, 0.0 }
  0x53   : > { %720 = vst.msk [vmem:[%s894_s18 + $0x34] sm:$0xf] %vm174_vm0, %v484_v53  ;;  %v392_v53 = vmax.f32 %v360_v35, 0.0  ;;  %v1257_v60 = vpack.c.bf16 %v390_v38, %v390_v38  ;;  %v330_v63 = vmul.f32 %v971_v3, %v817_v43 }
  0x54   : > { %721 = vst.msk [vmem:[%s894_s18 + $0x38] sm:$0x1] %vm603_vm6, %v485_v54  ;;  %v362_v50 = vadd.f32 %v990_v7, %v326_v16  ;;  %v361_v54 = vadd.f32 %v990_v7, %v325_v36  ;;  %v333_v26 = vmul.f32 %v971_v3, %v822_v13  ;;  %v427_v36 = vpack.c.bf16 %v395_v20, %v395_v20 }
  0x55   : > { %722 = vst.msk [vmem:[%s894_s18 + $0x3c] sm:$0xe] %vm600_vm5, %v486_v25  ;;  %v507_v25 = vrot.slane %v506_v62, 4  ;;  %v1274_v6 = vpack.c.bf16 %v392_v53, %v392_v53  ;;  %v516_v30 = vrot.slane %v1257_v60, 7  ;;  %v366_v14 = vadd.f32 %v990_v7, %v330_v63 }
  0x56   : > { %723 = vst.msk [vmem:[%s894_s18 + $0x40] sm:$0xf] %vm174_vm0, %v489_v1  ;;  %v364_v1 = vadd.f32 %v990_v7, %v328_v47  ;;  %v394_v39 = vmax.f32 %v362_v50, 0.0  ;;  %v393_v10 = vmax.f32 %v361_v54, 0.0  ;;  %v369_v44 = vadd.f32 %v990_v7, %v333_v26 }
  0x57   : > { %724 = vst.msk [vmem:[%s894_s18 + $0x44] sm:$0x1] %vm603_vm6, %v490_v8  ;;  %v509_v27 = vsel %vm1088_vm4, %v507_v25, %v508_v34  ;;  %v332_v8 = vmul.f32 %v971_v3, %v821_v56  ;;  %v521_v55 = vrot.slane %v1274_v6, 7  ;;  %v517_v28 = vrot.slane %v516_v30, 4 }
  0x58   : > { %725 = vst.msk [vmem:[%s894_s18 + $0x48] sm:$0xe] %vm600_vm5, %v491_v41  ;;  %v421_v41 = vpack.c.bf16 %v389_v46, %v389_v46  ;;  %v396_v18 = vmax.f32 %v364_v1, 0.0  ;;  %v426_v19 = vpack.c.bf16 %v394_v39, %v394_v39  ;;  %v425_v24 = vpack.c.bf16 %v393_v10, %v393_v10 }
  0x59   : > { %726 = vst.msk [vmem:[%s894_s18 + $0x4c] sm:$0xf] %vm174_vm0, %v494_v15  ;;  %v331_v15 = vmul.f32 %v971_v3, %v818_v0  ;;  %v398_v31 = vmax.f32 %v366_v14, 0.0  ;;  %v522_v38 = vrot.slane %v521_v55, 4  ;;  %v528_v50 = vrot.slane %v427_v36, 7 }
  0x5a   : > { %727 = vst.msk [vmem:[%s894_s18 + $0x50] sm:$0x1] %vm603_vm6, %v495_v58  ;;  %v513_v40 = vrot.slane %v421_v41, 7  ;;  %v365_v58 = vadd.f32 %v990_v7, %v329_v2  ;;  %v428_v34 = vpack.c.bf16 %v396_v18, %v396_v18  ;;  %v526_v12 = vrot.slane %v426_v19, 7 }
  0x5b   : > { %728 = vst.msk [vmem:[%s894_s18 + $0x54] sm:$0xe] %vm600_vm5, %v496_v49  ;;  %v423_v49 = vpack.c.bf16 %v391_v61, %v391_v61  ;;  %v367_v16 = vadd.f32 %v990_v7, %v331_v15  ;;  %v523_v42 = vrot.slane %v425_v24, 7  ;;  %v430_v47 = vpack.c.bf16 %v398_v31, %v398_v31 }
  0x5c   : > { %729 = vst.msk [vmem:[%s894_s18 + $0x58] sm:$0xf] %vm174_vm0, %v499_v23  ;;  %v826_v23 = vunpack.c.h.bf16 %v841_v59  ;;  %v514_v32 = vsel %vm1088_vm4, %v512_v17, %v513_v40  ;;  %v397_v35 = vmax.f32 %v365_v58, 0.0  ;;  %v527_v25 = vrot.slane %v526_v12, 4 }
  0x5d   : > { %730 = vst.msk [vmem:[%s894_s18 + $0x5c] sm:$0x1] %vm603_vm6, %v500_v33  ;;  %v518_v29 = vrot.slane %v423_v49, 7  ;;  %v515_v33 = vrot.slane %v513_v40, 4  ;;  %v399_v48 = vmax.f32 %v367_v16, 0.0  ;;  %v524_v53 = vsel %vm1088_vm4, %v522_v38, %v523_v42 }
  0x5e   : > { %731 = vst.msk [vmem:[%s894_s18 + $0x60] sm:$0xe] %vm600_vm5, %v501_v11  ;;  %v368_v11 = vadd.f32 %v990_v7, %v332_v8  ;;  %v525_v54 = vrot.slane %v523_v42, 4  ;;  %v401_v59 = vmax.f32 %v369_v44, 0.0  ;;  %v536_v60 = vrot.slane %v430_v47, 7 }
  0x5f   : > { %732 = vst.msk [vmem:[%s894_s18 + $0x64] sm:$0xf] %vm174_vm0, %v504_v9  ;;  %v519_v45 = vsel %vm1088_vm4, %v517_v28, %v518_v29  ;;  %v520_v46 = vrot.slane %v518_v29, 4  ;;  %v429_v9 = vpack.c.bf16 %v397_v35, %v397_v35  ;;  %v431_v61 = vpack.c.bf16 %v399_v48, %v399_v48 }
  0x60   : > { %733 = vst.msk [vmem:[%s894_s18 + $0x68] sm:$0x1] %vm603_vm6, %v505_v37  ;;  %v335_v37 = vmul.f32 %v971_v3, %v826_v23  ;;  %v400_v43 = vmax.f32 %v368_v11, 0.0  ;;  %v531_v3 = vrot.slane %v428_v34, 7  ;;  %v529_v0 = vsel %vm1088_vm4, %v527_v25, %v528_v50 }
  0x61   : > { %734 = vst.msk [vmem:[%s894_s18 + $0x6c] sm:$0xe] %vm600_vm5, %v506_v62  ;;  %v370_v62 = vadd.f32 %v990_v7, %v334_v21  ;;  %v537_v39 = vrot.slane %v536_v60, 4  ;;  %v538_v4 = vrot.slane %v431_v61, 7 }
  0x62   : > { %735 = vst.msk [vmem:[%s894_s18 + $0x70] sm:$0xf] %vm174_vm0, %v509_v27  ;;  %v432_v56 = vpack.c.bf16 %v400_v43, %v400_v43  ;;  %v532_v63 = vrot.slane %v531_v3, 4  ;;  %v433_v27 = vpack.c.bf16 %v401_v59, %v401_v59 }
  0x63   : > { %736 = vst.msk [vmem:[%s894_s18 + $0x74] sm:$0x1] %vm603_vm6, %v510_v52  ;;  %v402_v51 = vmax.f32 %v370_v62, 0.0  ;;  %v371_v52 = vadd.f32 %v990_v7, %v335_v37  ;;  %v533_v7 = vrot.slane %v429_v9, 7  ;;  %v539_v49 = vsel %vm1088_vm4, %v537_v39, %v538_v4 }
  0x64   : > { %737 = vst.msk [vmem:[%s894_s18 + $0x78] sm:$0xe] %vm600_vm5, %v511_v22  ;;  %v530_v22 = vrot.slane %v528_v50, 4  ;;  %v541_v2 = vrot.slane %v432_v56, 7  ;;  %v540_v14 = vrot.slane %v538_v4, 4 }
  0x65   : > { %738 = vst.msk [vmem:[%s894_s18 + $0x7c] sm:$0xf] %vm174_vm0, %v514_v32  ;;  %v434_v41 = vpack.c.bf16 %v402_v51, %v402_v51  ;;  %v403_v1 = vmax.f32 %v371_v52, 0.0  ;;  %v534_v5 = vsel %vm1088_vm4, %v532_v63, %v533_v7  ;;  %v535_v6 = vrot.slane %v533_v7, 4 }
  0x66   : > { %739 = vst.msk [vmem:[%s894_s18 + $0x80] sm:$0x1] %vm603_vm6, %v515_v33  ;;  %v542_v13 = vrot.slane %v541_v2, 4 }
  0x67   : > { %740 = vst.msk [vmem:[%s894_s18 + $0x84] sm:$0xe] %vm600_vm5, %v516_v30  ;;  %v546_v10 = vrot.slane %v434_v41, 7  ;;  %v435_v8 = vpack.c.bf16 %v403_v1, %v403_v1  ;;  %v543_v30 = vrot.slane %v433_v27, 7 }
  0x68   : > { %741 = vst.msk [vmem:[%s894_s18 + $0x88] sm:$0xf] %vm174_vm0, %v519_v45 }
  0x69   : > { %742 = vst.msk [vmem:[%s894_s18 + $0x8c] sm:$0x1] %vm603_vm6, %v520_v46  ;;  %v547_v15 = vrot.slane %v546_v10, 4  ;;  %v548_v17 = vrot.slane %v435_v8, 7  ;;  %v544_v40 = vsel %vm1088_vm4, %v542_v13, %v543_v30  ;;  %v545_v18 = vrot.slane %v543_v30, 4 }
  0x6a   : > { %743 = vst.msk [vmem:[%s894_s18 + $0x90] sm:$0xe] %vm600_vm5, %v521_v55 }
  0x6b   : > { %744 = vst.msk [vmem:[%s894_s18 + $0x94] sm:$0xf] %vm174_vm0, %v524_v53  ;;  %v549_v58 = vsel %vm1088_vm4, %v547_v15, %v548_v17  ;;  %v550_v19 = vrot.slane %v548_v17, 4 }
  0x6c   : > { %745 = vst.msk [vmem:[%s894_s18 + $0x98] sm:$0x1] %vm603_vm6, %v525_v54 }
  0x6d   : > { %746 = vst.msk [vmem:[%s894_s18 + $0x9c] sm:$0xe] %vm600_vm5, %v526_v12 }
  0x6e   : > { %747 = vst.msk [vmem:[%s894_s18 + $0xa0] sm:$0xf] %vm174_vm0, %v529_v0 }
  0x6f   : > { %748 = vst.msk [vmem:[%s894_s18 + $0xa4] sm:$0x1] %vm603_vm6, %v530_v22 }
  0x70   : > { %749 = vst.msk [vmem:[%s894_s18 + $0xa8] sm:$0xe] %vm600_vm5, %v531_v3 }
  0x71   : > { %750 = vst.msk [vmem:[%s894_s18 + $0xac] sm:$0xf] %vm174_vm0, %v534_v5 }
  0x72   : > { %751 = vst.msk [vmem:[%s894_s18 + $0xb0] sm:$0x1] %vm603_vm6, %v535_v6 }
  0x73   : > { %752 = vst.msk [vmem:[%s894_s18 + $0xb4] sm:$0xe] %vm600_vm5, %v536_v60 }
  0x74   : > { %753 = vst.msk [vmem:[%s894_s18 + $0xb8] sm:$0xf] %vm174_vm0, %v539_v49 }
  0x75   : > { %754 = vst.msk [vmem:[%s894_s18 + $0xbc] sm:$0x1] %vm603_vm6, %v540_v14 }
  0x76   : > { %755 = vst.msk [vmem:[%s894_s18 + $0xc0] sm:$0xe] %vm600_vm5, %v541_v2 }
  0x77   : > { %756 = vst.msk [vmem:[%s894_s18 + $0xc4] sm:$0xf] %vm174_vm0, %v544_v40 }
  0x78   : > { %757 = vst.msk [vmem:[%s894_s18 + $0xc8] sm:$0x1] %vm603_vm6, %v545_v18 }
  0x79   : > { %758 = vst.msk [vmem:[%s894_s18 + $0xcc] sm:$0xe] %vm600_vm5, %v546_v10 }
  0x7a   : > { %759 = vst.msk [vmem:[%s894_s18 + $0xd0] sm:$0xf] %vm174_vm0, %v549_v58 }
  0x7b   : > { %760 = vst.msk [vmem:[%s894_s18 + $0xd4] sm:$0x1] %vm603_vm6, %v550_v19 }
  0x7c PF: > { %s13_s12 = sadd.s32 1, %s860_s12  }
  0x7d   : > { %p10_p5 = scmp.ge.s32.totalorder %s13_s12, 4  }
  0x7f   :  { %12 = sbr.rel (!%p10_p5) target bundleno = 1 (0x1), region = 63 }

// kernel: a_call__.6
= control target key start
LH: loop header
LB: loop body
LE: loop exit
PB: predicated region body
PF: predicated region fallthrough
CT: control target
= control target key end

     0   :  { %s2544_s30 = smov 0   ;;  %s2546_s10 = smov 0   ;;  %s3439_s0 = inlined_call_operand.vmem [shape: bf16[2,18,18,4], index: 0, kind: input, shape index: {}]   ;;  %s3440_s1 = inlined_call_operand.vmem [shape: bf16[4,8], index: 1, kind: input, shape index: {}]   ;;  %s3441_s2 = inlined_call_operand.vmem [shape: bf16[4,4], index: 2, kind: input, shape index: {}]   ;;  %s3442_s3 = inlined_call_operand.vmem [shape: bf16[4,4], index: 3, kind: input, shape index: {}]   ;;  %s3443_s4 = inlined_call_operand.vmem [shape: bf16[4,8], index: 4, kind: input, shape index: {}]   ;;  %s3444_s5 = inlined_call_operand.vmem [shape: bf16[512,8], index: 5, kind: output, shape index: {0}]   ;;  %s3445_s6 = inlined_call_operand.vmem [shape: bf16[512,4], index: 6, kind: output, shape index: {1}]   ;;  %s3446_s7 = inlined_call_operand.vmem [shape: bf16[512,4], index: 7, kind: output, shape index: {2}]   ;;  %s3447_s8 = inlined_call_operand.vmem [shape: bf16[512,8], index: 8, kind: output, shape index: {3}]   ;;  %s3448_s9 = inlined_call_operand.vmem [shape: f32[4,2,24], index: 9, kind: output, shape index: {4}]  }
   0x1   :  { %s2548_s11 = smov 0   ;;  %s2550_s12 = smov 0  }
   0x2   :  { %s2552_s13 = smov 0  }
   0x3 LB: > { %s29_s14 = sadd.s32 1, %s2481_s11  ;;  %s32_s15 = sadd.s32 1, %s2485_s12  ;;  %s2489_s13 = sphi %s2552_s13, %s20_s13   ;;  %s2485_s12 = sphi %s2550_s12, %s3454_s12   ;;  %s2481_s11 = sphi %s2548_s11, %s3453_s11   ;;  %s2477_s10 = sphi %s2546_s10, %s3452_s10   ;;  %s2473_s30 = sphi %s2544_s30, %s3451_s30  }
   0x4   : > { %p30_p0 = scmp.ge.s32.totalorder %s29_s14, 2  ;;  %p2349_p1 = scmp.ge.s32.totalorder %s2489_s13, 1 }
   0x5   : > { %p328_p2 = scmp.lt.s32.totalorder %s2489_s13, 5 }
   0x6   : > { %s3456_s14 = smov (%p30_p0, %s29_s14), 0  ;;  %s3458_s15 = smov (!%p30_p0, %s32_s15), %s2485_s12 }
   0x7   : > { %p329_p3 = pnand %p2349_p1, %p328_p2  ;;  %p34_p4 = scmp.ge.s32.totalorder %s3458_s15, 2 }
   0x8   : > { %p393_p5 = scmp.lt.s32.totalorder (!%p329_p3), %s2477_s10, 1  ;;  %s2402_s23 = smul.u32 (!%p329_p3), 96, %s2473_s30 }
   0x9   : > { %s3460_s15 = smov (%p34_p4, %s3458_s15), 0  ;;  %332 = sbr.rel (%p329_p3) target bundleno = 445 (0x1bd), region = 40 }
   0xa   : > { %s2351_s17 = sshll.u32 (!%p329_p3), %s2477_s10, 1 }
   0xb   : > { %s2926_s18 = sadd.s32 (!%p329_p3), %s2473_s30, %s2351_s17  ;;  %s2491_s17 = smov (!%p329_p3), 8  }
   0xc   : > { %p440_p7 = scmp.lt.s32.totalorder (!%p329_p3), %s2926_s18, 3 }
   0xe   : > { %vm1296_vm0 = vcmask 1041408   ;;  %v1473_v0 = vld [vmem:[%s3441_s2] sm:$0x3]  ;;  %s394_s20 = scalar_select %p393_p5, %s2477_s10, 1  ;;  %vm481_vm1 = vsmask.f32 3328 }
   0xf   : > { %v1649_v1 = vld [vmem:[%s3442_s3] sm:$0x3]  ;;  %v1475_v2 = vsel %vm1296_vm0, %v1473_v0, 0  ;;  %vm482_vm2 = vsmask.f32 7440  ;;  %vm724_vm4 = vcmask 1046528  }
  0x10   : > { %v1651_v3 = vsel %vm1296_vm0, %v1649_v1, 0  ;;  %1484 = vmatpush.bf16.msra.mxu1 %v1475_v2  ;;  %v1824_v4 = vld [vmem:[%s3443_s4] sm:$0x3]  ;;  %s2407_s24 = smul.u32 216, %s394_s20  ;;  %vm2615_vm3 = vmor %vm481_vm1, %vm482_vm2  ;;  %vm1271_vm5 = vcmask 31744   ;;  %vm829_vm6 = vcmask 1045504  }
  0x11   : > { %1660 = vmatpush.bf16.msra.mxu2 %v1651_v3  ;;  %v1890_v5 = vsel %vm1296_vm0, %v1824_v4, 0  ;;  %s2352_s10 = sshll.u32 %s2926_s18, 4  ;;  %vm1542_vm7 = vcmask 27648   ;;  %vm1365_vm8 = vcmask 60416   ;;  %vm1382_vm9 = vcmask 64512   ;;  %s3464_s18 = smov (!%p440_p7, %s2926_s18), 3 }
  0x12   : > { %1899 = vmatpush.bf16.msra.mxu3 %v1890_v5  ;;  %s397_s27 = scalar_lea.vmem %s3439_s0, %s2407_s24  ;;  %p401_p6 = scmp.lt.s32.totalorder %s2352_s10, 63  ;;  %vm2076_vm10 = vcmask 97280   ;;  %vm2078_vm11 = vcmask 130048   ;;  %vm2098_vm12 = vcmask 1040384   ;;  %vm2100_vm13 = vcmask 189440  }
  0x13   : > { %s2596_s28 = scalar_lea.vmem %s397_s27, %s2402_s23  ;;  %s2364_s19 = sshll.u32 %s3464_s18, 1 }
  0x14   : > { %v454_v6 = vld [vmem:[%s2596_s28 + $0xc] sm:$0xf]  ;;  %v455_v7 = vld [vmem:[%s2596_s28 + $0x10] sm:$0xf]  ;;  %v456_v8 = vld [vmem:[%s2596_s28 + $0x14] sm:$0x1]  ;;  %s443_s22 = scalar_lea.vmem %s3448_s9, %s2364_s19 }
  0x15   : > { %v485_v9 = vshrl.u32 %v454_v6, 16  ;;  %v488_v10 = vshll.u32 %v454_v6, 16  ;;  %v494_v11 = vshll.u32 %v455_v7, 16  ;;  %v498_v12 = vshrl.u32 %v455_v7, 16  ;;  %v2404_v13 = vld [vmem:[%s2596_s28] sm:$0xff]   ;;  %s3462_s10 = smov (!%p401_p6, %s2352_s10), 63 }
  0x16   : > { %v504_v14 = vshll.u32 %v456_v8, 16  ;;  %v693_v15 = vunpack.c.l.bf16 %v456_v8  ;;  %v453_v16 = vld [vmem:[%s2596_s28 + $0x8] sm:$0x1]  ;;  %v2604_v21 = vld [vmem:[%s2596_s28 + $0x18] sm:$0xf]  ;;  %v2606_v22 = vunpack.c.l.bf16 %v454_v6  ;;  %v2608_v23 = vunpack.c.l.bf16 %v455_v7  ;;  %s2936_s30 = sshll.u32 %s3462_s10, 2 }
  0x17   : > { %v487_v17 = vrot.slane %v485_v9, 4  ;;  %v490_v18 = vrot.slane %v488_v10, 5  ;;  %v496_v19 = vrot.slane %v494_v11, 5  ;;  %v500_v20 = vrot.slane %v498_v12, 4  ;;  %v2611_v25 = vld [vmem:[%s2596_s28 + $0x1c] sm:$0xf]  ;;  %s2944_s21 = scalar_lea.vmem %s3445_s6, %s2936_s30  ;;  %s2952_s24 = scalar_lea.vmem %s3446_s7, %s2936_s30 }
  0x18   : > { %v2405_v24 = vunpack.c.l.bf16 %v2404_v13  ;;  %v506_v28 = vrot.slane %v504_v14, 5  ;;  %v2406_v29 = vunpack.c.h.bf16 %v2404_v13  ;;  %v733_v31 = vrot.slane %v693_v15, 1  ;;  %v2626_v38 = vld [vmem:[%s2596_s28 + $0x20] sm:$0x1]  ;;  %v2649_v60 = vld [vmem:[%s2596_s28 + $0x24] sm:$0xf]  ;;  %s2978_s27 = scalar_lea.vmem %s3444_s5, %s2936_s30  ;;  %s2987_s16 = scalar_lea.vmem %s3447_s8, %s2936_s30 }
  0x19   : > { %v491_v26 = vor.u32 %v490_v18, %v487_v17  ;;  %v501_v27 = vor.u32 %v500_v20, %v496_v19  ;;  %v2620_v32 = vunpack.c.l.bf16 %v2604_v21  ;;  %v692_v33 = vunpack.c.l.bf16 %v453_v16  ;;  %s2492_s10 = smov 12   ;;  %s2493_s30 = smov 16  }
  0x1a   : > { %v2623_v36 = vunpack.c.l.bf16 %v2611_v25  ;;  %v725_v37 = vrot.slane %v2405_v24, 1  ;;  %v726_v39 = vrot.slane %v2406_v29, 1  ;;  %v730_v41 = vrot.slane %v2606_v22, 1 }
  0x1b   : > { %v492_v34 = vrot.slane %v491_v26, 4  ;;  %v502_v35 = vrot.slane %v501_v27, 4  ;;  %v728_v40 = vrot.slane %v692_v33, 1  ;;  %v731_v42 = vrot.slane %v2608_v23, 1  ;;  %v2671_v26 = vld [vmem:[%s2596_s28 + $0x28] sm:$0xf] }
  0x1c   : > { %v727_v47 = vsel %vm724_vm4, %v725_v37, %v726_v39  ;;  %v838_v49 = vrot.slane %v693_v15, 2  ;;  %v694_v50 = vunpack.c.l.bf16 %v2626_v38  ;;  %v735_v51 = vrot.slane %v2620_v32, 1 }
  0x1d   : > { %v497_v43 = vsel %vm2615_vm3, %v492_v34, %v496_v19  ;;  %v507_v44 = vsel %vm2615_vm3, %v502_v35, %v506_v28  ;;  %v729_v48 = vsel %vm724_vm4, %v726_v39, %v728_v40  ;;  %v732_v53 = vsel %vm724_vm4, %v730_v41, %v731_v42 }
  0x1e   : > { %v1247_v45 = vunpack.c.l.b16 %v497_v43  ;;  %v1248_v46 = vunpack.c.l.b16 %v507_v44  ;;  %v734_v54 = vsel %vm724_vm4, %v731_v42, %v733_v31  ;;  %v736_v55 = vrot.slane %v2623_v36, 1 }
  0x1f   : > { %v781_v56 = vmax.f32 %v2405_v24, %v727_v47  ;;  %v782_v57 = vmax.f32 %v2406_v29, %v729_v48  ;;  %v783_v58 = vmax.f32 %v2606_v22, %v732_v53  ;;  %v830_v59 = vrot.slane %v2405_v24, 2 }
  0x20   : > { %v2638_v52 = vpack.c.b16 %v1248_v46, %v1247_v45  ;;  %v784_v61 = vmax.f32 %v2608_v23, %v734_v54  ;;  %v831_v62 = vrot.slane %v2406_v29, 2  ;;  %v833_v63 = vrot.slane %v692_v33, 2  ;;  %v2684_v45 = vld [vmem:[%s2596_s28 + $0x2c] sm:$0x1] }
  0x21   : > { %v835_v0 = vrot.slane %v2606_v22, 2  ;;  %v738_v1 = vrot.slane %v694_v50, 1  ;;  %v836_v2 = vrot.slane %v2608_v23, 2  ;;  %v509_v5 = vshrl.u32 %v2604_v21, 16 }
  0x22   : > { %2376 = vmatmul.msk.bf16.vlgmr.msra.gmra.mxu1 %vm1271_vm5, %v2638_v52  ;;  %2384 = vmatmul.msk.bf16.vlgmr.msra.gmra.mxu2 %vm1271_vm5, %v2638_v52  ;;  %v832_v3 = vsel %vm829_vm6, %v830_v59, %v831_v62  ;;  %v834_v4 = vsel %vm829_vm6, %v831_v62, %v833_v63  ;;  %v512_v6 = vshll.u32 %v2604_v21, 16  ;;  %v2659_v7 = vunpack.c.l.bf16 %v2649_v60 }
  0x23   : > { %v737_v8 = vsel %vm724_vm4, %v735_v51, %v736_v55  ;;  %v837_v9 = vsel %vm829_vm6, %v835_v0, %v836_v2  ;;  %v839_v10 = vsel %vm829_vm6, %v836_v2, %v838_v49  ;;  %v886_v11 = vmax.f32 %v781_v56, %v832_v3  ;;  %v2699_v3 = vld [vmem:[%s2596_s28 + $0x30] sm:$0xf] }
  0x24   : > { %v887_v12 = vmax.f32 %v782_v57, %v834_v4  ;;  %v888_v13 = vmax.f32 %v783_v58, %v837_v9  ;;  %v889_v14 = vmax.f32 %v784_v61, %v839_v10  ;;  %v739_v15 = vsel %vm724_vm4, %v736_v55, %v738_v1 }
  0x25   : > { %v785_v16 = vmax.f32 %v2620_v32, %v737_v8  ;;  %v511_v17 = vrot.slane %v509_v5, 4  ;;  %v514_v18 = vrot.slane %v512_v6, 5  ;;  %v840_v19 = vrot.slane %v2620_v32, 2 }
  0x26   : > { %v841_v20 = vrot.slane %v2623_v36, 2  ;;  %v936_v21 = vmax.f32 %v886_v11, %v2606_v22  ;;  %v937_v24 = vmax.f32 %v887_v12, %v2608_v23  ;;  %v843_v27 = vrot.slane %v694_v50, 2 }
  0x27   : > { %v938_v28 = vmax.f32 %v888_v13, %v2620_v32  ;;  %v515_v29 = vor.u32 %v514_v18, %v511_v17  ;;  %v518_v31 = vshll.u32 %v2611_v25, 16  ;;  %v786_v33 = vmax.f32 %v2623_v36, %v739_v15  ;;  %v1246_v18 = vld [vmem:[%s3440_s1] sm:$0x3] }
  0x28   : > { %v939_v34 = vmax.f32 %v889_v14, %v2623_v36  ;;  %v995_v35 = vmax.f32 %v936_v21, %v732_v53  ;;  %v996_v37 = vmax.f32 %v937_v24, %v734_v54  ;;  %v522_v22 = vshrl.u32 %v2611_v25, 16 }
  0x29   : > { %v516_v39 = vrot.slane %v515_v29, 4  ;;  %v520_v40 = vrot.slane %v518_v31, 5  ;;  %v528_v23 = vshll.u32 %v2626_v38, 16  ;;  %v2680_v41 = vunpack.c.l.bf16 %v2671_v26 }
  0x2a   : > { %v842_v42 = vsel %vm829_vm6, %v840_v19, %v841_v20  ;;  %v1050_v43 = vmax.f32 %v995_v35, %v837_v9  ;;  %v1051_v44 = vmax.f32 %v996_v37, %v839_v10  ;;  %v844_v46 = vsel %vm829_vm6, %v841_v20, %v843_v27 }
  0x2b   : > { %v890_v47 = vmax.f32 %v785_v16, %v842_v42  ;;  %v997_v48 = vmax.f32 %v938_v28, %v737_v8  ;;  %v524_v49 = vrot.slane %v522_v22, 4  ;;  %v2687_v50 = vmax.f32 %v786_v33, %v844_v46 }
  0x2c   : > { %v998_v51 = vmax.f32 %v939_v34, %v739_v15  ;;  %v1100_v25 = vmax.f32 %v1050_v43, %v2620_v32  ;;  %v1101_v38 = vmax.f32 %v1051_v44, %v2623_v36  ;;  %v521_v53 = vsel %vm2615_vm3, %v516_v39, %v520_v40  ;;  %v2726_v34 = vld [vmem:[%s2596_s28 + $0x34] sm:$0xf] }
  0x2d   : > { %v525_v54 = vor.u32 %v524_v49, %v520_v40  ;;  %v530_v55 = vrot.slane %v528_v23, 5  ;;  %v695_v56 = vunpack.c.l.bf16 %v2684_v45  ;;  %v740_v59 = vrot.slane %v2659_v7, 1 }
  0x2e   : > { %v1159_v57 = vmax.f32 %v1100_v25, %v737_v8  ;;  %v1160_v58 = vmax.f32 %v1101_v38, %v739_v15  ;;  %v741_v61 = vrot.slane %v2680_v41, 1  ;;  %v1052_v62 = vmax.f32 %v997_v48, %v842_v42 }
  0x2f   : > { %v526_v63 = vrot.slane %v525_v54, 4  ;;  %v845_v32 = vrot.slane %v2659_v7, 2  ;;  %v846_v36 = vrot.slane %v2680_v41, 2  ;;  %v1249_v2 = vunpack.c.l.b16 %v521_v53 }
  0x30   : > { %v1214_v0 = vmax.f32 %v1159_v57, %v842_v42  ;;  %v1215_v1 = vmax.f32 %v1160_v58, %v844_v46  ;;  %v743_v4 = vrot.slane %v695_v56, 1  ;;  %v940_v5 = vmax.f32 %v890_v47, %v2659_v7  ;;  %v2733_v42 = vld [vmem:[%s2596_s28 + $0x38] sm:$0x1] }
  0x31   : > { %v1053_v6 = vmax.f32 %v998_v51, %v844_v46  ;;  %v531_v8 = vsel %vm2615_vm3, %v526_v63, %v530_v55  ;;  %v848_v9 = vrot.slane %v695_v56, 2  ;;  %v742_v13 = vsel %vm724_vm4, %v740_v59, %v741_v61 }
  0x32   : > { %v1230_v10 = vpack.c.bf16 %v1214_v0, %v1214_v0  ;;  %v1231_v11 = vpack.c.bf16 %v1215_v1, %v1215_v1  ;;  %v1250_v12 = vunpack.c.l.b16 %v531_v8  ;;  %v941_v14 = vmax.f32 %v2687_v50, %v2680_v41 }
  0x33   : > { %v2708_v15 = vunpack.c.l.bf16 %v2699_v3  ;;  %v847_v16 = vsel %vm829_vm6, %v845_v32, %v846_v36  ;;  %v1102_v17 = vmax.f32 %v1052_v62, %v2659_v7  ;;  %v744_v24 = vsel %vm724_vm4, %v741_v61, %v743_v4 }
  0x34   : > { %v1841_v19 = vunpack.c.l.b16 %v1230_v10  ;;  %v1842_v20 = vunpack.c.l.b16 %v1231_v11  ;;  %v2715_v21 = vpack.c.b16 %v1250_v12, %v1249_v2  ;;  %v787_v27 = vmax.f32 %v2659_v7, %v742_v13 }
  0x35   : > { %v849_v28 = vsel %vm829_vm6, %v846_v36, %v848_v9  ;;  %v1103_v29 = vmax.f32 %v1053_v6, %v2680_v41  ;;  %v1161_v31 = vmax.f32 %v1102_v17, %v742_v13  ;;  %v999_v35 = vmax.f32 %v940_v5, %v742_v13 }
  0x36   : > { %v1857_v33 = vpack.c.b16 %v1842_v20, %v1841_v19  ;;  %2377 = vmatmul.msk.bf16.gmra.mxu1 %vm1271_vm5, %v2715_v21  ;;  %2385 = vmatmul.msk.bf16.gmra.mxu2 %vm1271_vm5, %v2715_v21  ;;  %v1298_v37 = vsel %vm1296_vm0, %v1246_v18, 0  ;;  %v533_v7 = vshrl.u32 %v2649_v60, 16  ;;  %v536_v22 = vshll.u32 %v2649_v60, 16  ;;  %v2763_v19 = vld [vmem:[%s2596_s28 + $0x3c] sm:$0xf] }
  0x37   : > { %v1162_v39 = vmax.f32 %v1103_v29, %v744_v24  ;;  %v1216_v40 = vmax.f32 %v1161_v31, %v847_v16  ;;  %1307 = vmatpush.bf16.msra.mxu0 %v1298_v37  ;;  %v542_v23 = vshll.u32 %v2671_v26, 16  ;;  %v788_v43 = vmax.f32 %v2680_v41, %v744_v24  ;;  %v2766_v20 = vld [vmem:[%s2596_s28 + $0x40] sm:$0xf] }
  0x38   : > { %2392 = vmatmul.msk.bf16.vlgmr.msra.gmra.mxu3 %vm1271_vm5, %v1857_v33  ;;  %v535_v44 = vrot.slane %v533_v7, 4  ;;  %v546_v46 = vshrl.u32 %v2671_v26, 16  ;;  %v552_v47 = vshll.u32 %v2684_v45, 16  ;;  %v2740_v48 = vunpack.c.l.bf16 %v2726_v34 }
  0x39   : > { %v1217_v49 = vmax.f32 %v1162_v39, %v849_v28  ;;  %v538_v50 = vrot.slane %v536_v22, 5  ;;  %v544_v51 = vrot.slane %v542_v23, 5  ;;  %v1000_v60 = vmax.f32 %v941_v14, %v744_v24 }
  0x3a   : > { %v1232_v25 = vpack.c.bf16 %v1216_v40, %v1216_v40  ;;  %v548_v38 = vrot.slane %v546_v46, 4  ;;  %2368 = vmatmul.msk.bf16.vlgmr.msra.gmra.mxu0 %vm1271_vm5, %v2638_v52  ;;  %v696_v53 = vunpack.c.l.bf16 %v2733_v42  ;;  %v892_v41 = vmax.f32 %v787_v27, %v847_v16  ;;  %v2775_v40 = vld [vmem:[%s2596_s28 + $0x44] sm:$0x1] }
  0x3b   : > { %v1233_v54 = vpack.c.bf16 %v1217_v49, %v1217_v49  ;;  %v539_v55 = vor.u32 %v538_v50, %v535_v44  ;;  %v893_v26 = vmax.f32 %v788_v43, %v849_v28  ;;  %v1054_v56 = vmax.f32 %v999_v35, %v847_v16 }
  0x3c   : > { %v549_v45 = vor.u32 %v548_v38, %v544_v51  ;;  %v554_v57 = vrot.slane %v552_v47, 5  ;;  %v745_v59 = vrot.slane %v2708_v15, 1  ;;  %v746_v61 = vrot.slane %v2740_v48, 1 }
  0x3d   : > { %v540_v58 = vrot.slane %v539_v55, 4  ;;  %v748_v62 = vrot.slane %v696_v53, 1  ;;  %v1055_v63 = vmax.f32 %v1000_v60, %v849_v28  ;;  %v1843_v32 = vunpack.c.l.b16 %v1232_v25 }
  0x3e   : > { %v550_v36 = vrot.slane %v549_v45, 4  ;;  %v850_v52 = vrot.slane %v2708_v15, 2  ;;  %v1844_v0 = vunpack.c.l.b16 %v1233_v54  ;;  %v851_v2 = vrot.slane %v2740_v48, 2 }
  0x3f   : > { %v545_v1 = vsel %vm2615_vm3, %v540_v58, %v544_v51  ;;  %v853_v4 = vrot.slane %v696_v53, 2  ;;  %v942_v5 = vmax.f32 %v892_v41, %v2708_v15  ;;  %v1104_v9 = vmax.f32 %v1054_v56, %v2708_v15 }
  0x40   : > { %v555_v6 = vsel %vm2615_vm3, %v550_v36, %v554_v57  ;;  %v1251_v8 = vunpack.c.l.b16 %v545_v1  ;;  %v747_v11 = vsel %vm724_vm4, %v745_v59, %v746_v61  ;;  %v749_v12 = vsel %vm724_vm4, %v746_v61, %v748_v62 }
  0x41   : > { %v1252_v10 = vunpack.c.l.b16 %v555_v6  ;;  %v943_v13 = vmax.f32 %v893_v26, %v2740_v48  ;;  %v1105_v14 = vmax.f32 %v1055_v63, %v2740_v48  ;;  %v557_v16 = vshrl.u32 %v2699_v3, 16 }
  0x42   : > { %v1858_v17 = vpack.c.b16 %v1844_v0, %v1843_v32  ;;  %v852_v24 = vsel %vm829_vm6, %v850_v52, %v851_v2  ;;  %v854_v27 = vsel %vm829_vm6, %v851_v2, %v853_v4  ;;  %v1001_v28 = vmax.f32 %v942_v5, %v747_v11 }
  0x43   : > { %v2760_v18 = vpack.c.b16 %v1252_v10, %v1251_v8  ;;  %v1163_v29 = vmax.f32 %v1104_v9, %v747_v11  ;;  %v1164_v31 = vmax.f32 %v1105_v14, %v749_v12  ;;  %v559_v33 = vrot.slane %v557_v16, 4 }
  0x44   : > { %v560_v35 = vshll.u32 %v2699_v3, 16  ;;  %v566_v37 = vshll.u32 %v2726_v34, 16  ;;  %v570_v7 = vshrl.u32 %v2726_v34, 16  ;;  %v576_v39 = vshll.u32 %v2733_v42, 16 }
  0x45   : > { %v2782_v22 = vunpack.c.l.bf16 %v2763_v19  ;;  %v2785_v23 = vunpack.c.l.bf16 %v2766_v20  ;;  %v1002_v3 = vmax.f32 %v943_v13, %v749_v12  ;;  %v1218_v42 = vmax.f32 %v1163_v29, %v852_v24 }
  0x46   : > { %2378 = vmatmul.msk.bf16.gmra.mxu1 %vm1271_vm5, %v2760_v18  ;;  %2386 = vmatmul.msk.bf16.gmra.mxu2 %vm1271_vm5, %v2760_v18  ;;  %v562_v43 = vrot.slane %v560_v35, 5  ;;  %v568_v44 = vrot.slane %v566_v37, 5  ;;  %v572_v34 = vrot.slane %v570_v7, 4  ;;  %v1219_v46 = vmax.f32 %v1164_v31, %v854_v27 }
  0x47   : > { %v697_v47 = vunpack.c.l.bf16 %v2775_v40  ;;  %v1056_v49 = vmax.f32 %v1001_v28, %v852_v24  ;;  %v578_v60 = vrot.slane %v576_v39, 5  ;;  %v789_v25 = vmax.f32 %v2708_v15, %v747_v11 }
  0x48   : > { %2393 = vmatmul.msk.bf16.gmra.mxu3 %vm1271_vm5, %v1858_v17  ;;  %v563_v50 = vor.u32 %v562_v43, %v559_v33  ;;  %v573_v51 = vor.u32 %v572_v34, %v568_v44  ;;  %v750_v38 = vrot.slane %v2782_v22, 1  ;;  %v751_v53 = vrot.slane %v2785_v23, 1  ;;  %v470_v33 = vld [vmem:[%s2596_s28 + $0x4c] sm:$0xf]  ;;  %v471_v43 = vld [vmem:[%s2596_s28 + $0x50] sm:$0x1] }
  0x49   : > { %v753_v41 = vrot.slane %v697_v47, 1  ;;  %v790_v54 = vmax.f32 %v2740_v48, %v749_v12  ;;  %v1057_v55 = vmax.f32 %v1002_v3, %v854_v27  ;;  %v1234_v45 = vpack.c.bf16 %v1218_v42, %v1218_v42 }
  0x4a   : > { %2369 = vmatmul.msk.bf16.gmra.mxu0 %vm1271_vm5, %v2715_v21  ;;  %v564_v26 = vrot.slane %v563_v50, 4  ;;  %v574_v56 = vrot.slane %v573_v51, 4  ;;  %v1235_v57 = vpack.c.bf16 %v1219_v46, %v1219_v46  ;;  %v855_v58 = vrot.slane %v2782_v22, 2 }
  0x4b   : > { %v856_v59 = vrot.slane %v2785_v23, 2  ;;  %v858_v61 = vrot.slane %v697_v47, 2  ;;  %v1106_v62 = vmax.f32 %v1056_v49, %v2782_v22  ;;  %v752_v32 = vsel %vm724_vm4, %v750_v38, %v751_v53 }
  0x4c   : > { %v569_v15 = vsel %vm2615_vm3, %v564_v26, %v568_v44  ;;  %v579_v21 = vsel %vm2615_vm3, %v574_v56, %v578_v60  ;;  %v754_v36 = vsel %vm724_vm4, %v751_v53, %v753_v41  ;;  %v894_v52 = vmax.f32 %v789_v25, %v852_v24 }
  0x4d   : > { %v1253_v63 = vunpack.c.l.b16 %v569_v15  ;;  %v1254_v48 = vunpack.c.l.b16 %v579_v21  ;;  %v895_v0 = vmax.f32 %v790_v54, %v854_v27  ;;  %v1107_v1 = vmax.f32 %v1057_v55, %v2785_v23  ;;  %v469_v27 = vld [vmem:[%s2596_s28 + $0x48] sm:$0xf] }
  0x4e   : > { %v1845_v2 = vunpack.c.l.b16 %v1234_v45  ;;  %v1846_v4 = vunpack.c.l.b16 %v1235_v57  ;;  %v2806_v5 = vsel %vm829_vm6, %v855_v58, %v856_v59  ;;  %v581_v6 = vshrl.u32 %v2763_v19, 16 }
  0x4f   : > { %v2809_v8 = vpack.c.b16 %v1254_v48, %v1253_v63  ;;  %v859_v9 = vsel %vm829_vm6, %v856_v59, %v858_v61  ;;  %v1165_v10 = vmax.f32 %v1106_v62, %v752_v32  ;;  %v1166_v11 = vmax.f32 %v1107_v1, %v754_v36 }
  0x50   : > { %v583_v12 = vrot.slane %v581_v6, 4  ;;  %v584_v13 = vshll.u32 %v2763_v19, 16  ;;  %v590_v14 = vshll.u32 %v2766_v20, 16  ;;  %v594_v16 = vshrl.u32 %v2766_v20, 16 }
  0x51   : > { %v944_v17 = vmax.f32 %v894_v52, %v2782_v22  ;;  %v945_v24 = vmax.f32 %v895_v0, %v2785_v23  ;;  %v791_v28 = vmax.f32 %v2782_v22, %v752_v32  ;;  %v600_v29 = vshll.u32 %v2775_v40, 16 }
  0x52   : > { %v1859_v31 = vpack.c.b16 %v1846_v4, %v1845_v2  ;;  %v586_v35 = vrot.slane %v584_v13, 5  ;;  %v592_v37 = vrot.slane %v590_v14, 5  ;;  %v596_v7 = vrot.slane %v594_v16, 4  ;;  %v472_v16 = vld [vmem:[%s2596_s28 + $0x54] sm:$0xf] }
  0x53   : > { %v1220_v19 = vmax.f32 %v1165_v10, %v2806_v5  ;;  %v1221_v39 = vmax.f32 %v1166_v11, %v859_v9  ;;  %v2826_v20 = vunpack.c.l.bf16 %v469_v27  ;;  %v2829_v40 = vunpack.c.l.bf16 %v470_v33 }
  0x54   : > { %v587_v3 = vor.u32 %v586_v35, %v583_v12  ;;  %v597_v22 = vor.u32 %v596_v7, %v592_v37  ;;  %v792_v44 = vmax.f32 %v2785_v23, %v754_v36  ;;  %v896_v34 = vmax.f32 %v791_v28, %v2806_v5  ;;  %v474_v7 = vld [vmem:[%s2596_s28 + $0x5c] sm:$0x1] }
  0x55   : > { %v602_v42 = vrot.slane %v600_v29, 5  ;;  %v1003_v46 = vmax.f32 %v944_v17, %v752_v32  ;;  %v1004_v47 = vmax.f32 %v945_v24, %v754_v36  ;;  %v1236_v51 = vpack.c.bf16 %v1220_v19, %v1220_v19  ;;  %v473_v17 = vld [vmem:[%s2596_s28 + $0x58] sm:$0xf] }
  0x56   : > { %2379 = vmatmul.msk.bf16.gmra.mxu1 %vm1271_vm5, %v2809_v8  ;;  %2387 = vmatmul.msk.bf16.gmra.mxu2 %vm1271_vm5, %v2809_v8  ;;  %v588_v49 = vrot.slane %v587_v3, 4  ;;  %v598_v50 = vrot.slane %v597_v22, 4  ;;  %v1237_v60 = vpack.c.bf16 %v1221_v39, %v1221_v39  ;;  %v698_v25 = vunpack.c.l.bf16 %v471_v43 }
  0x57   : > { %v897_v38 = vmax.f32 %v792_v44, %v859_v9  ;;  %v946_v53 = vmax.f32 %v896_v34, %v2826_v20  ;;  %v1058_v54 = vmax.f32 %v1003_v46, %v2806_v5  ;;  %v1059_v55 = vmax.f32 %v1004_v47, %v859_v9 }
  0x58   : > { %2394 = vmatmul.msk.bf16.gmra.mxu3 %vm1271_vm5, %v1859_v31  ;;  %v593_v23 = vsel %vm2615_vm3, %v588_v49, %v592_v37  ;;  %v603_v41 = vsel %vm2615_vm3, %v598_v50, %v602_v42  ;;  %v755_v26 = vrot.slane %v2826_v20, 1  ;;  %v756_v56 = vrot.slane %v2829_v40, 1 }
  0x59   : > { %v1847_v45 = vunpack.c.l.b16 %v1236_v51  ;;  %v1848_v57 = vunpack.c.l.b16 %v1237_v60  ;;  %v758_v58 = vrot.slane %v698_v25, 1  ;;  %v1255_v59 = vunpack.c.l.b16 %v593_v23 }
  0x5a   : > { %2370 = vmatmul.msk.bf16.gmra.mxu0 %vm1271_vm5, %v2760_v18  ;;  %v605_v18 = vshrl.u32 %v469_v27, 16  ;;  %v1256_v15 = vunpack.c.l.b16 %v603_v41  ;;  %v860_v21 = vrot.slane %v2826_v20, 2  ;;  %v861_v61 = vrot.slane %v2829_v40, 2 }
  0x5b   : > { %v608_v63 = vshll.u32 %v469_v27, 16  ;;  %v614_v48 = vshll.u32 %v470_v33, 16  ;;  %v618_v32 = vshrl.u32 %v470_v33, 16  ;;  %v757_v36 = vsel %vm724_vm4, %v755_v26, %v756_v56 }
  0x5c   : > { %v607_v62 = vrot.slane %v605_v18, 4  ;;  %v863_v52 = vrot.slane %v698_v25, 2  ;;  %v1108_v0 = vmax.f32 %v1058_v54, %v2826_v20  ;;  %v1109_v1 = vmax.f32 %v1059_v55, %v2829_v40 }
  0x5d   : > { %v759_v2 = vsel %vm724_vm4, %v756_v56, %v758_v58  ;;  %v610_v4 = vrot.slane %v608_v63, 5  ;;  %v616_v5 = vrot.slane %v614_v48, 5  ;;  %v620_v6 = vrot.slane %v618_v32, 4 }
  0x5e   : > { %v2850_v9 = vpack.c.b16 %v1256_v15, %v1255_v59  ;;  %v624_v10 = vshll.u32 %v471_v43, 16  ;;  %v947_v13 = vmax.f32 %v897_v38, %v2829_v40  ;;  %v1860_v14 = vpack.c.b16 %v1848_v57, %v1847_v45 }
  0x5f   : > { %v611_v11 = vor.u32 %v610_v4, %v607_v62  ;;  %v621_v12 = vor.u32 %v620_v6, %v616_v5  ;;  %v1167_v24 = vmax.f32 %v1108_v0, %v757_v36  ;;  %v1168_v27 = vmax.f32 %v1109_v1, %v759_v2 }
  0x60   : > { %v862_v28 = vsel %vm829_vm6, %v860_v21, %v861_v61  ;;  %v864_v29 = vsel %vm829_vm6, %v861_v61, %v863_v52  ;;  %v1005_v31 = vmax.f32 %v946_v53, %v757_v36  ;;  %v626_v37 = vrot.slane %v624_v10, 5 }
  0x61   : > { %v612_v33 = vrot.slane %v611_v11, 4  ;;  %v622_v35 = vrot.slane %v621_v12, 4  ;;  %v2862_v19 = vunpack.c.l.bf16 %v472_v16  ;;  %v2864_v39 = vunpack.c.l.bf16 %v473_v17 }
  0x62   : > { %v793_v3 = vmax.f32 %v2826_v20, %v757_v36  ;;  %v1006_v22 = vmax.f32 %v947_v13, %v759_v2  ;;  %v1222_v43 = vmax.f32 %v1167_v24, %v862_v28  ;;  %v1223_v44 = vmax.f32 %v1168_v27, %v864_v29 }
  0x63   : > { %v794_v34 = vmax.f32 %v2829_v40, %v759_v2  ;;  %v1060_v42 = vmax.f32 %v1005_v31, %v862_v28  ;;  %v699_v46 = vunpack.c.l.bf16 %v474_v7  ;;  %v617_v47 = vsel %vm2615_vm3, %v612_v33, %v616_v5 }
  0x64   : > { %v627_v49 = vsel %vm2615_vm3, %v622_v35, %v626_v37  ;;  %v629_v50 = vshrl.u32 %v472_v16, 16  ;;  %v632_v51 = vshll.u32 %v472_v16, 16  ;;  %v760_v20 = vrot.slane %v2862_v19, 1  ;;  %v476_v16 = vld [vmem:[%s2596_s28 + $0x64] sm:$0xf] }
  0x65   : > { %v761_v60 = vrot.slane %v2864_v39, 1  ;;  %v638_v25 = vshll.u32 %v473_v17, 16  ;;  %v642_v38 = vshrl.u32 %v473_v17, 16  ;;  %v898_v40 = vmax.f32 %v793_v3, %v862_v28 }
  0x66   : > { %2380 = vmatmul.msk.bf16.gmra.mxu1 %vm1271_vm5, %v2850_v9  ;;  %2388 = vmatmul.msk.bf16.gmra.mxu2 %vm1271_vm5, %v2850_v9  ;;  %v1061_v53 = vmax.f32 %v1006_v22, %v864_v29  ;;  %v1238_v23 = vpack.c.bf16 %v1222_v43, %v1222_v43  ;;  %v1239_v41 = vpack.c.bf16 %v1223_v44, %v1223_v44  ;;  %v1257_v54 = vunpack.c.l.b16 %v617_v47 }
  0x67   : > { %v1258_v55 = vunpack.c.l.b16 %v627_v49  ;;  %v763_v26 = vrot.slane %v699_v46, 1  ;;  %v1110_v56 = vmax.f32 %v1060_v42, %v2862_v19  ;;  %v631_v45 = vrot.slane %v629_v50, 4 }
  0x68   : > { %2395 = vmatmul.msk.bf16.gmra.mxu3 %vm1271_vm5, %v1860_v14  ;;  %v634_v57 = vrot.slane %v632_v51, 5  ;;  %v644_v58 = vrot.slane %v642_v38, 4  ;;  %v762_v18 = vsel %vm724_vm4, %v760_v20, %v761_v60  ;;  %v865_v59 = vrot.slane %v2862_v19, 2  ;;  %v475_v14 = vld [vmem:[%s2596_s28 + $0x60] sm:$0xf] }
  0x69   : > { %v866_v15 = vrot.slane %v2864_v39, 2  ;;  %v899_v21 = vmax.f32 %v794_v34, %v864_v29  ;;  %v1849_v61 = vunpack.c.l.b16 %v1238_v23  ;;  %v1850_v62 = vunpack.c.l.b16 %v1239_v41  ;;  %v477_v29 = vld [vmem:[%s2596_s28 + $0x68] sm:$0x1] }
  0x6a   : > { %2371 = vmatmul.msk.bf16.gmra.mxu0 %vm1271_vm5, %v2809_v8  ;;  %v640_v8 = vrot.slane %v638_v25, 5  ;;  %v1111_v63 = vmax.f32 %v1061_v53, %v2864_v39  ;;  %v948_v48 = vmax.f32 %v898_v40, %v2862_v19  ;;  %v2883_v32 = vpack.c.b16 %v1258_v55, %v1257_v54 }
  0x6b   : > { %v764_v36 = vsel %vm724_vm4, %v761_v60, %v763_v26  ;;  %v868_v52 = vrot.slane %v699_v46, 2  ;;  %v1169_v0 = vmax.f32 %v1110_v56, %v762_v18  ;;  %v635_v1 = vor.u32 %v634_v57, %v631_v45 }
  0x6c   : > { %v645_v2 = vor.u32 %v644_v58, %v640_v8  ;;  %v648_v4 = vshll.u32 %v474_v7, 16  ;;  %v867_v5 = vsel %vm829_vm6, %v865_v59, %v866_v15  ;;  %v949_v6 = vmax.f32 %v899_v21, %v2864_v39 }
  0x6d   : > { %v1861_v10 = vpack.c.b16 %v1850_v62, %v1849_v61  ;;  %v1170_v11 = vmax.f32 %v1111_v63, %v764_v36  ;;  %v869_v12 = vsel %vm829_vm6, %v866_v15, %v868_v52  ;;  %v1007_v13 = vmax.f32 %v948_v48, %v762_v18 }
  0x6e   : > { %v1224_v17 = vmax.f32 %v1169_v0, %v867_v5  ;;  %v636_v24 = vrot.slane %v635_v1, 4  ;;  %v646_v27 = vrot.slane %v645_v2, 4  ;;  %v650_v28 = vrot.slane %v648_v4, 5  ;;  %v478_v4 = vld [vmem:[%s2596_s28 + $0x6c] sm:$0xff]  }
  0x6f   : > { %v1008_v31 = vmax.f32 %v949_v6, %v764_v36  ;;  %v1225_v33 = vmax.f32 %v1170_v11, %v869_v12  ;;  %v934_v35 = vunpack.c.l.bf16 %v475_v14  ;;  %v935_v37 = vunpack.c.l.bf16 %v476_v16 }
  0x70   : > { %v795_v7 = vmax.f32 %v2862_v19, %v762_v18  ;;  %v796_v3 = vmax.f32 %v2864_v39, %v764_v36  ;;  %v984_v22 = vunpack.c.l.bf16 %v477_v29  ;;  %v1062_v43 = vmax.f32 %v1007_v13, %v867_v5 }
  0x71   : > { %v1240_v44 = vpack.c.bf16 %v1224_v17, %v1224_v17  ;;  %v641_v34 = vsel %vm2615_vm3, %v636_v24, %v640_v8  ;;  %v651_v42 = vsel %vm2615_vm3, %v646_v27, %v650_v28  ;;  %v653_v46 = vshrl.u32 %v475_v14, 16 }
  0x72   : > { %v656_v47 = vshll.u32 %v475_v14, 16  ;;  %v662_v49 = vshll.u32 %v476_v16, 16  ;;  %v666_v50 = vshrl.u32 %v476_v16, 16  ;;  %v1063_v51 = vmax.f32 %v1008_v31, %v869_v12 }
  0x73   : > { %v1241_v19 = vpack.c.bf16 %v1225_v33, %v1225_v33  ;;  %v988_v20 = vrot.slane %v934_v35, 1  ;;  %v989_v39 = vrot.slane %v935_v37, 1  ;;  %v900_v60 = vmax.f32 %v795_v7, %v867_v5  ;;  %v480_v5 = vld [vmem:[%s2596_s28 + $0x74] sm:$0x1] }
  0x74   : > { %v991_v25 = vrot.slane %v984_v22, 1  ;;  %v901_v38 = vmax.f32 %v796_v3, %v869_v12  ;;  %v1851_v40 = vunpack.c.l.b16 %v1240_v44  ;;  %v1259_v53 = vunpack.c.l.b16 %v641_v34 }
  0x75   : > { %v1260_v23 = vunpack.c.l.b16 %v651_v42  ;;  %v655_v41 = vrot.slane %v653_v46, 4  ;;  %v658_v54 = vrot.slane %v656_v47, 5  ;;  %v664_v55 = vrot.slane %v662_v49, 5 }
  0x76   : > { %2381 = vmatmul.msk.bf16.gmra.mxu1 %vm1271_vm5, %v2883_v32  ;;  %2389 = vmatmul.msk.bf16.gmra.mxu2 %vm1271_vm5, %v2883_v32  ;;  %v668_v26 = vrot.slane %v666_v50, 4  ;;  %v1852_v56 = vunpack.c.l.b16 %v1241_v19  ;;  %v1112_v45 = vmax.f32 %v1062_v43, %v934_v35  ;;  %v1113_v57 = vmax.f32 %v1063_v51, %v935_v37 }
  0x77   : > { %v992_v8 = vsel %vm724_vm4, %v989_v39, %v991_v25  ;;  %v1043_v58 = vrot.slane %v934_v35, 2  ;;  %v1044_v18 = vrot.slane %v935_v37, 2  ;;  %v1046_v59 = vrot.slane %v984_v22, 2 }
  0x78   : > { %2396 = vmatmul.msk.bf16.gmra.mxu3 %vm1271_vm5, %v1861_v10  ;;  %v2907_v15 = vpack.c.b16 %v1260_v23, %v1259_v53  ;;  %v950_v21 = vmax.f32 %v900_v60, %v934_v35  ;;  %v659_v61 = vor.u32 %v658_v54, %v655_v41  ;;  %v669_v62 = vor.u32 %v668_v26, %v664_v55 }
  0x79   : > { %v672_v63 = vshll.u32 %v477_v29, 16  ;;  %v1862_v48 = vpack.c.b16 %v1852_v56, %v1851_v40  ;;  %v951_v36 = vmax.f32 %v901_v38, %v935_v37  ;;  %v1172_v0 = vmax.f32 %v1113_v57, %v992_v8 }
  0x7a   : > { %2372 = vmatmul.msk.bf16.gmra.mxu0 %vm1271_vm5, %v2850_v9  ;;  %v990_v9 = vsel %vm724_vm4, %v988_v20, %v989_v39  ;;  %v1045_v1 = vsel %vm829_vm6, %v1043_v58, %v1044_v18  ;;  %v1047_v2 = vsel %vm829_vm6, %v1044_v18, %v1046_v59  ;;  %v660_v10 = vrot.slane %v659_v61, 4 }
  0x7b   : > { %v1171_v52 = vmax.f32 %v1112_v45, %v990_v9  ;;  %v1009_v6 = vmax.f32 %v950_v21, %v990_v9  ;;  %v670_v11 = vrot.slane %v669_v62, 4  ;;  %v674_v12 = vrot.slane %v672_v63, 5 }
  0x7c   : > { %v1010_v13 = vmax.f32 %v951_v36, %v992_v8  ;;  %v1227_v16 = vmax.f32 %v1172_v0, %v1047_v2  ;;  %v1098_v17 = vunpack.c.l.bf16 %v478_v4  ;;  %v1099_v24 = vunpack.c.h.bf16 %v478_v4 }
  0x7d   : > { %v1226_v14 = vmax.f32 %v1171_v52, %v1045_v1  ;;  %v1148_v27 = vunpack.c.l.bf16 %v480_v5  ;;  %v1064_v28 = vmax.f32 %v1009_v6, %v1045_v1  ;;  %v665_v29 = vsel %vm2615_vm3, %v660_v10, %v664_v55 }
  0x7e   : > { %v675_v31 = vsel %vm2615_vm3, %v670_v11, %v674_v12  ;;  %v1065_v33 = vmax.f32 %v1010_v13, %v1047_v2  ;;  %v1243_v37 = vpack.c.bf16 %v1227_v16, %v1227_v16  ;;  %v1152_v7 = vrot.slane %v1098_v17, 1 }
  0x7f   : > { %v1242_v35 = vpack.c.bf16 %v1226_v14, %v1226_v14  ;;  %v1153_v3 = vrot.slane %v1099_v24, 1  ;;  %v1155_v22 = vrot.slane %v1148_v27, 1  ;;  %v1261_v43 = vunpack.c.l.b16 %v665_v29 }
  0x80   : > { %v1262_v44 = vunpack.c.l.b16 %v675_v31  ;;  %v1854_v42 = vunpack.c.l.b16 %v1243_v37  ;;  %v1115_v46 = vmax.f32 %v1065_v33, %v1099_v24  ;;  %v1207_v47 = vrot.slane %v1098_v17, 2 }
  0x81   : > { %v1853_v34 = vunpack.c.l.b16 %v1242_v35  ;;  %v1154_v30 = vsel %vm724_vm4, %v1152_v7, %v1153_v3  ;;  %v1156_v49 = vsel %vm724_vm4, %v1153_v3, %v1155_v22  ;;  %v1208_v50 = vrot.slane %v1099_v24, 2 }
  0x82   : > { %v1210_v51 = vrot.slane %v1148_v27, 2  ;;  %v1270_v19 = vpack.c.b16 %v1262_v44, %v1261_v43  ;;  %v1174_v60 = vmax.f32 %v1115_v46, %v1156_v49 }
  0x83   : > { %v1863_v20 = vpack.c.b16 %v1854_v42, %v1853_v34  ;;  %v1209_v25 = vsel %vm829_vm6, %v1207_v47, %v1208_v50 }
  0x84   : > { %v1211_v38 = vsel %vm829_vm6, %v1208_v50, %v1210_v51 }
  0x85   : > { %v1229_v53 = vmax.f32 %v1174_v60, %v1211_v38 }
  0x86   : > { %2382 = vmatmul.msk.bf16.gmra.mxu1 %vm1271_vm5, %v2907_v15  ;;  %2390 = vmatmul.msk.bf16.gmra.mxu2 %vm1271_vm5, %v2907_v15 }
  0x87   : > { %v1245_v41 = vpack.c.bf16 %v1229_v53, %v1229_v53 }
  0x88   : > { %2397 = vmatmul.msk.bf16.gmra.mxu3 %vm1271_vm5, %v1862_v48 }
  0x89   : > { %v1856_v56 = vunpack.c.l.b16 %v1245_v41 }
  0x8a   : > { %2373 = vmatmul.msk.bf16.gmra.mxu0 %vm1271_vm5, %v2883_v32  ;;  %v1114_v32 = vmax.f32 %v1064_v28, %v1098_v17 }
  0x8c   : > { %v1173_v39 = vmax.f32 %v1114_v32, %v1154_v30 }
  0x8e   : > { %v1228_v40 = vmax.f32 %v1173_v39, %v1209_v25 }
  0x90   : > { %v1244_v23 = vpack.c.bf16 %v1228_v40, %v1228_v40 }
  0x92   : > { %v1855_v26 = vunpack.c.l.b16 %v1244_v23 }
  0x94   : > { %v1864_v8 = vpack.c.b16 %v1856_v56, %v1855_v26 }
  0x96   : > { %2383 = vmatmul.msk.bf16.gmra.mxu1 %vm1271_vm5, %v1270_v19  ;;  %2391 = vmatmul.msk.bf16.gmra.mxu2 %vm1271_vm5, %v1270_v19 }
  0x98   : > { %2398 = vmatmul.msk.bf16.gmra.mxu3 %vm1271_vm5, %v1863_v20 }
  0x9a   : > { %2374 = vmatmul.msk.bf16.gmra.mxu0 %vm1271_vm5, %v2907_v15 }
  0x9f   : > { %v1486_v54 = vpop.f32.mrf.mxu1 }
  0xa0   : > { %v1526_v55 = vpack.c.bf16 %v1486_v54, %v1486_v54  ;;  %v1596_v9 = vmul.f32 %v1486_v54, %v1486_v54  ;;  %v1559_v57 = vsel %vm1271_vm5, %v1486_v54, 0.0 }
  0xa2   : > { %1543 = vst.msk [vmem:[%s2944_s21] sm:$0xf] %vm1542_vm7, %v1526_v55  ;;  %v1612_v59 = vsel %vm1271_vm5, %v1596_v9, 0.0 }
  0xa5   : > { %v1662_v45 = vpop.f32.mrf.mxu2 }
  0xa6   : > { %v1702_v58 = vpack.c.bf16 %v1662_v45, %v1662_v45  ;;  %v1771_v63 = vmul.f32 %v1662_v45, %v1662_v45  ;;  %v1734_v52 = vsel %vm1271_vm5, %v1662_v45, 0.0 }
  0xa7   : > { %v1488_v18 = vpop.f32.mrf.mxu1 }
  0xa8   : > { %1718 = vst.msk [vmem:[%s2952_s24] sm:$0xf] %vm1542_vm7, %v1702_v58  ;;  %v1527_v15 = vpack.c.bf16 %v1488_v18, %v1488_v18  ;;  %v1560_v21 = vsel %vm1271_vm5, %v1488_v18, 0.0  ;;  %v1597_v61 = vmul.f32 %v1488_v18, %v1488_v18  ;;  %2399 = vmatmul.msk.bf16.gmra.mxu3 %vm1271_vm5, %v1864_v8  ;;  %v1787_v1 = vsel %vm1271_vm5, %v1771_v63, 0.0 }
  0xa9   : > { %v1561_v62 = vadd.f32 %v1560_v21, %v1559_v57 }
  0xaa   : > { %1544 = vst.msk [vmem:[%s2944_s21 + $0x4] sm:$0xf] %vm1542_vm7, %v1527_v15  ;;  %v1613_v48 = vsel %vm1271_vm5, %v1597_v61, 0.0  ;;  %2375 = vmatmul.msk.bf16.gmra.mxu0 %vm1271_vm5, %v1270_v19 }
  0xab   : > { %v1614_v36 = vadd.f32 %v1613_v48, %v1612_v59 }
  0xad   : > { %v1664_v0 = vpop.f32.mrf.mxu2 }
  0xae   : > { %v1703_v2 = vpack.c.bf16 %v1664_v0, %v1664_v0  ;;  %v1735_v4 = vsel %vm1271_vm5, %v1664_v0, 0.0  ;;  %v1772_v5 = vmul.f32 %v1664_v0, %v1664_v0 }
  0xaf   : > { %v1736_v6 = vadd.f32 %v1735_v4, %v1734_v52 }
  0xb0   : > { %1719 = vst.msk [vmem:[%s2952_s24 + $0x4] sm:$0xf] %vm1542_vm7, %v1703_v2  ;;  %v1788_v10 = vsel %vm1271_vm5, %v1772_v5, 0.0 }
  0xb1   : > { %v1789_v11 = vadd.f32 %v1788_v10, %v1787_v1 }
  0xb3   : > { %v1491_v12 = vpop.f32.mrf.mxu1 }
  0xb4   : > { %v1528_v13 = vpack.c.bf16 %v1491_v12, %v1491_v12  ;;  %v1562_v14 = vsel %vm1271_vm5, %v1491_v12, 0.0  ;;  %v1598_v16 = vmul.f32 %v1491_v12, %v1491_v12 }
  0xb5   : > { %v1563_v17 = vadd.f32 %v1562_v14, %v1561_v62 }
  0xb6   : > { %1545 = vst.msk [vmem:[%s2944_s21 + $0x8] sm:$0xf] %vm1542_vm7, %v1528_v13  ;;  %v1615_v24 = vsel %vm1271_vm5, %v1598_v16, 0.0 }
  0xb7   : > { %v1616_v27 = vadd.f32 %v1615_v24, %v1614_v36  ;;  %v1309_v28 = vpop.f32.mrf.mxu0 }
  0xb8   : > { %v1349_v29 = vpack.c.bf16 %v1309_v28, %v1309_v28  ;;  %v1420_v43 = vmul.f32 %v1309_v28, %v1309_v28  ;;  %v1383_v49 = vsel %vm1382_vm9, %v1309_v28, 0.0 }
  0xb9   : > { %v1667_v31 = vpop.f32.mrf.mxu2 }
  0xba   : > { %v1704_v33 = vpack.c.bf16 %v1667_v31, %v1667_v31  ;;  %v1737_v35 = vsel %vm1271_vm5, %v1667_v31, 0.0  ;;  %v1773_v37 = vmul.f32 %v1667_v31, %v1667_v31  ;;  %1366 = vst.msk [vmem:[%s2978_s27] sm:$0xf] %vm1365_vm8, %v1349_v29  ;;  %v1436_v51 = vsel %vm1382_vm9, %v1420_v43, 0.0 }
  0xbb   : > { %v1901_v7 = vpop.f32.mrf.mxu3  ;;  %v1738_v3 = vadd.f32 %v1737_v35, %v1736_v6  ;;  %v1493_v22 = vpop.f32.mrf.mxu1 }
  0xbc   : > { %v1941_v44 = vpack.c.bf16 %v1901_v7, %v1901_v7  ;;  %1720 = vst.msk [vmem:[%s2952_s24 + $0x8] sm:$0xf] %vm1542_vm7, %v1704_v33  ;;  %v1790_v32 = vsel %vm1271_vm5, %v1773_v37, 0.0  ;;  %v1529_v42 = vpack.c.bf16 %v1493_v22, %v1493_v22  ;;  %v1564_v46 = vsel %vm1271_vm5, %v1493_v22, 0.0 }
  0xbd   : > { %v1791_v34 = vadd.f32 %v1790_v32, %v1789_v11  ;;  %v1599_v47 = vmul.f32 %v1493_v22, %v1493_v22  ;;  %v1565_v30 = vadd.f32 %v1564_v46, %v1563_v17  ;;  %v2010_v38 = vmul.f32 %v1901_v7, %v1901_v7 }
  0xbe   : > { %1957 = vst.msk [vmem:[%s2987_s16] sm:$0xf] %vm1365_vm8, %v1941_v44  ;;  %v1973_v26 = vsel %vm1382_vm9, %v1901_v7, 0.0 }
  0xbf   : > { %1546 = vst.msk [vmem:[%s2944_s21 + $0xc] sm:$0xf] %vm1542_vm7, %v1529_v42  ;;  %v1617_v50 = vsel %vm1271_vm5, %v1599_v47, 0.0  ;;  %v1311_v19 = vpop.f32.mrf.mxu0  ;;  %v2026_v63 = vsel %vm1382_vm9, %v2010_v38, 0.0 }
  0xc0   : > { %v1618_v20 = vadd.f32 %v1617_v50, %v1616_v27  ;;  %v1350_v39 = vpack.c.bf16 %v1311_v19, %v1311_v19  ;;  %v1384_v60 = vsel %vm1382_vm9, %v1311_v19, 0.0  ;;  %v1421_v25 = vmul.f32 %v1311_v19, %v1311_v19 }
  0xc1   : > { %v1669_v40 = vpop.f32.mrf.mxu2  ;;  %v1385_v53 = vadd.f32 %v1384_v60, %v1383_v49 }
  0xc2   : > { %v1705_v23 = vpack.c.bf16 %v1669_v40, %v1669_v40  ;;  %v1739_v41 = vsel %vm1271_vm5, %v1669_v40, 0.0  ;;  %v1774_v54 = vmul.f32 %v1669_v40, %v1669_v40  ;;  %1367 = vst.msk [vmem:[%s2978_s27 + $0x4] sm:$0xf] %vm1365_vm8, %v1350_v39  ;;  %v1437_v55 = vsel %vm1382_vm9, %v1421_v25, 0.0 }
  0xc3   : > { %v1903_v56 = vpop.f32.mrf.mxu3  ;;  %v1740_v9 = vadd.f32 %v1739_v41, %v1738_v3  ;;  %v1496_v45 = vpop.f32.mrf.mxu1  ;;  %v1438_v57 = vadd.f32 %v1437_v55, %v1436_v51 }
  0xc4   : > { %v1942_v8 = vpack.c.bf16 %v1903_v56, %v1903_v56  ;;  %v1974_v58 = vsel %vm1382_vm9, %v1903_v56, 0.0  ;;  %v2011_v18 = vmul.f32 %v1903_v56, %v1903_v56  ;;  %1721 = vst.msk [vmem:[%s2952_s24 + $0xc] sm:$0xf] %vm1542_vm7, %v1705_v23  ;;  %v1792_v59 = vsel %vm1271_vm5, %v1774_v54, 0.0 }
  0xc5   : > { %v1975_v15 = vadd.f32 %v1974_v58, %v1973_v26  ;;  %v1793_v21 = vadd.f32 %v1792_v59, %v1791_v34  ;;  %v1530_v61 = vpack.c.bf16 %v1496_v45, %v1496_v45  ;;  %v1566_v62 = vsel %vm1271_vm5, %v1496_v45, 0.0 }
  0xc6   : > { %1958 = vst.msk [vmem:[%s2987_s16 + $0x4] sm:$0xf] %vm1365_vm8, %v1942_v8  ;;  %v2027_v48 = vsel %vm1382_vm9, %v2011_v18, 0.0  ;;  %v3015_v36 = vadd.f32 %v1566_v62, %v1565_v30  ;;  %v1600_v52 = vmul.f32 %v1496_v45, %v1496_v45 }
  0xc7   : > { %v2028_v0 = vadd.f32 %v2027_v48, %v2026_v63  ;;  %1547 = vst.msk [vmem:[%s2944_s21 + $0x10] sm:$0xf] %vm1542_vm7, %v1530_v61  ;;  %v1314_v1 = vpop.f32.mrf.mxu0 }
  0xc8   : > { %v1619_v2 = vsel %vm1271_vm5, %v1600_v52, 0.0  ;;  %v1351_v4 = vpack.c.bf16 %v1314_v1, %v1314_v1  ;;  %v1386_v5 = vsel %vm1382_vm9, %v1314_v1, 0.0  ;;  %v1422_v6 = vmul.f32 %v1314_v1, %v1314_v1 }
  0xc9   : > { %v3021_v10 = vadd.f32 %v1619_v2, %v1618_v20  ;;  %v1672_v11 = vpop.f32.mrf.mxu2  ;;  %v1387_v12 = vadd.f32 %v1386_v5, %v1385_v53 }
  0xca   : > { %v1706_v13 = vpack.c.bf16 %v1672_v11, %v1672_v11  ;;  %v1741_v14 = vsel %vm1271_vm5, %v1672_v11, 0.0  ;;  %v1775_v16 = vmul.f32 %v1672_v11, %v1672_v11  ;;  %1368 = vst.msk [vmem:[%s2978_s27 + $0x8] sm:$0xf] %vm1365_vm8, %v1351_v4  ;;  %v1439_v17 = vsel %vm1382_vm9, %v1422_v6, 0.0 }
  0xcb   : > { %v1906_v24 = vpop.f32.mrf.mxu3  ;;  %v3027_v27 = vadd.f32 %v1741_v14, %v1740_v9  ;;  %v3029_v28 = vpop.f32.mrf.mxu1  ;;  %v1440_v29 = vadd.f32 %v1439_v17, %v1438_v57 }
  0xcc   : > { %v1943_v31 = vpack.c.bf16 %v1906_v24, %v1906_v24  ;;  %v1976_v33 = vsel %vm1382_vm9, %v1906_v24, 0.0  ;;  %v2012_v35 = vmul.f32 %v1906_v24, %v1906_v24  ;;  %1722 = vst.msk [vmem:[%s2952_s24 + $0x10] sm:$0xf] %vm1542_vm7, %v1706_v13  ;;  %v1794_v37 = vsel %vm1271_vm5, %v1775_v16, 0.0 }
  0xcd   : > { %v1977_v7 = vadd.f32 %v1976_v33, %v1975_v15  ;;  %v1795_v3 = vadd.f32 %v1794_v37, %v1793_v21  ;;  %v1531_v22 = vpack.c.bf16 %v3029_v28, %v3029_v28 }
  0xce   : > { %1959 = vst.msk [vmem:[%s2987_s16 + $0x8] sm:$0xf] %vm1365_vm8, %v1943_v31  ;;  %v2029_v43 = vsel %vm1382_vm9, %v2012_v35, 0.0 }
  0xcf   : > { %v2030_v44 = vadd.f32 %v2029_v43, %v2028_v0  ;;  %1548 = vst.msk [vmem:[%s2944_s21 + $0x14] sm:$0xf] %vm1542_vm7, %v1531_v22  ;;  %v1316_v32 = vpop.f32.mrf.mxu0 }
  0xd0   : > { %v1352_v34 = vpack.c.bf16 %v1316_v32, %v1316_v32  ;;  %v1388_v42 = vsel %vm1382_vm9, %v1316_v32, 0.0  ;;  %v1423_v46 = vmul.f32 %v1316_v32, %v1316_v32 }
  0xd1   : > { %v3043_v47 = vpop.f32.mrf.mxu2  ;;  %v1389_v30 = vadd.f32 %v1388_v42, %v1387_v12 }
  0xd2   : > { %v1707_v49 = vpack.c.bf16 %v3043_v47, %v3043_v47  ;;  %v1776_v50 = vmul.f32 %v3043_v47, %v3043_v47  ;;  %1369 = vst.msk [vmem:[%s2978_s27 + $0xc] sm:$0xf] %vm1365_vm8, %v1352_v34  ;;  %v1441_v51 = vsel %vm1382_vm9, %v1423_v46, 0.0 }
  0xd3   : > { %v1908_v19 = vpop.f32.mrf.mxu3  ;;  %v3052_v20 = vpop.f32.mrf.mxu1  ;;  %v1442_v39 = vadd.f32 %v1441_v51, %v1440_v29 }
  0xd4   : > { %v1944_v60 = vpack.c.bf16 %v1908_v19, %v1908_v19  ;;  %v1978_v25 = vsel %vm1382_vm9, %v1908_v19, 0.0  ;;  %v2013_v38 = vmul.f32 %v1908_v19, %v1908_v19  ;;  %1723 = vst.msk [vmem:[%s2952_s24 + $0x14] sm:$0xf] %vm1542_vm7, %v1707_v49  ;;  %v1796_v40 = vsel %vm1271_vm5, %v1776_v50, 0.0 }
  0xd5   : > { %v1979_v53 = vadd.f32 %v1978_v25, %v1977_v7  ;;  %v3058_v23 = vadd.f32 %v1796_v40, %v1795_v3  ;;  %v1532_v41 = vpack.c.bf16 %v3052_v20, %v3052_v20  ;;  %v1601_v50 = vmul.f32 %v3029_v28, %v3029_v28 }
  0xd6   : > { %1960 = vst.msk [vmem:[%s2987_s16 + $0xc] sm:$0xf] %vm1365_vm8, %v1944_v60  ;;  %v2031_v54 = vsel %vm1382_vm9, %v2013_v38, 0.0 }
  0xd7   : > { %v2032_v55 = vadd.f32 %v2031_v54, %v2030_v44  ;;  %1549 = vst.msk [vmem:[%s2944_s21 + $0x18] sm:$0xf] %vm1542_vm7, %v1532_v41  ;;  %v1319_v26 = vpop.f32.mrf.mxu0 }
  0xd8   : > { %v1353_v56 = vpack.c.bf16 %v1319_v26, %v1319_v26  ;;  %v1390_v9 = vsel %vm1382_vm9, %v1319_v26, 0.0  ;;  %v1424_v45 = vmul.f32 %v1319_v26, %v1319_v26  ;;  %v1621_v26 = vsel %vm1271_vm5, %v1601_v50, 0.0 }
  0xd9   : > { %v3068_v57 = vpop.f32.mrf.mxu2  ;;  %v1391_v8 = vadd.f32 %v1390_v9, %v1389_v30 }
  0xda   : > { %v1708_v58 = vpack.c.bf16 %v3068_v57, %v3068_v57  ;;  %1370 = vst.msk [vmem:[%s2978_s27 + $0x10] sm:$0xf] %vm1365_vm8, %v1353_v56  ;;  %v1443_v18 = vsel %vm1382_vm9, %v1424_v45, 0.0  ;;  %v1743_v56 = vsel %vm1271_vm5, %v3043_v47, 0.0  ;;  %v1602_v45 = vmul.f32 %v3052_v20, %v3052_v20 }
  0xdb   : > { %v1911_v59 = vpop.f32.mrf.mxu3  ;;  %v3075_v15 = vpop.f32.mrf.mxu1  ;;  %v1444_v21 = vadd.f32 %v1443_v18, %v1442_v39  ;;  %v1622_v47 = vadd.f32 %v1621_v26, %v3021_v10  ;;  %v1744_v18 = vadd.f32 %v1743_v56, %v3027_v27  ;;  %v1745_v10 = vsel %vm1271_vm5, %v3068_v57, 0.0 }
  0xdc   : > { %v1945_v61 = vpack.c.bf16 %v1911_v59, %v1911_v59  ;;  %v1980_v62 = vsel %vm1382_vm9, %v1911_v59, 0.0  ;;  %v2014_v63 = vmul.f32 %v1911_v59, %v1911_v59  ;;  %1724 = vst.msk [vmem:[%s2952_s24 + $0x18] sm:$0xf] %vm1542_vm7, %v1708_v58  ;;  %v1533_v52 = vpack.c.bf16 %v3075_v15, %v3075_v15 }
  0xdd   : > { %v3080_v48 = vadd.f32 %v1980_v62, %v1979_v53  ;;  %v1603_v59 = vmul.f32 %v3075_v15, %v3075_v15 }
  0xde   : > { %1961 = vst.msk [vmem:[%s2987_s16 + $0x10] sm:$0xf] %vm1365_vm8, %v1945_v61  ;;  %v2033_v0 = vsel %vm1382_vm9, %v2014_v63, 0.0  ;;  %v1570_v61 = vsel %vm1271_vm5, %v3052_v20, 0.0 }
  0xdf   : > { %v3087_v1 = vadd.f32 %v2033_v0, %v2032_v55  ;;  %1550 = vst.msk [vmem:[%s2944_s21 + $0x1c] sm:$0xf] %vm1542_vm7, %v1533_v52  ;;  %v1321_v2 = vpop.f32.mrf.mxu0  ;;  %v1568_v55 = vsel %vm1271_vm5, %v3029_v28, 0.0 }
  0xe0   : > { %v1354_v4 = vpack.c.bf16 %v1321_v2, %v1321_v2  ;;  %v1392_v5 = vsel %vm1382_vm9, %v1321_v2, 0.0  ;;  %v1425_v6 = vmul.f32 %v1321_v2, %v1321_v2  ;;  %v1569_v28 = vadd.f32 %v1568_v55, %v3015_v36 }
  0xe1   : > { %v3092_v11 = vpop.f32.mrf.mxu2  ;;  %v1393_v12 = vadd.f32 %v1392_v5, %v1391_v8  ;;  %v1777_v8 = vmul.f32 %v3068_v57, %v3068_v57  ;;  %v1623_v36 = vsel %vm1271_vm5, %v1602_v45, 0.0 }
  0xe2   : > { %v1709_v13 = vpack.c.bf16 %v3092_v11, %v3092_v11  ;;  %1371 = vst.msk [vmem:[%s2978_s27 + $0x14] sm:$0xf] %vm1365_vm8, %v1354_v4  ;;  %v1445_v14 = vsel %vm1382_vm9, %v1425_v6, 0.0  ;;  %v1572_v4 = vsel %vm1271_vm5, %v3075_v15, 0.0  ;;  %v1778_v20 = vmul.f32 %v3092_v11, %v3092_v11 }
  0xe3   : > { %v3099_v16 = vpop.f32.mrf.mxu3  ;;  %v3101_v17 = vpop.f32.mrf.mxu1  ;;  %v1446_v24 = vadd.f32 %v1445_v14, %v1444_v21  ;;  %v1798_v27 = vsel %vm1271_vm5, %v1777_v8, 0.0  ;;  %v1571_v57 = vadd.f32 %v1570_v61, %v1569_v28  ;;  %v1624_v15 = vadd.f32 %v1623_v36, %v1622_v47 }
  0xe4   : > { %v1946_v29 = vpack.c.bf16 %v3099_v16, %v3099_v16  ;;  %1725 = vst.msk [vmem:[%s2952_s24 + $0x1c] sm:$0xf] %vm1542_vm7, %v1709_v13  ;;  %v1534_v31 = vpack.c.bf16 %v3101_v17, %v3101_v17 }
  0xe6   : > { %1962 = vst.msk [vmem:[%s2987_s16 + $0x14] sm:$0xf] %vm1365_vm8, %v1946_v29  ;;  %v1746_v29 = vadd.f32 %v1745_v10, %v1744_v18 }
  0xe7   : > { %1551 = vst.msk [vmem:[%s2944_s21 + $0x20] sm:$0xf] %vm1542_vm7, %v1534_v31  ;;  %v1324_v33 = vpop.f32.mrf.mxu0  ;;  %v1747_v31 = vsel %vm1271_vm5, %v3092_v11, 0.0  ;;  %v1800_v11 = vsel %vm1271_vm5, %v1778_v20, 0.0 }
  0xe8   : > { %v1355_v35 = vpack.c.bf16 %v1324_v33, %v1324_v33  ;;  %v1394_v37 = vsel %vm1382_vm9, %v1324_v33, 0.0  ;;  %v1426_v7 = vmul.f32 %v1324_v33, %v1324_v33 }
  0xe9   : > { %v3114_v3 = vpop.f32.mrf.mxu2  ;;  %v1395_v22 = vadd.f32 %v1394_v37, %v1393_v12  ;;  %v1625_v12 = vsel %vm1271_vm5, %v1603_v59, 0.0  ;;  %v1573_v37 = vadd.f32 %v1572_v4, %v1571_v57 }
  0xea   : > { %v1710_v43 = vpack.c.bf16 %v3114_v3, %v3114_v3  ;;  %1372 = vst.msk [vmem:[%s2978_s27 + $0x18] sm:$0xf] %vm1365_vm8, %v1355_v35  ;;  %v1447_v44 = vsel %vm1382_vm9, %v1426_v7, 0.0  ;;  %v1799_v35 = vadd.f32 %v1798_v27, %v3058_v23  ;;  %v2015_v7 = vmul.f32 %v3099_v16, %v3099_v16 }
  0xeb   : > { %v3121_v32 = vpop.f32.mrf.mxu3  ;;  %v3123_v34 = vpop.f32.mrf.mxu1  ;;  %v1448_v42 = vadd.f32 %v1447_v44, %v1446_v24  ;;  %v1982_v44 = vsel %vm1382_vm9, %v3099_v16, 0.0  ;;  %v1574_v23 = vsel %vm1271_vm5, %v3101_v17, 0.0  ;;  %v1749_v45 = vsel %vm1271_vm5, %v3114_v3, 0.0 }
  0xec   : > { %v1947_v46 = vpack.c.bf16 %v3121_v32, %v3121_v32  ;;  %1726 = vst.msk [vmem:[%s2952_s24 + $0x20] sm:$0xf] %vm1542_vm7, %v1710_v43  ;;  %v1535_v30 = vpack.c.bf16 %v3123_v34, %v3123_v34  ;;  %v1626_v43 = vadd.f32 %v1625_v12, %v1624_v15  ;;  %v1605_v50 = vmul.f32 %v3123_v34, %v3123_v34 }
  0xed   : > { %v1575_v55 = vadd.f32 %v1574_v23, %v1573_v37  ;;  %v1576_v59 = vsel %vm1271_vm5, %v3123_v34, 0.0 }
  0xee   : > { %1963 = vst.msk [vmem:[%s2987_s16 + $0x18] sm:$0xf] %vm1365_vm8, %v1947_v46  ;;  %v1748_v46 = vadd.f32 %v1747_v31, %v1746_v29 }
  0xef   : > { %1552 = vst.msk [vmem:[%s2944_s21 + $0x24] sm:$0xf] %vm1542_vm7, %v1535_v30  ;;  %v1326_v49 = vpop.f32.mrf.mxu0  ;;  %v2016_v30 = vmul.f32 %v3121_v32, %v3121_v32 }
  0xf0   : > { %v1356_v51 = vpack.c.bf16 %v1326_v49, %v1326_v49  ;;  %v1396_v19 = vsel %vm1382_vm9, %v1326_v49, 0.0  ;;  %v1427_v39 = vmul.f32 %v1326_v49, %v1326_v49  ;;  %v1779_v49 = vmul.f32 %v3114_v3, %v3114_v3 }
  0xf1   : > { %v3138_v60 = vpop.f32.mrf.mxu2  ;;  %v1397_v25 = vadd.f32 %v1396_v19, %v1395_v22  ;;  %v2037_v18 = vsel %vm1382_vm9, %v2016_v30, 0.0  ;;  %v1750_v36 = vadd.f32 %v1749_v45, %v1748_v46 }
  0xf2   : > { %v1711_v38 = vpack.c.bf16 %v3138_v60, %v3138_v60  ;;  %1373 = vst.msk [vmem:[%s2978_s27 + $0x1c] sm:$0xf] %vm1365_vm8, %v1356_v51  ;;  %v1449_v40 = vsel %vm1382_vm9, %v1427_v39, 0.0  ;;  %v1802_v8 = vsel %vm1271_vm5, %v1779_v49, 0.0 }
  0xf3   : > { %v3145_v53 = vpop.f32.mrf.mxu3  ;;  %v3147_v41 = vpop.f32.mrf.mxu1  ;;  %v1450_v54 = vadd.f32 %v1449_v40, %v1448_v42  ;;  %v1604_v42 = vmul.f32 %v3101_v17, %v3101_v17  ;;  %v2035_v17 = vsel %vm1382_vm9, %v2015_v7, 0.0 }
  0xf4   : > { %v1948_v9 = vpack.c.bf16 %v3145_v53, %v3145_v53  ;;  %1727 = vst.msk [vmem:[%s2952_s24 + $0x24] sm:$0xf] %vm1542_vm7, %v1711_v38  ;;  %v1536_v58 = vpack.c.bf16 %v3147_v41, %v3147_v41  ;;  %v1801_v38 = vadd.f32 %v1800_v11, %v1799_v35  ;;  %v2036_v3 = vadd.f32 %v2035_v17, %v3087_v1 }
  0xf5   : > { %v1627_v26 = vsel %vm1271_vm5, %v1604_v42, 0.0  ;;  %v2017_v10 = vmul.f32 %v3145_v53, %v3145_v53  ;;  %v1606_v1 = vmul.f32 %v3147_v41, %v3147_v41  ;;  %v1578_v29 = vsel %vm1271_vm5, %v3147_v41, 0.0 }
  0xf6   : > { %1964 = vst.msk [vmem:[%s2987_s16 + $0x1c] sm:$0xf] %vm1365_vm8, %v1948_v9  ;;  %v1628_v61 = vadd.f32 %v1627_v26, %v1626_v43  ;;  %v1803_v34 = vadd.f32 %v1802_v8, %v1801_v38  ;;  %v2038_v27 = vadd.f32 %v2037_v18, %v2036_v3 }
  0xf7   : > { %1553 = vst.msk [vmem:[%s2944_s21 + $0x28] sm:$0xf] %vm1542_vm7, %v1536_v58  ;;  %v1329_v21 = vpop.f32.mrf.mxu0  ;;  %v2039_v35 = vsel %vm1382_vm9, %v2017_v10, 0.0  ;;  %v1631_v7 = vsel %vm1271_vm5, %v1606_v1, 0.0 }
  0xf8   : > { %v1357_v62 = vpack.c.bf16 %v1329_v21, %v1329_v21  ;;  %v1398_v63 = vsel %vm1382_vm9, %v1329_v21, 0.0  ;;  %v1428_v52 = vmul.f32 %v1329_v21, %v1329_v21  ;;  %v1629_v21 = vsel %vm1271_vm5, %v1605_v50, 0.0 }
  0xf9   : > { %v3180_v0 = vpop.f32.mrf.mxu2  ;;  %v1399_v2 = vadd.f32 %v1398_v63, %v1397_v25  ;;  %v1983_v25 = vadd.f32 %v1982_v44, %v3080_v48  ;;  %v1984_v48 = vsel %vm1382_vm9, %v3121_v32, 0.0  ;;  %v1630_v4 = vadd.f32 %v1629_v21, %v1628_v61 }
  0xfa   : > { %v1712_v5 = vpack.c.bf16 %v3180_v0, %v3180_v0  ;;  %1374 = vst.msk [vmem:[%s2978_s27 + $0x20] sm:$0xf] %vm1365_vm8, %v1357_v62  ;;  %v1451_v6 = vsel %vm1382_vm9, %v1428_v52, 0.0  ;;  %v1780_v62 = vmul.f32 %v3138_v60, %v3138_v60 }
  0xfb   : > { %v3192_v13 = vpop.f32.mrf.mxu3  ;;  %v3194_v14 = vpop.f32.mrf.mxu1  ;;  %v1452_v24 = vadd.f32 %v1451_v6, %v1450_v54  ;;  %v1985_v52 = vadd.f32 %v1984_v48, %v1983_v25 }
  0xfc   : > { %v1949_v33 = vpack.c.bf16 %v3192_v13, %v3192_v13  ;;  %1728 = vst.msk [vmem:[%s2952_s24 + $0x28] sm:$0xf] %vm1542_vm7, %v1712_v5  ;;  %v1537_v22 = vpack.c.bf16 %v3194_v14, %v3194_v14  ;;  %v1751_v5 = vsel %vm1271_vm5, %v3138_v60, 0.0  ;;  %v1804_v15 = vsel %vm1271_vm5, %v1780_v62, 0.0 }
  0xfd   : > { %v1781_v60 = vmul.f32 %v3180_v0, %v3180_v0  ;;  %v2018_v41 = vmul.f32 %v3192_v13, %v3192_v13  ;;  %v1752_v46 = vadd.f32 %v1751_v5, %v1750_v36  ;;  %v1988_v23 = vsel %vm1382_vm9, %v3192_v13, 0.0 }
  0xfe   : > { %1965 = vst.msk [vmem:[%s2987_s16 + $0x20] sm:$0xf] %vm1365_vm8, %v1949_v33  ;;  %v1805_v49 = vadd.f32 %v1804_v15, %v1803_v34  ;;  %v1580_v38 = vsel %vm1271_vm5, %v3194_v14, 0.0 }
  0xff   : > { %1554 = vst.msk [vmem:[%s2944_s21 + $0x2c] sm:$0xf] %vm1542_vm7, %v1537_v22  ;;  %v1331_v16 = vpop.f32.mrf.mxu0  ;;  %v1753_v22 = vsel %vm1271_vm5, %v3180_v0, 0.0  ;;  %v1607_v0 = vmul.f32 %v3194_v14, %v3194_v14  ;;  %v1806_v25 = vsel %vm1271_vm5, %v1781_v60, 0.0  ;;  %v2041_v17 = vsel %vm1382_vm9, %v2018_v41, 0.0 }
 0x100   : > { %v1358_v51 = vpack.c.bf16 %v1331_v16, %v1331_v16  ;;  %v1400_v19 = vsel %vm1382_vm9, %v1331_v16, 0.0  ;;  %v1429_v39 = vmul.f32 %v1331_v16, %v1331_v16  ;;  %v1807_v45 = vadd.f32 %v1806_v25, %v1805_v49 }
 0x101   : > { %v3227_v40 = vpop.f32.mrf.mxu2  ;;  %v1401_v54 = vadd.f32 %v1400_v19, %v1399_v2  ;;  %v1577_v2 = vadd.f32 %v1576_v59, %v1575_v55  ;;  %v1632_v19 = vadd.f32 %v1631_v7, %v1630_v4  ;;  %v1633_v8 = vsel %vm1271_vm5, %v1607_v0, 0.0 }
 0x102   : > { %v1713_v56 = vpack.c.bf16 %v3227_v40, %v3227_v40  ;;  %1375 = vst.msk [vmem:[%s2978_s27 + $0x24] sm:$0xf] %vm1365_vm8, %v1358_v51  ;;  %v1453_v9 = vsel %vm1382_vm9, %v1429_v39, 0.0  ;;  %v2040_v51 = vadd.f32 %v2039_v35, %v2038_v27  ;;  %v1754_v39 = vadd.f32 %v1753_v22, %v1752_v46 }
 0x103   : > { %v3240_v58 = vpop.f32.mrf.mxu3  ;;  %v3242_v28 = vpop.f32.mrf.mxu1  ;;  %v1454_v47 = vadd.f32 %v1453_v9, %v1452_v24  ;;  %v1986_v24 = vsel %vm1382_vm9, %v3145_v53, 0.0  ;;  %v1579_v16 = vadd.f32 %v1578_v29, %v1577_v2  ;;  %v1755_v14 = vsel %vm1271_vm5, %v3227_v40, 0.0 }
 0x104   : > { %v1950_v32 = vpack.c.bf16 %v3240_v58, %v3240_v58  ;;  %1729 = vst.msk [vmem:[%s2952_s24 + $0x2c] sm:$0xf] %vm1542_vm7, %v1713_v56  ;;  %v1538_v63 = vpack.c.bf16 %v3242_v28, %v3242_v28  ;;  %v1987_v42 = vadd.f32 %v1986_v24, %v1985_v52  ;;  %v1608_v26 = vmul.f32 %v3242_v28, %v3242_v28 }
 0x105   : > { %v1990_v59 = vsel %vm1382_vm9, %v3240_v58, 0.0  ;;  %v2019_v21 = vmul.f32 %v3240_v58, %v3240_v58  ;;  %v3321_v61 = vadd.f32 %v2041_v17, %v2040_v51  ;;  %v1581_v62 = vadd.f32 %v1580_v38, %v1579_v16 }
 0x106   : > { %1966 = vst.msk [vmem:[%s2987_s16 + $0x24] sm:$0xf] %vm1365_vm8, %v1950_v32  ;;  %v1989_v13 = vadd.f32 %v1988_v23, %v1987_v42  ;;  %v1634_v34 = vadd.f32 %v1633_v8, %v1632_v19  ;;  %v1582_v10 = vsel %vm1271_vm5, %v3242_v28, 0.0  ;;  %v1635_v58 = vsel %vm1271_vm5, %v1608_v26, 0.0 }
 0x107   : > { %1555 = vst.msk [vmem:[%s2944_s21 + $0x30] sm:$0xf] %vm1542_vm7, %v1538_v63  ;;  %v1334_v20 = vpop.f32.mrf.mxu0  ;;  %v1756_v4 = vadd.f32 %v1755_v14, %v1754_v39  ;;  %v3338_v5 = vsel %vm1382_vm9, %v2019_v21, 0.0 }
 0x108   : > { %v1359_v6 = vpack.c.bf16 %v1334_v20, %v1334_v20  ;;  %v1402_v57 = vsel %vm1382_vm9, %v1334_v20, 0.0  ;;  %v1430_v12 = vmul.f32 %v1334_v20, %v1334_v20  ;;  %v3333_v2 = vadd.f32 %v1990_v59, %v1989_v13 }
 0x109   : > { %v3273_v31 = vpop.f32.mrf.mxu2  ;;  %v1403_v33 = vadd.f32 %v1402_v57, %v1401_v54  ;;  %v1782_v54 = vmul.f32 %v3227_v40, %v3227_v40  ;;  %v1636_v24 = vadd.f32 %v1635_v58, %v1634_v34 }
 0x10a   : > { %v1714_v37 = vpack.c.bf16 %v3273_v31, %v3273_v31  ;;  %1376 = vst.msk [vmem:[%s2978_s27 + $0x28] sm:$0xf] %vm1365_vm8, %v1359_v6  ;;  %v1455_v53 = vsel %vm1382_vm9, %v1430_v12, 0.0  ;;  %v1783_v1 = vmul.f32 %v3273_v31, %v3273_v31  ;;  %v1757_v28 = vsel %vm1271_vm5, %v3273_v31, 0.0 }
 0x10b   : > { %v3288_v43 = vpop.f32.mrf.mxu3  ;;  %v1518_v44 = vpop.f32.mrf.mxu1  ;;  %v1456_v11 = vadd.f32 %v1455_v53, %v1454_v47  ;;  %v1808_v63 = vsel %vm1271_vm5, %v1782_v54, 0.0  ;;  %v1583_v12 = vadd.f32 %v1582_v10, %v1581_v62  ;;  %v1758_v7 = vadd.f32 %v1757_v28, %v1756_v4 }
 0x10c   : > { %v1951_v30 = vpack.c.bf16 %v3288_v43, %v3288_v43  ;;  %1730 = vst.msk [vmem:[%s2952_s24 + $0x30] sm:$0xf] %vm1542_vm7, %v1714_v37  ;;  %v1539_v50 = vpack.c.bf16 %v1518_v44, %v1518_v44  ;;  %v1809_v6 = vadd.f32 %v1808_v63, %v1807_v45  ;;  %v1609_v57 = vmul.f32 %v1518_v44, %v1518_v44 }
 0x10d   : > { %v1584_v15 = vsel %vm1271_vm5, %v1518_v44, 0.0  ;;  %v1810_v31 = vsel %vm1271_vm5, %v1783_v1, 0.0  ;;  %v2020_v26 = vmul.f32 %v3288_v43, %v3288_v43 }
 0x10e   : > { %1967 = vst.msk [vmem:[%s2987_s16 + $0x28] sm:$0xf] %vm1365_vm8, %v1951_v30  ;;  %v1585_v42 = vadd.f32 %v1584_v15, %v1583_v12  ;;  %v1637_v44 = vsel %vm1271_vm5, %v1609_v57, 0.0  ;;  %v1992_v30 = vsel %vm1382_vm9, %v3288_v43, 0.0  ;;  %v1811_v17 = vadd.f32 %v1810_v31, %v1809_v6 }
 0x10f   : > { %1556 = vst.msk [vmem:[%s2944_s21 + $0x34] sm:$0xf] %vm1542_vm7, %v1539_v50  ;;  %v1336_v55 = vpop.f32.mrf.mxu0  ;;  %v1638_v38 = vadd.f32 %v1637_v44, %v1636_v24  ;;  %v2044_v57 = vadd.f32 %v3338_v5, %v3321_v61  ;;  %v1993_v15 = vadd.f32 %v1992_v30, %v3333_v2 }
 0x110   : > { %v1360_v56 = vpack.c.bf16 %v1336_v55, %v1336_v55  ;;  %v1404_v9 = vsel %vm1382_vm9, %v1336_v55, 0.0  ;;  %v1431_v48 = vmul.f32 %v1336_v55, %v1336_v55 }
 0x111   : > { %v1694_v47 = vpop.f32.mrf.mxu2  ;;  %v1405_v18 = vadd.f32 %v1404_v9, %v1403_v33 }
 0x112   : > { %v1715_v32 = vpack.c.bf16 %v1694_v47, %v1694_v47  ;;  %1377 = vst.msk [vmem:[%s2978_s27 + $0x2c] sm:$0xf] %vm1365_vm8, %v1360_v56  ;;  %v1457_v3 = vsel %vm1382_vm9, %v1431_v48, 0.0  ;;  %v1784_v29 = vmul.f32 %v1694_v47, %v1694_v47  ;;  %v1759_v49 = vsel %vm1271_vm5, %v1694_v47, 0.0 }
 0x113   : > { %v3324_v40 = vpop.f32.mrf.mxu3  ;;  %v1521_v52 = vpop.f32.mrf.mxu1  ;;  %v1458_v36 = vadd.f32 %v1457_v3, %v1456_v11  ;;  %v1760_v45 = vadd.f32 %v1759_v49, %v1758_v7 }
 0x114   : > { %v1952_v27 = vpack.c.bf16 %v3324_v40, %v3324_v40  ;;  %1731 = vst.msk [vmem:[%s2952_s24 + $0x34] sm:$0xf] %vm1542_vm7, %v1715_v32  ;;  %v1540_v20 = vpack.c.bf16 %v1521_v52, %v1521_v52  ;;  %v1610_v35 = vmul.f32 %v1521_v52, %v1521_v52  ;;  %v1586_v41 = vsel %vm1271_vm5, %v1521_v52, 0.0 }
 0x115   : > { %v1812_v19 = vsel %vm1271_vm5, %v1784_v29, 0.0  ;;  %v1587_v39 = vadd.f32 %v1586_v41, %v1585_v42 }
 0x116   : > { %1968 = vst.msk [vmem:[%s2987_s16 + $0x2c] sm:$0xf] %vm1365_vm8, %v1952_v27  ;;  %v1639_v25 = vsel %vm1271_vm5, %v1610_v35, 0.0  ;;  %v1813_v8 = vadd.f32 %v1812_v19, %v1811_v17 }
 0x117   : > { %1557 = vst.msk [vmem:[%s2944_s21 + $0x38] sm:$0xf] %vm1542_vm7, %v1540_v20  ;;  %v1339_v33 = vpop.f32.mrf.mxu0  ;;  %v1640_v14 = vadd.f32 %v1639_v25, %v1638_v38 }
 0x118   : > { %v1361_v60 = vpack.c.bf16 %v1339_v33, %v1339_v33  ;;  %v1406_v37 = vsel %vm1382_vm9, %v1339_v33, 0.0  ;;  %v1432_v53 = vmul.f32 %v1339_v33, %v1339_v33 }
 0x119   : > { %v1697_v22 = vpop.f32.mrf.mxu2  ;;  %v1407_v11 = vadd.f32 %v1406_v37, %v1405_v18  ;;  %v2021_v37 = vmul.f32 %v3324_v40, %v3324_v40 }
 0x11a   : > { %v1716_v46 = vpack.c.bf16 %v1697_v22, %v1697_v22  ;;  %1378 = vst.msk [vmem:[%s2978_s27 + $0x30] sm:$0xf] %vm1365_vm8, %v1361_v60  ;;  %v1459_v23 = vsel %vm1382_vm9, %v1432_v53, 0.0  ;;  %v1785_v0 = vmul.f32 %v1697_v22, %v1697_v22  ;;  %v1761_v56 = vsel %vm1271_vm5, %v1697_v22, 0.0 }
 0x11b   : > { %v3357_v16 = vpop.f32.mrf.mxu3  ;;  %v1523_v50 = vpop.f32.mrf.mxu1  ;;  %v1460_v51 = vadd.f32 %v1459_v23, %v1458_v36  ;;  %v1762_v3 = vadd.f32 %v1761_v56, %v1760_v45  ;;  %v2045_v60 = vsel %vm1382_vm9, %v2020_v26, 0.0 }
 0x11c   : > { %v1953_v13 = vpack.c.bf16 %v3357_v16, %v3357_v16  ;;  %1732 = vst.msk [vmem:[%s2952_s24 + $0x38] sm:$0xf] %vm1542_vm7, %v1716_v46  ;;  %v1541_v54 = vpack.c.bf16 %v1523_v50, %v1523_v50  ;;  %v1588_v55 = vsel %vm1271_vm5, %v1523_v50, 0.0  ;;  %v1611_v48 = vmul.f32 %v1523_v50, %v1523_v50 }
 0x11d   : > { %v1589_v9 = vadd.f32 %v1588_v55, %v1587_v39  ;;  %v1814_v47 = vsel %vm1271_vm5, %v1785_v0, 0.0  ;;  %v2022_v61 = vmul.f32 %v3357_v16, %v3357_v16  ;;  %v1994_v0 = vsel %vm1382_vm9, %v3324_v40, 0.0 }
 0x11e   : > { %1969 = vst.msk [vmem:[%s2987_s16 + $0x30] sm:$0xf] %vm1365_vm8, %v1953_v13  ;;  %v1641_v21 = vsel %vm1271_vm5, %v1611_v48, 0.0  ;;  %v1815_v4 = vadd.f32 %v1814_v47, %v1813_v8  ;;  %v1996_v55 = vsel %vm1382_vm9, %v3357_v16, 0.0  ;;  %v2046_v40 = vadd.f32 %v2045_v60, %v2044_v57 }
 0x11f   : > { %1558 = vst.msk [vmem:[%s2944_s21 + $0x3c] sm:$0xf] %vm1542_vm7, %v1541_v54  ;;  %v1341_v18 = vpop.f32.mrf.mxu0  ;;  %v1590_v59 = vrot.slane %v1589_v9, 4  ;;  %v1642_v62 = vadd.f32 %v1641_v21, %v1640_v14  ;;  %v2047_v54 = vsel %vm1382_vm9, %v2021_v37, 0.0  ;;  %v2049_v48 = vsel %vm1382_vm9, %v2022_v61, 0.0 }
 0x120   : > { %v1362_v32 = vpack.c.bf16 %v1341_v18, %v1341_v18  ;;  %v1408_v43 = vsel %vm1382_vm9, %v1341_v18, 0.0  ;;  %v1433_v36 = vmul.f32 %v1341_v18, %v1341_v18 }
 0x121   : > { %v1699_v63 = vpop.f32.mrf.mxu2  ;;  %v1409_v52 = vadd.f32 %v1408_v43, %v1407_v11  ;;  %v1591_v34 = vadd.f32 %v1590_v59, %v1589_v9  ;;  %v1643_v1 = vrot.slane %v1642_v62, 4  ;;  %v1995_v9 = vadd.f32 %v1994_v0, %v1993_v15 }
 0x122   : > { %v1717_v10 = vpack.c.bf16 %v1699_v63, %v1699_v63  ;;  %v1763_v58 = vsel %vm1271_vm5, %v1699_v63, 0.0  ;;  %v1786_v27 = vmul.f32 %v1699_v63, %v1699_v63  ;;  %1379 = vst.msk [vmem:[%s2978_s27 + $0x34] sm:$0xf] %vm1365_vm8, %v1362_v32  ;;  %v1461_v28 = vsel %vm1382_vm9, %v1433_v36, 0.0 }
 0x123   : > { %v1933_v20 = vpop.f32.mrf.mxu3  ;;  %v1764_v6 = vadd.f32 %v1763_v58, %v1762_v3  ;;  %v1592_v35 = vrot.slane %v1591_v34, 2  ;;  %v1644_v53 = vadd.f32 %v1643_v1, %v1642_v62  ;;  %v1462_v7 = vadd.f32 %v1461_v28, %v1460_v51 }
 0x124   : > { %v1954_v12 = vpack.c.bf16 %v1933_v20, %v1933_v20  ;;  %1733 = vst.msk [vmem:[%s2952_s24 + $0x3c] sm:$0xf] %vm1542_vm7, %v1717_v10  ;;  %v1816_v24 = vsel %vm1271_vm5, %v1786_v27, 0.0  ;;  %v2023_v50 = vmul.f32 %v1933_v20, %v1933_v20  ;;  %v1998_v8 = vsel %vm1382_vm9, %v1933_v20, 0.0 }
 0x125   : > { %v1765_v29 = vrot.slane %v1764_v6, 4  ;;  %v1817_v33 = vadd.f32 %v1816_v24, %v1815_v4  ;;  %v1593_v41 = vadd.f32 %v1592_v35, %v1591_v34  ;;  %v1645_v22 = vrot.slane %v1644_v53, 2 }
 0x126   : > { %1970 = vst.msk [vmem:[%s2987_s16 + $0x34] sm:$0xf] %vm1365_vm8, %v1954_v12  ;;  %v2048_v59 = vadd.f32 %v2047_v54, %v2046_v40  ;;  %v1997_v21 = vadd.f32 %v1996_v55, %v1995_v9  ;;  %v2051_v16 = vsel %vm1382_vm9, %v2023_v50, 0.0 }
 0x127   : > { %v1766_v5 = vadd.f32 %v1765_v29, %v1764_v6  ;;  %v1818_v31 = vrot.slane %v1817_v33, 4  ;;  %v1344_v2 = vpop.f32.mrf.mxu0  ;;  %v1594_v23 = vrot.slane %v1593_v41, 1  ;;  %v1646_v51 = vadd.f32 %v1645_v22, %v1644_v53 }
 0x128   : > { %v1363_v11 = vpack.c.bf16 %v1344_v2, %v1344_v2  ;;  %v1410_v42 = vsel %vm1382_vm9, %v1344_v2, 0.0  ;;  %v1434_v44 = vmul.f32 %v1344_v2, %v1344_v2  ;;  %v2050_v36 = vadd.f32 %v2049_v48, %v2048_v59 }
 0x129   : > { %v1819_v46 = vadd.f32 %v1818_v31, %v1817_v33  ;;  %v1767_v30 = vrot.slane %v1766_v5, 2  ;;  %v1411_v49 = vadd.f32 %v1410_v42, %v1409_v52  ;;  %v1595_v25 = vadd.f32 %v1594_v23, %v1593_v41 }
 0x12a   : > { %1380 = vst.msk [vmem:[%s2978_s27 + $0x38] sm:$0xf] %vm1365_vm8, %v1363_v11  ;;  %v1463_v19 = vsel %vm1382_vm9, %v1434_v44, 0.0  ;;  %v1647_v56 = vrot.slane %v1646_v51, 1  ;;  %v1999_v34 = vadd.f32 %v1998_v8, %v1997_v21  ;;  %v2052_v1 = vadd.f32 %v2051_v16, %v2050_v36 }
 0x12b   : > { %v1936_v39 = vpop.f32.mrf.mxu3  ;;  %v1768_v13 = vadd.f32 %v1767_v30, %v1766_v5  ;;  %v1820_v17 = vrot.slane %v1819_v46, 2  ;;  %v1464_v38 = vadd.f32 %v1463_v19, %v1462_v7  ;;  %2064 = vrot.lane.b32.xlu1 %v1595_v25, %s2491_s17 }
 0x12c   : > { %v1955_v26 = vpack.c.bf16 %v1936_v39, %v1936_v39  ;;  %v2024_v14 = vmul.f32 %v1936_v39, %v1936_v39  ;;  %v1648_v47 = vadd.f32 %v1647_v56, %v1646_v51  ;;  %v2000_v3 = vsel %vm1382_vm9, %v1936_v39, 0.0 }
 0x12d   : > { %v1769_v45 = vrot.slane %v1768_v13, 1  ;;  %v1821_v18 = vadd.f32 %v1820_v17, %v1819_v46  ;;  %v2001_v20 = vadd.f32 %v2000_v3, %v1999_v34 }
 0x12e   : > { %1971 = vst.msk [vmem:[%s2987_s16 + $0x38] sm:$0xf] %vm1365_vm8, %v1955_v26  ;;  %2081 = vrot.lane.b32.xlu0 %v1648_v47, %s2491_s17  ;;  %v2053_v58 = vsel %vm1382_vm9, %v2024_v14, 0.0 }
 0x12f   : > { %v1770_v32 = vadd.f32 %v1769_v45, %v1768_v13  ;;  %v1346_v43 = vpop.f32.mrf.mxu0  ;;  %v1822_v27 = vrot.slane %v1821_v18, 1  ;;  %v2054_v15 = vadd.f32 %v2053_v58, %v2052_v1 }
 0x130   : > { %v1364_v62 = vpack.c.bf16 %v1346_v43, %v1346_v43  ;;  %v1412_v63 = vsel %vm1382_vm9, %v1346_v43, 0.0  ;;  %v1435_v52 = vmul.f32 %v1346_v43, %v1346_v43 }
 0x131   : > { %2068 = vrot.lane.b32.xlu2 %v1770_v32, %s2492_s10  ;;  %v1413_v10 = vadd.f32 %v1412_v63, %v1411_v49  ;;  %v1823_v35 = vadd.f32 %v1822_v27, %v1821_v18 }
 0x132   : > { %1381 = vst.msk [vmem:[%s2978_s27 + $0x3c] sm:$0xf] %vm1365_vm8, %v1364_v62  ;;  %v1465_v4 = vsel %vm1382_vm9, %v1435_v52, 0.0 }
 0x133   : > { %v1938_v6 = vpop.f32.mrf.mxu3  ;;  %v1466_v28 = vadd.f32 %v1465_v4, %v1464_v38  ;;  %v1414_v46 = vrot.slane %v1413_v10, 4 }
 0x134   : > { %v1956_v57 = vpack.c.bf16 %v1938_v6, %v1938_v6  ;;  %v2002_v12 = vsel %vm1382_vm9, %v1938_v6, 0.0  ;;  %v2025_v24 = vmul.f32 %v1938_v6, %v1938_v6 }
 0x135   : > { %v2003_v29 = vadd.f32 %v2002_v12, %v2001_v20  ;;  %v1467_v23 = vrot.slane %v1466_v28, 4  ;;  %v1415_v30 = vadd.f32 %v1414_v46, %v1413_v10 }
 0x136   : > { %1972 = vst.msk [vmem:[%s2987_s16 + $0x3c] sm:$0xf] %vm1365_vm8, %v1956_v57  ;;  %v2055_v33 = vsel %vm1382_vm9, %v2025_v24, 0.0  ;;  %2085 = vrot.lane.b32.xlu0 %v1823_v35, %s2492_s10 }
 0x137   : > { %v2004_v60 = vrot.slane %v2003_v29, 4  ;;  %v2056_v37 = vadd.f32 %v2055_v33, %v2054_v15  ;;  %v1468_v49 = vadd.f32 %v1467_v23, %v1466_v28  ;;  %v1416_v0 = vrot.slane %v1415_v30, 2 }
 0x139   : > { %v2005_v53 = vadd.f32 %v2004_v60, %v2003_v29  ;;  %v2057_v7 = vrot.slane %v2056_v37, 4  ;;  %v1469_v50 = vrot.slane %v1468_v49, 2  ;;  %v1417_v51 = vadd.f32 %v1416_v0, %v1415_v30 }
 0x13b   : > { %v2006_v61 = vrot.slane %v2005_v53, 2  ;;  %v2058_v5 = vadd.f32 %v2057_v7, %v2056_v37  ;;  %v1470_v39 = vadd.f32 %v1469_v50, %v1468_v49  ;;  %v1418_v25 = vrot.slane %v1417_v51, 1 }
 0x13d   : > { %v2007_v31 = vadd.f32 %v2006_v61, %v2005_v53  ;;  %v2059_v41 = vrot.slane %v2058_v5, 2  ;;  %v1471_v17 = vrot.slane %v1470_v39, 1  ;;  %v1419_v54 = vadd.f32 %v1418_v25, %v1417_v51 }
 0x13f   : > { %v2008_v2 = vrot.slane %v2007_v31, 1  ;;  %v2060_v22 = vadd.f32 %v2059_v41, %v2058_v5  ;;  %v1472_v26 = vadd.f32 %v1471_v17, %v1470_v39 }
 0x141   : > { %v2009_v11 = vadd.f32 %v2008_v2, %v2007_v31  ;;  %v2061_v42 = vrot.slane %v2060_v22, 1 }
 0x143   : > { %2072 = vrot.lane.b32.xlu2 %v2009_v11, %s2493_s30  ;;  %v2062_v44 = vadd.f32 %v2061_v42, %v2060_v22 }
 0x145   : > { %2089 = vrot.lane.b32.xlu1 %v2062_v44, %s2493_s30 }
 0x18b   : > { %v2069_v38 = vpop.permute.xlu2 %2068 }
 0x19d   : > { %v2065_v13 = vpop.permute.xlu1 %2064  ;;  %v2073_v14 = vpop.permute.xlu2 %2072 }
 0x19e   : > { %v2075_v55 = vsel %vm1382_vm9, %v1419_v54, %v2065_v13 }
 0x19f   : > { %v2077_v9 = vsel %vm2076_vm10, %v2075_v55, %v2069_v38 }
 0x1a0   : > { %v2082_v19 = vpop.permute.xlu0 %2081  ;;  %v2079_v18 = vsel %vm2078_vm11, %v2077_v9, %v2073_v14 }
 0x1a1   : > { %v2092_v40 = vsel %vm1382_vm9, %v1472_v26, %v2082_v19 }
 0x1a8   : > { %v2086_v56 = vpop.permute.xlu0 %2085 }
 0x1a9   : > { %v2093_v48 = vsel %vm2076_vm10, %v2092_v40, %v2086_v56 }
 0x1b7   : > { %v2090_v45 = vpop.permute.xlu1 %2089 }
 0x1b8   : > { %v2094_v8 = vsel %vm2078_vm11, %v2093_v48, %v2090_v45 }
 0x1b9   : > { %v2096_v47 = vrot.slane %v2094_v8, 7 }
 0x1bb   : > { %v2099_v59 = vsel %vm2098_vm12, %v2079_v18, %v2096_v47 }
 0x1bc   : > { %2101 = vst.msk [vmem:[%s443_s22] sm:$0x3] %vm2100_vm13, %v2099_v59 }
 0x1bd PF: > { %s20_s13 = sadd.s32 1, %s2489_s13   ;;  %s3451_s30 = smov %s2481_s11 }
 0x1be   : > { %p17_p8 = scmp.ge.s32.totalorder %s20_s13, 6   ;;  %s3452_s10 = smov %s2485_s12 }
 0x1bf   : > { %s3453_s11 = smov %s3456_s14  ;;  %s3454_s12 = smov %s3460_s15 }
 0x1c0   :  { %19 = sbr.rel (!%p17_p8) target bundleno = 3 (0x3), region = 119 }

// kernel: a_call__.7
= control target key start
LH: loop header
LB: loop body
LE: loop exit
PB: predicated region body
PF: predicated region fallthrough
CT: control target
= control target key end

     0   :  { %s1136_s12 = smov 0   ;;  %s1798_s0 = inlined_call_operand.vmem [shape: bf16[512,4], index: 0, kind: input, shape index: {}]   ;;  %s1799_s1 = inlined_call_operand.vmem [shape: f32[1,4], index: 1, kind: input, shape index: {}]   ;;  %s1800_s2 = inlined_call_operand.vmem [shape: f32[1,4], index: 2, kind: input, shape index: {}]   ;;  %s1801_s3 = inlined_call_operand.vmem [shape: bf16[2,18,18,4], index: 3, kind: output, shape index: {}]  }
   0x1 LB: > { %s926_s13 = sadd.s32 4294967295, %s1113_s12   ;;  %p930_p0 = scmp.ge.s32.totalorder %s1113_s12, 1  ;;  %s1113_s12 = sphi %s1136_s12, %s13_s12  }
   0x2   : > { %p138_p1 = scmp.lt.s32.totalorder %s1113_s12, 3 }
   0x4   : > { %p139_p2 = pnand %p930_p0, %p138_p1 }
   0x5   : > { %p168_p3 = scmp.lt.s32.totalorder (!%p139_p2), %s926_s13, 1  ;;  %s931_s14 = sshll.u32 (!%p139_p2), %s926_s13, 5 }
   0x6   : > { %142 = sbr.rel (%p139_p2) target bundleno = 123 (0x7b), region = 32  ;;  %p163_p4 = scmp.lt.s32.totalorder (!%p139_p2), %s931_s14, 63 }
   0xb   : > { %s1809_s13 = smov (!%p168_p3, %s926_s13), 1  ;;  %vm174_vm0 = vcmask 27648   ;;  %v1115_v0 = vmov 0   ;;  %s1811_s14 = smov (!%p163_p4, %s931_s14), 63  ;;  %v1199_v5 = vld [vmem:[%s1799_s1] ss:$0 sm:$0xff] }
   0xc   : > { %s1095_s15 = smul.u32 216, %s1809_s13  ;;  %s932_s19 = sshll.u32 %s1811_s14, 2  ;;  %v1212_v14 = vld [vmem:[%s1800_s2] ss:$0 sm:$0xff]  ;;  %vm755_vm1 = vsmask.f32 7938 }
   0xd   : > { %s1179_s22 = scalar_lea.vmem %s1798_s0, %s932_s19  ;;  %vm430_vm2 = vsmask.f32 256  ;;  %vm431_vm3 = vsmask.f32 4368  ;;  %vm177_vm4 = vcmask 24576   ;;  %vm1274_vm5 = vmand %vm174_vm0, %vm755_vm1 }
   0xe   : > { %s1147_s18 = scalar_lea.vmem %s1801_s3, %s1095_s15  ;;  %v1017_v1 = vld [vmem:[%s1179_s22] sm:$0xff]   ;;  %v1080_v2 = vld [vmem:[%s1179_s22 + $0x8] sm:$0xff]   ;;  %v1081_v3 = vld [vmem:[%s1179_s22 + $0x10] sm:$0xff]  }
   0xf   : > { %179 = vst.msk [vmem:[%s1147_s18 + $0xc] sm:$0xf] %vm174_vm0, %v1115_v0  ;;  %v1018_v4 = vunpack.c.l.bf16 %v1017_v1  ;;  %v1019_v6 = vunpack.c.h.bf16 %v1017_v1  ;;  %v1022_v7 = vunpack.c.l.bf16 %v1080_v2  ;;  %v1023_v8 = vunpack.c.h.bf16 %v1080_v2  ;;  %v1082_v9 = vld [vmem:[%s1179_s22 + $0x18] sm:$0xff]   ;;  %v1083_v38 = vld [vmem:[%s1179_s22 + $0x20] sm:$0xff]   ;;  %vm1292_vm6 = vmor %vm430_vm2, %vm431_vm3 }
  0x10   : > { %175 = vst.msk [vmem:[%s1147_s18] sm:$0xf] %vm174_vm0, %v1115_v0  ;;  %v1026_v10 = vunpack.c.l.bf16 %v1081_v3  ;;  %v1027_v11 = vunpack.c.h.bf16 %v1081_v3  ;;  %v1030_v12 = vunpack.c.l.bf16 %v1082_v9  ;;  %v1031_v21 = vunpack.c.h.bf16 %v1082_v9  ;;  %vm1407_vm7 = vmand %vm177_vm4, %vm430_vm2 }
  0x11   : > { %176 = vst.msk [vmem:[%s1147_s18 + $0x4] sm:$0xf] %vm174_vm0, %v1115_v0  ;;  %v298_v13 = vmul.f32 %v1199_v5, %v1018_v4  ;;  %v299_v15 = vmul.f32 %v1199_v5, %v1019_v6  ;;  %v300_v16 = vmul.f32 %v1199_v5, %v1022_v7  ;;  %v301_v17 = vmul.f32 %v1199_v5, %v1023_v8 }
  0x12   : > { %180 = vst.msk [vmem:[%s1147_s18 + $0x10] sm:$0xf] %vm174_vm0, %v1115_v0  ;;  %v302_v18 = vmul.f32 %v1199_v5, %v1026_v10  ;;  %v303_v19 = vmul.f32 %v1199_v5, %v1027_v11  ;;  %v304_v20 = vmul.f32 %v1199_v5, %v1030_v12  ;;  %v305_v29 = vmul.f32 %v1199_v5, %v1031_v21 }
  0x13   : > { %182 = vst.msk [vmem:[%s1147_s18 + $0x18] sm:$0xf] %vm174_vm0, %v1115_v0  ;;  %v334_v22 = vadd.f32 %v1212_v14, %v298_v13  ;;  %v335_v23 = vadd.f32 %v1212_v14, %v299_v15  ;;  %v336_v24 = vadd.f32 %v1212_v14, %v300_v16  ;;  %v337_v25 = vadd.f32 %v1212_v14, %v301_v17 }
  0x14   : > { %183 = vst.msk [vmem:[%s1147_s18 + $0x1c] sm:$0xf] %vm174_vm0, %v1115_v0  ;;  %v338_v26 = vadd.f32 %v1212_v14, %v302_v18  ;;  %v339_v27 = vadd.f32 %v1212_v14, %v303_v19  ;;  %v340_v28 = vadd.f32 %v1212_v14, %v304_v20  ;;  %v1244_v37 = vadd.f32 %v1212_v14, %v305_v29  ;;  %v1084_v19 = vld [vmem:[%s1179_s22 + $0x28] sm:$0xff]  }
  0x15   : > { %185 = vst.msk [vmem:[%s1147_s18 + $0x24] sm:$0xf] %vm174_vm0, %v1115_v0  ;;  %v366_v30 = vmax.f32 %v334_v22, 0.0  ;;  %v367_v31 = vmax.f32 %v335_v23, 0.0  ;;  %v368_v32 = vmax.f32 %v336_v24, 0.0  ;;  %v369_v33 = vmax.f32 %v337_v25, 0.0 }
  0x16   : > { %186 = vst.msk [vmem:[%s1147_s18 + $0x28] sm:$0xf] %vm174_vm0, %v1115_v0  ;;  %v370_v34 = vmax.f32 %v338_v26, 0.0  ;;  %v371_v35 = vmax.f32 %v339_v27, 0.0  ;;  %v372_v36 = vmax.f32 %v340_v28, 0.0  ;;  %v1034_v48 = vunpack.c.l.bf16 %v1083_v38 }
  0x17   : > { %188 = vst.msk [vmem:[%s1147_s18 + $0x30] sm:$0xf] %vm174_vm0, %v1115_v0  ;;  %v398_v39 = vpack.c.bf16 %v366_v30, %v366_v30  ;;  %v399_v40 = vpack.c.bf16 %v367_v31, %v367_v31  ;;  %v400_v41 = vpack.c.bf16 %v368_v32, %v368_v32  ;;  %v401_v42 = vpack.c.bf16 %v369_v33, %v369_v33  ;;  %v1264_v49 = vld [vmem:[%s1147_s18 + $0xc] sm:$0xf] }
  0x18   : > { %189 = vst.msk [vmem:[%s1147_s18 + $0x34] sm:$0xf] %vm174_vm0, %v1115_v0  ;;  %v402_v43 = vpack.c.bf16 %v370_v34, %v370_v34  ;;  %v1253_v44 = vpack.c.bf16 %v371_v35, %v371_v35  ;;  %v1255_v45 = vpack.c.bf16 %v372_v36, %v372_v36  ;;  %v1035_v52 = vunpack.c.h.bf16 %v1083_v38 }
  0x19   : > { %191 = vst.msk [vmem:[%s1147_s18 + $0x3c] sm:$0xf] %vm174_vm0, %v1115_v0  ;;  %v434_v46 = vshrl.u32 %v398_v39, 16  ;;  %v437_v47 = vshll.u32 %v398_v39, 16  ;;  %v442_v50 = vshrl.u32 %v399_v40, 16  ;;  %v445_v51 = vshll.u32 %v399_v40, 16 }
  0x1a   : > { %192 = vst.msk [vmem:[%s1147_s18 + $0x40] sm:$0xf] %vm174_vm0, %v1115_v0  ;;  %v451_v54 = vshrl.u32 %v400_v41, 16  ;;  %v454_v55 = vshll.u32 %v400_v41, 16  ;;  %v459_v56 = vshrl.u32 %v401_v42, 16  ;;  %v462_v60 = vshll.u32 %v401_v42, 16 }
  0x1b   : > { %194 = vst.msk [vmem:[%s1147_s18 + $0x48] sm:$0xf] %vm174_vm0, %v1115_v0  ;;  %v436_v53 = vrot.slane %v434_v46, 7  ;;  %v1278_v58 = vrot.slane %v442_v50, 7  ;;  %v1281_v59 = vld [vmem:[%s1147_s18 + $0x18] sm:$0xf]  ;;  %v306_v61 = vmul.f32 %v1199_v5, %v1034_v48  ;;  %v307_v62 = vmul.f32 %v1199_v5, %v1035_v52 }
  0x1c   : > { %195 = vst.msk [vmem:[%s1147_s18 + $0x4c] sm:$0xf] %vm174_vm0, %v1115_v0  ;;  %v453_v3 = vrot.slane %v451_v54, 7  ;;  %v1296_v4 = vrot.slane %v459_v56, 7  ;;  %v468_v8 = vshrl.u32 %v402_v43, 16  ;;  %v471_v9 = vshll.u32 %v402_v43, 16 }
  0x1d   : > { %197 = vst.msk [vmem:[%s1147_s18 + $0x54] sm:$0xf] %vm174_vm0, %v1115_v0  ;;  %v1288_v63 = vor.u32 %v437_v47, %v436_v53  ;;  %v440_v2 = vrot.slane %v436_v53, 4  ;;  %v447_v6 = vor.u32 %v445_v51, %v1278_v58  ;;  %v449_v7 = vrot.slane %v1278_v58, 4  ;;  %v1335_v22 = vld [vmem:[%s1147_s18 + $0x24] sm:$0xf] }
  0x1e   : > { %198 = vst.msk [vmem:[%s1147_s18 + $0x58] sm:$0xf] %vm174_vm0, %v1115_v0  ;;  %v1310_v11 = vor.u32 %v454_v55, %v453_v3  ;;  %v457_v12 = vrot.slane %v453_v3, 4  ;;  %v464_v13 = vor.u32 %v462_v60, %v1296_v4  ;;  %v466_v16 = vrot.slane %v1296_v4, 4  ;;  %v1363_v36 = vld [vmem:[%s1147_s18 + $0x30] sm:$0xf] }
  0x1f   : > { %200 = vst.msk [vmem:[%s1147_s18 + $0x60] sm:$0xf] %vm174_vm0, %v1115_v0  ;;  %v758_v10 = vsel %vm1274_vm5, %v1288_v63, %v1264_v49  ;;  %v1318_v15 = vsel %vm1292_vm6, %v440_v2, %v447_v6  ;;  %v470_v17 = vrot.slane %v468_v8, 7  ;;  %v476_v18 = vshrl.u32 %v1253_v44, 16  ;;  %v1085_v42 = vld [vmem:[%s1179_s22 + $0x30] sm:$0xff]  }
  0x20   : > { %201 = vst.msk [vmem:[%s1147_s18 + $0x64] sm:$0xf] %vm174_vm0, %v1115_v0  ;;  %v767_v20 = vsel %vm1274_vm5, %v1310_v11, %v1281_v59  ;;  %v1332_v21 = vsel %vm1292_vm6, %v457_v12, %v464_v13  ;;  %v479_v23 = vshll.u32 %v1253_v44, 16  ;;  %v485_v24 = vshrl.u32 %v1255_v45, 16 }
  0x21   : > { %203 = vst.msk [vmem:[%s1147_s18 + $0x6c] sm:$0xf] %vm174_vm0, %v1115_v0  ;;  %v1342_v25 = vor.u32 %v471_v9, %v470_v17  ;;  %v474_v26 = vrot.slane %v470_v17, 4  ;;  %v1344_v27 = vrot.slane %v476_v18, 7  ;;  %v488_v28 = vshll.u32 %v1255_v45, 16 }
  0x22   : > { %204 = vst.msk [vmem:[%s1147_s18 + $0x70] sm:$0xf] %vm174_vm0, %v1115_v0  ;;  %v487_v29 = vrot.slane %v485_v24, 7  ;;  %v373_v30 = vmax.f32 %v1244_v37, 0.0  ;;  %v342_v31 = vadd.f32 %v1212_v14, %v306_v61  ;;  %v343_v32 = vadd.f32 %v1212_v14, %v307_v62 }
  0x23   : > { %206 = vst.msk [vmem:[%s1147_s18 + $0x78] sm:$0xf] %vm174_vm0, %v1115_v0  ;;  %v774_v33 = vsel %vm1274_vm5, %v1342_v25, %v1335_v22  ;;  %v481_v34 = vor.u32 %v479_v23, %v1344_v27  ;;  %v483_v35 = vrot.slane %v1344_v27, 4  ;;  %v1038_v37 = vunpack.c.l.bf16 %v1084_v19 }
  0x24   : > { %207 = vst.msk [vmem:[%s1147_s18 + $0x7c] sm:$0xf] %vm174_vm0, %v1115_v0  ;;  %v1368_v38 = vor.u32 %v488_v28, %v487_v29  ;;  %v405_v39 = vpack.c.bf16 %v373_v30, %v373_v30  ;;  %v491_v40 = vrot.slane %v487_v29, 4  ;;  %v374_v41 = vmax.f32 %v342_v31, 0.0 }
  0x25   : > { %209 = vst.msk [vmem:[%s1147_s18 + $0x84] sm:$0xf] %vm174_vm0, %v1115_v0  ;;  %v1376_v43 = vsel %vm1292_vm6, %v474_v26, %v481_v34  ;;  %v375_v44 = vmax.f32 %v343_v32, 0.0  ;;  %v308_v45 = vmul.f32 %v1199_v5, %v1038_v37  ;;  %v1039_v46 = vunpack.c.h.bf16 %v1084_v19  ;;  %v1412_v19 = vld [vmem:[%s1147_s18 + $0x3c] sm:$0xf] }
  0x26   : > { %210 = vst.msk [vmem:[%s1147_s18 + $0x88] sm:$0xf] %vm174_vm0, %v1115_v0  ;;  %v781_v47 = vsel %vm1274_vm5, %v1368_v38, %v1363_v36  ;;  %v493_v48 = vshrl.u32 %v405_v39, 16  ;;  %v496_v50 = vshll.u32 %v405_v39, 16  ;;  %v406_v51 = vpack.c.bf16 %v374_v41, %v374_v41  ;;  %v1426_v34 = vld [vmem:[%s1179_s22 + $0x38] sm:$0xff]  }
  0x27   : > { %212 = vst.msk [vmem:[%s1147_s18 + $0x90] sm:$0xf] %vm174_vm0, %v1115_v0  ;;  %v407_v52 = vpack.c.bf16 %v375_v44, %v375_v44  ;;  %v344_v53 = vadd.f32 %v1212_v14, %v308_v45  ;;  %v309_v54 = vmul.f32 %v1199_v5, %v1039_v46  ;;  %v1042_v55 = vunpack.c.l.bf16 %v1085_v42  ;;  %v1567_v59 = vld [vmem:[%s1147_s18 + $0x60] sm:$0xf] }
  0x28   : > { %213 = vst.msk [vmem:[%s1147_s18 + $0x94] sm:$0xf] %vm174_vm0, %v1115_v0  ;;  %v495_v56 = vrot.slane %v493_v48, 7  ;;  %v502_v60 = vshrl.u32 %v406_v51, 16  ;;  %v505_v61 = vshll.u32 %v406_v51, 16  ;;  %v1043_v62 = vunpack.c.h.bf16 %v1085_v42 }
  0x29   : > { %215 = vst.msk [vmem:[%s1147_s18 + $0x9c] sm:$0xf] %vm174_vm0, %v1115_v0  ;;  %v510_v2 = vshrl.u32 %v407_v52, 16  ;;  %v513_v3 = vshll.u32 %v407_v52, 16  ;;  %v376_v6 = vmax.f32 %v344_v53, 0.0  ;;  %v345_v8 = vadd.f32 %v1212_v14, %v309_v54 }
  0x2a   : > { %216 = vst.msk [vmem:[%s1147_s18 + $0xa0] sm:$0xf] %vm174_vm0, %v1115_v0  ;;  %v498_v9 = vor.u32 %v496_v50, %v495_v56  ;;  %v500_v12 = vrot.slane %v495_v56, 4  ;;  %v504_v13 = vrot.slane %v502_v60, 7  ;;  %v310_v17 = vmul.f32 %v1199_v5, %v1042_v55  ;;  %v1446_v48 = vld [vmem:[%s1147_s18 + $0x48] sm:$0xf] }
  0x2b   : > { %218 = vst.msk [vmem:[%s1147_s18 + $0xa8] sm:$0xf] %vm174_vm0, %v1115_v0  ;;  %v512_v23 = vrot.slane %v510_v2, 7  ;;  %v408_v24 = vpack.c.bf16 %v376_v6, %v376_v6  ;;  %v377_v26 = vmax.f32 %v345_v8, 0.0  ;;  %v311_v28 = vmul.f32 %v1199_v5, %v1043_v62  ;;  %v1087_v62 = vld [vmem:[%s1179_s22 + $0x40] sm:$0xff]  }
  0x2c   : > { %219 = vst.msk [vmem:[%s1147_s18 + $0xac] sm:$0xf] %vm174_vm0, %v1115_v0  ;;  %v1420_v29 = vsel %vm1292_vm6, %v491_v40, %v498_v9  ;;  %v1422_v30 = vor.u32 %v505_v61, %v504_v13  ;;  %v508_v31 = vrot.slane %v504_v13, 4  ;;  %v346_v32 = vadd.f32 %v1212_v14, %v310_v17 }
  0x2d   : > { %221 = vst.msk [vmem:[%s1147_s18 + $0xb4] sm:$0xf] %vm174_vm0, %v1115_v0  ;;  %v515_v39 = vor.u32 %v513_v3, %v512_v23  ;;  %v517_v41 = vrot.slane %v512_v23, 4  ;;  %v519_v42 = vshrl.u32 %v408_v24, 16  ;;  %v409_v40 = vpack.c.bf16 %v377_v26, %v377_v26 }
  0x2e   : > { %222 = vst.msk [vmem:[%s1147_s18 + $0xb8] sm:$0xf] %vm174_vm0, %v1115_v0  ;;  %v788_v45 = vsel %vm1274_vm5, %v1422_v30, %v1412_v19  ;;  %v522_v46 = vshll.u32 %v408_v24, 16  ;;  %v378_v50 = vmax.f32 %v346_v32, 0.0  ;;  %v347_v53 = vadd.f32 %v1212_v14, %v311_v28  ;;  %v1633_v30 = vld [vmem:[%s1147_s18 + $0x78] sm:$0xf] }
  0x2f   : > { %224 = vst.msk [vmem:[%s1147_s18 + $0xc0] sm:$0xf] %vm174_vm0, %v1115_v0  ;;  %v521_v51 = vrot.slane %v519_v42, 7  ;;  %v527_v52 = vshrl.u32 %v409_v40, 16  ;;  %v530_v56 = vshll.u32 %v409_v40, 16  ;;  %v1046_v61 = vunpack.c.l.bf16 %v1426_v34 }
  0x30   : > { %225 = vst.msk [vmem:[%s1147_s18 + $0xc4] sm:$0xf] %vm174_vm0, %v1115_v0  ;;  %v410_v60 = vpack.c.bf16 %v378_v50, %v378_v50  ;;  %v1520_v40 = vld [vmem:[%s1147_s18 + $0x54] sm:$0xf]  ;;  %v1051_v50 = vunpack.c.h.bf16 %v1087_v62 }
  0x31   : > { %227 = vst.msk [vmem:[%s1147_s18 + $0xcc] sm:$0xf] %vm174_vm0, %v1115_v0  ;;  %v525_v3 = vrot.slane %v521_v51, 4  ;;  %v529_v6 = vrot.slane %v527_v52, 7  ;;  %v312_v13 = vmul.f32 %v1199_v5, %v1046_v61 }
  0x32   : > { %228 = vst.msk [vmem:[%s1147_s18 + $0xd0] sm:$0xf] %vm174_vm0, %v1115_v0  ;;  %v536_v9 = vshrl.u32 %v410_v60, 16 }
  0x33   : > { %181 = vst.msk [vmem:[%s1147_s18 + $0x14] sm:$0x1] %vm177_vm4, %v1115_v0  ;;  %v532_v23 = vor.u32 %v530_v56, %v529_v6  ;;  %v534_v24 = vrot.slane %v529_v6, 4  ;;  %v348_v32 = vadd.f32 %v1212_v14, %v312_v13  ;;  %v315_v56 = vmul.f32 %v1199_v5, %v1051_v50 }
  0x34   : > { %178 = vst.msk [vmem:[%s1147_s18 + $0x8] sm:$0x1] %vm177_vm4, %v1115_v0  ;;  %v538_v28 = vrot.slane %v536_v9, 7 }
  0x35   : > { %184 = vst.msk [vmem:[%s1147_s18 + $0x20] sm:$0x1] %vm177_vm4, %v1115_v0  ;;  %v380_v52 = vmax.f32 %v348_v32, 0.0  ;;  %v351_v49 = vadd.f32 %v1212_v14, %v315_v56 }
  0x36   : > { %187 = vst.msk [vmem:[%s1147_s18 + $0x2c] sm:$0x1] %vm177_vm4, %v1115_v0 }
  0x37   : > { %190 = vst.msk [vmem:[%s1147_s18 + $0x38] sm:$0x1] %vm177_vm4, %v1115_v0 }
  0x38   : > { %193 = vst.msk [vmem:[%s1147_s18 + $0x44] sm:$0x1] %vm177_vm4, %v1115_v0 }
  0x39   : > { %196 = vst.msk [vmem:[%s1147_s18 + $0x50] sm:$0x1] %vm177_vm4, %v1115_v0 }
  0x3a   : > { %199 = vst.msk [vmem:[%s1147_s18 + $0x5c] sm:$0x1] %vm177_vm4, %v1115_v0  ;;  %v937_v37 = vld [vmem:[%s1147_s18 + $0x14] sm:$0x1] }
  0x3b   : > { %202 = vst.msk [vmem:[%s1147_s18 + $0x68] sm:$0x1] %vm177_vm4, %v1115_v0  ;;  %v1439_v44 = vsel %vm1407_vm7, %v449_v7, %v937_v37  ;;  %v1454_v7 = vsel %vm1292_vm6, %v508_v31, %v515_v39  ;;  %v379_v31 = vmax.f32 %v347_v53, 0.0  ;;  %v1047_v37 = vunpack.c.h.bf16 %v1426_v34  ;;  %v1088_v39 = vld [vmem:[%s1179_s22 + $0x48] sm:$0xff]  }
  0x3c   : > { %205 = vst.msk [vmem:[%s1147_s18 + $0x74] sm:$0x1] %vm177_vm4, %v1115_v0  ;;  %v942_v58 = vld [vmem:[%s1147_s18 + $0x20] sm:$0x1]  ;;  %v1055_v13 = vunpack.c.h.bf16 %v1088_v39 }
  0x3d   : > { %208 = vst.msk [vmem:[%s1147_s18 + $0x80] sm:$0x1] %vm177_vm4, %v1115_v0  ;;  %v1464_v54 = vsel %vm1407_vm7, %v466_v16, %v942_v58  ;;  %v947_v55 = vld [vmem:[%s1147_s18 + $0x2c] sm:$0x1]  ;;  %v1479_v16 = vor.u32 %v522_v46, %v521_v51  ;;  %v1050_v46 = vunpack.c.l.bf16 %v1087_v62  ;;  %v411_v58 = vpack.c.bf16 %v379_v31, %v379_v31 }
  0x3e   : > { %211 = vst.msk [vmem:[%s1147_s18 + $0x8c] sm:$0x1] %vm177_vm4, %v1115_v0  ;;  %v1476_v2 = vsel %vm1407_vm7, %v483_v35, %v947_v55  ;;  %v952_v4 = vld [vmem:[%s1147_s18 + $0x38] sm:$0x1]  ;;  %v539_v35 = vshll.u32 %v410_v60, 16  ;;  %v542_v51 = vrot.slane %v538_v28, 4  ;;  %v313_v53 = vmul.f32 %v1199_v5, %v1047_v37 }
  0x3f   : > { %214 = vst.msk [vmem:[%s1147_s18 + $0x98] sm:$0x1] %vm177_vm4, %v1115_v0  ;;  %v1486_v8 = vsel %vm1407_vm7, %v500_v12, %v952_v4  ;;  %v957_v27 = vld [vmem:[%s1147_s18 + $0x44] sm:$0x1]  ;;  %v795_v12 = vsel %vm1274_vm5, %v1479_v16, %v1446_v48  ;;  %v314_v55 = vmul.f32 %v1199_v5, %v1050_v46  ;;  %v1054_v60 = vunpack.c.l.bf16 %v1088_v39 }
  0x40   : > { %217 = vst.msk [vmem:[%s1147_s18 + $0xa4] sm:$0x1] %vm177_vm4, %v1115_v0  ;;  %v1495_v17 = vsel %vm1407_vm7, %v517_v41, %v957_v27  ;;  %v962_v26 = vld [vmem:[%s1147_s18 + $0x50] sm:$0x1]  ;;  %v1513_v41 = vsel %vm1292_vm6, %v525_v3, %v532_v23  ;;  %v1525_v34 = vor.u32 %v539_v35, %v538_v28  ;;  %v544_v61 = vshrl.u32 %v411_v58, 16 }
  0x41   : > { %220 = vst.msk [vmem:[%s1147_s18 + $0xb0] sm:$0x1] %vm177_vm4, %v1115_v0  ;;  %v1517_v42 = vsel %vm1407_vm7, %v534_v24, %v962_v26  ;;  %v547_v62 = vshll.u32 %v411_v58, 16  ;;  %v412_v4 = vpack.c.bf16 %v380_v52, %v380_v52  ;;  %v967_v3 = vld [vmem:[%s1147_s18 + $0x5c] sm:$0x1]  ;;  %v349_v6 = vadd.f32 %v1212_v14, %v313_v53  ;;  %v1089_v58 = vld [vmem:[%s1179_s22 + $0x50] sm:$0xff]  }
  0x42   : > { %223 = vst.msk [vmem:[%s1147_s18 + $0xbc] sm:$0x1] %vm177_vm4, %v1115_v0  ;;  %v350_v27 = vadd.f32 %v1212_v14, %v314_v55  ;;  %v316_v63 = vmul.f32 %v1199_v5, %v1054_v60  ;;  %v383_v24 = vmax.f32 %v351_v49, 0.0  ;;  %v317_v32 = vmul.f32 %v1199_v5, %v1055_v13  ;;  %v1596_v53 = vld [vmem:[%s1147_s18 + $0x6c] sm:$0xf]  ;;  %v1090_v13 = vld [vmem:[%s1179_s22 + $0x58] sm:$0xff]  }
  0x43   : > { %226 = vst.msk [vmem:[%s1147_s18 + $0xc8] sm:$0x1] %vm177_vm4, %v1115_v0  ;;  %v553_v9 = vshrl.u32 %v412_v4, 16  ;;  %v556_v35 = vshll.u32 %v412_v4, 16  ;;  %v1058_v4 = vunpack.c.l.bf16 %v1089_v58  ;;  %v1059_v49 = vunpack.c.h.bf16 %v1089_v58 }
  0x44   : > { %229 = vst.msk [vmem:[%s1147_s18 + $0xd4] sm:$0x1] %vm177_vm4, %v1115_v0  ;;  %v802_v0 = vsel %vm1274_vm5, %v1525_v34, %v1520_v40  ;;  %v382_v23 = vmax.f32 %v350_v27, 0.0  ;;  %v352_v26 = vadd.f32 %v1212_v14, %v316_v63  ;;  %v415_v37 = vpack.c.bf16 %v383_v24, %v383_v24 }
  0x45   : > { %935 = vst [vmem:[%s1147_s18 + $0xc] sm:$0xf] %v758_v10  ;;  %v546_v10 = vrot.slane %v544_v61, 7  ;;  %v555_v31 = vrot.slane %v553_v9, 7 }
  0x46   : > { %936 = vst.msk [vmem:[%s1147_s18 + $0x10] sm:$0xf] %vm174_vm0, %v1318_v15  ;;  %v381_v15 = vmax.f32 %v349_v6, 0.0  ;;  %v384_v39 = vmax.f32 %v352_v26, 0.0  ;;  %v578_v55 = vshrl.u32 %v415_v37, 16  ;;  %v581_v56 = vshll.u32 %v415_v37, 16 }
  0x47   : > { %938 = vst [vmem:[%s1147_s18 + $0x14] sm:$0x1] %v1439_v44  ;;  %v549_v44 = vor.u32 %v547_v62, %v546_v10  ;;  %v551_v28 = vrot.slane %v546_v10, 4  ;;  %v1583_v46 = vor.u32 %v556_v35, %v555_v31  ;;  %v559_v50 = vrot.slane %v555_v31, 4  ;;  %v977_v10 = vld [vmem:[%s1147_s18 + $0x74] sm:$0x1] }
  0x48   : > { %940 = vst [vmem:[%s1147_s18 + $0x18] sm:$0xf] %v767_v20  ;;  %v413_v11 = vpack.c.bf16 %v381_v15, %v381_v15  ;;  %v414_v20 = vpack.c.bf16 %v382_v23, %v382_v23  ;;  %v416_v60 = vpack.c.bf16 %v384_v39, %v384_v39  ;;  %v353_v62 = vadd.f32 %v1212_v14, %v317_v32 }
  0x49   : > { %941 = vst.msk [vmem:[%s1147_s18 + $0x1c] sm:$0xf] %vm174_vm0, %v1332_v21  ;;  %v1577_v21 = vsel %vm1292_vm6, %v542_v51, %v549_v44  ;;  %v809_v51 = vsel %vm1274_vm5, %v1583_v46, %v1567_v59  ;;  %v319_v32 = vmul.f32 %v1199_v5, %v1059_v49  ;;  %v1063_v37 = vunpack.c.h.bf16 %v1090_v13 }
  0x4a   : > { %943 = vst [vmem:[%s1147_s18 + $0x20] sm:$0x1] %v1464_v54  ;;  %v1581_v54 = vsel %vm1407_vm7, %v551_v28, %v967_v3  ;;  %v561_v52 = vshrl.u32 %v413_v11, 16  ;;  %v564_v22 = vshll.u32 %v413_v11, 16  ;;  %v570_v25 = vshrl.u32 %v414_v20, 16  ;;  %v1091_v28 = vld [vmem:[%s1179_s22 + $0x60] sm:$0xff]  }
  0x4b   : > { %945 = vst [vmem:[%s1147_s18 + $0x24] sm:$0xf] %v774_v33  ;;  %v573_v33 = vshll.u32 %v414_v20, 16  ;;  %v580_v3 = vrot.slane %v578_v55, 7  ;;  %v587_v6 = vshrl.u32 %v416_v60, 16  ;;  %v590_v27 = vshll.u32 %v416_v60, 16 }
  0x4c   : > { %946 = vst.msk [vmem:[%s1147_s18 + $0x28] sm:$0xf] %vm174_vm0, %v1376_v43  ;;  %v563_v43 = vrot.slane %v561_v52, 7  ;;  %v572_v61 = vrot.slane %v570_v25, 7  ;;  %v1062_v11 = vunpack.c.l.bf16 %v1090_v13  ;;  %v1654_v20 = vld [vmem:[%s1179_s22 + $0x68] sm:$0xff]   ;;  %v1066_v52 = vunpack.c.l.bf16 %v1091_v28 }
  0x4d   : > { %948 = vst [vmem:[%s1147_s18 + $0x2c] sm:$0x1] %v1476_v2  ;;  %v972_v2 = vld [vmem:[%s1147_s18 + $0x68] sm:$0x1]  ;;  %v585_v9 = vrot.slane %v580_v3, 4  ;;  %v589_v35 = vrot.slane %v587_v6, 7  ;;  %v1067_v25 = vunpack.c.h.bf16 %v1091_v28 }
  0x4e   : > { %950 = vst [vmem:[%s1147_s18 + $0x30] sm:$0xf] %v781_v47  ;;  %v566_v36 = vor.u32 %v564_v22, %v563_v43  ;;  %v568_v38 = vrot.slane %v563_v43, 4  ;;  %v1611_v47 = vor.u32 %v573_v33, %v572_v61  ;;  %v576_v63 = vrot.slane %v572_v61, 4  ;;  %v982_v33 = vld [vmem:[%s1147_s18 + $0x80] sm:$0x1] }
  0x4f   : > { %951 = vst.msk [vmem:[%s1147_s18 + $0x34] sm:$0xf] %vm174_vm0, %v1420_v29  ;;  %v583_v29 = vor.u32 %v581_v56, %v580_v3  ;;  %v820_v24 = vsel %vm1407_vm7, %v585_v9, %v977_v10  ;;  %v1642_v26 = vor.u32 %v590_v27, %v589_v35  ;;  %v593_v31 = vrot.slane %v589_v35, 4  ;;  %v984_v3 = vld [vmem:[%s1147_s18 + $0x84] sm:$0xf]  ;;  %v1093_v28 = vld [vmem:[%s1179_s22 + $0x70] sm:$0xff]  }
  0x50   : > { %953 = vst [vmem:[%s1147_s18 + $0x38] sm:$0x1] %v1486_v8  ;;  %v385_v8 = vmax.f32 %v353_v62, 0.0  ;;  %v567_v15 = vsel %vm1292_vm6, %v559_v50, %v566_v36  ;;  %v813_v23 = vsel %vm1407_vm7, %v568_v38, %v972_v2  ;;  %v816_v19 = vsel %vm1274_vm5, %v1611_v47, %v1596_v53  ;;  %v987_v36 = vld [vmem:[%s1147_s18 + $0x8c] sm:$0x1] }
  0x51   : > { %955 = vst [vmem:[%s1147_s18 + $0x3c] sm:$0xf] %v788_v45  ;;  %v318_v45 = vmul.f32 %v1199_v5, %v1058_v4  ;;  %v823_v48 = vsel %vm1274_vm5, %v1642_v26, %v1633_v30  ;;  %v355_v50 = vadd.f32 %v1212_v14, %v319_v32  ;;  %v320_v58 = vmul.f32 %v1199_v5, %v1062_v11 }
  0x52   : > { %956 = vst.msk [vmem:[%s1147_s18 + $0x40] sm:$0xf] %vm174_vm0, %v1454_v7  ;;  %v584_v7 = vsel %vm1292_vm6, %v576_v63, %v583_v29  ;;  %v417_v44 = vpack.c.bf16 %v385_v8, %v385_v8  ;;  %v321_v22 = vmul.f32 %v1199_v5, %v1063_v37  ;;  %v322_v40 = vmul.f32 %v1199_v5, %v1066_v52  ;;  %v992_v37 = vld [vmem:[%s1147_s18 + $0x98] sm:$0x1] }
  0x53   : > { %958 = vst [vmem:[%s1147_s18 + $0x44] sm:$0x1] %v1495_v17  ;;  %v354_v17 = vadd.f32 %v1212_v14, %v318_v45  ;;  %v387_v55 = vmax.f32 %v355_v50, 0.0  ;;  %v356_v56 = vadd.f32 %v1212_v14, %v320_v58  ;;  %v323_v43 = vmul.f32 %v1199_v5, %v1067_v25 }
  0x54   : > { %960 = vst [vmem:[%s1147_s18 + $0x48] sm:$0xf] %v795_v12  ;;  %v595_v16 = vshrl.u32 %v417_v44, 16  ;;  %v598_v12 = vshll.u32 %v417_v44, 16  ;;  %v357_v60 = vadd.f32 %v1212_v14, %v321_v22  ;;  %v358_v59 = vadd.f32 %v1212_v14, %v322_v40  ;;  %v994_v22 = vld [vmem:[%s1147_s18 + $0x9c] sm:$0xf] }
  0x55   : > { %961 = vst.msk [vmem:[%s1147_s18 + $0x4c] sm:$0xf] %vm174_vm0, %v1513_v41  ;;  %v386_v39 = vmax.f32 %v354_v17, 0.0  ;;  %v419_v61 = vpack.c.bf16 %v387_v55, %v387_v55  ;;  %v388_v62 = vmax.f32 %v356_v56, 0.0  ;;  %v359_v63 = vadd.f32 %v1212_v14, %v323_v43 }
  0x56   : > { %963 = vst [vmem:[%s1147_s18 + $0x50] sm:$0x1] %v1517_v42  ;;  %v597_v41 = vrot.slane %v595_v16, 7  ;;  %v1070_v42 = vunpack.c.l.bf16 %v1654_v20  ;;  %v389_v6 = vmax.f32 %v357_v60, 0.0  ;;  %v390_v47 = vmax.f32 %v358_v59, 0.0 }
  0x57   : > { %965 = vst [vmem:[%s1147_s18 + $0x54] sm:$0xf] %v802_v0  ;;  %v418_v53 = vpack.c.bf16 %v386_v39, %v386_v39  ;;  %v615_v27 = vshll.u32 %v419_v61, 16  ;;  %v420_v49 = vpack.c.bf16 %v388_v62, %v388_v62  ;;  %v391_v32 = vmax.f32 %v359_v63, 0.0  ;;  %v997_v59 = vld [vmem:[%s1147_s18 + $0xa4] sm:$0x1] }
  0x58   : > { %966 = vst.msk [vmem:[%s1147_s18 + $0x58] sm:$0xf] %vm174_vm0, %v1577_v21  ;;  %v600_v34 = vor.u32 %v598_v12, %v597_v41  ;;  %v602_v0 = vrot.slane %v597_v41, 4  ;;  %v421_v38 = vpack.c.bf16 %v389_v6, %v389_v6  ;;  %v324_v10 = vmul.f32 %v1199_v5, %v1070_v42 }
  0x59   : > { %968 = vst [vmem:[%s1147_s18 + $0x5c] sm:$0x1] %v1581_v54  ;;  %v604_v21 = vshrl.u32 %v418_v53, 16  ;;  %v607_v2 = vshll.u32 %v418_v53, 16  ;;  %v621_v8 = vshrl.u32 %v420_v49, 16  ;;  %v624_v13 = vshll.u32 %v420_v49, 16 }
  0x5a   : > { %970 = vst [vmem:[%s1147_s18 + $0x60] sm:$0xf] %v809_v51  ;;  %v601_v54 = vsel %vm1292_vm6, %v593_v31, %v600_v34  ;;  %v827_v4 = vsel %vm1407_vm7, %v602_v0, %v982_v33  ;;  %v612_v51 = vshrl.u32 %v419_v61, 16  ;;  %v422_v30 = vpack.c.bf16 %v390_v47, %v390_v47  ;;  %v1094_v53 = vld [vmem:[%s1179_s22 + $0x78] sm:$0xff]  }
  0x5b   : > { %971 = vst.msk [vmem:[%s1147_s18 + $0x64] sm:$0xf] %vm174_vm0, %v567_v15  ;;  %v606_v46 = vrot.slane %v604_v21, 7  ;;  %v989_v15 = vld [vmem:[%s1147_s18 + $0x90] sm:$0xf]  ;;  %v623_v44 = vrot.slane %v621_v8, 7  ;;  %v423_v52 = vpack.c.bf16 %v391_v32, %v391_v32  ;;  %v360_v25 = vadd.f32 %v1212_v14, %v324_v10 }
  0x5c   : > { %973 = vst [vmem:[%s1147_s18 + $0x68] sm:$0x1] %v813_v23  ;;  %v614_v35 = vrot.slane %v612_v51, 7  ;;  %v629_v23 = vshrl.u32 %v421_v38, 16  ;;  %v638_v31 = vshrl.u32 %v422_v30, 16  ;;  %v641_v17 = vshll.u32 %v422_v30, 16 }
  0x5d   : > { %975 = vst [vmem:[%s1147_s18 + $0x6c] sm:$0xf] %v816_v19  ;;  %v609_v29 = vor.u32 %v607_v2, %v606_v46  ;;  %v610_v9 = vrot.slane %v606_v46, 4  ;;  %v632_v19 = vshll.u32 %v421_v38, 16  ;;  %v626_v16 = vor.u32 %v624_v13, %v623_v44  ;;  %v1002_v32 = vld [vmem:[%s1147_s18 + $0xb0] sm:$0x1] }
  0x5e   : > { %976 = vst.msk [vmem:[%s1147_s18 + $0x70] sm:$0xf] %vm174_vm0, %v584_v7  ;;  %v617_v7 = vor.u32 %v615_v27, %v614_v35  ;;  %v619_v26 = vrot.slane %v614_v35, 4  ;;  %v627_v12 = vrot.slane %v623_v44, 4  ;;  %v640_v58 = vrot.slane %v638_v31, 7 }
  0x5f   : > { %978 = vst [vmem:[%s1147_s18 + $0x74] sm:$0x1] %v820_v24  ;;  %v830_v45 = vsel %vm1274_vm5, %v609_v29, %v984_v3  ;;  %v631_v24 = vrot.slane %v629_v23, 7  ;;  %v837_v41 = vsel %vm1274_vm5, %v626_v16, %v989_v15  ;;  %v1071_v42 = vunpack.c.h.bf16 %v1654_v20  ;;  %v999_v23 = vld [vmem:[%s1147_s18 + $0xa8] sm:$0xf] }
  0x60   : > { %980 = vst [vmem:[%s1147_s18 + $0x78] sm:$0xf] %v823_v48  ;;  %v618_v11 = vsel %vm1292_vm6, %v610_v9, %v617_v7  ;;  %v834_v48 = vsel %vm1407_vm7, %v619_v26, %v987_v36  ;;  %v1074_v33 = vunpack.c.l.bf16 %v1093_v28  ;;  %v643_v40 = vor.u32 %v641_v17, %v640_v58 }
  0x61   : > { %981 = vst.msk [vmem:[%s1147_s18 + $0x7c] sm:$0xf] %vm174_vm0, %v601_v54  ;;  %v634_v39 = vor.u32 %v632_v19, %v631_v24  ;;  %v636_v50 = vrot.slane %v631_v24, 4  ;;  %v644_v34 = vrot.slane %v640_v58, 4  ;;  %v646_v0 = vshrl.u32 %v423_v52, 16 }
  0x62   : > { %983 = vst [vmem:[%s1147_s18 + $0x80] sm:$0x1] %v827_v4  ;;  %v649_v60 = vshll.u32 %v423_v52, 16  ;;  %v392_v43 = vmax.f32 %v360_v25, 0.0  ;;  %v325_v20 = vmul.f32 %v1199_v5, %v1071_v42  ;;  %v844_v21 = vsel %vm1274_vm5, %v643_v40, %v994_v22 }
  0x63   : > { %985 = vst [vmem:[%s1147_s18 + $0x84] sm:$0xf] %v830_v45  ;;  %v635_v55 = vsel %vm1292_vm6, %v627_v12, %v634_v39  ;;  %v841_v56 = vsel %vm1407_vm7, %v636_v50, %v992_v37  ;;  %v326_v2 = vmul.f32 %v1199_v5, %v1074_v33  ;;  %v1075_v61 = vunpack.c.h.bf16 %v1093_v28  ;;  %v1004_v50 = vld [vmem:[%s1147_s18 + $0xb4] sm:$0xf] }
  0x64   : > { %986 = vst.msk [vmem:[%s1147_s18 + $0x88] sm:$0xf] %vm174_vm0, %v618_v11  ;;  %v1078_v62 = vunpack.c.l.bf16 %v1094_v53  ;;  %v648_v54 = vrot.slane %v646_v0, 7  ;;  %v424_v4 = vpack.c.bf16 %v392_v43, %v392_v43  ;;  %v361_v3 = vadd.f32 %v1212_v14, %v325_v20  ;;  %v1009_v43 = vld [vmem:[%s1147_s18 + $0xc0] sm:$0xf] }
  0x65   : > { %988 = vst [vmem:[%s1147_s18 + $0x8c] sm:$0x1] %v834_v48  ;;  %v1079_v6 = vunpack.c.h.bf16 %v1094_v53  ;;  %v362_v46 = vadd.f32 %v1212_v14, %v326_v2  ;;  %v327_v51 = vmul.f32 %v1199_v5, %v1075_v61 }
  0x66   : > { %990 = vst [vmem:[%s1147_s18 + $0x90] sm:$0xf] %v837_v41  ;;  %v328_v27 = vmul.f32 %v1199_v5, %v1078_v62  ;;  %v651_v49 = vor.u32 %v649_v60, %v648_v54  ;;  %v653_v36 = vrot.slane %v648_v54, 4  ;;  %v655_v38 = vshrl.u32 %v424_v4, 16  ;;  %v1007_v60 = vld [vmem:[%s1147_s18 + $0xbc] sm:$0x1] }
  0x67   : > { %991 = vst.msk [vmem:[%s1147_s18 + $0x94] sm:$0xf] %vm174_vm0, %v635_v55  ;;  %v658_v47 = vshll.u32 %v424_v4, 16  ;;  %v393_v63 = vmax.f32 %v361_v3, 0.0  ;;  %v394_v10 = vmax.f32 %v362_v46, 0.0  ;;  %v363_v29 = vadd.f32 %v1212_v14, %v327_v51 }
  0x68   : > { %993 = vst [vmem:[%s1147_s18 + $0x98] sm:$0x1] %v841_v56  ;;  %v364_v9 = vadd.f32 %v1212_v14, %v328_v27  ;;  %v652_v35 = vsel %vm1292_vm6, %v644_v34, %v651_v49  ;;  %v848_v8 = vsel %vm1407_vm7, %v653_v36, %v997_v59  ;;  %v657_v13 = vrot.slane %v655_v38, 7  ;;  %v1012_v46 = vld [vmem:[%s1147_s18 + $0xc8] sm:$0x1] }
  0x69   : > { %995 = vst [vmem:[%s1147_s18 + $0x9c] sm:$0xf] %v844_v21  ;;  %v329_v15 = vmul.f32 %v1199_v5, %v1079_v6  ;;  %v425_v19 = vpack.c.bf16 %v393_v63, %v393_v63  ;;  %v426_v30 = vpack.c.bf16 %v394_v10, %v394_v10  ;;  %v395_v45 = vmax.f32 %v363_v29, 0.0 }
  0x6a   : > { %996 = vst.msk [vmem:[%s1147_s18 + $0xa0] sm:$0xf] %vm174_vm0, %v652_v35  ;;  %v396_v7 = vmax.f32 %v364_v9, 0.0  ;;  %v660_v26 = vor.u32 %v658_v47, %v657_v13  ;;  %v661_v12 = vrot.slane %v657_v13, 4 }
  0x6b   : > { %998 = vst [vmem:[%s1147_s18 + $0xa4] sm:$0x1] %v848_v8  ;;  %v365_v44 = vadd.f32 %v1212_v14, %v329_v15  ;;  %v663_v28 = vshrl.u32 %v425_v19, 16  ;;  %v666_v24 = vshll.u32 %v425_v19, 16  ;;  %v672_v31 = vshrl.u32 %v426_v30, 16 }
  0x6c   : > { %v675_v17 = vshll.u32 %v426_v30, 16  ;;  %v851_v5 = vsel %vm1274_vm5, %v660_v26, %v999_v23  ;;  %v427_v11 = vpack.c.bf16 %v395_v45, %v395_v45  ;;  %v428_v48 = vpack.c.bf16 %v396_v7, %v396_v7 }
  0x6d   : > { %v397_v16 = vmax.f32 %v365_v44, 0.0  ;;  %1000 = vst [vmem:[%s1147_s18 + $0xa8] sm:$0xf] %v851_v5  ;;  %v665_v37 = vrot.slane %v663_v28, 7  ;;  %v674_v39 = vrot.slane %v672_v31, 7 }
  0x6e   : > { %v680_v58 = vshrl.u32 %v427_v11, 16  ;;  %v683_v14 = vshll.u32 %v427_v11, 16  ;;  %v689_v52 = vshrl.u32 %v428_v48, 16  ;;  %v692_v41 = vshll.u32 %v428_v48, 16 }
  0x6f   : > { %v668_v22 = vor.u32 %v666_v24, %v665_v37  ;;  %v670_v25 = vrot.slane %v665_v37, 4  ;;  %v677_v42 = vor.u32 %v675_v17, %v674_v39  ;;  %v678_v33 = vrot.slane %v674_v39, 4 }
  0x70   : > { %v682_v53 = vrot.slane %v680_v58, 7  ;;  %v691_v55 = vrot.slane %v689_v52, 7  ;;  %v429_v56 = vpack.c.bf16 %v397_v16, %v397_v16 }
  0x71   : > { %v669_v40 = vsel %vm1292_vm6, %v661_v12, %v668_v22  ;;  %v855_v34 = vsel %vm1407_vm7, %v670_v25, %v1002_v32  ;;  %v858_v0 = vsel %vm1274_vm5, %v677_v42, %v1004_v50 }
  0x72   : > { %1001 = vst.msk [vmem:[%s1147_s18 + $0xac] sm:$0xf] %vm174_vm0, %v669_v40  ;;  %v685_v20 = vor.u32 %v683_v14, %v682_v53  ;;  %v687_v21 = vrot.slane %v682_v53, 4  ;;  %v694_v2 = vor.u32 %v692_v41, %v691_v55  ;;  %v697_v61 = vshrl.u32 %v429_v56, 16 }
  0x73   : > { %1003 = vst [vmem:[%s1147_s18 + $0xb0] sm:$0x1] %v855_v34  ;;  %v700_v62 = vshll.u32 %v429_v56, 16  ;;  %v695_v6 = vrot.slane %v691_v55, 4 }
  0x74   : > { %1005 = vst [vmem:[%s1147_s18 + $0xb4] sm:$0xf] %v858_v0  ;;  %v686_v54 = vsel %vm1292_vm6, %v678_v33, %v685_v20  ;;  %v862_v4 = vsel %vm1407_vm7, %v687_v21, %v1007_v60  ;;  %v865_v3 = vsel %vm1274_vm5, %v694_v2, %v1009_v43  ;;  %v699_v59 = vrot.slane %v697_v61, 7 }
  0x75   : > { %1006 = vst.msk [vmem:[%s1147_s18 + $0xb8] sm:$0xf] %vm174_vm0, %v686_v54 }
  0x76   : > { %1008 = vst [vmem:[%s1147_s18 + $0xbc] sm:$0x1] %v862_v4  ;;  %v702_v51 = vor.u32 %v700_v62, %v699_v59  ;;  %v704_v27 = vrot.slane %v699_v59, 4 }
  0x77   : > { %1010 = vst [vmem:[%s1147_s18 + $0xc0] sm:$0xf] %v865_v3 }
  0x78   : > { %v703_v49 = vsel %vm1292_vm6, %v695_v6, %v702_v51  ;;  %v869_v36 = vsel %vm1407_vm7, %v704_v27, %v1012_v46 }
  0x79   : > { %1011 = vst.msk [vmem:[%s1147_s18 + $0xc4] sm:$0xf] %vm174_vm0, %v703_v49 }
  0x7a   : > { %1013 = vst [vmem:[%s1147_s18 + $0xc8] sm:$0x1] %v869_v36 }
  0x7b PF: > { %s13_s12 = sadd.s32 1, %s1113_s12  }
  0x7c   : > { %p10_p5 = scmp.ge.s32.totalorder %s13_s12, 4  }
  0x7e   :  { %12 = sbr.rel (!%p10_p5) target bundleno = 1 (0x1), region = 63 }

// kernel: a_call__.9
= control target key start
LH: loop header
LB: loop body
LE: loop exit
PB: predicated region body
PF: predicated region fallthrough
CT: control target
= control target key end

     0   :  { %s1885_s12 = smov 0   ;;  %s1887_s13 = smov 0   ;;  %s2441_s0 = inlined_call_operand.vmem [shape: bf16[2,18,18,4], index: 0, kind: input, shape index: {}]   ;;  %s2442_s1 = inlined_call_operand.vmem [shape: bf16[3,12,8], index: 1, kind: input, shape index: {}]   ;;  %s2443_s2 = inlined_call_operand.vmem [shape: bf16[512,8], index: 2, kind: output, shape index: {0}]   ;;  %s2444_s3 = inlined_call_operand.vmem [shape: f32[4,2,8], index: 3, kind: output, shape index: {1}]  }
   0x1   :  { %s1889_s14 = smov 0   ;;  %s1891_s15 = smov 0  }
   0x2   :  { %s1893_s16 = smov 0  }
   0x3 LB: > { %s23_s17 = sadd.s32 1, %s1853_s14  ;;  %s26_s18 = sadd.s32 1, %s1857_s15  ;;  %s1861_s16 = sphi %s1893_s16, %s14_s16   ;;  %s1857_s15 = sphi %s1891_s15, %s2448_s15   ;;  %s1853_s14 = sphi %s1889_s14, %s2447_s14   ;;  %s1849_s13 = sphi %s1887_s13, %s2446_s13   ;;  %s1845_s12 = sphi %s1885_s12, %s2445_s12  }
   0x4   : > { %p24_p0 = scmp.ge.s32.totalorder %s23_s17, 2  ;;  %p1549_p1 = scmp.ge.s32.totalorder %s1861_s16, 1 }
   0x5   : > { %p160_p2 = scmp.lt.s32.totalorder %s1861_s16, 5 }
   0x6   : > { %s2450_s17 = smov (%p24_p0, %s23_s17), 0  ;;  %s2452_s18 = smov (!%p24_p0, %s26_s18), %s1857_s15 }
   0x7   : > { %p161_p3 = pnand %p1549_p1, %p160_p2  ;;  %p28_p4 = scmp.ge.s32.totalorder %s2452_s18, 2 }
   0x8   : > { %p192_p5 = scmp.lt.s32.totalorder (!%p161_p3), %s1849_s13, 1  ;;  %s1749_s20 = smul.u32 (!%p161_p3), 96, %s1845_s12 }
   0x9   : > { %s2454_s18 = smov (%p28_p4, %s2452_s18), 0  ;;  %164 = sbr.rel (%p161_p3) target bundleno = 429 (0x1ad), region = 28 }
   0xa   : > { %s1863_s26 = smov (!%p161_p3), 8   ;;  %s1864_s27 = smov (!%p161_p3), 4  }
   0xe   : > { %s193_s19 = scalar_select %p192_p5, %s1849_s13, 1  ;;  %vm421_vm0 = vcmask 1046528   ;;  %vm308_vm1 = vsmask.f32 7424  ;;  %vm799_vm2 = vcmask 1045504   ;;  %vm462_vm3 = vcmask 31744  }
   0xf   : > { %vm479_vm4 = vcmask 64512   ;;  %vm782_vm5 = vcmask 97280   ;;  %vm1309_vm6 = vcmask 60416   ;;  %vm1416_vm7 = vcmask 1040384  }
  0x10   : > { %s1780_s21 = smul.u32 216, %s193_s19  ;;  %vm1418_vm8 = vcmask 58368  }
  0x12   : > { %s196_s24 = scalar_lea.vmem %s2441_s0, %s1780_s21 }
  0x13   : > { %s1925_s25 = scalar_lea.vmem %s196_s24, %s1749_s20  ;;  %s1551_s20 = sshll.u32 %s1849_s13, 1 }
  0x14   : > { %v1928_v0 = vld [vmem:[%s1925_s25 + $0x18] sm:$0xff]  ;;  %v1679_v1 = vld [vmem:[%s1925_s25 + $0x20] sm:$0x1]  ;;  %v222_v6 = vld [vmem:[%s1925_s25 + $0x8] sm:$0x1]  ;;  %s2321_s21 = sadd.s32 %s1845_s12, %s1551_s20 }
  0x15   : > { %v1932_v2 = vld [vmem:[%s1925_s25 + $0x54] sm:$0xff]  ;;  %v1001_v3 = vunpack.c.l.b16 %v1679_v1  ;;  %v1613_v4 = vld [vmem:[%s1925_s25 + $0x5c] sm:$0x1]  ;;  %v1936_v5 = vld [vmem:[%s1925_s25] sm:$0xff]  ;;  %v1129_v9 = vrot.slane %v1928_v0, 1  ;;  %v1020_v10 = vshll.u32 %v1928_v0, 16  ;;  %v292_v11 = vunpack.c.l.b16 %v222_v6 }
  0x16   : > { %v580_v7 = vunpack.c.l.b16 %v1613_v4  ;;  %v720_v13 = vrot.slane %v1932_v2, 1  ;;  %v1018_v14 = vshrl.u32 %v1928_v0, 16  ;;  %v312_v15 = vshll.u32 %v1936_v5, 16  ;;  %v1946_v23 = vld [vmem:[%s1925_s25 + $0xc] sm:$0xff]  ;;  %v1595_v24 = vld [vmem:[%s1925_s25 + $0x14] sm:$0x1] }
  0x17   : > { %v1009_v8 = vpack.c.b16 %v1001_v3, %v1001_v3  ;;  %v1022_v17 = vrot.slane %v1020_v10, 1  ;;  %v300_v19 = vpack.c.b16 %v292_v11, %v292_v11  ;;  %v310_v21 = vshrl.u32 %v1936_v5, 16  ;;  %v225_v36 = vld [vmem:[%s1925_s25 + $0x14] sm:$0x1]  ;;  %v1682_v40 = vld [vmem:[%s1925_s25 + $0x2c] sm:$0x1] }
  0x18   : > { %v588_v12 = vpack.c.b16 %v580_v7, %v580_v7  ;;  %v314_v22 = vrot.slane %v312_v15, 1  ;;  %v665_v28 = vshll.u32 %v1932_v2, 16  ;;  %v574_v31 = vunpack.c.l.b16 %v1595_v24  ;;  %v1962_v44 = vld [vmem:[%s1925_s25 + $0xc] sm:$0xff]  ;;  %v1972_v60 = vld [vmem:[%s1925_s25 + $0x24] sm:$0xff]  ;;  %v1598_v63 = vld [vmem:[%s1925_s25 + $0x20] sm:$0x1] }
  0x19   : > { %v1130_v16 = vrot.slane %v1009_v8, 1  ;;  %v1025_v18 = vshll.u32 %v1009_v8, 16  ;;  %v317_v26 = vshll.u32 %v300_v19, 16  ;;  %v1023_v29 = vor.u32 %v1022_v17, %v1018_v14  ;;  %v1986_v15 = vld [vmem:[%s1925_s25 + $0x18] sm:$0xff]  ;;  %s1552_s22 = sshll.u32 %s2321_s21, 4  ;;  %p209_p7 = scmp.lt.s32.totalorder %s2321_s21, 3 }
  0x1a   : > { %v721_v20 = vrot.slane %v588_v12, 1  ;;  %v315_v32 = vor.u32 %v314_v22, %v310_v21  ;;  %v593_v34 = vshll.u32 %v1946_v23, 16  ;;  %v582_v35 = vpack.c.b16 %v574_v31, %v574_v31  ;;  %v1685_v21 = vld [vmem:[%s1925_s25 + $0x38] sm:$0x1]  ;;  %v1996_v31 = vld [vmem:[%s1925_s25 + $0x30] sm:$0xff]  ;;  %p200_p6 = scmp.lt.s32.totalorder %s1552_s22, 63 }
  0x1b   : > { %v1131_v25 = vsel %vm421_vm0, %v1129_v9, %v1130_v16  ;;  %v1027_v30 = vrot.slane %v1025_v18, 1  ;;  %v319_v33 = vrot.slane %v317_v26, 1  ;;  %v663_v37 = vshrl.u32 %v1932_v2, 16  ;;  %s2458_s21 = smov (!%p209_p7, %s2321_s21), 3 }
  0x1c   : > { %1153 = vrot.lane.b32.xlu0 %v1131_v25, %s1863_s26  ;;  %v722_v27 = vsel %vm421_vm0, %v720_v13, %v721_v20  ;;  %v667_v38 = vrot.slane %v665_v28, 1  ;;  %v670_v39 = vshll.u32 %v588_v12, 16  ;;  %v422_v41 = vrot.slane %v1936_v5, 1  ;;  %v1616_v25 = vld [vmem:[%s1925_s25 + $0x68] sm:$0x1]  ;;  %s2456_s22 = smov (!%p200_p6, %s1552_s22), 63 }
  0x1d   : > { %738 = vrot.lane.b32.xlu1 %v722_v27, %s1863_s26  ;;  %v1028_v42 = vsel %vm308_vm1, %v1023_v29, %v1027_v30  ;;  %v591_v43 = vshrl.u32 %v1946_v23, 16  ;;  %v423_v45 = vrot.slane %v300_v19, 1  ;;  %v320_v46 = vsel %vm308_vm1, %v315_v32, %v319_v33  ;;  %v1999_v33 = vld [vmem:[%s1925_s25 + $0x60] sm:$0xff]  ;;  %s1553_s23 = sshll.u32 %s2456_s22, 2  ;;  %s1555_s12 = sshll.u32 %s2458_s21, 1 }
  0x1e   : > { %v595_v47 = vrot.slane %v593_v34, 1  ;;  %v598_v48 = vshll.u32 %v582_v35, 16  ;;  %v293_v49 = vunpack.c.l.b16 %v225_v36  ;;  %v1002_v50 = vunpack.c.l.b16 %v1682_v40  ;;  %s212_s28 = scalar_lea.vmem %s2444_s3, %s1555_s12 }
  0x1f   : > { %v424_v51 = vsel %vm421_vm0, %v422_v41, %v423_v45  ;;  %v668_v52 = vor.u32 %v667_v38, %v663_v37  ;;  %v672_v53 = vrot.slane %v670_v39, 1  ;;  %v324_v54 = vshll.u32 %v1962_v44, 16  ;;  %v228_v37 = vld [vmem:[%s1925_s25 + $0x20] sm:$0x1] }
  0x20   : > { %446 = vrot.lane.b32.xlu2 %v424_v51, %s1863_s26  ;;  %v702_v55 = vrot.slane %v1946_v23, 1  ;;  %v596_v56 = vor.u32 %v595_v47, %v591_v43  ;;  %v600_v57 = vrot.slane %v598_v48, 1  ;;  %v301_v58 = vpack.c.b16 %v293_v49, %v293_v49  ;;  %v1601_v47 = vld [vmem:[%s1925_s25 + $0x2c] sm:$0x1]  ;;  %v2013_v51 = vld [vmem:[%s1925_s25 + $0x18] sm:$0xff] }
  0x21   : > { %v703_v59 = vrot.slane %v582_v35, 1  ;;  %v1010_v61 = vpack.c.b16 %v1002_v50, %v1002_v50  ;;  %v673_v62 = vsel %vm308_vm1, %v668_v52, %v672_v53  ;;  %v1030_v3 = vshrl.u32 %v1972_v60, 16 }
  0x22   : > { %v1032_v4 = vshll.u32 %v1972_v60, 16  ;;  %v601_v7 = vsel %vm308_vm1, %v596_v56, %v600_v57  ;;  %v322_v8 = vshrl.u32 %v1962_v44, 16  ;;  %v326_v9 = vrot.slane %v324_v54, 1 }
  0x23   : > { %v704_v1 = vsel %vm421_vm0, %v702_v55, %v703_v59  ;;  %v1037_v6 = vshll.u32 %v1010_v61, 16  ;;  %v329_v10 = vshll.u32 %v301_v58, 16  ;;  %v575_v11 = vunpack.c.l.b16 %v1598_v63  ;;  %v2019_v59 = vld [vmem:[%s1925_s25 + $0x24] sm:$0xff] }
  0x24   : > { %1113 = vrot.lane.b32.xlu0 %v1028_v42, %s1864_s27  ;;  %v1034_v12 = vrot.slane %v1032_v4, 1  ;;  %v1132_v13 = vrot.slane %v1972_v60, 1  ;;  %v1133_v14 = vrot.slane %v1010_v61, 1  ;;  %v327_v18 = vor.u32 %v326_v9, %v322_v8 }
  0x25   : > { %405 = vrot.lane.b32.xlu1 %v320_v46, %s1864_s27  ;;  %v1039_v17 = vrot.slane %v1037_v6, 1  ;;  %v331_v19 = vrot.slane %v329_v10, 1  ;;  %v583_v20 = vpack.c.b16 %v575_v11, %v575_v11  ;;  %v605_v22 = vshll.u32 %v1986_v15, 16  ;;  %v240_v11 = vld [vmem:[%s1925_s25 + $0x50] sm:$0x1] }
  0x26   : > { %v1035_v16 = vor.u32 %v1034_v12, %v1030_v3  ;;  %v1134_v24 = vsel %vm421_vm0, %v1132_v13, %v1133_v14  ;;  %v603_v27 = vshrl.u32 %v1986_v15, 16  ;;  %v1003_v32 = vunpack.c.l.b16 %v1685_v21 }
  0x27   : > { %v607_v28 = vrot.slane %v605_v22, 1  ;;  %v610_v29 = vshll.u32 %v583_v20, 16  ;;  %v332_v30 = vsel %vm308_vm1, %v327_v18, %v331_v19  ;;  %v581_v34 = vunpack.c.l.b16 %v1616_v25  ;;  %v2034_v22 = vld [vmem:[%s1925_s25 + $0x48] sm:$0xff]  ;;  %v1688_v25 = vld [vmem:[%s1925_s25 + $0x44] sm:$0x1] }
  0x28   : > { %726 = vrot.lane.b32.xlu2 %v704_v1, %s1863_s26  ;;  %v1040_v26 = vsel %vm308_vm1, %v1035_v16, %v1039_v17  ;;  %v425_v35 = vrot.slane %v1962_v44, 1  ;;  %v426_v36 = vrot.slane %v301_v58, 1  ;;  %v677_v40 = vshll.u32 %v1999_v33, 16 }
  0x29   : > { %v608_v38 = vor.u32 %v607_v28, %v603_v27  ;;  %v612_v39 = vrot.slane %v610_v29, 1  ;;  %v705_v41 = vrot.slane %v1986_v15, 1  ;;  %v706_v42 = vrot.slane %v583_v20, 1 }
  0x2a   : > { %v1011_v43 = vpack.c.b16 %v1003_v32, %v1003_v32  ;;  %v1044_v45 = vshll.u32 %v1996_v31, 16  ;;  %v589_v46 = vpack.c.b16 %v581_v34, %v581_v34  ;;  %v427_v48 = vsel %vm421_vm0, %v425_v35, %v426_v36  ;;  %v2043_v36 = vld [vmem:[%s1925_s25 + $0x3c] sm:$0xff] }
  0x2b   : > { %v1042_v49 = vshrl.u32 %v1996_v31, 16  ;;  %v294_v50 = vunpack.c.l.b16 %v228_v37  ;;  %v613_v52 = vsel %vm308_vm1, %v608_v38, %v612_v39  ;;  %v675_v53 = vshrl.u32 %v1999_v33, 16 }
  0x2c   : > { %698 = vrot.lane.b32.xlu0 %v673_v62, %s1864_s27  ;;  %v679_v54 = vrot.slane %v677_v40, 1  ;;  %v682_v55 = vshll.u32 %v589_v46, 16  ;;  %v707_v56 = vsel %vm421_vm0, %v705_v41, %v706_v42  ;;  %v1046_v57 = vrot.slane %v1044_v45, 1 }
  0x2d   : > { %686 = vrot.lane.b32.xlu1 %v601_v7, %s1864_s27  ;;  %v1049_v58 = vshll.u32 %v1011_v43, 16  ;;  %v576_v61 = vunpack.c.l.b16 %v1601_v47  ;;  %v723_v62 = vrot.slane %v1999_v33, 1  ;;  %v724_v63 = vrot.slane %v589_v46, 1 }
  0x2e   : > { %v302_v1 = vpack.c.b16 %v294_v50, %v294_v50  ;;  %v336_v3 = vshll.u32 %v2013_v51, 16  ;;  %v680_v4 = vor.u32 %v679_v54, %v675_v53  ;;  %v684_v6 = vrot.slane %v682_v55, 1 }
  0x2f   : > { %v1047_v7 = vor.u32 %v1046_v57, %v1042_v49  ;;  %v1051_v8 = vrot.slane %v1049_v58, 1  ;;  %v584_v9 = vpack.c.b16 %v576_v61, %v576_v61  ;;  %v617_v10 = vshll.u32 %v2019_v59, 16  ;;  %v1604_v49 = vld [vmem:[%s1925_s25 + $0x38] sm:$0x1]  ;;  %v2058_v58 = vld [vmem:[%s1925_s25 + $0x30] sm:$0xff] }
  0x30   : > { %1115 = vrot.lane.b32.xlu2 %v1040_v26, %s1864_s27  ;;  %v725_v12 = vsel %vm421_vm0, %v723_v62, %v724_v63  ;;  %v334_v13 = vshrl.u32 %v2013_v51, 16  ;;  %v338_v14 = vrot.slane %v336_v3, 1  ;;  %v341_v16 = vshll.u32 %v302_v1, 16  ;;  %v231_v62 = vld [vmem:[%s1925_s25 + $0x2c] sm:$0x1] }
  0x31   : > { %v615_v17 = vshrl.u32 %v2019_v59, 16  ;;  %v685_v18 = vsel %vm308_vm1, %v680_v4, %v684_v6  ;;  %v1052_v19 = vsel %vm308_vm1, %v1047_v7, %v1051_v8  ;;  %v619_v20 = vrot.slane %v617_v10, 1 }
  0x32   : > { %v622_v21 = vshll.u32 %v584_v9, 16  ;;  %v339_v26 = vor.u32 %v338_v14, %v334_v13  ;;  %v343_v27 = vrot.slane %v341_v16, 1  ;;  %v1135_v28 = vrot.slane %v1996_v31, 1 }
  0x33   : > { %v1136_v29 = vrot.slane %v1011_v43, 1  ;;  %v384_v35 = vshll.u32 %v2034_v22, 16  ;;  %v1004_v37 = vunpack.c.l.b16 %v1688_v25  ;;  %v382_v41 = vshrl.u32 %v2034_v22, 16  ;;  %v2078_v25 = vld [vmem:[%s1925_s25 + $0x54] sm:$0xff] }
  0x34   : > { %1155 = vrot.lane.b32.xlu0 %v1134_v24, %s1863_s26  ;;  %v298_v24 = vunpack.c.l.b16 %v240_v11  ;;  %v624_v32 = vrot.slane %v622_v21, 1  ;;  %v344_v38 = vsel %vm308_vm1, %v339_v26, %v343_v27  ;;  %v1056_v46 = vshll.u32 %v2043_v36, 16  ;;  %v243_v11 = vld [vmem:[%s1925_s25 + $0x5c] sm:$0x1] }
  0x35   : > { %407 = vrot.lane.b32.xlu1 %v332_v30, %s1864_s27  ;;  %v620_v30 = vor.u32 %v619_v20, %v615_v17  ;;  %v1137_v39 = vsel %vm421_vm0, %v1135_v28, %v1136_v29  ;;  %v386_v42 = vrot.slane %v384_v35, 1  ;;  %v1012_v43 = vpack.c.b16 %v1004_v37, %v1004_v37 }
  0x36   : > { %v306_v34 = vpack.c.b16 %v298_v24, %v298_v24  ;;  %v708_v47 = vrot.slane %v2019_v59, 1  ;;  %v428_v50 = vrot.slane %v2013_v51, 1  ;;  %v1054_v55 = vshrl.u32 %v2043_v36, 16 }
  0x37   : > { %v625_v40 = vsel %vm308_vm1, %v620_v30, %v624_v32  ;;  %v387_v53 = vor.u32 %v386_v42, %v382_v41  ;;  %v1061_v57 = vshll.u32 %v1012_v43, 16  ;;  %v577_v61 = vunpack.c.l.b16 %v1604_v49 }
  0x38   : > { %688 = vrot.lane.b32.xlu2 %v613_v52, %s1864_s27  ;;  %v389_v45 = vshll.u32 %v306_v34, 16  ;;  %v429_v52 = vrot.slane %v302_v1, 1  ;;  %v2065_v1 = vld [vmem:[%s1925_s25 + $0x24] sm:$0xff]  ;;  %v295_v8 = vunpack.c.l.b16 %v231_v62  ;;  %v629_v10 = vshll.u32 %v2058_v58, 16 }
  0x39   : > { %v1063_v7 = vrot.slane %v1061_v57, 1  ;;  %v441_v13 = vrot.slane %v306_v34, 1  ;;  %v348_v14 = vshll.u32 %v2065_v1, 16  ;;  %v1138_v16 = vrot.slane %v2043_v36, 1 }
  0x3a   : > { %v391_v54 = vrot.slane %v389_v45, 1  ;;  %v430_v3 = vsel %vm421_vm0, %v428_v50, %v429_v52  ;;  %v1139_v17 = vrot.slane %v1012_v43, 1  ;;  %v627_v20 = vshrl.u32 %v2058_v58, 16  ;;  %v234_v45 = vld [vmem:[%s1925_s25 + $0x38] sm:$0x1] }
  0x3b   : > { %v631_v21 = vrot.slane %v629_v10, 1  ;;  %v299_v26 = vunpack.c.l.b16 %v243_v11  ;;  %v346_v28 = vshrl.u32 %v2065_v1, 16  ;;  %v350_v29 = vrot.slane %v348_v14, 1 }
  0x3c   : > { %448 = vrot.lane.b32.xlu0 %v427_v48, %s1863_s26  ;;  %v709_v48 = vrot.slane %v584_v9, 1  ;;  %v392_v4 = vsel %vm308_vm1, %v387_v53, %v391_v54  ;;  %v585_v9 = vpack.c.b16 %v577_v61, %v577_v61  ;;  %v1140_v32 = vsel %vm421_vm0, %v1138_v16, %v1139_v17  ;;  %v2095_v53 = vld [vmem:[%s1925_s25 + $0x30] sm:$0xff] }
  0x3d   : > { %728 = vrot.lane.b32.xlu1 %v707_v56, %s1863_s26  ;;  %v1058_v56 = vrot.slane %v1056_v46, 1  ;;  %v307_v34 = vpack.c.b16 %v299_v26, %v299_v26  ;;  %v396_v35 = vshll.u32 %v2078_v25, 16  ;;  %v632_v37 = vor.u32 %v631_v21, %v627_v20  ;;  %v2114_v21 = vld [vmem:[%s1925_s25 + $0x3c] sm:$0xff] }
  0x3e   : > { %v710_v63 = vsel %vm421_vm0, %v708_v47, %v709_v48  ;;  %v634_v24 = vshll.u32 %v585_v9, 16  ;;  %v431_v41 = vrot.slane %v2065_v1, 1  ;;  %v394_v43 = vshrl.u32 %v2078_v25, 16  ;;  %v1691_v48 = vld [vmem:[%s1925_s25 + $0x50] sm:$0x1] }
  0x3f   : > { %v1059_v6 = vor.u32 %v1058_v56, %v1054_v55  ;;  %v398_v46 = vrot.slane %v396_v35, 1  ;;  %v401_v47 = vshll.u32 %v307_v34, 16  ;;  %v296_v54 = vunpack.c.l.b16 %v234_v45  ;;  %v2098_v55 = vld [vmem:[%s1925_s25 + $0x48] sm:$0xff] }
  0x40   : > { %700 = vrot.lane.b32.xlu2 %v685_v18, %s1864_s27  ;;  %v1005_v56 = vunpack.c.l.b16 %v1691_v48  ;;  %v711_v62 = vrot.slane %v2058_v58, 1  ;;  %v1066_v14 = vshrl.u32 %v2098_v55, 16  ;;  %v641_v26 = vshll.u32 %v2114_v21, 16 }
  0x41   : > { %v1064_v18 = vsel %vm308_vm1, %v1059_v6, %v1063_v7  ;;  %v399_v57 = vor.u32 %v398_v46, %v394_v43  ;;  %v403_v61 = vrot.slane %v401_v47, 1  ;;  %v444_v6 = vrot.slane %v307_v34, 1 }
  0x42   : > { %v304_v7 = vpack.c.b16 %v296_v54, %v296_v54  ;;  %v1013_v10 = vpack.c.b16 %v1005_v56, %v1005_v56  ;;  %v434_v48 = vrot.slane %v2095_v53, 1  ;;  %v1665_v54 = vld [vmem:[%s2442_s1] sm:$0xf]  ;;  %v1758_v56 = vld [vmem:[%s2442_s1] sm:$0x30] }
  0x43   : > { %v404_v11 = vsel %vm308_vm1, %v399_v57, %v403_v61 }
  0x44   : > { %740 = vrot.lane.b32.xlu0 %v725_v12, %s1863_s26  ;;  %v440_v12 = vrot.slane %v2034_v22, 1  ;;  %v365_v20 = vshll.u32 %v304_v7, 16 }
  0x45   : > { %1117 = vrot.lane.b32.xlu1 %v1052_v19, %s1864_s27  ;;  %v303_v19 = vpack.c.b16 %v295_v8, %v295_v8  ;;  %v360_v8 = vshll.u32 %v2095_v53, 16 }
  0x46   : > { %v442_v27 = vsel %vm421_vm0, %v440_v12, %v441_v13  ;;  %v1607_v12 = vld [vmem:[%s1925_s25 + $0x44] sm:$0x1]  ;;  %v367_v35 = vrot.slane %v365_v20, 1 }
  0x47   : > { %v353_v30 = vshll.u32 %v303_v19, 16  ;;  %v432_v42 = vrot.slane %v303_v19, 1  ;;  %v362_v19 = vrot.slane %v360_v8, 1 }
  0x48   : > { %1157 = vrot.lane.b32.xlu2 %v1137_v39, %s1863_s26  ;;  %v351_v39 = vor.u32 %v350_v29, %v346_v28  ;;  %v1142_v28 = vrot.slane %v1013_v10, 1  ;;  %v1694_v29 = vld [vmem:[%s1925_s25 + $0x5c] sm:$0x1] }
  0x49   : > { %v433_v52 = vsel %vm421_vm0, %v431_v41, %v432_v42  ;;  %v639_v41 = vshrl.u32 %v2114_v21, 16  ;;  %v643_v42 = vrot.slane %v641_v26, 1  ;;  %v2165_v26 = vld [vmem:[%s1925_s25 + $0x3c] sm:$0xff] }
  0x4c   : > { %409 = vrot.lane.b32.xlu0 %v344_v38, %s1864_s27  ;;  %v636_v38 = vrot.slane %v634_v24, 1  ;;  %v578_v24 = vunpack.c.l.b16 %v1607_v12 }
  0x4d   : > { %690 = vrot.lane.b32.xlu1 %v625_v40, %s1864_s27  ;;  %v355_v40 = vrot.slane %v353_v30, 1 }
  0x4e   : > { %v637_v49 = vsel %vm308_vm1, %v632_v37, %v636_v38  ;;  %v586_v37 = vpack.c.b16 %v578_v24, %v578_v24  ;;  %v1697_v38 = vld [vmem:[%s1925_s25 + $0x68] sm:$0x1] }
  0x4f   : > { %v356_v50 = vsel %vm308_vm1, %v351_v39, %v355_v40  ;;  %v2124_v39 = vld [vmem:[%s1925_s25 + $0x54] sm:$0xff]  ;;  %v1006_v40 = vunpack.c.l.b16 %v1694_v29 }
  0x50   : > { %450 = vrot.lane.b32.xlu2 %v430_v3, %s1863_s26  ;;  %v1068_v3 = vshll.u32 %v2098_v55, 16  ;;  %v646_v46 = vshll.u32 %v586_v37, 16  ;;  %v1080_v61 = vshll.u32 %v2124_v39, 16  ;;  %v715_v12 = vrot.slane %v586_v37, 1  ;;  %v1653_v37 = vld [vmem:[%s2442_s1 + $0x8] sm:$0xf] }
  0x51   : > { %v2141_v57 = vpack.c.b16 %v1006_v40, %v1006_v40 }
  0x52   : > { %v1070_v16 = vrot.slane %v1068_v3, 1  ;;  %v1737_v3 = vld [vmem:[%s2442_s1 + $0x10] sm:$0xf] }
  0x53   : > { %v1085_v20 = vshll.u32 %v2141_v57, 16 }
  0x54   : > { %730 = vrot.lane.b32.xlu0 %v710_v63, %s1863_s26  ;;  %v712_v63 = vrot.slane %v585_v9, 1  ;;  %v1073_v9 = vshll.u32 %v1013_v10, 16  ;;  %v1071_v30 = vor.u32 %v1070_v16, %v1066_v14 }
  0x55   : > { %417 = vrot.lane.b32.xlu1 %v392_v4, %s1864_s27  ;;  %v443_v4 = vrot.slane %v2078_v25, 1 }
  0x56   : > { %v713_v13 = vsel %vm421_vm0, %v711_v62, %v712_v63  ;;  %v644_v62 = vor.u32 %v643_v42, %v639_v41  ;;  %v1666_v63 = vor.u32 %v1758_v56, %v1665_v54 }
  0x57   : > { %v445_v17 = vsel %vm421_vm0, %v443_v4, %v444_v6  ;;  %v1776_v4 = vld [vmem:[%s2442_s1 + $0x10] sm:$0x30]  ;;  %v237_v6 = vld [vmem:[%s1925_s25 + $0x44] sm:$0x1] }
  0x58   : > { %458 = vrot.lane.b32.xlu2 %v442_v27, %s1863_s26  ;;  %v1141_v27 = vrot.slane %v2098_v55, 1  ;;  %v1738_v10 = vor.u32 %v1776_v4, %v1737_v3  ;;  %v297_v24 = vunpack.c.l.b16 %v237_v6  ;;  %v370_v4 = vshrl.u32 %v2165_v26, 16 }
  0x5a   : > { %v1143_v45 = vsel %vm421_vm0, %v1141_v27, %v1142_v28 }
  0x5c   : > { %1119 = vrot.lane.b32.xlu0 %v1064_v18, %s1864_s27  ;;  %v358_v18 = vshrl.u32 %v2095_v53, 16 }
  0x5d   : > { %1159 = vrot.lane.b32.xlu1 %v1140_v32, %s1863_s26  ;;  %v1075_v32 = vrot.slane %v1073_v9, 1  ;;  %v1610_v9 = vld [vmem:[%s1925_s25 + $0x50] sm:$0x1] }
  0x5e   : > { %v363_v34 = vor.u32 %v362_v19, %v358_v18  ;;  %v1078_v18 = vshrl.u32 %v2124_v39, 16  ;;  %v1082_v19 = vrot.slane %v1080_v61, 1 }
  0x5f   : > { %v1076_v43 = vsel %vm308_vm1, %v1071_v30, %v1075_v32 }
  0x60   : > { %411 = vrot.lane.b32.xlu2 %v356_v50, %s1864_s27  ;;  %v368_v47 = vsel %vm308_vm1, %v363_v34, %v367_v35  ;;  %v2132_v50 = vld [vmem:[%s1925_s25 + $0x60] sm:$0xff]  ;;  %v2171_v34 = vld [vmem:[%s1925_s25 + $0x48] sm:$0xff]  ;;  %v579_v35 = vunpack.c.l.b16 %v1610_v9 }
  0x61   : > { %v1092_v8 = vshll.u32 %v2132_v50, 16  ;;  %v1090_v28 = vshrl.u32 %v2132_v50, 16  ;;  %v1147_v40 = vrot.slane %v2132_v50, 1  ;;  %v653_v56 = vshll.u32 %v2171_v34, 16 }
  0x62   : > { %v587_v54 = vpack.c.b16 %v579_v35, %v579_v35 }
  0x63   : > { %v1094_v29 = vrot.slane %v1092_v8, 1 }
  0x64   : > { %692 = vrot.lane.b32.xlu0 %v637_v49, %s1864_s27  ;;  %v435_v49 = vrot.slane %v304_v7, 1  ;;  %v648_v7 = vrot.slane %v646_v46, 1  ;;  %v305_v46 = vpack.c.b16 %v297_v24, %v297_v24 }
  0x65   : > { %452 = vrot.lane.b32.xlu1 %v433_v52, %s1863_s26  ;;  %v1007_v52 = vunpack.c.l.b16 %v1697_v38  ;;  %v1767_v38 = vld [vmem:[%s2442_s1 + $0x8] sm:$0x30] }
  0x66   : > { %v436_v14 = vsel %vm421_vm0, %v434_v48, %v435_v49  ;;  %v649_v27 = vsel %vm308_vm1, %v644_v62, %v648_v7  ;;  %v1654_v41 = vor.u32 %v1767_v38, %v1653_v37  ;;  %v1095_v48 = vor.u32 %v1094_v29, %v1090_v28  ;;  %v1700_v62 = vld [vmem:[%s1925_s25 + $0x74] sm:$0x1] }
  0x67   : > { %v1015_v16 = vpack.c.b16 %v1007_v52, %v1007_v52  ;;  %v377_v7 = vshll.u32 %v305_v46, 16 }
  0x68   : > { %732 = vrot.lane.b32.xlu2 %v713_v13, %s1863_s26  ;;  %v874_v13 = vsel %vm799_vm2, %v1666_v63, 0  ;;  %v801_v52 = vsel %vm799_vm2, %v1654_v41, 0  ;;  %v718_v41 = vrot.slane %v587_v54, 1 }
  0x69   : > { %883 = vmatpush.bf16.msra.mxu1 %v874_v13  ;;  %v1097_v30 = vshll.u32 %v1015_v16, 16  ;;  %v1148_v42 = vrot.slane %v1015_v16, 1  ;;  %810 = vmatpush.bf16.msra.mxu0 %v801_v52  ;;  %v1008_v16 = vunpack.c.l.b16 %v1700_v62  ;;  %v379_v9 = vrot.slane %v377_v7, 1 }
  0x6a   : > { %1777 = vmatpush.bf16.msra.mxu3 %v801_v52 }
  0x6b   : > { %v1099_v49 = vrot.slane %v1097_v30, 1  ;;  %v1149_v63 = vsel %vm421_vm0, %v1147_v40, %v1148_v42  ;;  %v437_v42 = vrot.slane %v2165_v26, 1 }
  0x6c   : > { %419 = vrot.lane.b32.xlu0 %v404_v11, %s1864_s27  ;;  %v714_v11 = vrot.slane %v2114_v21, 1 }
  0x6d   : > { %460 = vrot.lane.b32.xlu1 %v445_v17, %s1863_s26  ;;  %v2159_v17 = vsel %vm799_vm2, %v1738_v10, 0  ;;  %v1100_v8 = vsel %vm308_vm1, %v1095_v48, %v1099_v49  ;;  %v651_v10 = vshrl.u32 %v2171_v34, 16 }
  0x6e   : > { %1235 = vmatpush.bf16.msra.mxu2 %v2159_v17  ;;  %v716_v32 = vsel %vm421_vm0, %v714_v11, %v715_v12  ;;  %1778 = vmatpush.bf16.msrb.mxu3 %v874_v13  ;;  %v655_v11 = vrot.slane %v653_v56, 1  ;;  %v658_v12 = vshll.u32 %v587_v54, 16 }
  0x70   : > { %1121 = vrot.lane.b32.xlu2 %v1076_v43, %s1864_s27  ;;  %v1087_v43 = vrot.slane %v1085_v20, 1  ;;  %v656_v20 = vor.u32 %v655_v11, %v651_v10  ;;  %v660_v24 = vrot.slane %v658_v12, 1 }
  0x72   : > { %v661_v35 = vsel %vm308_vm1, %v656_v20, %v660_v24 }
  0x74   : > { %1161 = vrot.lane.b32.xlu0 %v1143_v45, %s1863_s26  ;;  %v1083_v45 = vor.u32 %v1082_v19, %v1078_v18  ;;  %v1144_v18 = vrot.slane %v2124_v39, 1  ;;  %v1145_v19 = vrot.slane %v2141_v57, 1  ;;  %v717_v57 = vrot.slane %v2171_v34, 1 }
  0x75   : > { %413 = vrot.lane.b32.xlu1 %v368_v47, %s1864_s27  ;;  %v372_v47 = vshll.u32 %v2165_v26, 16 }
  0x76   : > { %v1088_v3 = vsel %vm308_vm1, %v1083_v45, %v1087_v43  ;;  %v438_v45 = vrot.slane %v305_v46, 1  ;;  %v719_v56 = vsel %vm421_vm0, %v717_v57, %v718_v41 }
  0x77   : > { %v374_v6 = vrot.slane %v372_v47, 1 }
  0x78   : > { %694 = vrot.lane.b32.xlu2 %v649_v27, %s1864_s27  ;;  %v1016_v27 = vpack.c.b16 %v1008_v16, %v1008_v16  ;;  %v439_v62 = vsel %vm421_vm0, %v437_v42, %v438_v45 }
  0x79   : > { %v375_v13 = vor.u32 %v374_v6, %v370_v4 }
  0x7a   : > { %v2186_v61 = vpop.permute.xlu2 %446  ;;  %v1109_v40 = vshll.u32 %v1016_v27, 16  ;;  %v1151_v54 = vrot.slane %v1016_v27, 1 }
  0x7b   : > { %v380_v30 = vsel %vm308_vm1, %v375_v13, %v379_v9 }
  0x7c   : > { %454 = vrot.lane.b32.xlu0 %v436_v14, %s1863_s26  ;;  %v2195_v14 = vld [vmem:[%s1925_s25 + $0x6c] sm:$0xff]  ;;  %v1111_v48 = vrot.slane %v1109_v40, 1 }
  0x7d   : > { %734 = vrot.lane.b32.xlu1 %v716_v32, %s1863_s26  ;;  %v1104_v28 = vshll.u32 %v2195_v14, 16  ;;  %v1146_v32 = vsel %vm421_vm0, %v1144_v18, %v1145_v19  ;;  %v1102_v37 = vshrl.u32 %v2195_v14, 16  ;;  %v1150_v46 = vrot.slane %v2195_v14, 1 }
  0x7f   : > { %v1106_v38 = vrot.slane %v1104_v28, 1  ;;  %v1152_v12 = vsel %vm421_vm0, %v1150_v46, %v1151_v54 }
  0x80   : > { %1125 = vrot.lane.b32.xlu2 %v1100_v8, %s1864_s27 }
  0x81   : > { %v1107_v47 = vor.u32 %v1106_v38, %v1102_v37 }
  0x82   : > { %v727_v29 = vpop.permute.xlu2 %726 }
  0x84   : > { %1165 = vrot.lane.b32.xlu0 %v1149_v63, %s1863_s26  ;;  %v1112_v63 = vsel %vm308_vm1, %v1107_v47, %v1111_v48 }
  0x85   : > { %1123 = vrot.lane.b32.xlu1 %v1088_v3, %s1864_s27 }
  0x88   : > { %1163 = vrot.lane.b32.xlu2 %v1146_v32, %s1863_s26 }
  0x8a   : > { %v1116_v49 = vpop.permute.xlu2 %1115 }
  0x8b   : > { %v1172_v19 = vsel %vm462_vm3, %v1972_v60, %v1116_v49 }
  0x8c   : > { %415 = vrot.lane.b32.xlu0 %v380_v30, %s1864_s27 }
  0x8d   : > { %696 = vrot.lane.b32.xlu1 %v661_v35, %s1864_s27 }
  0x8e   : > { %v1154_v43 = vpop.permute.xlu0 %1153 }
  0x8f   : > { %v739_v52 = vpop.permute.xlu1 %738 }
  0x90   : > { %456 = vrot.lane.b32.xlu2 %v439_v62, %s1863_s26 }
  0x92   : > { %v689_v4 = vpop.permute.xlu2 %688 }
  0x93   : > { %v745_v30 = vsel %vm462_vm3, %v1986_v15, %v689_v4 }
  0x94   : > { %736 = vrot.lane.b32.xlu0 %v719_v56, %s1863_s26 }
  0x95   : > { %1127 = vrot.lane.b32.xlu1 %v1112_v63, %s1864_s27 }
  0x96   : > { %v1114_v3 = vpop.permute.xlu0 %1113 }
  0x97   : > { %v1170_v6 = vsel %vm462_vm3, %v1928_v0, %v1114_v3  ;;  %v406_v7 = vpop.permute.xlu1 %405 }
  0x98   : > { %v464_v8 = vsel %vm462_vm3, %v1936_v5, %v406_v7  ;;  %v1186_v10 = vsel %vm479_vm4, %v1170_v6, %v1154_v43  ;;  %1167 = vrot.lane.b32.xlu2 %v1152_v12, %s1863_s26  ;;  %s2327_s26 = scalar_lea.vmem %s2443_s2, %s1553_s23 }
  0x99   : > { %v481_v11 = vsel %vm479_vm4, %v464_v8, %v2186_v61  ;;  %1739 = vmatmul.msk.bf16.vlgmr.msra.gmra.mxu2 %vm782_vm5, %v1186_v10 }
  0x9a   : > { %1667 = vmatmul.msk.bf16.vlgmr.msra.gmra.mxu1 %vm782_vm5, %v481_v11  ;;  %v701_v13 = vpop.permute.xlu2 %700 }
  0x9b   : > { %v757_v35 = vsel %vm462_vm3, %v1999_v33, %v701_v13 }
  0x9e   : > { %v699_v16 = vpop.permute.xlu0 %698 }
  0x9f   : > { %v755_v0 = vsel %vm462_vm3, %v1932_v2, %v699_v16  ;;  %v687_v9 = vpop.permute.xlu1 %686 }
  0xa0   : > { %v743_v5 = vsel %vm462_vm3, %v1946_v23, %v687_v9  ;;  %v771_v18 = vsel %vm479_vm4, %v755_v0, %v739_v52 }
  0xa1   : > { %v759_v61 = vsel %vm479_vm4, %v743_v5, %v727_v29  ;;  %1661 = vmatmul.msk.bf16.vlgmr.msra.gmra.mxu3 %vm782_vm5, %v771_v18 }
  0xa2   : > { %1655 = vmatmul.msk.bf16.vlgmr.msra.gmra.mxu0 %vm782_vm5, %v759_v61  ;;  %1779 = vmatpush.bf16.msra.mxu3 %v2159_v17  ;;  %v1158_v24 = vpop.permute.xlu2 %1157 }
  0xa6   : > { %v1156_v20 = vpop.permute.xlu0 %1155 }
  0xa7   : > { %v408_v2 = vpop.permute.xlu1 %407  ;;  %v1188_v27 = vsel %vm479_vm4, %v1172_v19, %v1156_v20 }
  0xa8   : > { %v466_v23 = vsel %vm462_vm3, %v1962_v44, %v408_v2 }
  0xa9   : > { %1740 = vmatmul.msk.bf16.gmra.mxu2 %vm782_vm5, %v1188_v27 }
  0xaa   : > { %v451_v29 = vpop.permute.xlu2 %450 }
  0xae   : > { %v449_v28 = vpop.permute.xlu0 %448 }
  0xaf   : > { %v729_v32 = vpop.permute.xlu1 %728  ;;  %v483_v17 = vsel %vm479_vm4, %v466_v23, %v449_v28 }
  0xb0   : > { %1668 = vmatmul.msk.bf16.gmra.mxu1 %vm782_vm5, %v483_v17  ;;  %v761_v60 = vsel %vm479_vm4, %v745_v30, %v729_v32 }
  0xb2   : > { %1656 = vmatmul.msk.bf16.gmra.mxu0 %vm782_vm5, %v761_v60  ;;  %v459_v38 = vpop.permute.xlu2 %458 }
  0xb6   : > { %v741_v37 = vpop.permute.xlu0 %740 }
  0xb7   : > { %v1118_v44 = vpop.permute.xlu1 %1117  ;;  %v773_v40 = vsel %vm479_vm4, %v757_v35, %v741_v37 }
  0xb8   : > { %v1174_v15 = vsel %vm462_vm3, %v1996_v31, %v1118_v44  ;;  %1662 = vmatmul.msk.bf16.gmra.mxu3 %vm782_vm5, %v773_v40 }
  0xb9   : > { %v1190_v57 = vsel %vm479_vm4, %v1174_v15, %v1158_v24 }
  0xba   : > { %1741 = vmatmul.msk.bf16.gmra.mxu2 %vm782_vm5, %v1190_v57  ;;  %v412_v43 = vpop.permute.xlu2 %411 }
  0xbe   : > { %v410_v41 = vpop.permute.xlu0 %409 }
  0xbf   : > { %v468_v42 = vsel %vm462_vm3, %v2013_v51, %v410_v41  ;;  %v691_v45 = vpop.permute.xlu1 %690 }
  0xc0   : > { %v485_v33 = vsel %vm479_vm4, %v468_v42, %v451_v29  ;;  %v747_v47 = vsel %vm462_vm3, %v2019_v59, %v691_v45 }
  0xc1   : > { %1669 = vmatmul.msk.bf16.gmra.mxu1 %vm782_vm5, %v485_v33 }
  0xc2   : > { %v733_v56 = vpop.permute.xlu2 %732 }
  0xc6   : > { %v731_v31 = vpop.permute.xlu0 %730 }
  0xc7   : > { %v418_v48 = vpop.permute.xlu1 %417  ;;  %v763_v49 = vsel %vm479_vm4, %v747_v47, %v731_v31 }
  0xc8   : > { %v476_v52 = vsel %vm462_vm3, %v2034_v22, %v418_v48  ;;  %1657 = vmatmul.msk.bf16.gmra.mxu0 %vm782_vm5, %v763_v49  ;;  %v470_v22 = vsel %vm462_vm3, %v2065_v1, %v412_v43 }
  0xc9   : > { %v493_v51 = vsel %vm479_vm4, %v476_v52, %v459_v38 }
  0xca   : > { %1673 = vmatmul.msk.bf16.vlgmr.msrb.gmra.mxu3 %vm782_vm5, %v493_v51  ;;  %v1122_v54 = vpop.permute.xlu2 %1121 }
  0xce   : > { %v1120_v62 = vpop.permute.xlu0 %1119 }
  0xcf   : > { %v1176_v63 = vsel %vm462_vm3, %v2043_v36, %v1120_v62  ;;  %v1160_v46 = vpop.permute.xlu1 %1159 }
  0xd0   : > { %v1192_v59 = vsel %vm479_vm4, %v1176_v63, %v1160_v46 }
  0xd1   : > { %1742 = vmatmul.msk.bf16.gmra.mxu2 %vm782_vm5, %v1192_v59 }
  0xd2   : > { %v695_v10 = vpop.permute.xlu2 %694 }
  0xd6   : > { %v693_v3 = vpop.permute.xlu0 %692 }
  0xd7   : > { %v749_v4 = vsel %vm462_vm3, %v2058_v58, %v693_v3  ;;  %v453_v6 = vpop.permute.xlu1 %452  ;;  %v1178_v58 = vsel %vm462_vm3, %v2098_v55, %v1122_v54 }
  0xd8   : > { %v487_v7 = vsel %vm479_vm4, %v470_v22, %v453_v6  ;;  %v765_v8 = vsel %vm479_vm4, %v749_v4, %v733_v56 }
  0xd9   : > { %1670 = vmatmul.msk.bf16.gmra.mxu1 %vm782_vm5, %v487_v7  ;;  %1658 = vmatmul.msk.bf16.gmra.mxu0 %vm782_vm5, %v765_v8 }
  0xda   : > { %v1126_v9 = vpop.permute.xlu2 %1125 }
  0xdb   : > { %v1182_v24 = vsel %vm462_vm3, %v2132_v50, %v1126_v9 }
  0xde   : > { %v420_v36 = vpop.permute.xlu0 %419 }
  0xdf   : > { %v478_v11 = vsel %vm462_vm3, %v2078_v25, %v420_v36  ;;  %v461_v12 = vpop.permute.xlu1 %460  ;;  %v751_v25 = vsel %vm462_vm3, %v2114_v21, %v695_v10 }
  0xe0   : > { %v495_v1 = vsel %vm479_vm4, %v478_v11, %v461_v12 }
  0xe1   : > { %1674 = vmatmul.msk.bf16.gmra.mxu3 %vm782_vm5, %v495_v1 }
  0xe2   : > { %v1164_v55 = vpop.permute.xlu2 %1163 }
  0xe6   : > { %v1162_v16 = vpop.permute.xlu0 %1161 }
  0xe7   : > { %v414_v13 = vpop.permute.xlu1 %413  ;;  %v1194_v0 = vsel %vm479_vm4, %v1178_v58, %v1162_v16 }
  0xe8   : > { %1743 = vmatmul.msk.bf16.gmra.mxu2 %vm782_vm5, %v1194_v0  ;;  %v472_v5 = vsel %vm462_vm3, %v2095_v53, %v414_v13 }
  0xea   : > { %v457_v28 = vpop.permute.xlu2 %456 }
  0xee   : > { %v455_v18 = vpop.permute.xlu0 %454 }
  0xef   : > { %v735_v61 = vpop.permute.xlu1 %734  ;;  %v489_v19 = vsel %vm479_vm4, %v472_v5, %v455_v18 }
  0xf0   : > { %v767_v20 = vsel %vm479_vm4, %v751_v25, %v735_v61  ;;  %1671 = vmatmul.msk.bf16.gmra.mxu1 %vm782_vm5, %v489_v19 }
  0xf1   : > { %1659 = vmatmul.msk.bf16.gmra.mxu0 %vm782_vm5, %v767_v20 }
  0xf2   : > { %v1168_v60 = vpop.permute.xlu2 %1167 }
  0xf6   : > { %v1166_v2 = vpop.permute.xlu0 %1165 }
  0xf7   : > { %v1198_v53 = vsel %vm479_vm4, %v1182_v24, %v1166_v2  ;;  %v1124_v27 = vpop.permute.xlu1 %1123 }
  0xf8   : > { %v1180_v21 = vsel %vm462_vm3, %v2124_v39, %v1124_v27  ;;  %1745 = vmatmul.msk.bf16.vlgmr.msra.gmra.mxu3 %vm782_vm5, %v1198_v53 }
  0xf9   : > { %v1196_v23 = vsel %vm479_vm4, %v1180_v21, %v1164_v55 }
  0xfa   : > { %1744 = vmatmul.msk.bf16.gmra.mxu2 %vm782_vm5, %v1196_v23 }
  0xfe   : > { %v416_v29 = vpop.permute.xlu0 %415 }
  0xff   : > { %v474_v50 = vsel %vm462_vm3, %v2165_v26, %v416_v29  ;;  %v697_v30 = vpop.permute.xlu1 %696 }
 0x100   : > { %v491_v32 = vsel %vm479_vm4, %v474_v50, %v457_v28  ;;  %v753_v39 = vsel %vm462_vm3, %v2171_v34, %v697_v30 }
 0x101   : > { %1672 = vmatmul.msk.bf16.gmra.mxu1 %vm782_vm5, %v491_v32 }
 0x106   : > { %v737_v17 = vpop.permute.xlu0 %736 }
 0x107   : > { %v1128_v35 = vpop.permute.xlu1 %1127  ;;  %v769_v37 = vsel %vm479_vm4, %v753_v39, %v737_v17 }
 0x108   : > { %v1184_v38 = vsel %vm462_vm3, %v2195_v14, %v1128_v35  ;;  %1660 = vmatmul.msk.bf16.gmra.mxu0 %vm782_vm5, %v769_v37 }
 0x109   : > { %v1200_v26 = vsel %vm479_vm4, %v1184_v38, %v1168_v60 }
 0x10a   : > { %1746 = vmatmul.msk.bf16.gmra.mxu3 %vm782_vm5, %v1200_v26 }
 0x117   : > { %v885_v34 = vpop.f32.mrf.mxu1 }
 0x11c   : > { %v1237_v44 = vpop.f32.mrf.mxu2 }
 0x11f   : > { %v812_v40 = vpop.f32.mrf.mxu0  ;;  %v887_v42 = vpop.f32.mrf.mxu1 }
 0x120   : > { %v886_v15 = vadd.f32 %v885_v34, %v812_v40 }
 0x122   : > { %v1277_v57 = vadd.f32 %v1237_v44, %v886_v15 }
 0x124   : > { %v1293_v14 = vpack.c.bf16 %v1277_v57, %v1277_v57  ;;  %v1239_v41 = vpop.f32.mrf.mxu2  ;;  %v1363_v43 = vmul.f32 %v1277_v57, %v1277_v57  ;;  %v1326_v31 = vsel %vm479_vm4, %v1277_v57, 0.0  ;;  %v2337_v3 = vpop.f32.mrf.mxu3 }
 0x126   : > { %1310 = vst.msk [vmem:[%s2327_s26] sm:$0xf] %vm1309_vm6, %v1293_v14  ;;  %v1379_v62 = vsel %vm479_vm4, %v1363_v43, 0.0 }
 0x127   : > { %v814_v45 = vpop.f32.mrf.mxu0 }
 0x128   : > { %v888_v33 = vadd.f32 %v887_v42, %v814_v45 }
 0x12a   : > { %v1278_v47 = vadd.f32 %v1239_v41, %v888_v33 }
 0x12c   : > { %v1294_v48 = vpack.c.bf16 %v1278_v47, %v1278_v47  ;;  %v1327_v49 = vsel %vm479_vm4, %v1278_v47, 0.0  ;;  %v1364_v52 = vmul.f32 %v1278_v47, %v1278_v47  ;;  %v1242_v46 = vpop.f32.mrf.mxu2  ;;  %v2343_v13 = vpop.f32.mrf.mxu3 }
 0x12d   : > { %v1328_v51 = vadd.f32 %v1327_v49, %v1326_v31  ;;  %v890_v56 = vpop.f32.mrf.mxu1 }
 0x12e   : > { %1311 = vst.msk [vmem:[%s2327_s26 + $0x4] sm:$0xf] %vm1309_vm6, %v1294_v48  ;;  %v1380_v63 = vsel %vm479_vm4, %v1364_v52, 0.0 }
 0x12f   : > { %v1381_v59 = vadd.f32 %v1380_v63, %v1379_v62  ;;  %v817_v54 = vpop.f32.mrf.mxu0 }
 0x130   : > { %v891_v22 = vadd.f32 %v890_v56, %v817_v54 }
 0x132   : > { %v1279_v4 = vadd.f32 %v1242_v46, %v891_v22 }
 0x134   : > { %v1295_v6 = vpack.c.bf16 %v1279_v4, %v1279_v4  ;;  %v1329_v7 = vsel %vm479_vm4, %v1279_v4, 0.0  ;;  %v1365_v8 = vmul.f32 %v1279_v4, %v1279_v4  ;;  %v1244_v58 = vpop.f32.mrf.mxu2 }
 0x135   : > { %v1330_v36 = vadd.f32 %v1329_v7, %v1328_v51  ;;  %v892_v10 = vpop.f32.mrf.mxu1 }
 0x136   : > { %1312 = vst.msk [vmem:[%s2327_s26 + $0x8] sm:$0xf] %vm1309_vm6, %v1295_v6  ;;  %v1382_v11 = vsel %vm479_vm4, %v1365_v8, 0.0 }
 0x137   : > { %v1383_v12 = vadd.f32 %v1382_v11, %v1381_v59  ;;  %v819_v1 = vpop.f32.mrf.mxu0 }
 0x138   : > { %v893_v16 = vadd.f32 %v892_v10, %v819_v1 }
 0x13a   : > { %v1280_v0 = vadd.f32 %v1244_v58, %v893_v16 }
 0x13b   : > { %v2353_v20 = vpop.f32.mrf.mxu3 }
 0x13c   : > { %v1296_v9 = vpack.c.bf16 %v1280_v0, %v1280_v0  ;;  %v1331_v5 = vsel %vm479_vm4, %v1280_v0, 0.0  ;;  %v1366_v18 = vmul.f32 %v1280_v0, %v1280_v0 }
 0x13d   : > { %v2346_v25 = vadd.f32 %v1331_v5, %v1330_v36  ;;  %v1247_v55 = vpop.f32.mrf.mxu2 }
 0x13e   : > { %1313 = vst.msk [vmem:[%s2327_s26 + $0xc] sm:$0xf] %vm1309_vm6, %v1296_v9  ;;  %v1384_v61 = vsel %vm479_vm4, %v1366_v18, 0.0  ;;  %v895_v24 = vpop.f32.mrf.mxu1 }
 0x13f   : > { %v2351_v19 = vadd.f32 %v1384_v61, %v1383_v12 }
 0x143   : > { %v2355_v23 = vpop.f32.mrf.mxu3 }
 0x145   : > { %v822_v2 = vpop.f32.mrf.mxu0  ;;  %v1249_v28 = vpop.f32.mrf.mxu2 }
 0x146   : > { %v896_v53 = vadd.f32 %v895_v24, %v822_v2  ;;  %v897_v29 = vpop.f32.mrf.mxu1 }
 0x148   : > { %v1281_v27 = vadd.f32 %v1247_v55, %v896_v53 }
 0x14a   : > { %v1297_v21 = vpack.c.bf16 %v1281_v27, %v1281_v27  ;;  %v1367_v7 = vmul.f32 %v1281_v27, %v1281_v27  ;;  %v1333_v36 = vsel %vm479_vm4, %v1281_v27, 0.0 }
 0x14b   : > { %v1334_v0 = vadd.f32 %v1333_v36, %v2346_v25 }
 0x14c   : > { %1314 = vst.msk [vmem:[%s2327_s26 + $0x10] sm:$0xf] %vm1309_vm6, %v1297_v21 }
 0x14d   : > { %v824_v50 = vpop.f32.mrf.mxu0  ;;  %v915_v37 = vpop.f32.mrf.mxu3 }
 0x14e   : > { %v898_v30 = vadd.f32 %v897_v29, %v824_v50  ;;  %v916_v59 = vadd.f32 %v915_v37, %v2337_v3  ;;  %v1386_v3 = vsel %vm479_vm4, %v1367_v7, 0.0 }
 0x14f   : > { %v1387_v2 = vadd.f32 %v1386_v3, %v2351_v19 }
 0x150   : > { %v1282_v32 = vadd.f32 %v1249_v28, %v898_v30 }
 0x152   : > { %v1298_v39 = vpack.c.bf16 %v1282_v32, %v1282_v32  ;;  %v1368_v8 = vmul.f32 %v1282_v32, %v1282_v32  ;;  %v1335_v1 = vsel %vm479_vm4, %v1282_v32, 0.0 }
 0x153   : > { %v1336_v53 = vadd.f32 %v1335_v1, %v1334_v0 }
 0x154   : > { %1315 = vst.msk [vmem:[%s2327_s26 + $0x14] sm:$0xf] %vm1309_vm6, %v1298_v39  ;;  %v1252_v17 = vpop.f32.mrf.mxu2  ;;  %v1388_v9 = vsel %vm479_vm4, %v1368_v8, 0.0 }
 0x155   : > { %v917_v14 = vpop.f32.mrf.mxu3  ;;  %v1389_v29 = vadd.f32 %v1388_v9, %v1387_v2 }
 0x156   : > { %v900_v60 = vpop.f32.mrf.mxu1  ;;  %v827_v35 = vpop.f32.mrf.mxu0  ;;  %v918_v10 = vadd.f32 %v917_v14, %v2343_v13 }
 0x157   : > { %v901_v38 = vadd.f32 %v900_v60, %v827_v35 }
 0x159   : > { %v1283_v26 = vadd.f32 %v1252_v17, %v901_v38 }
 0x15b   : > { %v1299_v34 = vpack.c.bf16 %v1283_v26, %v1283_v26  ;;  %v1369_v58 = vmul.f32 %v1283_v26, %v1283_v26  ;;  %v1337_v61 = vsel %vm479_vm4, %v1283_v26, 0.0 }
 0x15c   : > { %v1254_v57 = vpop.f32.mrf.mxu2  ;;  %v1338_v50 = vadd.f32 %v1337_v61, %v1336_v53 }
 0x15d   : > { %1316 = vst.msk [vmem:[%s2327_s26 + $0x18] sm:$0xf] %vm1309_vm6, %v1299_v34  ;;  %v1390_v27 = vsel %vm479_vm4, %v1369_v58, 0.0 }
 0x15e   : > { %v902_v44 = vpop.f32.mrf.mxu1  ;;  %v829_v40 = vpop.f32.mrf.mxu0  ;;  %v1391_v60 = vadd.f32 %v1390_v27, %v1389_v29 }
 0x15f   : > { %v903_v15 = vadd.f32 %v902_v44, %v829_v40 }
 0x161   : > { %v1284_v41 = vadd.f32 %v1254_v57, %v903_v15 }
 0x163   : > { %v1300_v42 = vpack.c.bf16 %v1284_v41, %v1284_v41  ;;  %v1370_v55 = vmul.f32 %v1284_v41, %v1284_v41  ;;  %v1339_v21 = vsel %vm479_vm4, %v1284_v41, 0.0 }
 0x164   : > { %v920_v45 = vpop.f32.mrf.mxu3  ;;  %v1340_v19 = vadd.f32 %v1339_v21, %v1338_v50 }
 0x165   : > { %1317 = vst.msk [vmem:[%s2327_s26 + $0x1c] sm:$0xf] %vm1309_vm6, %v1300_v42  ;;  %v1392_v30 = vsel %vm479_vm4, %v1370_v55, 0.0  ;;  %v921_v35 = vadd.f32 %v920_v45, %v2353_v20 }
 0x166   : > { %v1393_v44 = vadd.f32 %v1392_v30, %v1391_v60 }
 0x16b   : > { %v1257_v43 = vpop.f32.mrf.mxu2 }
 0x16c   : > { %v2365_v49 = vpop.f32.mrf.mxu3 }
 0x16d   : > { %v905_v33 = vpop.f32.mrf.mxu1 }
 0x16e   : > { %v832_v47 = vpop.f32.mrf.mxu0 }
 0x16f   : > { %v906_v31 = vadd.f32 %v905_v33, %v832_v47 }
 0x171   : > { %v1285_v48 = vadd.f32 %v1257_v43, %v906_v31 }
 0x173   : > { %v1301_v52 = vpack.c.bf16 %v1285_v48, %v1285_v48  ;;  %v1259_v63 = vpop.f32.mrf.mxu2  ;;  %v1371_v28 = vmul.f32 %v1285_v48, %v1285_v48  ;;  %v1341_v32 = vsel %vm479_vm4, %v1285_v48, 0.0 }
 0x174   : > { %v1342_v40 = vadd.f32 %v1341_v32, %v1340_v19 }
 0x175   : > { %1318 = vst.msk [vmem:[%s2327_s26 + $0x20] sm:$0xf] %vm1309_vm6, %v1301_v52  ;;  %v907_v51 = vpop.f32.mrf.mxu1  ;;  %v1394_v37 = vsel %vm479_vm4, %v1371_v28, 0.0 }
 0x176   : > { %v834_v56 = vpop.f32.mrf.mxu0  ;;  %v1395_v20 = vadd.f32 %v1394_v37, %v1393_v44 }
 0x177   : > { %v908_v62 = vadd.f32 %v907_v51, %v834_v56 }
 0x179   : > { %v1286_v46 = vadd.f32 %v1259_v63, %v908_v62 }
 0x17b   : > { %v1302_v54 = vpack.c.bf16 %v1286_v46, %v1286_v46  ;;  %v1267_v22 = vpop.f32.mrf.mxu3  ;;  %v1372_v39 = vmul.f32 %v1286_v46, %v1286_v46  ;;  %v1343_v38 = vsel %vm479_vm4, %v1286_v46, 0.0 }
 0x17c   : > { %v2370_v4 = vadd.f32 %v1267_v22, %v916_v59  ;;  %v1344_v45 = vadd.f32 %v1343_v38, %v1342_v40  ;;  %v923_v22 = vadd.f32 %v2365_v49, %v2355_v23 }
 0x17d   : > { %1319 = vst.msk [vmem:[%s2327_s26 + $0x24] sm:$0xf] %vm1309_vm6, %v1302_v54  ;;  %v1262_v5 = vpop.f32.mrf.mxu2  ;;  %v1396_v14 = vsel %vm479_vm4, %v1372_v39, 0.0 }
 0x17e   : > { %v1305_v6 = vpack.c.bf16 %v2370_v4, %v2370_v4  ;;  %v910_v11 = vpop.f32.mrf.mxu1  ;;  %v1397_v52 = vadd.f32 %v1396_v14, %v1395_v20  ;;  %v1375_v56 = vmul.f32 %v2370_v4, %v2370_v4 }
 0x180   : > { %1322 = vst.msk [vmem:[%s2327_s26 + $0x30] sm:$0xf] %vm1309_vm6, %v1305_v6  ;;  %v1349_v6 = vsel %vm479_vm4, %v2370_v4, 0.0 }
 0x183   : > { %v1269_v12 = vpop.f32.mrf.mxu3 }
 0x184   : > { %v1290_v16 = vadd.f32 %v1269_v12, %v918_v10  ;;  %v1402_v12 = vsel %vm479_vm4, %v1375_v56, 0.0 }
 0x185   : > { %v837_v18 = vpop.f32.mrf.mxu0  ;;  %v1264_v43 = vpop.f32.mrf.mxu2 }
 0x186   : > { %v1306_v24 = vpack.c.bf16 %v1290_v16, %v1290_v16  ;;  %v911_v13 = vadd.f32 %v910_v11, %v837_v18  ;;  %v912_v34 = vpop.f32.mrf.mxu1  ;;  %v1376_v7 = vmul.f32 %v1290_v16, %v1290_v16  ;;  %v1351_v3 = vsel %vm479_vm4, %v1290_v16, 0.0 }
 0x188   : > { %1323 = vst.msk [vmem:[%s2327_s26 + $0x34] sm:$0xf] %vm1309_vm6, %v1306_v24  ;;  %v1287_v25 = vadd.f32 %v1262_v5, %v911_v13  ;;  %v1404_v49 = vsel %vm479_vm4, %v1376_v7, 0.0 }
 0x18a   : > { %v1303_v17 = vpack.c.bf16 %v1287_v25, %v1287_v25  ;;  %v1373_v26 = vmul.f32 %v1287_v25, %v1287_v25  ;;  %v1345_v41 = vsel %vm479_vm4, %v1287_v25, 0.0 }
 0x18b   : > { %v1346_v51 = vadd.f32 %v1345_v41, %v1344_v45 }
 0x18c   : > { %1320 = vst.msk [vmem:[%s2327_s26 + $0x28] sm:$0xf] %vm1309_vm6, %v1303_v17  ;;  %v1398_v47 = vsel %vm479_vm4, %v1373_v26, 0.0 }
 0x18d   : > { %v1272_v15 = vpop.f32.mrf.mxu3  ;;  %v839_v57 = vpop.f32.mrf.mxu0  ;;  %v1399_v59 = vadd.f32 %v1398_v47, %v1397_v52 }
 0x18e   : > { %v1291_v42 = vadd.f32 %v1272_v15, %v921_v35  ;;  %v913_v33 = vadd.f32 %v912_v34, %v839_v57 }
 0x190   : > { %v1307_v31 = vpack.c.bf16 %v1291_v42, %v1291_v42  ;;  %v1288_v48 = vadd.f32 %v1264_v43, %v913_v33  ;;  %v1377_v1 = vmul.f32 %v1291_v42, %v1291_v42  ;;  %v1353_v4 = vsel %vm479_vm4, %v1291_v42, 0.0 }
 0x192   : > { %1324 = vst.msk [vmem:[%s2327_s26 + $0x38] sm:$0xf] %vm1309_vm6, %v1307_v31  ;;  %v1304_v62 = vpack.c.bf16 %v1288_v48, %v1288_v48  ;;  %v1347_v63 = vsel %vm479_vm4, %v1288_v48, 0.0  ;;  %v1374_v46 = vmul.f32 %v1288_v48, %v1288_v48  ;;  %v1406_v55 = vsel %vm479_vm4, %v1377_v1, 0.0 }
 0x193   : > { %v1348_v54 = vadd.f32 %v1347_v63, %v1346_v51 }
 0x194   : > { %1321 = vst.msk [vmem:[%s2327_s26 + $0x2c] sm:$0xf] %vm1309_vm6, %v1304_v62  ;;  %v1400_v8 = vsel %vm479_vm4, %v1374_v46, 0.0 }
 0x195   : > { %v1350_v36 = vadd.f32 %v1349_v6, %v1348_v54  ;;  %v1401_v10 = vadd.f32 %v1400_v8, %v1399_v59  ;;  %v1274_v11 = vpop.f32.mrf.mxu3 }
 0x196   : > { %v1292_v58 = vadd.f32 %v1274_v11, %v923_v22 }
 0x197   : > { %v1403_v0 = vadd.f32 %v1402_v12, %v1401_v10  ;;  %v1352_v23 = vadd.f32 %v1351_v3, %v1350_v36 }
 0x198   : > { %v1308_v9 = vpack.c.bf16 %v1292_v58, %v1292_v58  ;;  %v1378_v5 = vmul.f32 %v1292_v58, %v1292_v58  ;;  %v1355_v16 = vsel %vm479_vm4, %v1292_v58, 0.0 }
 0x199   : > { %v1354_v18 = vadd.f32 %v1353_v4, %v1352_v23  ;;  %v1405_v61 = vadd.f32 %v1404_v49, %v1403_v0 }
 0x19a   : > { %1325 = vst.msk [vmem:[%s2327_s26 + $0x3c] sm:$0xf] %vm1309_vm6, %v1308_v9  ;;  %v1408_v2 = vsel %vm479_vm4, %v1378_v5, 0.0 }
 0x19b   : > { %v1356_v24 = vadd.f32 %v1355_v16, %v1354_v18  ;;  %v1407_v13 = vadd.f32 %v1406_v55, %v1405_v61 }
 0x19d   : > { %v1357_v53 = vrot.slane %v1356_v24, 4  ;;  %v1409_v27 = vadd.f32 %v1408_v2, %v1407_v13 }
 0x19f   : > { %v1358_v21 = vadd.f32 %v1357_v53, %v1356_v24  ;;  %v1410_v28 = vrot.slane %v1409_v27, 4 }
 0x1a1   : > { %v1359_v25 = vrot.slane %v1358_v21, 2  ;;  %v1411_v29 = vadd.f32 %v1410_v28, %v1409_v27 }
 0x1a3   : > { %v1360_v50 = vadd.f32 %v1359_v25, %v1358_v21  ;;  %v1412_v30 = vrot.slane %v1411_v29, 2 }
 0x1a5   : > { %v1361_v32 = vrot.slane %v1360_v50, 1  ;;  %v1413_v39 = vadd.f32 %v1412_v30, %v1411_v29 }
 0x1a7   : > { %v1414_v17 = vrot.slane %v1413_v39, 1  ;;  %v1362_v60 = vadd.f32 %v1361_v32, %v1360_v50 }
 0x1a9   : > { %v1415_v19 = vadd.f32 %v1414_v17, %v1413_v39 }
 0x1ab   : > { %v1417_v35 = vsel %vm1416_vm7, %v1362_v60, %v1415_v19 }
 0x1ac   : > { %1419 = vst.msk [vmem:[%s212_s28] sm:$0x3] %vm1418_vm8, %v1417_v35 }
 0x1ad PF: > { %s14_s16 = sadd.s32 1, %s1861_s16   ;;  %s2445_s12 = smov %s1853_s14 }
 0x1ae   : > { %p11_p8 = scmp.ge.s32.totalorder %s14_s16, 6   ;;  %s2446_s13 = smov %s1857_s15 }
 0x1af   : > { %s2447_s14 = smov %s2450_s17  ;;  %s2448_s15 = smov %s2454_s18 }
 0x1b0   :  { %13 = sbr.rel (!%p11_p8) target bundleno = 3 (0x3), region = 75 }

// kernel: a_call__.11
= control target key start
LH: loop header
LB: loop body
LE: loop exit
PB: predicated region body
PF: predicated region fallthrough
CT: control target
= control target key end

     0   :  { %11 = vsyncpa [#allocation3], 0  ;;  %s2231_s0 = inlined_call_operand.vmem [shape: bf16[512,8], index: 0, kind: input, shape index: {}]   ;;  %s2232_s1 = inlined_call_operand.vmem [shape: bf16[512,8], index: 1, kind: input, shape index: {}]   ;;  %s2233_s2 = inlined_call_operand.vmem [shape: bf16[512,8], index: 2, kind: input, shape index: {}]   ;;  %s2234_s3 = inlined_call_operand.vmem [shape: bf16[512,8], index: 3, kind: input, shape index: {}]   ;;  %s2235_s4 = inlined_call_operand.vmem [shape: f32[1,32], index: 4, kind: input, shape index: {}]   ;;  %s2236_s5 = inlined_call_operand.vmem [shape: f32[1,32], index: 5, kind: input, shape index: {}]   ;;  %s2237_s6 = inlined_call_operand.hbm [shape: f32[512,32], index: 6, kind: output, shape index: {}]  }
   0x1   :  { %13 = vsyncpa [#allocation3 + $0x1], 0  ;;  %s1764_s21 = smov 0   ;;  %s1766_s22 = smov 0  }
   0x2   :  { %s1768_s23 = smov 0   ;;  %s1770_s24 = smov 0  }
   0x3 LB: > { %s1785_s25 = sadd.s32 4294967295, %s1723_s24   ;;  %s1277_s26 = sadd.s32 4294967294, %s1723_s24   ;;  %s1723_s24 = sphi %s1770_s24, %s2243_s24   ;;  %s1719_s23 = sphi %s1768_s23, %s2242_s23   ;;  %s1715_s22 = sphi %s1766_s22, %s2241_s22   ;;  %s1711_s21 = sphi %s1764_s21, %s2240_s21  }
   0x4   : > { %s1789_s27 = sadd.s32 1, %s1723_s24   ;;  %s172_s28 = sadd.s32 1, %s1719_s23 }
   0x5   : > { %s169_s29 = ssub.s32 %s1723_s24, %s1789_s27  ;;  %p182_p0 = scmp.ne.s32.totalorder %s1719_s23, %s1715_s22 }
   0x6   : > { %p170_p1 = scmp.eq.s32.totalorder %s169_s29, 0  ;;  %p183_p2 = scmp.eq.s32.totalorder %s1785_s25, 1 }
   0x7   : > { %p188_p3 = scmp.ne.s32.totalorder %s1715_s22, %s1711_s21  ;;  %p189_p4 = scmp.eq.s32.totalorder %s1277_s26, 1 }
   0x8   : > { %s1800_s30 = scalar_select %p170_p1, %s1719_s23, %s172_s28  }
   0x9   : > { %p1802_p5 = por %p183_p2, %p182_p0  ;;  %p1806_p6 = por %p189_p4, %p188_p3 }
   0xa   : > { %p1280_p7 = scmp.ge.s32.totalorder %s1723_s24, 1  ;;  %p249_p8 = scmp.lt.s32.totalorder %s1723_s24, 3 }
   0xc   : > { %p250_p9 = pnand %p1280_p7, %p249_p8 }
   0xd   : > { %s1282_s9 = sshll.u32 (!%p250_p9), %s1785_s25, 5  ;;  %s1725_s14 = smov (!%p250_p9), 8  }
   0xe   : > { %253 = sbr.rel (%p250_p9) target bundleno = 274 (0x112), region = 44  ;;  %p295_p10 = scmp.lt.s32.totalorder (!%p250_p9), %s1282_s9, 63 }
   0xf   : > { %s1726_s18 = smov (!%p250_p9), 16   ;;  %s1727_s28 = smov (!%p250_p9), 24  }
  0x10   : > { %s1615_s19 = sshll.u32 (!%p250_p9), %s1785_s25, 8  ;;  %s1681_s16 = scalar_lea.hbm (!%p250_p9), %s2237_s6, 512 }
  0x13   : > { %s2245_s9 = smov (!%p295_p10, %s1282_s9), 63  ;;  %vm863_vm0 = vcmask 64512   ;;  %vm912_vm1 = vcmask 130048   ;;  %vm945_vm2 = vcmask 195584   ;;  %vm1130_vm3 = vcmask 261120  }
  0x14   : > { %s1813_s10 = sshll.u32 %s2245_s9, 2 }
  0x15   : > { %s1819_s13 = scalar_lea.vmem %s2232_s1, %s1813_s10  ;;  %s1855_s17 = scalar_lea.vmem %s2233_s2, %s1813_s10 }
  0x16   : > { %v1571_v0 = vld [vmem:[%s1819_s13 + $0x20] sm:$0xff]  ;;  %v1569_v1 = vld [vmem:[%s1819_s13 + $0x10] sm:$0xff]  ;;  %v1572_v3 = vld [vmem:[%s1819_s13 + $0x28] sm:$0xff]  ;;  %s1891_s26 = scalar_lea.vmem %s2234_s3, %s1813_s10  ;;  %s1905_s11 = scalar_lea.vmem %s2231_s0, %s1813_s10 }
  0x17   : > { %v1567_v2 = vld [vmem:[%s1819_s13] sm:$0xff]  ;;  %615 = vrot.lane.b32.xlu2 %v1571_v0, %s1725_s14  ;;  %611 = vrot.lane.b32.xlu1 %v1569_v1, %s1725_s14  ;;  %v1570_v4 = vld [vmem:[%s1819_s13 + $0x18] sm:$0xff] }
  0x18   : > { %607 = vrot.lane.b32.xlu0 %v1567_v2, %s1725_s14  ;;  %v1568_v5 = vld [vmem:[%s1819_s13 + $0x8] sm:$0xff]  ;;  %v1575_v6 = vld [vmem:[%s1819_s13 + $0x40] sm:$0xff]  ;;  %v1574_v7 = vld [vmem:[%s1819_s13 + $0x38] sm:$0xff] }
  0x19   : > { %v1573_v8 = vld [vmem:[%s1819_s13 + $0x30] sm:$0xff]  ;;  %v1578_v9 = vld [vmem:[%s1819_s13 + $0x58] sm:$0xff]  ;;  %v1576_v11 = vld [vmem:[%s1819_s13 + $0x48] sm:$0xff] }
  0x1a   : > { %v1577_v10 = vld [vmem:[%s1819_s13 + $0x50] sm:$0xff]  ;;  %v1580_v13 = vld [vmem:[%s1819_s13 + $0x68] sm:$0xff]  ;;  %v1579_v14 = vld [vmem:[%s1819_s13 + $0x60] sm:$0xff] }
  0x1b   : > { %v1581_v12 = vld [vmem:[%s1819_s13 + $0x70] sm:$0xff]  ;;  %v1584_v15 = vld [vmem:[%s1855_s17 + $0x8] sm:$0xff]  ;;  %v1583_v16 = vld [vmem:[%s1855_s17] sm:$0xff] }
  0x1c   : > { %v1582_v17 = vld [vmem:[%s1819_s13 + $0x78] sm:$0xff]  ;;  %v1587_v18 = vld [vmem:[%s1855_s17 + $0x20] sm:$0xff]  ;;  %v1585_v20 = vld [vmem:[%s1855_s17 + $0x10] sm:$0xff]  ;;  %s291_s13 = sand.u32 1, %s1715_s22  }
  0x1d   : > { %v1586_v19 = vld [vmem:[%s1855_s17 + $0x18] sm:$0xff]  ;;  %v1589_v22 = vld [vmem:[%s1855_s17 + $0x30] sm:$0xff]  ;;  %v1588_v23 = vld [vmem:[%s1855_s17 + $0x28] sm:$0xff]  ;;  %s1164_s9 = scalar_lea.sflag [#allocation3], %s291_s13 }
  0x1e   : > { %v1590_v21 = vld [vmem:[%s1855_s17 + $0x38] sm:$0xff]  ;;  %v1593_v24 = vld [vmem:[%s1855_s17 + $0x50] sm:$0xff]  ;;  %v1592_v25 = vld [vmem:[%s1855_s17 + $0x48] sm:$0xff] }
  0x1f   : > { %617 = vrot.lane.b32.xlu2 %v1572_v3, %s1725_s14  ;;  %613 = vrot.lane.b32.xlu1 %v1570_v4, %s1725_s14  ;;  %v1591_v26 = vld [vmem:[%s1855_s17 + $0x40] sm:$0xff]  ;;  %v1596_v27 = vld [vmem:[%s1855_s17 + $0x68] sm:$0xff] }
  0x20   : > { %609 = vrot.lane.b32.xlu0 %v1568_v5, %s1725_s14  ;;  %v1595_v28 = vld [vmem:[%s1855_s17 + $0x60] sm:$0xff]  ;;  %v1594_v29 = vld [vmem:[%s1855_s17 + $0x58] sm:$0xff]  ;;  %v1597_v32 = vld [vmem:[%s1855_s17 + $0x70] sm:$0xff] }
  0x21   : > { %v1599_v30 = vld [vmem:[%s1891_s26] sm:$0xff]  ;;  %v1598_v31 = vld [vmem:[%s1855_s17 + $0x78] sm:$0xff]  ;;  %v1601_v34 = vld [vmem:[%s1891_s26 + $0x10] sm:$0xff]  ;;  %s1281_s17 = sshll.u32 %s291_s13, 8 }
  0x22   : > { %v1602_v33 = vld [vmem:[%s1891_s26 + $0x18] sm:$0xff]  ;;  %v1600_v35 = vld [vmem:[%s1891_s26 + $0x8] sm:$0xff]  ;;  %v1555_v36 = vld [vmem:[%s1905_s11 + $0x20] sm:$0xff] }
  0x23   : > { %v1605_v39 = vld [vmem:[%s1891_s26 + $0x30] sm:$0xff]  ;;  %v1604_v40 = vld [vmem:[%s1891_s26 + $0x28] sm:$0xff]  ;;  %v1603_v41 = vld [vmem:[%s1891_s26 + $0x20] sm:$0xff] }
  0x24   : > { %v1556_v42 = vld [vmem:[%s1905_s11 + $0x28] sm:$0xff]  ;;  %v1607_v46 = vld [vmem:[%s1891_s26 + $0x40] sm:$0xff]  ;;  %v1606_v47 = vld [vmem:[%s1891_s26 + $0x38] sm:$0xff] }
  0x25   : > { %v1608_v45 = vld [vmem:[%s1891_s26 + $0x48] sm:$0xff]  ;;  %v1559_v48 = vld [vmem:[%s1905_s11 + $0x40] sm:$0xff]  ;;  %v1610_v52 = vld [vmem:[%s1891_s26 + $0x58] sm:$0xff] }
  0x26   : > { %v1611_v51 = vld [vmem:[%s1891_s26 + $0x60] sm:$0xff]  ;;  %v1609_v53 = vld [vmem:[%s1891_s26 + $0x50] sm:$0xff]  ;;  %v1562_v54 = vld [vmem:[%s1905_s11 + $0x58] sm:$0xff] }
  0x27   : > { %623 = vrot.lane.b32.xlu2 %v1575_v6, %s1725_s14  ;;  %621 = vrot.lane.b32.xlu1 %v1574_v7, %s1725_s14  ;;  %v1553_v55 = vld [vmem:[%s1905_s11 + $0x10] sm:$0xff]  ;;  %v1614_v61 = vld [vmem:[%s1891_s26 + $0x78] sm:$0xff] }
  0x28   : > { %619 = vrot.lane.b32.xlu0 %v1573_v8, %s1725_s14  ;;  %v1613_v62 = vld [vmem:[%s1891_s26 + $0x70] sm:$0xff]  ;;  %v1612_v63 = vld [vmem:[%s1891_s26 + $0x68] sm:$0xff]  ;;  %v1558_v7 = vld [vmem:[%s1905_s11 + $0x38] sm:$0xff]  ;;  %s1175_s26 = scalar_lea.hbm %s2237_s6, %s1615_s19 }
  0x29   : > { %v1565_v0 = vld [vmem:[%s1905_s11 + $0x70] sm:$0xff]  ;;  %v1552_v1 = vld [vmem:[%s1905_s11 + $0x8] sm:$0xff]  ;;  %s1178_s29 = sshll.u32 %s1175_s26, 4  ;;  %s1179_s29 = int_to_ptr.hbm [resolvable:$true] %s1178_s29 }
  0x2f   : > { %629 = vrot.lane.b32.xlu2 %v1578_v9, %s1725_s14  ;;  %627 = vrot.lane.b32.xlu1 %v1577_v10, %s1725_s14 }
  0x30   : > { %625 = vrot.lane.b32.xlu0 %v1576_v11, %s1725_s14 }
  0x37   : > { %635 = vrot.lane.b32.xlu2 %v1581_v12, %s1725_s14  ;;  %633 = vrot.lane.b32.xlu1 %v1580_v13, %s1725_s14  ;;  %v1561_v13 = vld [vmem:[%s1905_s11 + $0x50] sm:$0xff] }
  0x38   : > { %631 = vrot.lane.b32.xlu0 %v1579_v14, %s1725_s14 }
  0x3f   : > { %721 = vrot.lane.b32.xlu2 %v1584_v15, %s1726_s18  ;;  %719 = vrot.lane.b32.xlu1 %v1583_v16, %s1726_s18 }
  0x40   : > { %637 = vrot.lane.b32.xlu0 %v1582_v17, %s1725_s14 }
  0x47   : > { %727 = vrot.lane.b32.xlu2 %v1587_v18, %s1726_s18  ;;  %725 = vrot.lane.b32.xlu1 %v1586_v19, %s1726_s18  ;;  %v1564_v19 = vld [vmem:[%s1905_s11 + $0x68] sm:$0xff] }
  0x48   : > { %723 = vrot.lane.b32.xlu0 %v1585_v20, %s1726_s18 }
  0x4f   : > { %733 = vrot.lane.b32.xlu2 %v1590_v21, %s1726_s18  ;;  %731 = vrot.lane.b32.xlu1 %v1589_v22, %s1726_s18 }
  0x50   : > { %729 = vrot.lane.b32.xlu0 %v1588_v23, %s1726_s18 }
  0x57   : > { %739 = vrot.lane.b32.xlu2 %v1593_v24, %s1726_s18  ;;  %737 = vrot.lane.b32.xlu1 %v1592_v25, %s1726_s18 }
  0x58   : > { %735 = vrot.lane.b32.xlu0 %v1591_v26, %s1726_s18 }
  0x5f   : > { %745 = vrot.lane.b32.xlu2 %v1596_v27, %s1726_s18  ;;  %743 = vrot.lane.b32.xlu1 %v1595_v28, %s1726_s18 }
  0x60   : > { %741 = vrot.lane.b32.xlu0 %v1594_v29, %s1726_s18 }
  0x67   : > { %831 = vrot.lane.b32.xlu2 %v1599_v30, %s1727_s28  ;;  %749 = vrot.lane.b32.xlu1 %v1598_v31, %s1726_s18 }
  0x68   : > { %747 = vrot.lane.b32.xlu0 %v1597_v32, %s1726_s18  ;;  %s2017_s18 = scalar_lea.vmem [#allocation2], %s1281_s17 }
  0x6f   : > { %837 = vrot.lane.b32.xlu2 %v1602_v33, %s1727_s28  ;;  %835 = vrot.lane.b32.xlu1 %v1601_v34, %s1727_s28  ;;  %v1551_v33 = vld [vmem:[%s1905_s11] sm:$0xff] }
  0x70   : > { %833 = vrot.lane.b32.xlu0 %v1600_v35, %s1727_s28 }
  0x71   : > { %v616_v37 = vpop.permute.xlu2 %615 }
  0x72   : > { %v878_v38 = vsel %vm863_vm0, %v1555_v36, %v616_v37  ;;  %v1994_v36 = vld [vmem:[%s2235_s4] ss:$0 sm:$0xff] }
  0x77   : > { %843 = vrot.lane.b32.xlu2 %v1605_v39, %s1727_s28  ;;  %841 = vrot.lane.b32.xlu1 %v1604_v40, %s1727_s28 }
  0x78   : > { %839 = vrot.lane.b32.xlu0 %v1603_v41, %s1727_s28  ;;  %v2003_v41 = vld [vmem:[%s2236_s5] ss:$0 sm:$0xff] }
  0x79   : > { %v618_v43 = vpop.permute.xlu2 %617 }
  0x7a   : > { %v1921_v44 = vsel %vm863_vm0, %v1556_v42, %v618_v43 }
  0x7f   : > { %849 = vrot.lane.b32.xlu2 %v1608_v45, %s1727_s28  ;;  %847 = vrot.lane.b32.xlu1 %v1607_v46, %s1727_s28  ;;  %v1554_v45 = vld [vmem:[%s1905_s11 + $0x18] sm:$0xff] }
  0x80   : > { %845 = vrot.lane.b32.xlu0 %v1606_v47, %s1727_s28 }
  0x81   : > { %v624_v49 = vpop.permute.xlu2 %623 }
  0x82   : > { %v1931_v50 = vsel %vm863_vm0, %v1559_v48, %v624_v49 }
  0x87   : > { %855 = vrot.lane.b32.xlu2 %v1611_v51, %s1727_s28  ;;  %853 = vrot.lane.b32.xlu1 %v1610_v52, %s1727_s28 }
  0x88   : > { %851 = vrot.lane.b32.xlu0 %v1609_v53, %s1727_s28 }
  0x89   : > { %v630_v56 = vpop.permute.xlu2 %629  ;;  %v612_v57 = vpop.permute.xlu1 %611 }
  0x8a   : > { %v1942_v58 = vsel %vm863_vm0, %v1562_v54, %v630_v56  ;;  %v1945_v59 = vsel %vm863_vm0, %v1553_v55, %v612_v57  ;;  %v608_v60 = vpop.permute.xlu0 %607 }
  0x8b   : > { %v866_v34 = vsel %vm863_vm0, %v1551_v33, %v608_v60 }
  0x8f   : > { %861 = vrot.lane.b32.xlu2 %v1614_v61, %s1727_s28  ;;  %859 = vrot.lane.b32.xlu1 %v1613_v62, %s1727_s28 }
  0x90   : > { %857 = vrot.lane.b32.xlu0 %v1612_v63, %s1727_s28  ;;  %v1557_v63 = vld [vmem:[%s1905_s11 + $0x30] sm:$0xff]  ;;  %s1176_s28 = sshll.u32 %s2017_s18, 4  ;;  %s1177_s28 = int_to_ptr.vmem [resolvable:$true] %s1176_s28 }
  0x91   : > { %v636_v2 = vpop.permute.xlu2 %635  ;;  %v614_v3 = vpop.permute.xlu1 %613 }
  0x92   : > { %v1956_v4 = vsel %vm863_vm0, %v1565_v0, %v636_v2  ;;  %v610_v5 = vpop.permute.xlu0 %609  ;;  %v875_v51 = vsel %vm863_vm0, %v1554_v45, %v614_v3 }
  0x93   : > { %v869_v6 = vsel %vm863_vm0, %v1552_v1, %v610_v5 }
  0x99   : > { %v722_v8 = vpop.permute.xlu2 %721  ;;  %v622_v9 = vpop.permute.xlu1 %621 }
  0x9a   : > { %v1961_v10 = vsel %vm912_vm1, %v869_v6, %v722_v8  ;;  %v887_v11 = vsel %vm863_vm0, %v1558_v7, %v622_v9  ;;  %v620_v12 = vpop.permute.xlu0 %619 }
  0x9b   : > { %v884_v5 = vsel %vm863_vm0, %v1557_v63, %v620_v12 }
  0xa1   : > { %v728_v14 = vpop.permute.xlu2 %727  ;;  %v628_v15 = vpop.permute.xlu1 %627 }
  0xa2   : > { %v1966_v16 = vsel %vm912_vm1, %v878_v38, %v728_v14  ;;  %v896_v17 = vsel %vm863_vm0, %v1561_v13, %v628_v15  ;;  %v1969_v18 = vpop.permute.xlu0 %625 }
  0xa9   : > { %v734_v20 = vpop.permute.xlu2 %733  ;;  %v634_v21 = vpop.permute.xlu1 %633 }
  0xaa   : > { %v1973_v22 = vsel %vm912_vm1, %v887_v11, %v734_v20  ;;  %v905_v23 = vsel %vm863_vm0, %v1564_v19, %v634_v21  ;;  %v1976_v24 = vpop.permute.xlu0 %631  ;;  %v1560_v19 = vld [vmem:[%s1905_s11 + $0x48] sm:$0xff] }
  0xb1   : > { %v740_v25 = vpop.permute.xlu2 %739  ;;  %v720_v26 = vpop.permute.xlu1 %719 }
  0xb2   : > { %v1979_v27 = vsel %vm912_vm1, %v896_v17, %v740_v25  ;;  %v1981_v28 = vpop.permute.xlu0 %637  ;;  %v914_v35 = vsel %vm912_vm1, %v866_v34, %v720_v26  ;;  %v893_v25 = vsel %vm863_vm0, %v1560_v19, %v1969_v18 }
  0xb9   : > { %v746_v29 = vpop.permute.xlu2 %745  ;;  %v726_v30 = vpop.permute.xlu1 %725 }
  0xba   : > { %v1984_v31 = vsel %vm912_vm1, %v905_v23, %v746_v29  ;;  %v1986_v32 = vpop.permute.xlu0 %723  ;;  %v920_v52 = vsel %vm912_vm1, %v875_v51, %v726_v30 }
  0xc1   : > { %v832_v37 = vpop.permute.xlu2 %831  ;;  %v732_v38 = vpop.permute.xlu1 %731 }
  0xc2   : > { %v947_v39 = vsel %vm945_vm2, %v914_v35, %v832_v37  ;;  %v1998_v40 = vpop.permute.xlu0 %729  ;;  %v926_v6 = vsel %vm912_vm1, %v884_v5, %v732_v38 }
  0xc3   : > { %v994_v42 = vunpack.c.l.bf16 %v947_v39  ;;  %v995_v43 = vunpack.c.h.bf16 %v947_v39 }
  0xc5   : > { %v1030_v46 = vmul.f32 %v1994_v36, %v994_v42  ;;  %v1031_v47 = vmul.f32 %v1994_v36, %v995_v43  ;;  %v1563_v42 = vld [vmem:[%s1905_s11 + $0x60] sm:$0xff] }
  0xc7   : > { %v1066_v48 = vadd.f32 %v2003_v41, %v1030_v46  ;;  %v1067_v49 = vadd.f32 %v2003_v41, %v1031_v47  ;;  %v902_v47 = vsel %vm863_vm0, %v1563_v42, %v1976_v24 }
  0xc9   : > { %v1098_v53 = vmax.f32 %v1066_v48, 0.0  ;;  %v1099_v54 = vmax.f32 %v1067_v49, 0.0  ;;  %v838_v55 = vpop.permute.xlu2 %837  ;;  %v738_v56 = vpop.permute.xlu1 %737  ;;  %v918_v48 = vsel %vm912_vm1, %v1945_v59, %v1986_v32 }
  0xca   : > { %v956_v57 = vsel %vm945_vm2, %v920_v52, %v838_v55  ;;  %v2015_v60 = vpop.permute.xlu0 %735  ;;  %v932_v26 = vsel %vm912_vm1, %v893_v25, %v738_v56  ;;  %v1566_v55 = vld [vmem:[%s1905_s11 + $0x78] sm:$0xff]  ;;  %s1675_s11 = sshra.s32 %s1179_s29, 4  ;;  %s1676_s11 = int_to_ptr.hbm [resolvable:$true] %s1675_s11 }
  0xcb   : > { %1131 = vst.msk [vmem:[%s2017_s18] sm:$0xff] %vm1130_vm3, %v1098_v53  ;;  %v1000_v61 = vunpack.c.l.bf16 %v956_v57  ;;  %v1001_v62 = vunpack.c.h.bf16 %v956_v57  ;;  %v911_v5 = vsel %vm863_vm0, %v1566_v55, %v1981_v28  ;;  %s1677_s10 = scalar_lea.hbm %s1676_s11, 256  ;;  %p1682_p0 = scmp.lt.s32.totalorder %s1676_s11, %s2237_s6 }
  0xcc   : > { %1132 = vst.msk [vmem:[%s2017_s18 + $0x8] sm:$0xff] %vm1130_vm3, %v1099_v54  ;;  %p1678_p11 = scmp.ne.s32.totalorder %s1676_s11, %s1677_s10  ;;  %p1683_p1 = scmp.lt.s32.totalorder %s1681_s16, %s1677_s10 }
  0xcd   : > { %v1036_v0 = vmul.f32 %v1994_v36, %v1000_v61  ;;  %v1037_v1 = vmul.f32 %v1994_v36, %v1001_v62 }
  0xce   : > { %p1679_p12 = pnand %p1678_p11, %p1802_p5  ;;  %p1684_p2 = por %p1683_p1, %p1682_p0 }
  0xcf   : > { %v1072_v2 = vadd.f32 %v2003_v41, %v1036_v0  ;;  %v1073_v3 = vadd.f32 %v2003_v41, %v1037_v1 }
  0xd0   : > { %p1680_p13 = pneg %p1679_p12 }
  0xd1   : > { %v1104_v7 = vmax.f32 %v1072_v2, 0.0  ;;  %v1105_v8 = vmax.f32 %v1073_v3, 0.0  ;;  %v844_v9 = vpop.permute.xlu2 %843  ;;  %v744_v11 = vpop.permute.xlu1 %743 }
  0xd2   : > { %v965_v13 = vsel %vm945_vm2, %v926_v6, %v844_v9  ;;  %v2031_v14 = vpop.permute.xlu0 %741  ;;  %v938_v49 = vsel %vm912_vm1, %v902_v47, %v744_v11  ;;  %p1685_p3 = pnand %p1684_p2, %p1680_p13 }
  0xd3   : > { %1137 = vst.msk [vmem:[%s2017_s18 + $0x30] sm:$0xff] %vm1130_vm3, %v1104_v7  ;;  %v1006_v15 = vunpack.c.l.bf16 %v965_v13  ;;  %v1007_v17 = vunpack.c.h.bf16 %v965_v13  ;;  %v924_v13 = vsel %vm912_vm1, %v1921_v44, %v1998_v40 }
  0xd4   : > { %1138 = vst.msk [vmem:[%s2017_s18 + $0x38] sm:$0xff] %vm1130_vm3, %v1105_v8 }
  0xd5   : > { %v1042_v12 = vmul.f32 %v1994_v36, %v1006_v15  ;;  %v1043_v20 = vmul.f32 %v1994_v36, %v1007_v17 }
  0xd7   : > { %v1078_v21 = vadd.f32 %v2003_v41, %v1042_v12  ;;  %v1079_v23 = vadd.f32 %v2003_v41, %v1043_v20 }
  0xd9   : > { %v1110_v29 = vmax.f32 %v1078_v21, 0.0  ;;  %v1111_v30 = vmax.f32 %v1079_v23, 0.0  ;;  %v850_v33 = vpop.permute.xlu2 %849  ;;  %v750_v34 = vpop.permute.xlu1 %749 }
  0xda   : > { %v974_v35 = vsel %vm945_vm2, %v932_v26, %v850_v33  ;;  %v2046_v37 = vpop.permute.xlu0 %747  ;;  %v944_v15 = vsel %vm912_vm1, %v911_v5, %v750_v34 }
  0xdb   : > { %1143 = vst.msk [vmem:[%s2017_s18 + $0x60] sm:$0xff] %vm1130_vm3, %v1110_v29  ;;  %v1012_v38 = vunpack.c.l.bf16 %v974_v35  ;;  %v1013_v39 = vunpack.c.h.bf16 %v974_v35 }
  0xdc   : > { %1144 = vst.msk [vmem:[%s2017_s18 + $0x68] sm:$0xff] %vm1130_vm3, %v1111_v30 }
  0xdd   : > { %v1048_v18 = vmul.f32 %v1994_v36, %v1012_v38  ;;  %v1049_v43 = vmul.f32 %v1994_v36, %v1013_v39 }
  0xdf   : > { %v1084_v45 = vadd.f32 %v2003_v41, %v1048_v18  ;;  %v1085_v46 = vadd.f32 %v2003_v41, %v1049_v43 }
  0xe1   : > { %v1116_v51 = vmax.f32 %v1084_v45, 0.0  ;;  %v1117_v52 = vmax.f32 %v1085_v46, 0.0  ;;  %v856_v53 = vpop.permute.xlu2 %855  ;;  %v836_v54 = vpop.permute.xlu1 %835 }
  0xe2   : > { %v983_v56 = vsel %vm945_vm2, %v938_v49, %v856_v53  ;;  %v953_v57 = vsel %vm945_vm2, %v918_v48, %v836_v54  ;;  %v834_v61 = vpop.permute.xlu0 %833 }
  0xe3   : > { %1149 = vst.msk [vmem:[%s2017_s18 + $0x90] sm:$0xff] %vm1130_vm3, %v1116_v51  ;;  %v1018_v24 = vunpack.c.l.bf16 %v983_v56  ;;  %v1019_v62 = vunpack.c.h.bf16 %v983_v56  ;;  %v998_v63 = vunpack.c.l.bf16 %v953_v57  ;;  %v999_v0 = vunpack.c.h.bf16 %v953_v57 }
  0xe4   : > { %1150 = vst.msk [vmem:[%s2017_s18 + $0x98] sm:$0xff] %vm1130_vm3, %v1117_v52  ;;  %v950_v59 = vsel %vm945_vm2, %v1961_v10, %v834_v61  ;;  %v930_v56 = vsel %vm912_vm1, %v1931_v50, %v2015_v60 }
  0xe5   : > { %v1054_v32 = vmul.f32 %v1994_v36, %v1018_v24  ;;  %v1055_v1 = vmul.f32 %v1994_v36, %v1019_v62  ;;  %v1034_v2 = vmul.f32 %v1994_v36, %v998_v63  ;;  %v1035_v3 = vmul.f32 %v1994_v36, %v999_v0 }
  0xe6   : > { %v996_v6 = vunpack.c.l.bf16 %v950_v59  ;;  %v997_v7 = vunpack.c.h.bf16 %v950_v59 }
  0xe7   : > { %v1090_v8 = vadd.f32 %v2003_v41, %v1054_v32  ;;  %v1091_v9 = vadd.f32 %v2003_v41, %v1055_v1  ;;  %v1070_v11 = vadd.f32 %v2003_v41, %v1034_v2  ;;  %v1071_v10 = vadd.f32 %v2003_v41, %v1035_v3 }
  0xe8   : > { %v1032_v17 = vmul.f32 %v1994_v36, %v996_v6  ;;  %v1033_v28 = vmul.f32 %v1994_v36, %v997_v7 }
  0xe9   : > { %v1122_v19 = vmax.f32 %v1090_v8, 0.0  ;;  %v1123_v12 = vmax.f32 %v1091_v9, 0.0  ;;  %v1102_v20 = vmax.f32 %v1070_v11, 0.0  ;;  %v1103_v21 = vmax.f32 %v1071_v10, 0.0  ;;  %v862_v23 = vpop.permute.xlu2 %861  ;;  %v842_v25 = vpop.permute.xlu1 %841 }
  0xea   : > { %v1068_v26 = vadd.f32 %v2003_v41, %v1032_v17  ;;  %v1069_v29 = vadd.f32 %v2003_v41, %v1033_v28  ;;  %v992_v44 = vsel %vm945_vm2, %v944_v15, %v862_v23  ;;  %v962_v40 = vsel %vm945_vm2, %v924_v13, %v842_v25  ;;  %v840_v30 = vpop.permute.xlu0 %839 }
  0xeb   : > { %1155 = vst.msk [vmem:[%s2017_s18 + $0xc0] sm:$0xff] %vm1130_vm3, %v1122_v19  ;;  %v1024_v33 = vunpack.c.l.bf16 %v992_v44  ;;  %v1025_v34 = vunpack.c.h.bf16 %v992_v44  ;;  %v1004_v35 = vunpack.c.l.bf16 %v962_v40  ;;  %v1005_v38 = vunpack.c.h.bf16 %v962_v40 }
  0xec   : > { %1156 = vst.msk [vmem:[%s2017_s18 + $0xc8] sm:$0xff] %vm1130_vm3, %v1123_v12  ;;  %v1100_v39 = vmax.f32 %v1068_v26, 0.0  ;;  %v1101_v42 = vmax.f32 %v1069_v29, 0.0  ;;  %v959_v18 = vsel %vm945_vm2, %v1966_v16, %v840_v30  ;;  %v936_v28 = vsel %vm912_vm1, %v1942_v58, %v2031_v14 }
  0xed   : > { %1135 = vst.msk [vmem:[%s2017_s18 + $0x20] sm:$0xff] %vm1130_vm3, %v1102_v20  ;;  %v1060_v43 = vmul.f32 %v1994_v36, %v1024_v33  ;;  %v1061_v45 = vmul.f32 %v1994_v36, %v1025_v34  ;;  %v1040_v46 = vmul.f32 %v1994_v36, %v1004_v35  ;;  %v1041_v47 = vmul.f32 %v1994_v36, %v1005_v38 }
  0xee   : > { %1136 = vst.msk [vmem:[%s2017_s18 + $0x28] sm:$0xff] %vm1130_vm3, %v1103_v21  ;;  %v1002_v48 = vunpack.c.l.bf16 %v959_v18  ;;  %v1003_v49 = vunpack.c.h.bf16 %v959_v18  ;;  %v942_v18 = vsel %vm912_vm1, %v1956_v4, %v2046_v37 }
  0xef   : > { %1133 = vst.msk [vmem:[%s2017_s18 + $0x10] sm:$0xff] %vm1130_vm3, %v1100_v39  ;;  %v1096_v51 = vadd.f32 %v2003_v41, %v1060_v43  ;;  %v1097_v16 = vadd.f32 %v2003_v41, %v1061_v45  ;;  %v1076_v52 = vadd.f32 %v2003_v41, %v1040_v46  ;;  %v1077_v53 = vadd.f32 %v2003_v41, %v1041_v47 }
  0xf0   : > { %1134 = vst.msk [vmem:[%s2017_s18 + $0x18] sm:$0xff] %vm1130_vm3, %v1101_v42  ;;  %v1038_v54 = vmul.f32 %v1994_v36, %v1002_v48  ;;  %v1039_v55 = vmul.f32 %v1994_v36, %v1003_v49 }
  0xf1   : > { %v1128_v57 = vmax.f32 %v1096_v51, 0.0  ;;  %v1129_v61 = vmax.f32 %v1097_v16, 0.0  ;;  %v1108_v24 = vmax.f32 %v1076_v52, 0.0  ;;  %v848_v62 = vpop.permute.xlu1 %847  ;;  %v1109_v63 = vmax.f32 %v1077_v53, 0.0 }
  0xf2   : > { %v1074_v0 = vadd.f32 %v2003_v41, %v1038_v54  ;;  %v1075_v59 = vadd.f32 %v2003_v41, %v1039_v55  ;;  %v971_v32 = vsel %vm945_vm2, %v930_v56, %v848_v62  ;;  %v846_v1 = vpop.permute.xlu0 %845 }
  0xf3   : > { %1161 = vst.msk [vmem:[%s2017_s18 + $0xf0] sm:$0xff] %vm1130_vm3, %v1128_v57  ;;  %v1010_v2 = vunpack.c.l.bf16 %v971_v32  ;;  %v1011_v3 = vunpack.c.h.bf16 %v971_v32  ;;  %v968_v50 = vsel %vm945_vm2, %v1973_v22, %v846_v1 }
  0xf4   : > { %1162 = vst.msk [vmem:[%s2017_s18 + $0xf8] sm:$0xff] %vm1130_vm3, %v1129_v61  ;;  %v1106_v60 = vmax.f32 %v1074_v0, 0.0  ;;  %v1107_v5 = vmax.f32 %v1075_v59, 0.0  ;;  %v1008_v6 = vunpack.c.l.bf16 %v968_v50  ;;  %v1009_v7 = vunpack.c.h.bf16 %v968_v50 }
  0xf5   : > { %1141 = vst.msk [vmem:[%s2017_s18 + $0x50] sm:$0xff] %vm1130_vm3, %v1108_v24  ;;  %v1046_v8 = vmul.f32 %v1994_v36, %v1010_v2  ;;  %v1047_v9 = vmul.f32 %v1994_v36, %v1011_v3 }
  0xf6   : > { %1142 = vst.msk [vmem:[%s2017_s18 + $0x58] sm:$0xff] %vm1130_vm3, %v1109_v63  ;;  %v1044_v11 = vmul.f32 %v1994_v36, %v1008_v6  ;;  %v1045_v10 = vmul.f32 %v1994_v36, %v1009_v7 }
  0xf7   : > { %1139 = vst.msk [vmem:[%s2017_s18 + $0x40] sm:$0xff] %vm1130_vm3, %v1106_v60  ;;  %v1082_v22 = vadd.f32 %v2003_v41, %v1046_v8  ;;  %v1083_v13 = vadd.f32 %v2003_v41, %v1047_v9 }
  0xf8   : > { %1140 = vst.msk [vmem:[%s2017_s18 + $0x48] sm:$0xff] %vm1130_vm3, %v1107_v5  ;;  %v1080_v15 = vadd.f32 %v2003_v41, %v1044_v11  ;;  %v1081_v17 = vadd.f32 %v2003_v41, %v1045_v10 }
  0xf9   : > { %v1114_v19 = vmax.f32 %v1082_v22, 0.0  ;;  %v1115_v12 = vmax.f32 %v1083_v13, 0.0  ;;  %v854_v20 = vpop.permute.xlu1 %853 }
  0xfa   : > { %v1112_v21 = vmax.f32 %v1080_v15, 0.0  ;;  %v1113_v23 = vmax.f32 %v1081_v17, 0.0  ;;  %v980_v25 = vsel %vm945_vm2, %v936_v28, %v854_v20  ;;  %v852_v26 = vpop.permute.xlu0 %851 }
  0xfb   : > { %1147 = vst.msk [vmem:[%s2017_s18 + $0x80] sm:$0xff] %vm1130_vm3, %v1114_v19  ;;  %v1016_v29 = vunpack.c.l.bf16 %v980_v25  ;;  %v1017_v44 = vunpack.c.h.bf16 %v980_v25  ;;  %v977_v40 = vsel %vm945_vm2, %v1979_v27, %v852_v26 }
  0xfc   : > { %1148 = vst.msk [vmem:[%s2017_s18 + $0x88] sm:$0xff] %vm1130_vm3, %v1115_v12  ;;  %v1014_v30 = vunpack.c.l.bf16 %v977_v40  ;;  %v1015_v58 = vunpack.c.h.bf16 %v977_v40 }
  0xfd   : > { %1145 = vst.msk [vmem:[%s2017_s18 + $0x70] sm:$0xff] %vm1130_vm3, %v1112_v21  ;;  %v1052_v14 = vmul.f32 %v1994_v36, %v1016_v29  ;;  %v1053_v33 = vmul.f32 %v1994_v36, %v1017_v44 }
  0xfe   : > { %1146 = vst.msk [vmem:[%s2017_s18 + $0x78] sm:$0xff] %vm1130_vm3, %v1113_v23  ;;  %v1050_v34 = vmul.f32 %v1994_v36, %v1014_v30  ;;  %v1051_v35 = vmul.f32 %v1994_v36, %v1015_v58 }
  0xff   : > { %v1088_v38 = vadd.f32 %v2003_v41, %v1052_v14  ;;  %v1089_v27 = vadd.f32 %v2003_v41, %v1053_v33 }
 0x100   : > { %v1086_v39 = vadd.f32 %v2003_v41, %v1050_v34  ;;  %v1087_v42 = vadd.f32 %v2003_v41, %v1051_v35 }
 0x101   : > { %v1120_v43 = vmax.f32 %v1088_v38, 0.0  ;;  %v1121_v45 = vmax.f32 %v1089_v27, 0.0  ;;  %v860_v46 = vpop.permute.xlu1 %859 }
 0x102   : > { %v1118_v47 = vmax.f32 %v1086_v39, 0.0  ;;  %v1119_v48 = vmax.f32 %v1087_v42, 0.0  ;;  %v989_v49 = vsel %vm945_vm2, %v942_v18, %v860_v46  ;;  %v858_v51 = vpop.permute.xlu0 %857 }
 0x103   : > { %1153 = vst.msk [vmem:[%s2017_s18 + $0xb0] sm:$0xff] %vm1130_vm3, %v1120_v43  ;;  %v1022_v16 = vunpack.c.l.bf16 %v989_v49  ;;  %v1023_v52 = vunpack.c.h.bf16 %v989_v49  ;;  %v986_v53 = vsel %vm945_vm2, %v1984_v31, %v858_v51 }
 0x104   : > { %1154 = vst.msk [vmem:[%s2017_s18 + $0xb8] sm:$0xff] %vm1130_vm3, %v1121_v45  ;;  %v1020_v4 = vunpack.c.l.bf16 %v986_v53  ;;  %v1021_v37 = vunpack.c.h.bf16 %v986_v53 }
 0x105   : > { %1151 = vst.msk [vmem:[%s2017_s18 + $0xa0] sm:$0xff] %vm1130_vm3, %v1118_v47  ;;  %v1058_v54 = vmul.f32 %v1994_v36, %v1022_v16  ;;  %v1059_v55 = vmul.f32 %v1994_v36, %v1023_v52 }
 0x106   : > { %1152 = vst.msk [vmem:[%s2017_s18 + $0xa8] sm:$0xff] %vm1130_vm3, %v1119_v48  ;;  %v1056_v56 = vmul.f32 %v1994_v36, %v1020_v4  ;;  %v1057_v31 = vmul.f32 %v1994_v36, %v1021_v37 }
 0x107   : > { %v1094_v57 = vadd.f32 %v2003_v41, %v1058_v54  ;;  %v1095_v61 = vadd.f32 %v2003_v41, %v1059_v55 }
 0x108   : > { %v1092_v24 = vadd.f32 %v2003_v41, %v1056_v56  ;;  %v1093_v62 = vadd.f32 %v2003_v41, %v1057_v31 }
 0x109   : > { %v1126_v63 = vmax.f32 %v1094_v57, 0.0  ;;  %v1127_v0 = vmax.f32 %v1095_v61, 0.0 }
 0x10a   : > { %v1124_v36 = vmax.f32 %v1092_v24, 0.0  ;;  %v1125_v59 = vmax.f32 %v1093_v62, 0.0 }
 0x10b   : > { %1159 = vst.msk [vmem:[%s2017_s18 + $0xe0] sm:$0xff] %vm1130_vm3, %v1126_v63 }
 0x10c   : > { %1160 = vst.msk [vmem:[%s2017_s18 + $0xe8] sm:$0xff] %vm1130_vm3, %v1127_v0 }
 0x10d   : > { %1157 = vst.msk [vmem:[%s2017_s18 + $0xd0] sm:$0xff] %vm1130_vm3, %v1124_v36 }
 0x10e   : > { %1158 = vst.msk [vmem:[%s2017_s18 + $0xd8] sm:$0xff] %vm1130_vm3, %v1125_v59 }
 0x10f   : > { %1688 = shalt.err (!%p1685_p3)
}
 0x110   : > { %s1728_s13 = smov 128  }
 0x111   : > { %1616 = dma.vmem_to_hbm [thread:$0]  (%p1802_p5), %s1177_s28, 4096, %s1179_s29, %s1164_s9, %s1728_s13, %s1728_s13, %s1725_s14  }
 0x112 PF: > { %p1622_p4 = scmp.ge.s32.totalorder %s1723_s24, 2  ;;  %s1193_s18 = sand.u32 1, %s1711_s21  }
 0x113   : > { %s1194_s20 = scalar_lea.sflag [#allocation3], %s1193_s18 }
 0x114   : > { %p1619_p7 = pnand %p1622_p4, %p1806_p6 }
 0x116   : > { %p1620_p8 = pneg %p1619_p7 }
 0x118   : > { %1706 = dma.done.wait (%p1620_p8), %s1194_s20, 4096  }
 0x119   : > { %1708 = vsyncadd (%p1620_p8), %s1194_s20, 4294963200  ;;  %p16_p9 = scmp.ge.s32.totalorder %s1789_s27, 4   ;;  %s2240_s21 = smov %s1715_s22 }
 0x11a   : > { %s2241_s22 = smov %s1719_s23  ;;  %s2242_s23 = smov %s1800_s30 }
 0x11b   : > { %s2243_s24 = smov %s1789_s27  ;;  %18 = sbr.rel (!%p16_p9) target bundleno = 3 (0x3), region = 88 }
 0x120   :  { %1200 = vsyncpa [#allocation3], 1 }
 0x121   :  { %1202 = vsyncpa [#allocation3 + $0x1], 1 }

// kernel: a_call__.10
= control target key start
LH: loop header
LB: loop body
LE: loop exit
PB: predicated region body
PF: predicated region fallthrough
CT: control target
= control target key end

     0   :  { %s3653_s12 = smov 0   ;;  %s3655_s13 = smov 0   ;;  %s5367_s0 = inlined_call_operand.vmem [shape: bf16[2,20,20,4], index: 0, kind: input, shape index: {}]   ;;  %s5368_s1 = inlined_call_operand.vmem [shape: bf16[5,20,8], index: 1, kind: input, shape index: {}]   ;;  %s5369_s2 = inlined_call_operand.vmem [shape: bf16[512,8], index: 2, kind: output, shape index: {0}]   ;;  %s5370_s3 = inlined_call_operand.vmem [shape: f32[4,2,8], index: 3, kind: output, shape index: {1}]  }
   0x1   :  { %s3657_s14 = smov 0   ;;  %s3659_s15 = smov 0  }
   0x2   :  { %s3661_s16 = smov 0  }
   0x3 LB: > { %s23_s17 = sadd.s32 1, %s3619_s14  ;;  %s26_s18 = sadd.s32 1, %s3623_s15  ;;  %s3627_s16 = sphi %s3661_s16, %s14_s16   ;;  %s3623_s15 = sphi %s3659_s15, %s5376_s15   ;;  %s3619_s14 = sphi %s3657_s14, %s5375_s14   ;;  %s3615_s13 = sphi %s3655_s13, %s5374_s13   ;;  %s3611_s12 = sphi %s3653_s12, %s5373_s12  }
   0x4   : > { %p24_p0 = scmp.ge.s32.totalorder %s23_s17, 2  ;;  %p3122_p1 = scmp.ge.s32.totalorder %s3627_s16, 1 }
   0x5   : > { %p160_p2 = scmp.lt.s32.totalorder %s3627_s16, 5 }
   0x6   : > { %s5378_s17 = smov (%p24_p0, %s23_s17), 0  ;;  %s5380_s18 = smov (!%p24_p0, %s26_s18), %s3623_s15 }
   0x7   : > { %p161_p3 = pnand %p3122_p1, %p160_p2  ;;  %p28_p4 = scmp.ge.s32.totalorder %s5380_s18, 2 }
   0x8   : > { %p192_p5 = scmp.lt.s32.totalorder (!%p161_p3), %s3615_s13, 1  ;;  %s3470_s20 = smul.u32 (!%p161_p3), 96, %s3611_s12 }
   0x9   : > { %s5382_s18 = smov (%p28_p4, %s5380_s18), 0  ;;  %164 = sbr.rel (%p161_p3) target bundleno = 725 (0x2d5), region = 28 }
   0xa   : > { %s3629_s26 = smov (!%p161_p3), 8   ;;  %s3630_s27 = smov (!%p161_p3), 4  }
   0xb   : > { %s3631_s28 = smov (!%p161_p3), 12   ;;  %s3632_s29 = smov (!%p161_p3), 16  }
   0xe   : > { %s193_s19 = scalar_select %p192_p5, %s3615_s13, 1  ;;  %vm308_vm0 = vsmask.f32 7424  ;;  %vm421_vm1 = vcmask 1046528   ;;  %vm462_vm2 = vsmask.f32 6400 }
   0xf   : > { %vm551_vm3 = vcmask 1045504   ;;  %vm592_vm4 = vcmask 31744   ;;  %vm609_vm5 = vcmask 64512   ;;  %vm626_vm6 = vcmask 97280  }
  0x10   : > { %s3522_s21 = smul.u32 240, %s193_s19  ;;  %vm643_vm7 = vcmask 130048   ;;  %vm1129_vm8 = vcmask 1041408   ;;  %vm1112_vm9 = vcmask 162816   ;;  %vm2874_vm10 = vcmask 60416  }
  0x11   : > { %vm2981_vm11 = vcmask 1040384   ;;  %vm2983_vm12 = vcmask 58368  }
  0x12   : > { %s196_s24 = scalar_lea.vmem %s5367_s0, %s3522_s21 }
  0x13   : > { %s3693_s25 = scalar_lea.vmem %s196_s24, %s3470_s20 }
  0x14   : > { %v3696_v0 = vld [vmem:[%s3693_s25] sm:$0xff]  ;;  %v222_v1 = vld [vmem:[%s3693_s25 + $0x8] sm:$0x3]  ;;  %v3700_v2 = vld [vmem:[%s3693_s25 + $0x18] sm:$0xff] }
  0x15   : > { %v292_v3 = vunpack.c.l.b16 %v222_v1  ;;  %v228_v4 = vld [vmem:[%s3693_s25 + $0x20] sm:$0x3]  ;;  %v3704_v5 = vld [vmem:[%s3693_s25 + $0x30] sm:$0xff]  ;;  %v234_v6 = vld [vmem:[%s3693_s25 + $0x38] sm:$0x3]  ;;  %v422_v7 = vrot.slane %v3696_v0, 1 }
  0x16   : > { %v294_v8 = vunpack.c.l.b16 %v228_v4  ;;  %v334_v9 = vshrl.u32 %v3700_v2, 16  ;;  %v336_v10 = vshll.u32 %v3700_v2, 16  ;;  %v310_v12 = vshrl.u32 %v3696_v0, 16  ;;  %v231_v15 = vld [vmem:[%s3693_s25 + $0x2c] sm:$0x3]  ;;  %v3728_v24 = vld [vmem:[%s3693_s25 + $0x24] sm:$0xff] }
  0x17   : > { %v3710_v11 = vpack.c.b16 %v292_v3, %v292_v3  ;;  %v312_v13 = vshll.u32 %v3696_v0, 16  ;;  %v296_v14 = vunpack.c.l.b16 %v234_v6  ;;  %v358_v18 = vshrl.u32 %v3704_v5, 16  ;;  %v3736_v29 = vld [vmem:[%s3693_s25 + $0xc] sm:$0xff]  ;;  %v225_v30 = vld [vmem:[%s3693_s25 + $0x14] sm:$0x3]  ;;  %v3754_v39 = vld [vmem:[%s3693_s25 + $0x3c] sm:$0xff] }
  0x18   : > { %v3715_v16 = vpack.c.b16 %v294_v8, %v294_v8  ;;  %v338_v17 = vrot.slane %v336_v10, 1  ;;  %v360_v19 = vshll.u32 %v3704_v5, 16  ;;  %v295_v28 = vunpack.c.l.b16 %v231_v15  ;;  %v237_v40 = vld [vmem:[%s3693_s25 + $0x44] sm:$0x3]  ;;  %v3767_v49 = vld [vmem:[%s3693_s25 + $0x54] sm:$0xff]  ;;  %v3788_v63 = vld [vmem:[%s3693_s25 + $0x48] sm:$0xff] }
  0x19   : > { %v423_v20 = vrot.slane %v3710_v11, 1  ;;  %v314_v21 = vrot.slane %v312_v13, 1  ;;  %v317_v22 = vshll.u32 %v3710_v11, 16  ;;  %v3725_v23 = vpack.c.b16 %v296_v14, %v296_v14  ;;  %v243_v50 = vld [vmem:[%s3693_s25 + $0x5c] sm:$0x3] }
  0x1a   : > { %v339_v25 = vor.u32 %v338_v17, %v334_v9  ;;  %v341_v26 = vshll.u32 %v3715_v16, 16  ;;  %v362_v27 = vrot.slane %v360_v19, 1  ;;  %v3750_v37 = vpack.c.b16 %v295_v28, %v295_v28  ;;  %v240_v1 = vld [vmem:[%s3693_s25 + $0x50] sm:$0x3] }
  0x1b   : > { %v424_v31 = vsel %vm421_vm1, %v422_v7, %v423_v20  ;;  %v315_v32 = vor.u32 %v314_v21, %v310_v12  ;;  %v319_v33 = vrot.slane %v317_v22, 1  ;;  %v365_v34 = vshll.u32 %v3725_v23, 16 }
  0x1c   : > { %446 = vrot.lane.b32.xlu2 %v424_v31, %s3629_s26  ;;  %v343_v35 = vrot.slane %v341_v26, 1  ;;  %v363_v36 = vor.u32 %v362_v27, %v358_v18  ;;  %v346_v38 = vshrl.u32 %v3728_v24, 16  ;;  %v348_v43 = vshll.u32 %v3728_v24, 16 }
  0x1d   : > { %v320_v41 = vsel %vm308_vm0, %v315_v32, %v319_v33  ;;  %v367_v42 = vrot.slane %v365_v34, 1  ;;  %v293_v44 = vunpack.c.l.b16 %v225_v30  ;;  %v353_v46 = vshll.u32 %v3750_v37, 16 }
  0x1e   : > { %v344_v45 = vsel %vm308_vm0, %v339_v25, %v343_v35  ;;  %405 = vrot.lane.b32.xlu0 %v320_v41, %s3630_s27  ;;  %v322_v47 = vshrl.u32 %v3736_v29, 16  ;;  %v324_v48 = vshll.u32 %v3736_v29, 16  ;;  %v350_v52 = vrot.slane %v348_v43, 1 }
  0x1f   : > { %409 = vrot.lane.b32.xlu1 %v344_v45, %s3630_s27  ;;  %v368_v51 = vsel %vm308_vm0, %v363_v36, %v367_v42  ;;  %v3774_v53 = vpack.c.b16 %v293_v44, %v293_v44  ;;  %v297_v54 = vunpack.c.l.b16 %v237_v40  ;;  %v355_v55 = vrot.slane %v353_v46, 1 }
  0x20   : > { %v326_v56 = vrot.slane %v324_v48, 1  ;;  %v370_v57 = vshrl.u32 %v3754_v39, 16  ;;  %v372_v58 = vshll.u32 %v3754_v39, 16  ;;  %v351_v59 = vor.u32 %v350_v52, %v346_v38 }
  0x21   : > { %v329_v60 = vshll.u32 %v3774_v53, 16  ;;  %v3785_v61 = vpack.c.b16 %v297_v54, %v297_v54  ;;  %v299_v62 = vunpack.c.l.b16 %v243_v50  ;;  %v394_v6 = vshrl.u32 %v3767_v49, 16 }
  0x22   : > { %v327_v3 = vor.u32 %v326_v56, %v322_v47  ;;  %v374_v4 = vrot.slane %v372_v58, 1  ;;  %v396_v7 = vshll.u32 %v3767_v49, 16  ;;  %v356_v8 = vsel %vm308_vm0, %v351_v59, %v355_v55 }
  0x23   : > { %v331_v14 = vrot.slane %v329_v60, 1  ;;  %v377_v15 = vshll.u32 %v3785_v61, 16  ;;  %v3799_v17 = vpack.c.b16 %v299_v62, %v299_v62  ;;  %v298_v25 = vunpack.c.l.b16 %v240_v1 }
  0x24   : > { %413 = vrot.lane.b32.xlu2 %v368_v51, %s3630_s27  ;;  %v375_v20 = vor.u32 %v374_v4, %v370_v57  ;;  %v398_v21 = vrot.slane %v396_v7, 1  ;;  %v382_v27 = vshrl.u32 %v3788_v63, 16  ;;  %v384_v32 = vshll.u32 %v3788_v63, 16 }
  0x25   : > { %v332_v28 = vsel %vm308_vm0, %v327_v3, %v331_v14  ;;  %v379_v30 = vrot.slane %v377_v15, 1  ;;  %v401_v31 = vshll.u32 %v3799_v17, 16  ;;  %v3813_v33 = vpack.c.b16 %v298_v25, %v298_v25 }
  0x26   : > { %407 = vrot.lane.b32.xlu0 %v332_v28, %s3630_s27  ;;  %v386_v35 = vrot.slane %v384_v32, 1  ;;  %v399_v36 = vor.u32 %v398_v21, %v394_v6  ;;  %v431_v52 = vrot.slane %v3728_v24, 1  ;;  %v432_v54 = vrot.slane %v3750_v37, 1 }
  0x27   : > { %411 = vrot.lane.b32.xlu1 %v356_v8, %s3630_s27  ;;  %v403_v40 = vrot.slane %v401_v31, 1  ;;  %v389_v41 = vshll.u32 %v3813_v33, 16  ;;  %v380_v42 = vsel %vm308_vm0, %v375_v20, %v379_v30  ;;  %v425_v55 = vrot.slane %v3736_v29, 1 }
  0x28   : > { %v387_v44 = vor.u32 %v386_v35, %v382_v27  ;;  %v426_v56 = vrot.slane %v3774_v53, 1  ;;  %v428_v59 = vrot.slane %v3700_v2, 1  ;;  %v429_v62 = vrot.slane %v3715_v16, 1 }
  0x29   : > { %v391_v45 = vrot.slane %v389_v41, 1  ;;  %v404_v50 = vsel %vm308_vm0, %v399_v36, %v403_v40  ;;  %v433_v1 = vsel %vm421_vm1, %v431_v52, %v432_v54  ;;  %v440_v8 = vrot.slane %v3788_v63, 1 }
  0x2a   : > { %v427_v3 = vsel %vm421_vm1, %v425_v55, %v426_v56  ;;  %v430_v4 = vsel %vm421_vm1, %v428_v59, %v429_v62  ;;  %v441_v14 = vrot.slane %v3813_v33, 1  ;;  %v475_v20 = vshrl.u32 %v3774_v53, 16 }
  0x2b   : > { %v392_v51 = vsel %vm308_vm0, %v387_v44, %v391_v45  ;;  %v437_v21 = vrot.slane %v3754_v39, 1  ;;  %v438_v25 = vrot.slane %v3785_v61, 1  ;;  %v434_v28 = vrot.slane %v3704_v5, 1 }
  0x2c   : > { %415 = vrot.lane.b32.xlu2 %v380_v42, %s3630_s27  ;;  %v435_v30 = vrot.slane %v3725_v23, 1  ;;  %v442_v35 = vsel %vm421_vm1, %v440_v8, %v441_v14  ;;  %v466_v36 = vshrl.u32 %v3710_v11, 16  ;;  %v472_v40 = vrot.slane %v322_v47, 1 }
  0x2d   : > { %v473_v42 = vrot.slane %v324_v48, 2  ;;  %v477_v44 = vrot.slane %v475_v20, 1  ;;  %v478_v45 = vrot.slane %v329_v60, 2  ;;  %v463_v52 = vrot.slane %v310_v12, 1 }
  0x2e   : > { %417 = vrot.lane.b32.xlu0 %v392_v51, %s3630_s27  ;;  %v436_v51 = vsel %vm421_vm1, %v434_v28, %v435_v30  ;;  %v464_v54 = vrot.slane %v312_v13, 2  ;;  %v468_v55 = vrot.slane %v466_v36, 1  ;;  %v469_v47 = vrot.slane %v317_v22, 2 }
  0x2f   : > { %419 = vrot.lane.b32.xlu1 %v404_v50, %s3630_s27  ;;  %v439_v50 = vsel %vm421_vm1, %v437_v21, %v438_v25  ;;  %v474_v56 = vor.u32 %v473_v42, %v472_v40  ;;  %v479_v48 = vor.u32 %v478_v45, %v477_v44  ;;  %v502_v60 = vshrl.u32 %v3725_v23, 16 }
  0x30   : > { %v443_v59 = vrot.slane %v3767_v49, 1  ;;  %v444_v62 = vrot.slane %v3799_v17, 1  ;;  %v484_v12 = vshrl.u32 %v3715_v16, 16  ;;  %v465_v13 = vor.u32 %v464_v54, %v463_v52 }
  0x31   : > { %v499_v22 = vrot.slane %v358_v18, 1  ;;  %v500_v8 = vrot.slane %v360_v19, 2  ;;  %v504_v14 = vrot.slane %v502_v60, 1  ;;  %v505_v20 = vrot.slane %v365_v34, 2 }
  0x32   : > { %v445_v21 = vsel %vm421_vm1, %v443_v59, %v444_v62  ;;  %v490_v25 = vrot.slane %v346_v38, 1  ;;  %v481_v28 = vrot.slane %v334_v9, 1  ;;  %v482_v18 = vrot.slane %v336_v10, 2 }
  0x33   : > { %v486_v30 = vrot.slane %v484_v12, 1  ;;  %v491_v34 = vrot.slane %v348_v43, 2  ;;  %v496_v38 = vrot.slane %v353_v46, 2  ;;  %v501_v9 = vor.u32 %v500_v8, %v499_v22  ;;  %v3168_v8 = vld [vmem:[%s3693_s25 + $0x14] sm:$0x3] }
  0x34   : > { %452 = vrot.lane.b32.xlu2 %v433_v1, %s3629_s26  ;;  %v470_v1 = vor.u32 %v469_v47, %v468_v55  ;;  %v506_v40 = vor.u32 %v505_v20, %v504_v14  ;;  %v529_v10 = vshrl.u32 %v3799_v17, 16  ;;  %v511_v44 = vshrl.u32 %v3785_v61, 16 }
  0x35   : > { %v492_v45 = vor.u32 %v491_v34, %v490_v25  ;;  %v526_v43 = vrot.slane %v394_v6, 1  ;;  %v527_v52 = vrot.slane %v396_v7, 2  ;;  %v532_v55 = vrot.slane %v401_v31, 2 }
  0x36   : > { %448 = vrot.lane.b32.xlu0 %v427_v3, %s3629_s26  ;;  %v493_v3 = vshrl.u32 %v3750_v37, 16  ;;  %v471_v19 = vsel %vm462_vm2, %v465_v13, %v470_v1  ;;  %v507_v46 = vsel %vm462_vm2, %v501_v9, %v506_v40  ;;  %v531_v54 = vrot.slane %v529_v10, 1  ;;  %v3171_v9 = vld [vmem:[%s3693_s25 + $0x20] sm:$0x3] }
  0x37   : > { %450 = vrot.lane.b32.xlu1 %v430_v4, %s3629_s26  ;;  %v480_v4 = vsel %vm462_vm2, %v474_v56, %v479_v48  ;;  %v517_v47 = vrot.slane %v382_v27, 1  ;;  %v508_v56 = vrot.slane %v370_v57, 1  ;;  %v509_v6 = vrot.slane %v372_v58, 2 }
  0x38   : > { %v495_v36 = vrot.slane %v493_v3, 1  ;;  %v513_v60 = vrot.slane %v511_v44, 1  ;;  %v514_v59 = vrot.slane %v377_v15, 2  ;;  %v518_v31 = vrot.slane %v384_v32, 2  ;;  %v3964_v44 = vld [vmem:[%s3693_s25 + $0x30] sm:$0xff] }
  0x39   : > { %v523_v57 = vrot.slane %v389_v41, 2  ;;  %v528_v62 = vor.u32 %v527_v52, %v526_v43  ;;  %v533_v12 = vor.u32 %v532_v55, %v531_v54  ;;  %v510_v58 = vor.u32 %v509_v6, %v508_v56 }
  0x3a   : > { %v515_v15 = vor.u32 %v514_v59, %v513_v60  ;;  %v519_v13 = vor.u32 %v518_v31, %v517_v47  ;;  %v558_v41 = vrot.slane %v3700_v2, 2  ;;  %v552_v14 = vrot.slane %v3696_v0, 2 }
  0x3b   : > { %v534_v22 = vsel %vm462_vm2, %v528_v62, %v533_v12  ;;  %v553_v20 = vrot.slane %v3710_v11, 2  ;;  %v556_v25 = vrot.slane %v3774_v53, 2  ;;  %v568_v53 = vrot.slane %v3785_v61, 2  ;;  %v3180_v62 = vld [vmem:[%s3693_s25 + $0x44] sm:$0x3] }
  0x3c   : > { %458 = vrot.lane.b32.xlu2 %v442_v35, %s3629_s26  ;;  %v487_v35 = vrot.slane %v341_v26, 2  ;;  %v483_v26 = vor.u32 %v482_v18, %v481_v28  ;;  %v516_v32 = vsel %vm462_vm2, %v510_v58, %v515_v15  ;;  %v3939_v28 = vld [vmem:[%s3693_s25 + $0xc] sm:$0xff]  ;;  %v739_v18 = vunpack.c.l.b16 %v3168_v8  ;;  %v4003_v15 = vld [vmem:[%s3693_s25 + $0x54] sm:$0xff] }
  0x3d   : > { %v758_v11 = vshll.u32 %v3939_v28, 16  ;;  %v564_v34 = vrot.slane %v3704_v5, 2  ;;  %v565_v40 = vrot.slane %v3725_v23, 2  ;;  %v756_v10 = vshrl.u32 %v3939_v28, 16 }
  0x3e   : > { %454 = vrot.lane.b32.xlu0 %v436_v51, %s3629_s26  ;;  %v488_v42 = vor.u32 %v487_v35, %v486_v30  ;;  %v520_v51 = vshrl.u32 %v3813_v33, 16  ;;  %v554_v30 = vsel %vm551_vm3, %v552_v14, %v553_v20  ;;  %v3945_v35 = vpack.c.b16 %v739_v18, %v739_v18 }
  0x3f   : > { %456 = vrot.lane.b32.xlu1 %v439_v50, %s3629_s26  ;;  %v497_v50 = vor.u32 %v496_v38, %v495_v36  ;;  %v561_v36 = vrot.slane %v3728_v24, 2  ;;  %v562_v38 = vrot.slane %v3750_v37, 2  ;;  %v760_v61 = vrot.slane %v758_v11, 1  ;;  %v3174_v24 = vld [vmem:[%s3693_s25 + $0x2c] sm:$0x3] }
  0x40   : > { %v489_v48 = vsel %vm462_vm2, %v483_v26, %v488_v42  ;;  %v522_v27 = vrot.slane %v520_v51, 1  ;;  %v763_v26 = vshll.u32 %v3945_v35, 16  ;;  %v740_v37 = vunpack.c.l.b16 %v3171_v9 }
  0x41   : > { %v498_v7 = vsel %vm462_vm2, %v492_v45, %v497_v50  ;;  %v3968_v45 = vld [vmem:[%s3693_s25 + $0x18] sm:$0xff]  ;;  %v563_v50 = vsel %vm551_vm3, %v561_v36, %v562_v38  ;;  %v566_v23 = vsel %vm551_vm3, %v564_v34, %v565_v40  ;;  %v761_v43 = vor.u32 %v760_v61, %v756_v10 }
  0x42   : > { %v524_v1 = vor.u32 %v523_v57, %v522_v27  ;;  %v765_v51 = vrot.slane %v763_v26, 1  ;;  %v741_v52 = vunpack.c.l.b16 %v3174_v24  ;;  %v794_v55 = vshll.u32 %v3964_v44, 16 }
  0x43   : > { %v3984_v47 = vpack.c.b16 %v740_v37, %v740_v37  ;;  %v770_v56 = vshll.u32 %v3968_v45, 16  ;;  %v573_v6 = vrot.slane %v3767_v49, 2  ;;  %v574_v60 = vrot.slane %v3799_v17, 2 }
  0x44   : > { %537 = vrot.lane.b32.xlu2 %v480_v4, %s3631_s28  ;;  %v525_v3 = vsel %vm462_vm2, %v519_v13, %v524_v1  ;;  %v559_v4 = vrot.slane %v3715_v16, 2  ;;  %v570_v59 = vrot.slane %v3788_v63, 2  ;;  %v766_v31 = vsel %vm308_vm0, %v761_v43, %v765_v51 }
  0x45   : > { %v3994_v27 = vpack.c.b16 %v741_v52, %v741_v52  ;;  %v792_v12 = vshrl.u32 %v3964_v44, 16  ;;  %v796_v58 = vrot.slane %v794_v55, 1  ;;  %v768_v1 = vshrl.u32 %v3968_v45, 16 }
  0x46   : > { %460 = vrot.lane.b32.xlu0 %v445_v21, %s3629_s26  ;;  %v555_v21 = vrot.slane %v3736_v29, 2  ;;  %v560_v16 = vsel %vm551_vm3, %v558_v41, %v559_v4  ;;  %v567_v29 = vrot.slane %v3754_v39, 2  ;;  %v4013_v4 = vld [vmem:[%s3693_s25 + $0x3c] sm:$0xff]  ;;  %v743_v8 = vunpack.c.l.b16 %v3180_v62 }
  0x47   : > { %535 = vrot.lane.b32.xlu1 %v471_v19, %s3631_s28  ;;  %v3177_v19 = vld [vmem:[%s3693_s25 + $0x38] sm:$0x3]  ;;  %v806_v36 = vshll.u32 %v4013_v4, 16  ;;  %v828_v24 = vshrl.u32 %v4003_v15, 16  ;;  %v804_v43 = vshrl.u32 %v4013_v4, 16 }
  0x48   : > { %v557_v0 = vsel %vm551_vm3, %v555_v21, %v556_v25  ;;  %v569_v42 = vsel %vm551_vm3, %v567_v29, %v568_v53  ;;  %v742_v5 = vunpack.c.l.b16 %v3177_v19  ;;  %v787_v21 = vshll.u32 %v3994_v27, 16  ;;  %v4021_v25 = vld [vmem:[%s3693_s25 + $0x48] sm:$0xff] }
  0x49   : > { %v830_v29 = vshll.u32 %v4003_v15, 16  ;;  %v4036_v34 = vpack.c.b16 %v743_v8, %v743_v8  ;;  %v818_v61 = vshll.u32 %v4021_v25, 16  ;;  %v808_v51 = vrot.slane %v806_v36, 1 }
  0x4a   : > { %v3980_v54 = vpack.c.b16 %v742_v5, %v742_v5  ;;  %v789_v9 = vrot.slane %v787_v21, 1 }
  0x4b   : > { %v832_v37 = vrot.slane %v830_v29, 1  ;;  %v811_v52 = vshll.u32 %v4036_v34, 16 }
  0x4c   : > { %543 = vrot.lane.b32.xlu2 %v507_v46, %s3631_s28  ;;  %v3978_v46 = vld [vmem:[%s3693_s25 + $0x24] sm:$0xff]  ;;  %v5371_v17 = vshll.u32 %v3980_v54, 16 }
  0x4d   : > { %v782_v57 = vshll.u32 %v3978_v46, 16  ;;  %v780_v14 = vshrl.u32 %v3978_v46, 16  ;;  %v833_v62 = vor.u32 %v832_v37, %v828_v24 }
  0x4e   : > { %539 = vrot.lane.b32.xlu0 %v489_v48, %s3631_s28  ;;  %v3186_v48 = vld [vmem:[%s3693_s25 + $0x5c] sm:$0x3] }
  0x4f   : > { %541 = vrot.lane.b32.xlu1 %v498_v7, %s3631_s28  ;;  %v571_v7 = vrot.slane %v3813_v33, 2  ;;  %v745_v13 = vunpack.c.l.b16 %v3186_v48  ;;  %v3183_v33 = vld [vmem:[%s3693_s25 + $0x50] sm:$0x3]  ;;  %v784_v20 = vrot.slane %v782_v57, 1  ;;  %v4058_v48 = vld [vmem:[%s3693_s25 + $0x60] sm:$0xff] }
  0x50   : > { %v744_v18 = vunpack.c.l.b16 %v3183_v33  ;;  %v809_v33 = vor.u32 %v808_v51, %v804_v43  ;;  %v867_v51 = vrot.slane %v3939_v28, 1 }
  0x51   : > { %v572_v41 = vsel %vm551_vm3, %v570_v59, %v571_v7  ;;  %v785_v38 = vor.u32 %v784_v20, %v780_v14  ;;  %v816_v59 = vshrl.u32 %v4021_v25, 16  ;;  %v820_v7 = vrot.slane %v818_v61, 1 }
  0x52   : > { %v4043_v40 = vpack.c.b16 %v744_v18, %v744_v18 }
  0x53   : > { %v821_v8 = vor.u32 %v820_v7, %v816_v59 }
  0x54   : > { %549 = vrot.lane.b32.xlu2 %v534_v22, %s3631_s28  ;;  %v772_v22 = vrot.slane %v770_v56, 1 }
  0x56   : > { %545 = vrot.lane.b32.xlu0 %v516_v32, %s3631_s28  ;;  %v775_v32 = vshll.u32 %v3984_v47, 16  ;;  %v773_v53 = vor.u32 %v772_v22, %v768_v1  ;;  %v813_v22 = vrot.slane %v811_v52, 1 }
  0x57   : > { %547 = vrot.lane.b32.xlu1 %v525_v3, %s3631_s28  ;;  %v575_v3 = vsel %vm551_vm3, %v573_v6, %v574_v60  ;;  %v790_v60 = vsel %vm308_vm0, %v785_v38, %v789_v9  ;;  %v870_v9 = vrot.slane %v3968_v45, 1 }
  0x58   : > { %v777_v19 = vrot.slane %v775_v32, 1 }
  0x5c   : > { %580 = vrot.lane.b32.xlu2 %v560_v16, %s3632_s29  ;;  %v797_v16 = vor.u32 %v796_v58, %v792_v12 }
  0x5e   : > { %576 = vrot.lane.b32.xlu0 %v554_v30, %s3632_s29  ;;  %v801_v30 = vrot.slane %v5371_v17, 1 }
  0x5f   : > { %578 = vrot.lane.b32.xlu1 %v557_v0, %s3632_s29  ;;  %v4027_v0 = vpack.c.b16 %v745_v13, %v745_v13 }
  0x60   : > { %v802_v5 = vsel %vm308_vm0, %v797_v16, %v801_v30  ;;  %v814_v16 = vsel %vm308_vm0, %v809_v33, %v813_v22  ;;  %v840_v30 = vshrl.u32 %v4058_v48, 16  ;;  %v880_v33 = vrot.slane %v4036_v34, 1 }
  0x64   : > { %586 = vrot.lane.b32.xlu2 %v569_v42, %s3632_s29  ;;  %v3189_v42 = vld [vmem:[%s3693_s25 + $0x68] sm:$0x3] }
  0x65   : > { %v746_v6 = vunpack.c.l.b16 %v3189_v42  ;;  %v871_v42 = vrot.slane %v3984_v47, 1 }
  0x66   : > { %582 = vrot.lane.b32.xlu0 %v563_v50, %s3632_s29  ;;  %v835_v50 = vshll.u32 %v4027_v0, 16 }
  0x67   : > { %584 = vrot.lane.b32.xlu1 %v566_v23, %s3632_s29  ;;  %v778_v23 = vsel %vm308_vm0, %v773_v53, %v777_v19 }
  0x68   : > { %v837_v58 = vrot.slane %v835_v50, 1 }
  0x6a   : > { %v838_v18 = vsel %vm308_vm0, %v833_v62, %v837_v58  ;;  %v879_v58 = vrot.slane %v4013_v4, 1 }
  0x6c   : > { %851 = vrot.lane.b32.xlu2 %v766_v31, %s3630_s27  ;;  %v823_v31 = vshll.u32 %v4043_v40, 16 }
  0x6e   : > { %588 = vrot.lane.b32.xlu0 %v572_v41, %s3632_s29  ;;  %v842_v41 = vshll.u32 %v4058_v48, 16  ;;  %v825_v20 = vrot.slane %v823_v31, 1 }
  0x6f   : > { %590 = vrot.lane.b32.xlu1 %v575_v3, %s3632_s29  ;;  %v4074_v3 = vpack.c.b16 %v746_v6, %v746_v6  ;;  %v868_v6 = vrot.slane %v3945_v35, 1 }
  0x70   : > { %v844_v53 = vrot.slane %v842_v41, 1  ;;  %v826_v38 = vsel %vm308_vm0, %v821_v8, %v825_v20  ;;  %v946_v8 = vshrl.u32 %v4036_v34, 16  ;;  %v873_v20 = vrot.slane %v3978_v46, 1 }
  0x71   : > { %v847_v19 = vshll.u32 %v4074_v3, 16  ;;  %v869_v62 = vsel %vm421_vm1, %v867_v51, %v868_v6 }
  0x72   : > { %v845_v37 = vor.u32 %v844_v53, %v840_v30  ;;  %v877_v53 = vrot.slane %v3980_v54, 1 }
  0x74   : > { %857 = vrot.lane.b32.xlu2 %v802_v5, %s3630_s27 }
  0x76   : > { %v4070_v13 = vpop.permute.xlu2 %446  ;;  %853 = vrot.lane.b32.xlu0 %v778_v23, %s3630_s27  ;;  %v849_v23 = vrot.slane %v847_v19, 1 }
  0x77   : > { %855 = vrot.lane.b32.xlu1 %v790_v60, %s3630_s27  ;;  %v872_v60 = vsel %vm421_vm1, %v870_v9, %v871_v42  ;;  %v943_v9 = vrot.slane %v804_v43, 1  ;;  %v944_v42 = vrot.slane %v806_v36, 2 }
  0x78   : > { %v850_v7 = vsel %vm308_vm0, %v845_v37, %v849_v23  ;;  %v948_v37 = vrot.slane %v946_v8, 1  ;;  %v949_v23 = vrot.slane %v811_v52, 2  ;;  %v964_v52 = vshrl.u32 %v4027_v0, 16 }
  0x79   : > { %v945_v43 = vor.u32 %v944_v42, %v943_v9  ;;  %v885_v8 = vrot.slane %v4003_v15, 1  ;;  %v961_v42 = vrot.slane %v828_v24, 1 }
  0x7a   : > { %v950_v36 = vor.u32 %v949_v23, %v948_v37  ;;  %v962_v37 = vrot.slane %v830_v29, 2  ;;  %v966_v23 = vrot.slane %v964_v52, 1  ;;  %v1014_v29 = vrot.slane %v4027_v0, 2 }
  0x7c   : > { %863 = vrot.lane.b32.xlu2 %v838_v18, %s3630_s27  ;;  %v874_v18 = vrot.slane %v3994_v27, 1  ;;  %v951_v9 = vsel %vm462_vm2, %v945_v43, %v950_v36  ;;  %v963_v24 = vor.u32 %v962_v37, %v961_v42 }
  0x7e   : > { %v4091_v5 = vpop.permute.xlu2 %413  ;;  %859 = vrot.lane.b32.xlu0 %v814_v16, %s3630_s27  ;;  %v876_v16 = vrot.slane %v3964_v44, 1  ;;  %v875_v51 = vsel %vm421_vm1, %v873_v20, %v874_v18  ;;  %v925_v18 = vrot.slane %v780_v14, 1 }
  0x7f   : > { %861 = vrot.lane.b32.xlu1 %v826_v38, %s3630_s27  ;;  %v881_v38 = vsel %vm421_vm1, %v879_v58, %v880_v33 }
  0x80   : > { %v878_v6 = vsel %vm421_vm1, %v876_v16, %v877_v53  ;;  %v926_v16 = vrot.slane %v782_v57, 2 }
  0x82   : > { %v927_v14 = vor.u32 %v926_v16, %v925_v18  ;;  %v995_v18 = vrot.slane %v3939_v28, 2  ;;  %v996_v16 = vrot.slane %v3945_v35, 2 }
  0x84   : > { %893 = vrot.lane.b32.xlu2 %v872_v60, %s3629_s26  ;;  %v1007_v60 = vrot.slane %v4013_v4, 2  ;;  %v997_v28 = vsel %vm551_vm3, %v995_v18, %v996_v16  ;;  %v976_v16 = vrot.slane %v847_v19, 2 }
  0x86   : > { %v4107_v22 = vpop.permute.xlu2 %415  ;;  %865 = vrot.lane.b32.xlu0 %v850_v7, %s3630_s27  ;;  %v1008_v7 = vrot.slane %v4036_v34, 2  ;;  %v886_v34 = vrot.slane %v4027_v0, 1  ;;  %v908_v0 = vrot.slane %v758_v11, 2  ;;  %v955_v11 = vshrl.u32 %v4043_v40, 16 }
  0x87   : > { %891 = vrot.lane.b32.xlu1 %v869_v62, %s3629_s26  ;;  %v928_v62 = vshrl.u32 %v3994_v27, 16 }
  0x88   : > { %v1009_v33 = vsel %vm551_vm3, %v1007_v60, %v1008_v7  ;;  %v887_v57 = vsel %vm421_vm1, %v885_v8, %v886_v34  ;;  %v913_v34 = vrot.slane %v763_v26, 2 }
  0x89   : > { %v930_v53 = vrot.slane %v928_v62, 1 }
  0x8c   : > { %899 = vrot.lane.b32.xlu2 %v881_v38, %s3629_s26  ;;  %v931_v38 = vrot.slane %v787_v21, 2  ;;  %v1013_v21 = vrot.slane %v4003_v15, 2  ;;  %v907_v15 = vrot.slane %v756_v10, 1 }
  0x8e   : > { %v4125_v17 = vpop.permute.xlu2 %452  ;;  %895 = vrot.lane.b32.xlu0 %v875_v51, %s3629_s26  ;;  %v967_v51 = vrot.slane %v835_v50, 2  ;;  %v910_v50 = vshrl.u32 %v3945_v35, 16  ;;  %v1015_v52 = vsel %vm551_vm3, %v1013_v21, %v1014_v29  ;;  %v909_v42 = vor.u32 %v908_v0, %v907_v15 }
  0x8f   : > { %897 = vrot.lane.b32.xlu1 %v878_v6, %s3629_s26  ;;  %v932_v6 = vor.u32 %v931_v38, %v930_v53  ;;  %v1001_v38 = vrot.slane %v3978_v46, 2  ;;  %v953_v46 = vrot.slane %v818_v61, 2  ;;  %v882_v29 = vrot.slane %v4021_v25, 1 }
  0x90   : > { %v4130_v58 = vpop.permute.xlu0 %405  ;;  %v968_v7 = vor.u32 %v967_v51, %v966_v23  ;;  %v912_v8 = vrot.slane %v910_v50, 1  ;;  %v952_v23 = vrot.slane %v816_v59, 1  ;;  %v958_v51 = vrot.slane %v823_v31, 2 }
  0x91   : > { %v4135_v20 = vpop.permute.xlu1 %409  ;;  %v933_v36 = vsel %vm462_vm2, %v927_v14, %v932_v6  ;;  %v888_v14 = vrot.slane %v4058_v48, 1  ;;  %v889_v6 = vrot.slane %v4074_v3, 1  ;;  %v883_v31 = vrot.slane %v4043_v40, 1 }
  0x92   : > { %v914_v26 = vor.u32 %v913_v34, %v912_v8  ;;  %v954_v59 = vor.u32 %v953_v46, %v952_v23  ;;  %v1016_v15 = vrot.slane %v4058_v48, 2  ;;  %v1017_v0 = vrot.slane %v4074_v3, 2  ;;  %v3253_v23 = vld [vmem:[%s3693_s25 + $0x20] sm:$0x3] }
  0x93   : > { %v970_v8 = vrot.slane %v840_v30, 1  ;;  %v971_v34 = vrot.slane %v842_v41, 2  ;;  %v937_v30 = vshrl.u32 %v3980_v54, 16 }
  0x94   : > { %1027 = vrot.lane.b32.xlu2 %v1009_v33, %s3632_s29  ;;  %v969_v33 = vsel %vm462_vm2, %v963_v24, %v968_v7  ;;  %v973_v7 = vshrl.u32 %v4074_v3, 16  ;;  %v1018_v41 = vsel %vm551_vm3, %v1016_v15, %v1017_v0  ;;  %v3326_v0 = vld [vmem:[%s3693_s25 + $0x2c] sm:$0x3] }
  0x95   : > { %v972_v3 = vor.u32 %v971_v34, %v970_v8 }
  0x96   : > { %v4152_v60 = vpop.permute.xlu2 %458  ;;  %987 = vrot.lane.b32.xlu0 %v951_v9, %s3631_s28  ;;  %v1002_v9 = vrot.slane %v3994_v27, 2  ;;  %v957_v27 = vrot.slane %v955_v11, 1  ;;  %v975_v18 = vrot.slane %v973_v7, 1  ;;  %v1010_v11 = vrot.slane %v4021_v25, 2 }
  0x97   : > { %903 = vrot.lane.b32.xlu1 %v887_v57, %s3629_s26  ;;  %v915_v57 = vsel %vm462_vm2, %v909_v42, %v914_v26  ;;  %v1011_v42 = vrot.slane %v4043_v40, 2  ;;  %v917_v25 = vrot.slane %v770_v56, 2 }
  0x98   : > { %v4158_v62 = vpop.permute.xlu0 %407  ;;  %v1003_v35 = vsel %vm551_vm3, %v1001_v38, %v1002_v9  ;;  %v959_v61 = vor.u32 %v958_v51, %v957_v27  ;;  %v919_v38 = vshrl.u32 %v3984_v47, 16  ;;  %v977_v19 = vor.u32 %v976_v16, %v975_v18  ;;  %v4268_v16 = vld [vmem:[%s3693_s25 + $0x24] sm:$0xff] }
  0x99   : > { %v4161_v43 = vpop.permute.xlu1 %411  ;;  %v1012_v46 = vsel %vm551_vm3, %v1010_v11, %v1011_v42  ;;  %v934_v27 = vrot.slane %v792_v12, 1  ;;  %v935_v51 = vrot.slane %v794_v55, 2 }
  0x9a   : > { %v921_v40 = vrot.slane %v919_v38, 1  ;;  %v978_v56 = vsel %vm462_vm2, %v972_v3, %v977_v19 }
  0x9b   : > { %v936_v55 = vor.u32 %v935_v51, %v934_v27 }
  0x9c   : > { %983 = vrot.lane.b32.xlu2 %v933_v36, %s3631_s28  ;;  %v890_v36 = vsel %vm421_vm1, %v888_v14, %v889_v6  ;;  %v5372_v14 = vshll.u32 %v3980_v54, 16  ;;  %v4249_v6 = vld [vmem:[%s3693_s25 + $0x18] sm:$0xff] }
  0x9d   : > { %v1354_v15 = vshll.u32 %v4249_v6, 16  ;;  %v1352_v38 = vshrl.u32 %v4249_v6, 16  ;;  %v1463_v3 = vrot.slane %v4249_v6, 1 }
  0x9e   : > { %v4175_v53 = vpop.permute.xlu2 %537  ;;  %991 = vrot.lane.b32.xlu0 %v969_v33, %s3631_s28  ;;  %v884_v33 = vsel %vm421_vm1, %v882_v29, %v883_v31  ;;  %v1004_v31 = vrot.slane %v3964_v44, 2 }
  0x9f   : > { %1031 = vrot.lane.b32.xlu1 %v1015_v52, %s3632_s29  ;;  %v960_v52 = vsel %vm462_vm2, %v954_v59, %v959_v61  ;;  %v1356_v11 = vrot.slane %v1354_v15, 1 }
  0xa0   : > { %v4182_v10 = vpop.permute.xlu0 %417 }
  0xa1   : > { %v4184_v37 = vpop.permute.xlu1 %419 }
  0xa2   : > { %v608_v7 = vsel %vm592_vm4, %v3767_v49, %v4184_v37  ;;  %v1868_v49 = vunpack.c.l.b16 %v3326_v0 }
  0xa4   : > { %1019 = vrot.lane.b32.xlu2 %v997_v28, %s3632_s29  ;;  %v916_v28 = vrot.slane %v768_v1, 1  ;;  %v940_v1 = vrot.slane %v5372_v14, 2  ;;  %v1504_v14 = vrot.slane %v1354_v15, 2 }
  0xa6   : > { %v4198_v21 = vpop.permute.xlu2 %543  ;;  %1023 = vrot.lane.b32.xlu0 %v1003_v35, %s3632_s29  ;;  %v922_v35 = vrot.slane %v775_v32, 2  ;;  %v1335_v32 = vunpack.c.l.b16 %v3253_v23  ;;  %v918_v59 = vor.u32 %v917_v25, %v916_v28  ;;  %v598_v25 = vsel %vm592_vm4, %v3700_v2, %v4135_v20 }
  0xa7   : > { %979 = vrot.lane.b32.xlu1 %v915_v57, %s3631_s28  ;;  %v939_v57 = vrot.slane %v937_v30, 1  ;;  %v998_v30 = vrot.slane %v3968_v45, 2  ;;  %v1887_v45 = vshll.u32 %v4268_v16, 16  ;;  %v1357_v23 = vor.u32 %v1356_v11, %v1352_v38  ;;  %v3568_v11 = vld [vmem:[%s3693_s25 + $0xc] sm:$0xff] }
  0xa8   : > { %v4204_v24 = vpop.permute.xlu0 %448  ;;  %v923_v61 = vor.u32 %v922_v35, %v921_v40  ;;  %v4287_v40 = vpack.c.b16 %v1868_v49, %v1868_v49  ;;  %v1503_v20 = vrot.slane %v1352_v38, 1 }
  0xa9   : > { %v4207_v50 = vpop.permute.xlu1 %450  ;;  %v941_v12 = vor.u32 %v940_v1, %v939_v57 }
  0xaa   : > { %v924_v18 = vsel %vm462_vm2, %v918_v59, %v923_v61  ;;  %v1889_v59 = vrot.slane %v1887_v45, 1  ;;  %v1892_v61 = vshll.u32 %v4287_v40, 16 }
  0xab   : > { %v942_v44 = vsel %vm462_vm2, %v936_v55, %v941_v12  ;;  %v1591_v12 = vrot.slane %v4249_v6, 2  ;;  %v1505_v6 = vor.u32 %v1504_v14, %v1503_v20  ;;  %v3256_v20 = vld [vmem:[%s3693_s25 + $0x2c] sm:$0x3] }
  0xac   : > { %905 = vrot.lane.b32.xlu2 %v890_v36, %s3629_s26  ;;  %v1894_v0 = vrot.slane %v1892_v61, 1 }
  0xae   : > { %v550_v9 = vpop.permute.xlu2 %549  ;;  %901 = vrot.lane.b32.xlu0 %v884_v33, %s3629_s26  ;;  %v4258_v33 = vpack.c.b16 %v1335_v32, %v1335_v32 }
  0xaf   : > { %989 = vrot.lane.b32.xlu1 %v960_v52, %s3631_s28  ;;  %v1005_v52 = vrot.slane %v3980_v54, 2 }
  0xb0   : > { %v4227_v48 = vpop.permute.xlu0 %454  ;;  %v1359_v42 = vshll.u32 %v4258_v33, 16  ;;  %v1464_v19 = vrot.slane %v4258_v33, 1 }
  0xb1   : > { %v4230_v26 = vpop.permute.xlu1 %456  ;;  %v1006_v54 = vsel %vm551_vm3, %v1004_v31, %v1005_v52  ;;  %v1592_v31 = vrot.slane %v4258_v33, 2  ;;  %v3399_v52 = vld [vmem:[%s3693_s25 + $0x38] sm:$0x3] }
  0xb2   : > { %v1465_v2 = vsel %vm421_vm1, %v1463_v3, %v1464_v19  ;;  %v1509_v32 = vrot.slane %v1359_v42, 2 }
  0xb3   : > { %v1593_v49 = vsel %vm551_vm3, %v1591_v12, %v1592_v31 }
  0xb4   : > { %1033 = vrot.lane.b32.xlu2 %v1018_v41, %s3632_s29  ;;  %v999_v41 = vrot.slane %v3984_v47, 2  ;;  %v615_v47 = vsel %vm609_vm5, %v598_v25, %v4207_v50  ;;  %v1885_v50 = vshrl.u32 %v4268_v16, 16  ;;  %v2042_v25 = vrot.slane %v1892_v61, 2 }
  0xb6   : > { %v581_v29 = vpop.permute.xlu2 %580  ;;  %1029 = vrot.lane.b32.xlu0 %v1012_v46, %s3632_s29  ;;  %v1361_v46 = vrot.slane %v1359_v42, 1  ;;  %v1000_v57 = vsel %vm551_vm3, %v998_v30, %v999_v41  ;;  %v4334_v30 = vld [vmem:[%s3693_s25 + $0x30] sm:$0xff]  ;;  %v2036_v19 = vrot.slane %v1885_v50, 1 }
  0xb7   : > { %993 = vrot.lane.b32.xlu1 %v978_v56, %s3631_s28 }
  0xb8   : > { %v461_v36 = vpop.permute.xlu0 %460  ;;  %v1362_v55 = vsel %vm308_vm0, %v1357_v23, %v1361_v46  ;;  %v1997_v46 = vrot.slane %v4287_v40, 1 }
  0xb9   : > { %v4262_v8 = vpop.permute.xlu1 %535  ;;  %v625_v34 = vsel %vm609_vm5, %v608_v7, %v461_v36  ;;  %v604_v7 = vsel %vm592_vm4, %v3754_v39, %v4107_v22 }
  0xba   : > { %v4271_v37 = vsel %vm626_vm6, %v625_v34, %v550_v9  ;;  %v1506_v9 = vshrl.u32 %v4258_v33, 16  ;;  %v1890_v33 = vor.u32 %v1889_v59, %v1885_v50  ;;  %v621_v39 = vsel %vm609_vm5, %v604_v7, %v4230_v26  ;;  %v4377_v7 = vld [vmem:[%s3693_s25 + $0x24] sm:$0xff] }
  0xbb   : > { %v596_v26 = vsel %vm592_vm4, %v3568_v11, %v4158_v62  ;;  %v2418_v50 = vshrl.u32 %v4334_v30, 16  ;;  %v2529_v11 = vrot.slane %v4334_v30, 1 }
  0xbc   : > { %981 = vrot.lane.b32.xlu2 %v924_v18, %s3631_s28  ;;  %v1508_v1 = vrot.slane %v1506_v9, 1  ;;  %v1895_v3 = vsel %vm308_vm0, %v1890_v33, %v1894_v0  ;;  %v2037_v9 = vrot.slane %v1887_v45, 2  ;;  %v1996_v45 = vrot.slane %v4268_v16, 1  ;;  %v3570_v0 = vld [vmem:[%s3693_s25 + $0x30] sm:$0xff] }
  0xbe   : > { %v587_v28 = vpop.permute.xlu2 %586  ;;  %985 = vrot.lane.b32.xlu0 %v942_v44, %s3631_s28  ;;  %v1510_v15 = vor.u32 %v1509_v32, %v1508_v1  ;;  %v2401_v44 = vunpack.c.l.b16 %v3399_v52  ;;  %v2038_v1 = vor.u32 %v2037_v9, %v2036_v19 }
  0xbf   : > { %1025 = vrot.lane.b32.xlu1 %v1006_v54, %s3632_s29  ;;  %v3567_v54 = vld [vmem:[%s3693_s25] sm:$0xff] }
  0xc0   : > { %v540_v35 = vpop.permute.xlu0 %539  ;;  %v594_v38 = vsel %vm592_vm4, %v3567_v54, %v4130_v58  ;;  %v1511_v41 = vsel %vm462_vm2, %v1505_v6, %v1510_v15 }
  0xc1   : > { %v4292_v27 = vpop.permute.xlu1 %541  ;;  %v632_v51 = vsel %vm626_vm6, %v615_v47, %v540_v35  ;;  %v4344_v47 = vpack.c.b16 %v2401_v44, %v2401_v44  ;;  %v2124_v35 = vrot.slane %v4268_v16, 2 }
  0xc2   : > { %v4298_v56 = vsel %vm643_vm7, %v632_v51, %v581_v29  ;;  %v606_v29 = vsel %vm592_vm4, %v3788_v63, %v4182_v10  ;;  %v2039_v63 = vshrl.u32 %v4287_v40, 16  ;;  %v2420_v51 = vshll.u32 %v4334_v30, 16 }
  0xc3   : > { %v623_v34 = vsel %vm609_vm5, %v606_v29, %v4152_v60  ;;  %v613_v60 = vsel %vm609_vm5, %v596_v26, %v4204_v24  ;;  %v2125_v24 = vrot.slane %v4287_v40, 2  ;;  %v2569_v29 = vrot.slane %v2418_v50, 1 }
  0xc4   : > { %1487 = vrot.lane.b32.xlu2 %v1465_v2, %s3629_s26  ;;  %v2041_v58 = vrot.slane %v2039_v63, 1  ;;  %v611_v2 = vsel %vm609_vm5, %v594_v38, %v4070_v13  ;;  %v630_v14 = vsel %vm626_vm6, %v613_v60, %v4175_v53  ;;  %v2425_v13 = vshll.u32 %v4344_v47, 16  ;;  %v3329_v60 = vld [vmem:[%s3693_s25 + $0x38] sm:$0x3] }
  0xc5   : > { %v628_v16 = vsel %vm626_vm6, %v611_v2, %v4262_v8  ;;  %v2126_v61 = vsel %vm551_vm3, %v2124_v35, %v2125_v24  ;;  %v1998_v53 = vsel %vm421_vm1, %v1996_v45, %v1997_v46  ;;  %v2422_v12 = vrot.slane %v2420_v51, 1  ;;  %v4414_v45 = vld [vmem:[%s3693_s25 + $0x30] sm:$0xff] }
  0xc6   : > { %v4312_v36 = vpop.permute.xlu2 %851  ;;  %1021 = vrot.lane.b32.xlu0 %v1000_v57, %s3632_s29  ;;  %v3569_v57 = vld [vmem:[%s3693_s25 + $0x24] sm:$0xff]  ;;  %v2043_v32 = vor.u32 %v2042_v25, %v2041_v58  ;;  %v1336_v8 = vunpack.c.l.b16 %v3256_v20  ;;  %v2570_v52 = vrot.slane %v2420_v51, 2  ;;  %v2575_v15 = vrot.slane %v2425_v13, 2 }
  0xc7   : > { %1447 = vrot.lane.b32.xlu1 %v1362_v55, %s3630_s27  ;;  %v2572_v55 = vshrl.u32 %v4344_v47, 16  ;;  %v2423_v44 = vor.u32 %v2422_v12, %v2418_v50  ;;  %v1364_v58 = vshrl.u32 %v4377_v7, 16  ;;  %v1869_v46 = vunpack.c.l.b16 %v3329_v60 }
  0xc8   : > { %v546_v22 = vpop.permute.xlu0 %545  ;;  %v2044_v33 = vsel %vm462_vm2, %v2038_v1, %v2043_v32  ;;  %v4392_v54 = vpack.c.b16 %v1336_v8, %v1336_v8  ;;  %v2657_v2 = vrot.slane %v4334_v30, 2  ;;  %v2658_v20 = vrot.slane %v4344_v47, 2 }
  0xc9   : > { %v548_v10 = vpop.permute.xlu1 %547  ;;  %v638_v18 = vsel %vm626_vm6, %v621_v39, %v546_v22  ;;  %v2574_v6 = vrot.slane %v2572_v55, 1  ;;  %v602_v39 = vsel %vm592_vm4, %v3570_v0, %v4091_v5  ;;  %v2571_v22 = vor.u32 %v2570_v52, %v2569_v29 }
  0xca   : > { %v4331_v42 = vsel %vm626_vm6, %v623_v34, %v548_v10  ;;  %v4342_v62 = vsel %vm643_vm7, %v638_v18, %v587_v28  ;;  %v600_v28 = vsel %vm592_vm4, %v3569_v57, %v4161_v43  ;;  %v619_v10 = vsel %vm609_vm5, %v602_v39, %v4227_v48 }
  0xcb   : > { %v2576_v63 = vor.u32 %v2575_v15, %v2574_v6  ;;  %v617_v34 = vsel %vm609_vm5, %v600_v28, %v4125_v17  ;;  %v1366_v5 = vshll.u32 %v4377_v7, 16  ;;  %v2530_v17 = vrot.slane %v4344_v47, 1 }
  0xcc   : > { %1615 = vrot.lane.b32.xlu2 %v1593_v49, %s3632_s29  ;;  %v2427_v49 = vrot.slane %v2425_v13, 1  ;;  %v634_v38 = vsel %vm626_vm6, %v617_v34, %v4292_v27  ;;  %v636_v19 = vsel %vm626_vm6, %v619_v10, %v4198_v21  ;;  %v1371_v35 = vshll.u32 %v4392_v54, 16 }
  0xcd   : > { %v1368_v25 = vrot.slane %v1366_v5, 1  ;;  %v2531_v24 = vsel %vm421_vm1, %v2529_v11, %v2530_v17  ;;  %v1515_v51 = vshrl.u32 %v4392_v54, 16  ;;  %v1466_v21 = vrot.slane %v4377_v7, 1 }
  0xce   : > { %v4348_v23 = vpop.permute.xlu2 %857  ;;  %1575 = vrot.lane.b32.xlu0 %v1511_v41, %s3631_s28  ;;  %v2577_v41 = vsel %vm462_vm2, %v2571_v22, %v2576_v63  ;;  %v2428_v27 = vsel %vm308_vm0, %v2423_v44, %v2427_v49  ;;  %v1467_v57 = vrot.slane %v4392_v54, 1  ;;  %v1512_v32 = vrot.slane %v1364_v58, 1  ;;  %v3402_v44 = vld [vmem:[%s3693_s25 + $0x44] sm:$0x3]  ;;  %v3488_v49 = vld [vmem:[%s5368_s1 + $0xc] sm:$0xff] }
  0xcf   : > { %1980 = vrot.lane.b32.xlu1 %v1895_v3, %s3630_s27  ;;  %v4429_v50 = vpack.c.b16 %v1869_v46, %v1869_v46  ;;  %v1513_v55 = vrot.slane %v1366_v5, 2  ;;  %v1518_v12 = vrot.slane %v1371_v35, 2  ;;  %v2659_v52 = vsel %vm551_vm3, %v2657_v2, %v2658_v20 }
  0xd0   : > { %v577_v40 = vpop.permute.xlu0 %576  ;;  %v1468_v30 = vsel %vm421_vm1, %v1466_v21, %v1467_v57  ;;  %v1897_v15 = vshrl.u32 %v4414_v45, 16  ;;  %v1594_v39 = vrot.slane %v4377_v7, 2  ;;  %v2402_v17 = vunpack.c.l.b16 %v3402_v44 }
  0xd1   : > { %v579_v59 = vpop.permute.xlu1 %578  ;;  %v4367_v43 = vsel %vm643_vm7, %v628_v16, %v577_v40  ;;  %v1373_v16 = vrot.slane %v1371_v35, 1  ;;  %v3224_v40 = vld [vmem:[%s5368_s1 + $0x14] sm:$0x3]  ;;  %v1904_v0 = vshll.u32 %v4429_v50, 16  ;;  %v1514_v63 = vor.u32 %v1513_v55, %v1512_v32 }
  0xd2   : > { %v4374_v31 = vsel %vm643_vm7, %v630_v14, %v579_v59  ;;  %v1369_v14 = vor.u32 %v1368_v25, %v1364_v58  ;;  %v1899_v59 = vshll.u32 %v4414_v45, 16  ;;  %v1108_v13 = vunpack.c.l.b16 %v3224_v40 }
  0xd3   : > { %v2048_v34 = vshrl.u32 %v4429_v50, 16  ;;  %v1906_v5 = vrot.slane %v1904_v0, 1  ;;  %v2127_v25 = vrot.slane %v4414_v45, 2  ;;  %v2128_v35 = vrot.slane %v4429_v50, 2 }
  0xd4   : > { %2148 = vrot.lane.b32.xlu2 %v2126_v61, %s3632_s29  ;;  %v1110_v8 = vpack.c.b16 %v1108_v13, %v1108_v13  ;;  %v1374_v6 = vsel %vm308_vm0, %v1369_v14, %v1373_v16  ;;  %v2046_v60 = vrot.slane %v1899_v59, 2  ;;  %v1999_v46 = vrot.slane %v4414_v45, 1  ;;  %v3259_v16 = vld [vmem:[%s3693_s25 + $0x38] sm:$0x3] }
  0xd5   : > { %v2000_v21 = vrot.slane %v4429_v50, 1  ;;  %v1337_v55 = vunpack.c.l.b16 %v3259_v16 }
  0xd6   : > { %v4388_v18 = vpop.permute.xlu2 %863  ;;  %2020 = vrot.lane.b32.xlu0 %v1998_v53, %s3629_s26  ;;  %v1517_v53 = vrot.slane %v1515_v51, 1  ;;  %v4475_v51 = vpack.c.b16 %v2402_v17, %v2402_v17 }
  0xd7   : > { %2108 = vrot.lane.b32.xlu1 %v2044_v33, %s3631_s28  ;;  %v1901_v33 = vrot.slane %v1899_v59, 1  ;;  %v2001_v13 = vsel %vm421_vm1, %v1999_v46, %v2000_v21 }
  0xd8   : > { %v583_v48 = vpop.permute.xlu0 %582  ;;  %v1519_v10 = vor.u32 %v1518_v12, %v1517_v53  ;;  %v2437_v32 = vshll.u32 %v4475_v51, 16  ;;  %v2581_v59 = vshrl.u32 %v4475_v51, 16  ;;  %v4492_v53 = vld [vmem:[%s3693_s25 + $0x30] sm:$0xff]  ;;  %v2661_v21 = vrot.slane %v4475_v51, 2 }
  0xd9   : > { %v585_v26 = vpop.permute.xlu1 %584  ;;  %v4402_v3 = vsel %vm643_vm7, %v634_v38, %v583_v48 }
  0xda   : > { %v4407_v9 = vsel %vm643_vm7, %v636_v19, %v585_v26  ;;  %v1520_v11 = vsel %vm462_vm2, %v1514_v63, %v1519_v10  ;;  %v2045_v26 = vrot.slane %v1897_v15, 1  ;;  %v2051_v19 = vrot.slane %v1904_v0, 2 }
  0xdb   : > { %v1345_v10 = vpack.c.b16 %v1337_v55, %v1337_v55 }
  0xdc   : > { %2641 = vrot.lane.b32.xlu2 %v2577_v41, %s3631_s28  ;;  %v2050_v41 = vrot.slane %v2048_v34, 1  ;;  %v2047_v57 = vor.u32 %v2046_v60, %v2045_v26  ;;  %v1378_v34 = vshll.u32 %v4492_v53, 16  ;;  %v4512_v60 = vld [vmem:[%s3693_s25 + $0x3c] sm:$0xff] }
  0xdd   : > { %v1383_v26 = vshll.u32 %v1345_v10, 16  ;;  %v1909_v55 = vshrl.u32 %v4512_v60, 16 }
  0xde   : > { %v4420_v28 = vpop.permute.xlu2 %893  ;;  %2513 = vrot.lane.b32.xlu0 %v2428_v27, %s3630_s27  ;;  %v4465_v27 = vld [vmem:[%s3693_s25 + $0x3c] sm:$0xff]  ;;  %v2052_v2 = vor.u32 %v2051_v19, %v2050_v41  ;;  %v1380_v17 = vrot.slane %v1378_v34, 1 }
  0xdf   : > { %2553 = vrot.lane.b32.xlu1 %v2531_v24, %s3629_s26  ;;  %v2432_v20 = vshll.u32 %v4465_v27, 16  ;;  %v2430_v45 = vshrl.u32 %v4465_v27, 16  ;;  %v2660_v46 = vrot.slane %v4465_v27, 2 }
  0xe0   : > { %v589_v1 = vpop.permute.xlu0 %588  ;;  %v2053_v50 = vsel %vm462_vm2, %v2047_v57, %v2052_v2 }
  0xe1   : > { %v591_v61 = vpop.permute.xlu1 %590  ;;  %v4435_v47 = vsel %vm643_vm7, %v4331_v42, %v589_v1  ;;  %v1131_v42 = vsel %vm1129_vm8, %v1110_v8, 0  ;;  %v2129_v1 = vsel %vm551_vm3, %v2127_v25, %v2128_v35  ;;  %v2579_v12 = vrot.slane %v2432_v20, 2 }
  0xe2   : > { %v4439_v29 = vsel %vm643_vm7, %v4271_v37, %v591_v61  ;;  %3517 = vmatpush.bf16.msra.mxu2 %v1131_v42  ;;  %v1595_v37 = vrot.slane %v4392_v54, 2  ;;  %3518 = vmatpush.bf16.msra.mxu3 %v1131_v42  ;;  %v1902_v54 = vor.u32 %v1901_v33, %v1897_v15  ;;  %v2434_v61 = vrot.slane %v2432_v20, 1 }
  0xe3   : > { %3516 = vmatpush.bf16.msra.mxu1 %v1131_v42  ;;  %1139 = vmatpush.bf16.msra.mxu0 %v1131_v42  ;;  %v2583_v8 = vrot.slane %v2581_v59, 1  ;;  %v2439_v42 = vrot.slane %v2437_v32, 1  ;;  %v1469_v25 = vrot.slane %v4492_v53, 1  ;;  %v1470_v35 = vrot.slane %v1345_v10, 1 }
  0xe4   : > { %1489 = vrot.lane.b32.xlu2 %v1468_v30, %s3629_s26  ;;  %v1596_v48 = vsel %vm551_vm3, %v1594_v39, %v1595_v37  ;;  %v1907_v58 = vsel %vm308_vm0, %v1902_v54, %v1906_v5  ;;  %v2578_v30 = vrot.slane %v2430_v45, 1  ;;  %v2435_v0 = vor.u32 %v2434_v61, %v2430_v45 }
  0xe5   : > { %v2532_v39 = vrot.slane %v4465_v27, 1  ;;  %v2533_v37 = vrot.slane %v4475_v51, 1  ;;  %v1385_v20 = vrot.slane %v1383_v26, 1  ;;  %v1527_v61 = vrot.slane %v1383_v26, 2 }
  0xe6   : > { %v4449_v22 = vpop.permute.xlu2 %899  ;;  %2681 = vrot.lane.b32.xlu0 %v2659_v52, %s3632_s29  ;;  %3520 = vmatpush.bf16.msra.mxu2 %v3488_v49  ;;  %v2584_v52 = vrot.slane %v2437_v32, 2  ;;  %v2580_v15 = vor.u32 %v2579_v12, %v2578_v30  ;;  %v2440_v5 = vsel %vm308_vm0, %v2435_v0, %v2439_v42  ;;  %v1471_v32 = vsel %vm421_vm1, %v1469_v25, %v1470_v35 }
  0xe7   : > { %1449 = vrot.lane.b32.xlu1 %v1374_v6, %s3630_s27  ;;  %3521 = vmatpush.bf16.msra.mxu3 %v3488_v49  ;;  %v2662_v27 = vsel %vm551_vm3, %v2660_v46, %v2661_v21  ;;  %v1597_v0 = vrot.slane %v4492_v53, 2  ;;  %v1598_v42 = vrot.slane %v1345_v10, 2  ;;  %v3571_v46 = vld [vmem:[%s3693_s25 + $0x54] sm:$0xff] }
  0xe8   : > { %v4458_v7 = vpop.permute.xlu0 %853  ;;  %3519 = vmatpush.bf16.msra.mxu1 %v3488_v49  ;;  %1140 = vmatpush.bf16.msra.mxu0 %v3488_v49  ;;  %v2585_v33 = vor.u32 %v2584_v52, %v2583_v8  ;;  %v3332_v49 = vld [vmem:[%s3693_s25 + $0x44] sm:$0x3] }
  0xe9   : > { %v4460_v38 = vpop.permute.xlu1 %855  ;;  %v1870_v41 = vunpack.c.l.b16 %v3332_v49 }
  0xea   : > { %v2586_v54 = vsel %vm462_vm2, %v2580_v15, %v2585_v33 }
  0xeb   : > { %v4524_v16 = vpack.c.b16 %v1870_v41, %v1870_v41 }
  0xec   : > { %1617 = vrot.lane.b32.xlu2 %v1596_v48, %s3632_s29  ;;  %v2534_v48 = vsel %vm421_vm1, %v2532_v39, %v2533_v37  ;;  %v3405_v37 = vld [vmem:[%s3693_s25 + $0x50] sm:$0x3] }
  0xed   : > { %v1916_v12 = vshll.u32 %v4524_v16, 16  ;;  %v2057_v39 = vshrl.u32 %v4524_v16, 16 }
  0xee   : > { %v4471_v24 = vpop.permute.xlu2 %1027  ;;  %1577 = vrot.lane.b32.xlu0 %v1520_v11, %s3631_s28  ;;  %v1376_v11 = vshrl.u32 %v4492_v53, 16  ;;  %v1599_v53 = vsel %vm551_vm3, %v1597_v0, %v1598_v42  ;;  %v3572_v0 = vld [vmem:[%s3693_s25 + $0x24] sm:$0xff] }
  0xef   : > { %1982 = vrot.lane.b32.xlu1 %v1907_v58, %s3630_s27  ;;  %v1524_v58 = vshrl.u32 %v1345_v10, 16  ;;  %v2059_v41 = vrot.slane %v2057_v39, 1  ;;  %v1040_v42 = vsel %vm592_vm4, %v3572_v0, %v4460_v38 }
  0xf0   : > { %v4480_v14 = vpop.permute.xlu0 %859  ;;  %v1381_v2 = vor.u32 %v1380_v17, %v1376_v11  ;;  %v1521_v59 = vrot.slane %v1376_v11, 1  ;;  %v2403_v17 = vunpack.c.l.b16 %v3405_v37 }
  0xf1   : > { %v4483_v40 = vpop.permute.xlu1 %861  ;;  %v1044_v8 = vsel %vm592_vm4, %v4013_v4, %v4480_v14  ;;  %v1918_v14 = vrot.slane %v1916_v12, 1 }
  0xf2   : > { %v1386_v51 = vsel %vm308_vm0, %v1381_v2, %v1385_v20  ;;  %v4565_v2 = vpack.c.b16 %v2403_v17, %v2403_v17  ;;  %v2130_v20 = vrot.slane %v4512_v60, 2 }
  0xf4   : > { %2150 = vrot.lane.b32.xlu2 %v2129_v1, %s3632_s29  ;;  %v1911_v1 = vshll.u32 %v4512_v60, 16 }
  0xf6   : > { %v4495_v6 = vpop.permute.xlu2 %983  ;;  %2022 = vrot.lane.b32.xlu0 %v2001_v13, %s3629_s26  ;;  %v1522_v13 = vrot.slane %v1378_v34, 2  ;;  %v1913_v30 = vrot.slane %v1911_v1, 1  ;;  %v1060_v34 = vsel %vm609_vm5, %v1044_v8, %v4449_v22  ;;  %v2054_v22 = vrot.slane %v1909_v55, 1 }
  0xf7   : > { %2110 = vrot.lane.b32.xlu1 %v2053_v50, %s3631_s28  ;;  %v1526_v50 = vrot.slane %v1524_v58, 1  ;;  %v2055_v26 = vrot.slane %v1911_v1, 2  ;;  %v2060_v58 = vrot.slane %v1916_v12, 2  ;;  %v2131_v1 = vrot.slane %v4524_v16, 2 }
  0xf8   : > { %v4501_v63 = vpop.permute.xlu0 %865  ;;  %v1523_v15 = vor.u32 %v1522_v13, %v1521_v59  ;;  %v1914_v4 = vor.u32 %v1913_v30, %v1909_v55  ;;  %v2003_v59 = vrot.slane %v4524_v16, 1  ;;  %v2590_v16 = vshrl.u32 %v4565_v2, 16 }
  0xf9   : > { %v4504_v44 = vpop.permute.xlu1 %891  ;;  %v1528_v33 = vor.u32 %v1527_v61, %v1526_v50  ;;  %v2056_v13 = vor.u32 %v2055_v26, %v2054_v22  ;;  %v2132_v8 = vsel %vm551_vm3, %v2130_v20, %v2131_v1  ;;  %v3573_v26 = vld [vmem:[%s3693_s25 + $0xc] sm:$0xff]  ;;  %v662_v20 = vld [vmem:[%s5368_s1 + $0x8] sm:$0x3] }
  0xfa   : > { %v1919_v25 = vsel %vm308_vm0, %v1914_v4, %v1918_v14  ;;  %v2592_v14 = vrot.slane %v2590_v16, 1 }
  0xfb   : > { %v1529_v11 = vsel %vm462_vm2, %v1523_v15, %v1528_v33  ;;  %v4580_v33 = vld [vmem:[%s3693_s25 + $0x3c] sm:$0xff] }
  0xfc   : > { %2643 = vrot.lane.b32.xlu2 %v2586_v54, %s3631_s28 }
  0xfe   : > { %v4515_v19 = vpop.permute.xlu2 %1019  ;;  %2515 = vrot.lane.b32.xlu0 %v2440_v5, %s3630_s27 }
  0xff   : > { %2555 = vrot.lane.b32.xlu1 %v2534_v48, %s3629_s26  ;;  %v4549_v48 = vld [vmem:[%s3693_s25 + $0x48] sm:$0xff] }
 0x100   : > { %v4522_v57 = vpop.permute.xlu0 %895  ;;  %v2444_v35 = vshll.u32 %v4549_v48, 16  ;;  %v2442_v30 = vshrl.u32 %v4549_v48, 16 }
 0x101   : > { %v4527_v45 = vpop.permute.xlu1 %897 }
 0x102   : > { %v2446_v12 = vrot.slane %v2444_v35, 1  ;;  %v2588_v4 = vrot.slane %v2444_v35, 2 }
 0x104   : > { %1491 = vrot.lane.b32.xlu2 %v1471_v32, %s3629_s26  ;;  %v2002_v32 = vrot.slane %v4512_v60, 1  ;;  %v2449_v60 = vshll.u32 %v4565_v2, 16 }
 0x106   : > { %v4538_v52 = vpop.permute.xlu2 %905  ;;  %2683 = vrot.lane.b32.xlu0 %v2662_v27, %s3632_s29  ;;  %v3262_v27 = vld [vmem:[%s3693_s25 + $0x44] sm:$0x3]  ;;  %v2004_v39 = vsel %vm421_vm1, %v2002_v32, %v2003_v59  ;;  %v2451_v38 = vrot.slane %v2449_v60, 1 }
 0x107   : > { %1451 = vrot.lane.b32.xlu1 %v1386_v51, %s3630_s27 }
 0x108   : > { %v988_v49 = vpop.permute.xlu0 %987 }
 0x109   : > { %v904_v54 = vpop.permute.xlu1 %903  ;;  %v1076_v5 = vsel %vm626_vm6, %v1060_v34, %v988_v49  ;;  %v1338_v34 = vunpack.c.l.b16 %v3262_v27  ;;  %v2587_v49 = vrot.slane %v2442_v30, 1 }
 0x10a   : > { %v1092_v10 = vsel %vm643_vm7, %v1076_v5, %v4471_v24  ;;  %v1048_v24 = vsel %vm592_vm4, %v3571_v46, %v4388_v18  ;;  %v2061_v18 = vor.u32 %v2060_v58, %v2059_v41  ;;  %v1056_v5 = vsel %vm609_vm5, %v1040_v42, %v4522_v57 }
 0x10b   : > { %3233 = vmatmul.msk.bf16.vlgmr.msra.gmra.mxu2 %vm1112_vm9, %v1092_v10  ;;  %v1064_v50 = vsel %vm609_vm5, %v1048_v24, %v904_v54  ;;  %v2593_v54 = vrot.slane %v2449_v60, 2  ;;  %v2589_v17 = vor.u32 %v2588_v4, %v2587_v49  ;;  %v1036_v41 = vsel %vm592_vm4, %v3573_v26, %v4312_v36  ;;  %v3309_v36 = vld [vmem:[%s5368_s1 + $0x20] sm:$0x3] }
 0x10c   : > { %1619 = vrot.lane.b32.xlu2 %v1599_v53, %s3632_s29  ;;  %v2062_v37 = vsel %vm462_vm2, %v2056_v13, %v2061_v18  ;;  %v2447_v53 = vor.u32 %v2446_v12, %v2442_v30  ;;  %v4600_v58 = vpack.c.b16 %v1338_v34, %v1338_v34  ;;  %v1052_v57 = vsel %vm609_vm5, %v1036_v41, %v4504_v44  ;;  %v3335_v44 = vld [vmem:[%s3693_s25 + $0x50] sm:$0x3]  ;;  %v3382_v41 = vld [vmem:[%s5368_s1 + $0x2c] sm:$0x3] }
 0x10d   : > { %v2594_v22 = vor.u32 %v2593_v54, %v2592_v14  ;;  %v1072_v35 = vsel %vm626_vm6, %v1056_v5, %v4495_v6  ;;  %v2535_v46 = vrot.slane %v4549_v48, 1  ;;  %v2536_v24 = vrot.slane %v4565_v2, 1  ;;  %v3479_v54 = vld [vmem:[%s5368_s1] sm:$0xff]  ;;  %v3497_v5 = vld [vmem:[%s5368_s1 + $0x18] sm:$0xff] }
 0x10e   : > { %v4562_v21 = vpop.permute.xlu2 %1033  ;;  %1579 = vrot.lane.b32.xlu0 %v1529_v11, %s3631_s28  ;;  %v1390_v11 = vshll.u32 %v4580_v33, 16  ;;  %v1187_v6 = vunpack.c.l.b16 %v662_v20  ;;  %v1704_v13 = vunpack.c.l.b16 %v3309_v36  ;;  %v1871_v60 = vunpack.c.l.b16 %v3335_v44 }
 0x10f   : > { %1984 = vrot.lane.b32.xlu1 %v1919_v25, %s3630_s27  ;;  %v2595_v59 = vsel %vm462_vm2, %v2589_v17, %v2594_v22  ;;  %v2663_v34 = vrot.slane %v4549_v48, 2  ;;  %v2664_v49 = vrot.slane %v4565_v2, 2 }
 0x110   : > { %v992_v61 = vpop.permute.xlu0 %991  ;;  %v1392_v27 = vrot.slane %v1390_v11, 1  ;;  %v1189_v30 = vpack.c.b16 %v1187_v6, %v1187_v6  ;;  %v1706_v12 = vpack.c.b16 %v1704_v13, %v1704_v13  ;;  %v1531_v2 = vrot.slane %v1390_v11, 2 }
 0x111   : > { %v1032_v51 = vpop.permute.xlu1 %1031  ;;  %v1080_v55 = vsel %vm626_vm6, %v1064_v50, %v992_v61  ;;  %v2452_v50 = vsel %vm308_vm0, %v2447_v53, %v2451_v38  ;;  %v1388_v61 = vshrl.u32 %v4580_v33, 16  ;;  %v4647_v38 = vpack.c.b16 %v1871_v60, %v1871_v60 }
 0x112   : > { %v1096_v15 = vsel %vm643_vm7, %v1080_v55, %v1032_v51  ;;  %v1395_v55 = vshll.u32 %v4600_v58, 16  ;;  %v1208_v16 = vsel %vm1129_vm8, %v1189_v30, 0  ;;  %v1725_v0 = vsel %vm1129_vm8, %v1706_v12, 0 }
 0x113   : > { %3235 = vmatmul.msk.bf16.vlgmr.msra.gmra.mxu3 %vm1112_vm9, %v1096_v15  ;;  %v4627_v15 = vld [vmem:[%s3693_s25 + $0x48] sm:$0xff]  ;;  %1216 = vmatpush.bf16.msrb.mxu1 %v1208_v16  ;;  %v1393_v4 = vor.u32 %v1392_v27, %v1388_v61  ;;  %v1530_v22 = vrot.slane %v1388_v61, 1  ;;  %v2665_v20 = vsel %vm551_vm3, %v2663_v34, %v2664_v49  ;;  %v1601_v61 = vrot.slane %v4600_v58, 2 }
 0x114   : > { %2152 = vrot.lane.b32.xlu2 %v2132_v8, %s3632_s29  ;;  %v2537_v8 = vsel %vm421_vm1, %v2535_v46, %v2536_v24  ;;  %v1397_v14 = vrot.slane %v1395_v55, 1  ;;  %1733 = vmatpush.bf16.msrb.mxu2 %v1725_v0  ;;  %v1923_v17 = vshll.u32 %v4627_v15, 16  ;;  %v3574_v46 = vld [vmem:[%s3693_s25 + $0x48] sm:$0xff]  ;;  %v1921_v11 = vshrl.u32 %v4627_v15, 16 }
 0x115   : > { %v1046_v24 = vsel %vm592_vm4, %v3574_v46, %v4483_v40  ;;  %v1532_v6 = vor.u32 %v1531_v2, %v1530_v22  ;;  %v2066_v27 = vshrl.u32 %v4647_v38, 16  ;;  %v3455_v46 = vld [vmem:[%s5368_s1 + $0x38] sm:$0x3] }
 0x116   : > { %v4592_v10 = vpop.permute.xlu2 %981  ;;  %2024 = vrot.lane.b32.xlu0 %v2004_v39, %s3629_s26  ;;  %v1472_v39 = vrot.slane %v4580_v33, 1  ;;  %v1398_v36 = vsel %vm308_vm0, %v1393_v4, %v1397_v14  ;;  %v2063_v34 = vrot.slane %v1921_v11, 1  ;;  %v2064_v4 = vrot.slane %v1923_v17, 2 }
 0x117   : > { %2112 = vrot.lane.b32.xlu1 %v2062_v37, %s3631_s28  ;;  %v1473_v37 = vrot.slane %v4600_v58, 1  ;;  %1217 = vmatpush.bf16.msrb.mxu1 %v3479_v54  ;;  %v2068_v14 = vrot.slane %v2066_v27, 1 }
 0x118   : > { %v1024_v25 = vpop.permute.xlu0 %1023  ;;  %1734 = vmatpush.bf16.msrb.mxu2 %v3497_v5  ;;  %v4689_v5 = vld [vmem:[%s3693_s25 + $0x54] sm:$0xff] }
 0x119   : > { %v980_v1 = vpop.permute.xlu1 %979  ;;  %v1088_v32 = vsel %vm643_vm7, %v1072_v35, %v1024_v25  ;;  %v1474_v26 = vsel %vm421_vm1, %v1472_v39, %v1473_v37  ;;  %v1536_v25 = vrot.slane %v1395_v55, 2  ;;  %v2237_v35 = vunpack.c.l.b16 %v3382_v41  ;;  %v3575_v55 = vld [vmem:[%s3693_s25 + $0x60] sm:$0xff] }
 0x11a   : > { %v1068_v18 = vsel %vm626_vm6, %v1052_v57, %v980_v1  ;;  %3231 = vmatmul.msk.bf16.vlgmr.msra.gmra.mxu1 %vm1112_vm9, %v1088_v32  ;;  %v1925_v1 = vrot.slane %v1923_v17, 1  ;;  %v1928_v32 = vshll.u32 %v4647_v38, 16  ;;  %v1050_v30 = vsel %vm592_vm4, %v3575_v55, %v4501_v63  ;;  %v3506_v39 = vld [vmem:[%s5368_s1 + $0x24] sm:$0xff] }
 0x11b   : > { %v1084_v51 = vsel %vm643_vm7, %v1068_v18, %v4515_v19  ;;  %v1533_v19 = vshrl.u32 %v4600_v58, 16  ;;  %v2239_v44 = vpack.c.b16 %v2237_v35, %v2237_v35  ;;  %v2134_v41 = vrot.slane %v4647_v38, 2 }
 0x11c   : > { %3229 = vmatmul.msk.bf16.vlgmr.msra.gmra.mxu0 %vm1112_vm9, %v1084_v51  ;;  %2645 = vrot.lane.b32.xlu2 %v2595_v59, %s3631_s28  ;;  %v3408_v51 = vld [vmem:[%s3693_s25 + $0x5c] sm:$0x3]  ;;  %v1926_v60 = vor.u32 %v1925_v1, %v1921_v11  ;;  %v1930_v16 = vrot.slane %v1928_v32, 1  ;;  %v2069_v54 = vrot.slane %v1928_v32, 2 }
 0x11d   : > { %v1535_v57 = vrot.slane %v1533_v19, 1  ;;  %v2258_v18 = vsel %vm1129_vm8, %v2239_v44, 0  ;;  %v2404_v49 = vunpack.c.l.b16 %v3408_v51  ;;  %v3577_v11 = vld [vmem:[%s3693_s25 + $0x18] sm:$0xff]  ;;  %v2454_v44 = vshrl.u32 %v4689_v5, 16  ;;  %v4727_v51 = vld [vmem:[%s3693_s25 + $0x48] sm:$0xff] }
 0x11e   : > { %2517 = vrot.lane.b32.xlu0 %v2452_v50, %s3630_s27  ;;  %v4634_v42 = vpop.permute.xlu2 %1487  ;;  %v1600_v50 = vrot.slane %v4580_v33, 2  ;;  %2266 = vmatpush.bf16.msrb.mxu3 %v2258_v18  ;;  %v1066_v33 = vsel %vm609_vm5, %v1050_v30, %v4538_v52  ;;  %v2070_v35 = vor.u32 %v2069_v54, %v2068_v14  ;;  %v1038_v1 = vsel %vm592_vm4, %v3577_v11, %v4458_v7 }
 0x11f   : > { %2557 = vrot.lane.b32.xlu1 %v2537_v8, %s3629_s26  ;;  %v1537_v40 = vor.u32 %v1536_v25, %v1535_v57  ;;  %v4699_v17 = vpack.c.b16 %v2404_v49, %v2404_v49  ;;  %v2006_v57 = vrot.slane %v4647_v38, 1  ;;  %v2065_v25 = vor.u32 %v2064_v4, %v2063_v34 }
 0x120   : > { %v902_v53 = vpop.permute.xlu0 %901  ;;  %v1602_v19 = vsel %vm551_vm3, %v1600_v50, %v1601_v61  ;;  %v2596_v30 = vrot.slane %v2454_v44, 1  ;;  %v1402_v4 = vshll.u32 %v4727_v51, 16  ;;  %v2666_v11 = vrot.slane %v4689_v5, 2 }
 0x121   : > { %v990_v48 = vpop.permute.xlu1 %989  ;;  %v1062_v59 = vsel %vm609_vm5, %v1046_v24, %v902_v53  ;;  %v1538_v37 = vsel %vm462_vm2, %v1532_v6, %v1537_v40  ;;  %v1931_v53 = vsel %vm308_vm0, %v1926_v60, %v1930_v16  ;;  %v2461_v40 = vshll.u32 %v4699_v17, 16 }
 0x122   : > { %v1078_v8 = vsel %vm626_vm6, %v1062_v59, %v990_v48  ;;  %2267 = vmatpush.bf16.msrb.mxu3 %v3506_v39  ;;  %v3576_v48 = vld [vmem:[%s3693_s25 + $0x30] sm:$0xff]  ;;  %v2599_v18 = vshrl.u32 %v4699_v17, 16  ;;  %v2071_v7 = vsel %vm462_vm2, %v2065_v25, %v2070_v35  ;;  %v1054_v16 = vsel %vm609_vm5, %v1038_v1, %v4420_v28 }
 0x123   : > { %v1042_v22 = vsel %vm592_vm4, %v3576_v48, %v4348_v23  ;;  %v2456_v23 = vshll.u32 %v4689_v5, 16  ;;  %v2602_v60 = vrot.slane %v2461_v40, 2  ;;  %v1070_v34 = vsel %vm626_vm6, %v1054_v16, %v4592_v10  ;;  %v4758_v35 = vld [vmem:[%s3693_s25 + $0x54] sm:$0xff] }
 0x124   : > { %1493 = vrot.lane.b32.xlu2 %v1474_v26, %s3629_s26  ;;  %v2133_v26 = vrot.slane %v4627_v15, 2  ;;  %v1058_v24 = vsel %vm609_vm5, %v1042_v22, %v4527_v45  ;;  %v3578_v22 = vld [vmem:[%s3693_s25 + $0x18] sm:$0xff]  ;;  %v2667_v1 = vrot.slane %v4699_v17, 2 }
 0x125   : > { %v2458_v61 = vrot.slane %v2456_v23, 1 }
 0x126   : > { %2685 = vrot.lane.b32.xlu0 %v2665_v20, %s3632_s29  ;;  %v4664_v13 = vpop.permute.xlu2 %1615  ;;  %v2135_v59 = vsel %vm551_vm3, %v2133_v26, %v2134_v41  ;;  %v1400_v41 = vshrl.u32 %v4727_v51, 16 }
 0x127   : > { %1453 = vrot.lane.b32.xlu1 %v1398_v36, %s3630_s27  ;;  %v3265_v36 = vld [vmem:[%s3693_s25 + $0x50] sm:$0x3]  ;;  %v2459_v39 = vor.u32 %v2458_v61, %v2454_v44 }
 0x128   : > { %v1030_v12 = vpop.permute.xlu0 %1029  ;;  %v1339_v27 = vunpack.c.l.b16 %v3265_v36  ;;  %v1475_v36 = vrot.slane %v4727_v51, 1 }
 0x129   : > { %v994_v58 = vpop.permute.xlu1 %993  ;;  %v1094_v0 = vsel %vm643_vm7, %v1078_v8, %v1030_v12  ;;  %v2597_v12 = vrot.slane %v2456_v23, 2  ;;  %v2601_v8 = vrot.slane %v2599_v18, 1  ;;  %v1540_v18 = vrot.slane %v1402_v4, 2 }
 0x12a   : > { %v1082_v63 = vsel %vm626_vm6, %v1066_v33, %v994_v58  ;;  %3234 = vmatmul.msk.bf16.gmra.mxu2 %vm1112_vm9, %v1094_v0  ;;  %v2463_v33 = vrot.slane %v2461_v40, 1  ;;  %v3515_v0 = vld [vmem:[%s5368_s1 + $0x30] sm:$0xff] }
 0x12b   : > { %v1098_v52 = vsel %vm643_vm7, %v1082_v63, %v4562_v21  ;;  %v2005_v21 = vrot.slane %v4627_v15, 1  ;;  %v2770_v15 = vunpack.c.l.b16 %v3455_v46  ;;  %v2538_v63 = vrot.slane %v4689_v5, 1 }
 0x12c   : > { %3236 = vmatmul.msk.bf16.gmra.mxu3 %vm1112_vm9, %v1098_v52  ;;  %1621 = vrot.lane.b32.xlu2 %v1602_v19, %s3632_s29  ;;  %v2598_v19 = vor.u32 %v2597_v12, %v2596_v30  ;;  %v2603_v28 = vor.u32 %v2602_v60, %v2601_v8  ;;  %v4744_v52 = vpack.c.b16 %v1339_v27, %v1339_v27  ;;  %v1933_v30 = vshrl.u32 %v4758_v35, 16  ;;  %v3579_v60 = vld [vmem:[%s3693_s25 + $0x24] sm:$0xff] }
 0x12d   : > { %v2772_v45 = vpack.c.b16 %v2770_v15, %v2770_v15  ;;  %v2007_v50 = vsel %vm421_vm1, %v2005_v21, %v2006_v57  ;;  %v2464_v10 = vsel %vm308_vm0, %v2459_v39, %v2463_v33  ;;  %v1404_v57 = vrot.slane %v1402_v4, 1 }
 0x12e   : > { %1581 = vrot.lane.b32.xlu0 %v1538_v37, %s3631_s28  ;;  %v4701_v2 = vpop.permute.xlu2 %2148  ;;  %v2539_v37 = vrot.slane %v4699_v17, 1  ;;  %v2604_v48 = vsel %vm462_vm2, %v2598_v19, %v2603_v28  ;;  %v1407_v25 = vshll.u32 %v4744_v52, 16  ;;  %v1476_v15 = vrot.slane %v4744_v52, 1 }
 0x12f   : > { %1986 = vrot.lane.b32.xlu1 %v1931_v53, %s3630_s27  ;;  %v2791_v55 = vsel %vm1129_vm8, %v2772_v45, 0  ;;  %v3338_v53 = vld [vmem:[%s3693_s25 + $0x5c] sm:$0x3]  ;;  %v1539_v45 = vrot.slane %v1400_v41, 1  ;;  %v2668_v27 = vsel %vm551_vm3, %v2666_v11, %v2667_v1  ;;  %v1604_v19 = vrot.slane %v4744_v52, 2 }
 0x130   : > { %v986_v20 = vpop.permute.xlu0 %985  ;;  %2799 = vmatpush.bf16.msrb.mxu0 %v2791_v55  ;;  %v2540_v26 = vsel %vm421_vm1, %v2538_v63, %v2539_v37  ;;  %v1872_v23 = vunpack.c.l.b16 %v3338_v53  ;;  %v1409_v44 = vrot.slane %v1407_v25, 1  ;;  %v1545_v17 = vrot.slane %v1407_v25, 2  ;;  %v3411_v63 = vld [vmem:[%s3693_s25 + $0x68] sm:$0x3] }
 0x131   : > { %v1074_v38 = vsel %vm626_vm6, %v1058_v24, %v986_v20  ;;  %v1026_v32 = vpop.permute.xlu1 %1025  ;;  %v1542_v24 = vshrl.u32 %v4744_v52, 16  ;;  %v2405_v52 = vunpack.c.l.b16 %v3411_v63  ;;  %v2008_v25 = vrot.slane %v4758_v35, 1 }
 0x132   : > { %v1090_v6 = vsel %vm643_vm7, %v1074_v38, %v1026_v32  ;;  %v1405_v32 = vor.u32 %v1404_v57, %v1400_v41  ;;  %v4804_v41 = vld [vmem:[%s3693_s25 + $0x60] sm:$0xff] }
 0x133   : > { %3232 = vmatmul.msk.bf16.gmra.mxu1 %vm1112_vm9, %v1090_v6  ;;  %v1544_v61 = vrot.slane %v1542_v24, 1  ;;  %v2468_v1 = vshll.u32 %v4804_v41, 16 }
 0x134   : > { %2154 = vrot.lane.b32.xlu2 %v2135_v59, %s3632_s29  ;;  %2800 = vmatpush.bf16.msrb.mxu0 %v3515_v0  ;;  %v4772_v59 = vpack.c.b16 %v1872_v23, %v1872_v23  ;;  %v1410_v55 = vsel %vm308_vm0, %v1405_v32, %v1409_v44  ;;  %v1603_v0 = vrot.slane %v4727_v51, 2  ;;  %v4811_v23 = vpack.c.b16 %v2405_v52, %v2405_v52  ;;  %v3268_v32 = vld [vmem:[%s3693_s25 + $0x5c] sm:$0x3] }
 0x136   : > { %2026 = vrot.lane.b32.xlu0 %v2007_v50, %s3629_s26  ;;  %v4734_v58 = vpop.permute.xlu2 %2641  ;;  %v1477_v50 = vsel %vm421_vm1, %v1475_v36, %v1476_v15  ;;  %v1940_v8 = vshll.u32 %v4772_v59, 16  ;;  %v2075_v39 = vshrl.u32 %v4772_v59, 16  ;;  %v2137_v24 = vrot.slane %v4772_v59, 2 }
 0x137   : > { %2114 = vrot.lane.b32.xlu1 %v2071_v7, %s3631_s28  ;;  %v2009_v36 = vrot.slane %v4772_v59, 1 }
 0x138   : > { %v1022_v49 = vpop.permute.xlu0 %1021 }
 0x139   : > { %v1448_v14 = vpop.permute.xlu1 %1447  ;;  %v1086_v54 = vsel %vm643_vm7, %v1070_v34, %v1022_v49  ;;  %v1942_v34 = vrot.slane %v1940_v8, 1  ;;  %v2010_v59 = vsel %vm421_vm1, %v2008_v25, %v2009_v36 }
 0x13a   : > { %3230 = vmatmul.msk.bf16.gmra.mxu0 %vm1112_vm9, %v1086_v54  ;;  %v1632_v21 = vsel %vm592_vm4, %v3578_v22, %v1448_v14  ;;  %v1605_v14 = vsel %vm551_vm3, %v1603_v0, %v1604_v19  ;;  %v2541_v19 = vrot.slane %v4804_v41, 1 }
 0x13b   : > { %v1648_v46 = vsel %vm609_vm5, %v1632_v21, %v4634_v42  ;;  %v1935_v42 = vshll.u32 %v4758_v35, 16 }
 0x13c   : > { %2647 = vrot.lane.b32.xlu2 %v2604_v48, %s3631_s28  ;;  %v2072_v48 = vrot.slane %v1933_v30, 1 }
 0x13d   : > { %v1937_v12 = vrot.slane %v1935_v42, 1  ;;  %v2073_v21 = vrot.slane %v1935_v42, 2 }
 0x13e   : > { %2519 = vrot.lane.b32.xlu0 %v2464_v10, %s3630_s27  ;;  %v4765_v20 = vpop.permute.xlu2 %1489  ;;  %v2077_v10 = vrot.slane %v2075_v39, 1  ;;  %v2542_v39 = vrot.slane %v4811_v23, 1 }
 0x13f   : > { %2559 = vrot.lane.b32.xlu1 %v2540_v26, %s3629_s26  ;;  %v1938_v28 = vor.u32 %v1937_v12, %v1933_v30  ;;  %v2078_v26 = vrot.slane %v1940_v8, 2  ;;  %v2074_v15 = vor.u32 %v2073_v21, %v2072_v48  ;;  %v2606_v30 = vrot.slane %v2468_v1, 2 }
 0x140   : > { %v1576_v38 = vpop.permute.xlu0 %1575 }
 0x141   : > { %v1664_v6 = vsel %vm626_vm6, %v1648_v46, %v1576_v38  ;;  %v1981_v40 = vpop.permute.xlu1 %1980  ;;  %v1943_v57 = vsel %vm308_vm0, %v1938_v28, %v1942_v34  ;;  %v2136_v46 = vrot.slane %v4758_v35, 2  ;;  %v2079_v11 = vor.u32 %v2078_v26, %v2077_v10  ;;  %v4858_v26 = vld [vmem:[%s3693_s25 + $0x60] sm:$0xff] }
 0x142   : > { %v1680_v7 = vsel %vm643_vm7, %v1664_v6, %v4664_v13  ;;  %v1541_v13 = vor.u32 %v1540_v18, %v1539_v45  ;;  %v2165_v16 = vsel %vm592_vm4, %v3579_v60, %v1981_v40  ;;  %v3580_v6 = vld [vmem:[%s3693_s25 + $0x30] sm:$0xff]  ;;  %v2466_v45 = vshrl.u32 %v4804_v41, 16 }
 0x143   : > { %3241 = vmatmul.msk.bf16.vlgmr.msrb.gmra.mxu1 %vm1112_vm9, %v4367_v43  ;;  %3314 = vmatmul.msk.bf16.vlgmr.msrb.gmra.mxu2 %vm1112_vm9, %v1680_v7  ;;  %v1546_v43 = vor.u32 %v1545_v17, %v1544_v61  ;;  %v2138_v42 = vsel %vm551_vm3, %v2136_v46, %v2137_v24  ;;  %v2473_v18 = vshll.u32 %v4811_v23, 16  ;;  %v2080_v7 = vsel %vm462_vm2, %v2074_v15, %v2079_v11 }
 0x144   : > { %1495 = vrot.lane.b32.xlu2 %v1477_v50, %s3629_s26  ;;  %v2608_v50 = vshrl.u32 %v4811_v23, 16  ;;  %v2470_v61 = vrot.slane %v2468_v1, 1  ;;  %v1340_v17 = vunpack.c.l.b16 %v3268_v32  ;;  %v2669_v11 = vrot.slane %v4804_v41, 2 }
 0x145   : > { %v1547_v53 = vsel %vm462_vm2, %v1541_v13, %v1546_v43  ;;  %v2611_v8 = vrot.slane %v2473_v18, 2  ;;  %v2475_v0 = vrot.slane %v2473_v18, 1  ;;  %v2670_v1 = vrot.slane %v4811_v23, 2 }
 0x146   : > { %2687 = vrot.lane.b32.xlu0 %v2668_v27, %s3632_s29  ;;  %v4790_v33 = vpop.permute.xlu2 %1617  ;;  %v4832_v27 = vld [vmem:[%s3693_s25 + $0x54] sm:$0xff]  ;;  %v2610_v12 = vrot.slane %v2608_v50, 1  ;;  %v2471_v43 = vor.u32 %v2470_v61, %v2466_v45  ;;  %v4844_v28 = vpack.c.b16 %v1340_v17, %v1340_v17 }
 0x147   : > { %1455 = vrot.lane.b32.xlu1 %v1410_v55, %s3630_s27  ;;  %v2605_v55 = vrot.slane %v2466_v45, 1  ;;  %v1414_v34 = vshll.u32 %v4832_v27, 16  ;;  %v1478_v36 = vrot.slane %v4832_v27, 1  ;;  %v2671_v61 = vsel %vm551_vm3, %v2669_v11, %v2670_v1 }
 0x148   : > { %v2021_v37 = vpop.permute.xlu0 %2020  ;;  %v2476_v52 = vsel %vm308_vm0, %v2471_v43, %v2475_v0  ;;  %v1419_v10 = vshll.u32 %v4844_v28, 16  ;;  %v1551_v46 = vshrl.u32 %v4844_v28, 16  ;;  %v1479_v15 = vrot.slane %v4844_v28, 1 }
 0x149   : > { %v2181_v49 = vsel %vm609_vm5, %v2165_v16, %v2021_v37  ;;  %v2109_v4 = vpop.permute.xlu1 %2108  ;;  %v2607_v60 = vor.u32 %v2606_v30, %v2605_v55  ;;  %v2612_v16 = vor.u32 %v2611_v8, %v2610_v12  ;;  %v1416_v21 = vrot.slane %v1414_v34, 1  ;;  %v3582_v8 = vld [vmem:[%s3693_s25 + $0x30] sm:$0xff] }
 0x14a   : > { %v2197_v54 = vsel %vm626_vm6, %v2181_v49, %v2109_v4  ;;  %v1549_v18 = vrot.slane %v1414_v34, 2  ;;  %v1480_v50 = vsel %vm421_vm1, %v1478_v36, %v1479_v15  ;;  %v1554_v23 = vrot.slane %v1419_v10, 2 }
 0x14b   : > { %v2213_v22 = vsel %vm643_vm7, %v2197_v54, %v4701_v2  ;;  %v2613_v54 = vsel %vm462_vm2, %v2607_v60, %v2612_v16  ;;  %v1945_v55 = vshrl.u32 %v4858_v26, 16  ;;  %v1606_v16 = vrot.slane %v4832_v27, 2 }
 0x14c   : > { %3387 = vmatmul.msk.bf16.vlgmr.msrb.gmra.mxu3 %vm1112_vm9, %v2213_v22  ;;  %1623 = vrot.lane.b32.xlu2 %v1605_v14, %s3632_s29  ;;  %v3341_v14 = vld [vmem:[%s3693_s25 + $0x68] sm:$0x3]  ;;  %v1412_v22 = vshrl.u32 %v4832_v27, 16  ;;  %v1607_v43 = vrot.slane %v4844_v28, 2 }
 0x14e   : > { %1583 = vrot.lane.b32.xlu0 %v1547_v53, %s3631_s28  ;;  %v4813_v2 = vpop.permute.xlu2 %2150  ;;  %v3581_v53 = vld [vmem:[%s3693_s25 + $0x24] sm:$0xff]  ;;  %v1417_v32 = vor.u32 %v1416_v21, %v1412_v22  ;;  %v1548_v45 = vrot.slane %v1412_v22, 1  ;;  %v4904_v21 = vld [vmem:[%s3693_s25 + $0x6c] sm:$0xff] }
 0x14f   : > { %1988 = vrot.lane.b32.xlu1 %v1943_v57, %s3630_s27  ;;  %v1873_v57 = vunpack.c.l.b16 %v3341_v14 }
 0x150   : > { %v2514_v38 = vpop.permute.xlu0 %2513 }
 0x151   : > { %v2554_v44 = vpop.permute.xlu1 %2553  ;;  %v2698_v40 = vsel %vm592_vm4, %v3580_v6, %v2514_v38 }
 0x152   : > { %v2714_v13 = vsel %vm609_vm5, %v2698_v40, %v2554_v44  ;;  %v1421_v44 = vrot.slane %v1419_v10, 1 }
 0x153   : > { %3242 = vmatmul.msk.bf16.gmra.mxu1 %vm1112_vm9, %v4374_v31  ;;  %v2730_v63 = vsel %vm626_vm6, %v2714_v13, %v4734_v58  ;;  %v2543_v58 = vsel %vm421_vm1, %v2541_v19, %v2542_v39  ;;  %v3414_v19 = vld [vmem:[%s3693_s25 + $0x74] sm:$0x3] }
 0x154   : > { %2156 = vrot.lane.b32.xlu2 %v2138_v42, %s3632_s29  ;;  %v4872_v42 = vpack.c.b16 %v1873_v57, %v1873_v57  ;;  %v1422_v17 = vsel %vm308_vm0, %v1417_v32, %v1421_v44  ;;  %v2406_v28 = vunpack.c.l.b16 %v3414_v19  ;;  %v2011_v57 = vrot.slane %v4858_v26, 1  ;;  %v3271_v44 = vld [vmem:[%s3693_s25 + $0x68] sm:$0x3] }
 0x156   : > { %2028 = vrot.lane.b32.xlu0 %v2010_v59, %s3629_s26  ;;  %v4837_v31 = vpop.permute.xlu2 %2643  ;;  %v1952_v12 = vshll.u32 %v4872_v42, 16  ;;  %v2084_v0 = vshrl.u32 %v4872_v42, 16  ;;  %v2140_v36 = vrot.slane %v4872_v42, 2  ;;  %v2012_v15 = vrot.slane %v4872_v42, 1 }
 0x157   : > { %2116 = vrot.lane.b32.xlu1 %v2080_v7, %s3631_s28  ;;  %v1553_v7 = vrot.slane %v1551_v46, 1  ;;  %v2139_v46 = vrot.slane %v4858_v26, 2 }
 0x158   : > { %v2682_v37 = vpop.permute.xlu0 %2681  ;;  %v2087_v22 = vrot.slane %v1952_v12, 2  ;;  %v2013_v42 = vsel %vm421_vm1, %v2011_v57, %v2012_v15 }
 0x159   : > { %v2746_v49 = vsel %vm643_vm7, %v2730_v63, %v2682_v37  ;;  %v1450_v4 = vpop.permute.xlu1 %1449  ;;  %v1954_v37 = vrot.slane %v1952_v12, 1 }
 0x15a   : > { %3460 = vmatmul.msk.bf16.vlgmr.msrb.gmra.mxu0 %vm1112_vm9, %v2746_v49  ;;  %v1634_v48 = vsel %vm592_vm4, %v3581_v53, %v1450_v4  ;;  %v1608_v4 = vsel %vm551_vm3, %v1606_v16, %v1607_v43  ;;  %v2081_v53 = vrot.slane %v1945_v55, 1 }
 0x15b   : > { %v1650_v25 = vsel %vm609_vm5, %v1634_v48, %v4765_v20  ;;  %v1947_v20 = vshll.u32 %v4858_v26, 16 }
 0x15c   : > { %2649 = vrot.lane.b32.xlu2 %v2613_v54, %s3631_s28 }
 0x15d   : > { %v1949_v30 = vrot.slane %v1947_v20, 1 }
 0x15e   : > { %2521 = vrot.lane.b32.xlu0 %v2476_v52, %s3630_s27  ;;  %v4865_v24 = vpop.permute.xlu2 %1491  ;;  %v2082_v52 = vrot.slane %v1947_v20, 2 }
 0x15f   : > { %2561 = vrot.lane.b32.xlu1 %v2543_v58, %s3629_s26  ;;  %v1950_v63 = vor.u32 %v1949_v30, %v1945_v55  ;;  %v2086_v58 = vrot.slane %v2084_v0, 1  ;;  %v2544_v0 = vrot.slane %v4904_v21, 1 }
 0x160   : > { %v1578_v38 = vpop.permute.xlu0 %1577  ;;  %v2083_v11 = vor.u32 %v2082_v52, %v2081_v53  ;;  %v3584_v53 = vld [vmem:[%s3693_s25 + $0x30] sm:$0xff] }
 0x161   : > { %v1666_v6 = vsel %vm626_vm6, %v1650_v25, %v1578_v38  ;;  %v1983_v40 = vpop.permute.xlu1 %1982  ;;  %v1955_v10 = vsel %vm308_vm0, %v1950_v63, %v1954_v37  ;;  %v4911_v25 = vpack.c.b16 %v2406_v28, %v2406_v28  ;;  %v2088_v1 = vor.u32 %v2087_v22, %v2086_v58 }
 0x162   : > { %v1682_v59 = vsel %vm643_vm7, %v1666_v6, %v4790_v33  ;;  %v1550_v33 = vor.u32 %v1549_v18, %v1548_v45  ;;  %v2167_v13 = vsel %vm592_vm4, %v3582_v8, %v1983_v40  ;;  %v2480_v38 = vshll.u32 %v4904_v21, 16  ;;  %v3583_v40 = vld [vmem:[%s3693_s25 + $0x3c] sm:$0xff] }
 0x163   : > { %3243 = vmatmul.msk.bf16.gmra.mxu1 %vm1112_vm9, %v4298_v56  ;;  %3315 = vmatmul.msk.bf16.gmra.mxu2 %vm1112_vm9, %v1682_v59  ;;  %v1555_v56 = vor.u32 %v1554_v23, %v1553_v7  ;;  %v2141_v6 = vsel %vm551_vm3, %v2139_v46, %v2140_v36  ;;  %v2478_v18 = vshrl.u32 %v4904_v21, 16  ;;  %v2617_v59 = vshrl.u32 %v4911_v25, 16 }
 0x164   : > { %1497 = vrot.lane.b32.xlu2 %v1480_v50, %s3629_s26  ;;  %v2485_v50 = vshll.u32 %v4911_v25, 16  ;;  %v2089_v7 = vsel %vm462_vm2, %v2083_v11, %v2088_v1  ;;  %v2482_v23 = vrot.slane %v2480_v38, 1  ;;  %v2615_v30 = vrot.slane %v2480_v38, 2 }
 0x165   : > { %v1556_v54 = vsel %vm462_vm2, %v1550_v33, %v1555_v56  ;;  %v2614_v55 = vrot.slane %v2478_v18, 1  ;;  %v2619_v12 = vrot.slane %v2617_v59, 1  ;;  %v2545_v19 = vrot.slane %v4911_v25, 1 }
 0x166   : > { %2689 = vrot.lane.b32.xlu0 %v2671_v61, %s3632_s29  ;;  %v4890_v60 = vpop.permute.xlu2 %1619  ;;  %v1341_v61 = vunpack.c.l.b16 %v3271_v44  ;;  %v2620_v33 = vrot.slane %v2485_v50, 2  ;;  %v2483_v16 = vor.u32 %v2482_v23, %v2478_v18  ;;  %v2487_v43 = vrot.slane %v2485_v50, 1 }
 0x167   : > { %1457 = vrot.lane.b32.xlu1 %v1422_v17, %s3630_s27  ;;  %v4932_v17 = vld [vmem:[%s3693_s25 + $0x60] sm:$0xff]  ;;  %v2546_v52 = vsel %vm421_vm1, %v2544_v0, %v2545_v19  ;;  %v2672_v38 = vrot.slane %v4904_v21, 2 }
 0x168   : > { %v2023_v39 = vpop.permute.xlu0 %2022  ;;  %v2621_v56 = vor.u32 %v2620_v33, %v2619_v12  ;;  %v4944_v37 = vpack.c.b16 %v1341_v61, %v1341_v61  ;;  %v1481_v11 = vrot.slane %v4932_v17, 1  ;;  %v3417_v19 = vld [vmem:[%s3693_s25 + $0x80] sm:$0x3] }
 0x169   : > { %v2183_v34 = vsel %vm609_vm5, %v2167_v13, %v2023_v39  ;;  %v2111_v49 = vpop.permute.xlu1 %2110  ;;  %v2616_v13 = vor.u32 %v2615_v30, %v2614_v55 }
 0x16a   : > { %v2199_v14 = vsel %vm626_vm6, %v2183_v34, %v2111_v49  ;;  %v1426_v34 = vshll.u32 %v4932_v17, 16  ;;  %v1431_v22 = vshll.u32 %v4944_v37, 16  ;;  %v1560_v36 = vshrl.u32 %v4944_v37, 16 }
 0x16b   : > { %v2215_v48 = vsel %vm643_vm7, %v2199_v14, %v4813_v2  ;;  %v3344_v14 = vld [vmem:[%s3693_s25 + $0x74] sm:$0x3]  ;;  %v1482_v1 = vrot.slane %v4944_v37, 1 }
 0x16c   : > { %3388 = vmatmul.msk.bf16.gmra.mxu3 %vm1112_vm9, %v2215_v48  ;;  %1625 = vrot.lane.b32.xlu2 %v1608_v4, %s3632_s29  ;;  %v2488_v48 = vsel %vm308_vm0, %v2483_v16, %v2487_v43  ;;  %v1428_v58 = vrot.slane %v1426_v34, 1  ;;  %v1874_v57 = vunpack.c.l.b16 %v3344_v14  ;;  %v1558_v59 = vrot.slane %v1426_v34, 2 }
 0x16d   : > { %v1562_v23 = vrot.slane %v1560_v36, 1  ;;  %v1609_v16 = vrot.slane %v4932_v17, 2  ;;  %v1610_v43 = vrot.slane %v4944_v37, 2  ;;  %v2407_v37 = vunpack.c.l.b16 %v3417_v19 }
 0x16e   : > { %1585 = vrot.lane.b32.xlu0 %v1556_v54, %s3631_s28  ;;  %v4913_v2 = vpop.permute.xlu2 %2152  ;;  %v2622_v54 = vsel %vm462_vm2, %v2616_v13, %v2621_v56 }
 0x16f   : > { %1990 = vrot.lane.b32.xlu1 %v1955_v10, %s3630_s27  ;;  %v4958_v10 = vld [vmem:[%s3693_s25 + $0x6c] sm:$0xff]  ;;  %v1611_v14 = vsel %vm551_vm3, %v1609_v16, %v1610_v43  ;;  %v5011_v36 = vpack.c.b16 %v2407_v37, %v2407_v37  ;;  %v3587_v37 = vld [vmem:[%s3693_s25 + $0x3c] sm:$0xff] }
 0x170   : > { %v2516_v32 = vpop.permute.xlu0 %2515  ;;  %v1957_v30 = vshrl.u32 %v4958_v10, 16 }
 0x171   : > { %v2556_v20 = vpop.permute.xlu1 %2555  ;;  %v2700_v45 = vsel %vm592_vm4, %v3583_v40, %v2516_v32  ;;  %v2673_v32 = vrot.slane %v4911_v25, 2  ;;  %v4972_v40 = vpack.c.b16 %v1874_v57, %v1874_v57  ;;  %v1563_v25 = vrot.slane %v1431_v22, 2 }
 0x172   : > { %v2716_v8 = vsel %vm609_vm5, %v2700_v45, %v2556_v20 }
 0x173   : > { %3244 = vmatmul.msk.bf16.gmra.mxu1 %vm1112_vm9, %v4402_v3  ;;  %v2732_v63 = vsel %vm626_vm6, %v2716_v8, %v4837_v31  ;;  %v1424_v31 = vshrl.u32 %v4932_v17, 16  ;;  %v2674_v61 = vsel %vm551_vm3, %v2672_v38, %v2673_v32  ;;  %v1964_v33 = vshll.u32 %v4972_v40, 16  ;;  %v3585_v8 = vld [vmem:[%s3693_s25 + $0x3c] sm:$0xff] }
 0x174   : > { %2158 = vrot.lane.b32.xlu2 %v2141_v6, %s3632_s29  ;;  %v1433_v6 = vrot.slane %v1431_v22, 1  ;;  %v2093_v0 = vshrl.u32 %v4972_v40, 16  ;;  %v5004_v22 = vld [vmem:[%s3693_s25 + $0x78] sm:$0xff]  ;;  %v2015_v38 = vrot.slane %v4972_v40, 1 }
 0x175   : > { %v1429_v20 = vor.u32 %v1428_v58, %v1424_v31  ;;  %v1557_v50 = vrot.slane %v1424_v31, 1  ;;  %v1966_v34 = vrot.slane %v1964_v33, 1  ;;  %v2096_v58 = vrot.slane %v1964_v33, 2 }
 0x176   : > { %2030 = vrot.lane.b32.xlu0 %v2013_v42, %s3629_s26  ;;  %v4937_v3 = vpop.permute.xlu2 %2645  ;;  %v1483_v42 = vsel %vm421_vm1, %v1481_v11, %v1482_v1  ;;  %v2095_v31 = vrot.slane %v2093_v0, 1  ;;  %v2142_v11 = vrot.slane %v4958_v10, 2  ;;  %v2143_v1 = vrot.slane %v4972_v40, 2 }
 0x177   : > { %2118 = vrot.lane.b32.xlu1 %v2089_v7, %s3631_s28  ;;  %v1434_v55 = vsel %vm308_vm0, %v1429_v20, %v1433_v6  ;;  %v2492_v20 = vshll.u32 %v5004_v22, 16  ;;  %v2547_v0 = vrot.slane %v5004_v22, 1 }
 0x178   : > { %v2684_v39 = vpop.permute.xlu0 %2683 }
 0x179   : > { %v1452_v49 = vpop.permute.xlu1 %1451  ;;  %v2748_v4 = vsel %vm643_vm7, %v2732_v63, %v2684_v39  ;;  %v2624_v33 = vrot.slane %v2492_v20, 2 }
 0x17a   : > { %3461 = vmatmul.msk.bf16.gmra.mxu0 %vm1112_vm9, %v2748_v4  ;;  %v1636_v28 = vsel %vm592_vm4, %v3584_v53, %v1452_v49 }
 0x17b   : > { %v1652_v46 = vsel %vm609_vm5, %v1636_v28, %v4865_v24  ;;  %v1959_v24 = vshll.u32 %v4958_v10, 16  ;;  %v2090_v28 = vrot.slane %v1957_v30, 1 }
 0x17c   : > { %2651 = vrot.lane.b32.xlu2 %v2622_v54, %s3631_s28 }
 0x17d   : > { %v1961_v12 = vrot.slane %v1959_v24, 1 }
 0x17e   : > { %2523 = vrot.lane.b32.xlu0 %v2488_v48, %s3630_s27  ;;  %v4965_v15 = vpop.permute.xlu2 %1493 }
 0x17f   : > { %2563 = vrot.lane.b32.xlu1 %v2546_v52, %s3629_s26  ;;  %v1962_v63 = vor.u32 %v1961_v12, %v1957_v30  ;;  %v2091_v52 = vrot.slane %v1959_v24, 2  ;;  %v3274_v24 = vld [vmem:[%s3693_s25 + $0x74] sm:$0x3]  ;;  %v5032_v30 = vld [vmem:[%s3693_s25 + $0x6c] sm:$0xff] }
 0x180   : > { %v1580_v44 = vpop.permute.xlu0 %1579 }
 0x181   : > { %v1668_v45 = vsel %vm626_vm6, %v1652_v46, %v1580_v44  ;;  %v1985_v18 = vpop.permute.xlu1 %1984  ;;  %v1967_v57 = vsel %vm308_vm0, %v1962_v63, %v1966_v34  ;;  %v2014_v46 = vrot.slane %v4958_v10, 1  ;;  %v2092_v32 = vor.u32 %v2091_v52, %v2090_v28 }
 0x182   : > { %v1684_v7 = vsel %vm643_vm7, %v1668_v45, %v4890_v60  ;;  %v1559_v60 = vor.u32 %v1558_v59, %v1557_v50  ;;  %v2169_v13 = vsel %vm592_vm4, %v3585_v8, %v1985_v18  ;;  %v2097_v44 = vor.u32 %v2096_v58, %v2095_v31  ;;  %v3586_v50 = vld [vmem:[%s3693_s25 + $0x48] sm:$0xff] }
 0x183   : > { %3245 = vmatmul.msk.bf16.gmra.mxu1 %vm1112_vm9, %v4407_v9  ;;  %3316 = vmatmul.msk.bf16.gmra.mxu2 %vm1112_vm9, %v1684_v7  ;;  %v1564_v9 = vor.u32 %v1563_v25, %v1562_v23  ;;  %v2144_v18 = vsel %vm551_vm3, %v2142_v11, %v2143_v1  ;;  %v2497_v7 = vshll.u32 %v5011_v36, 16  ;;  %v2626_v23 = vshrl.u32 %v5011_v36, 16 }
 0x184   : > { %1499 = vrot.lane.b32.xlu2 %v1483_v42, %s3629_s26  ;;  %v2490_v42 = vshrl.u32 %v5004_v22, 16  ;;  %v2016_v40 = vsel %vm421_vm1, %v2014_v46, %v2015_v38  ;;  %v2098_v25 = vsel %vm462_vm2, %v2092_v32, %v2097_v44  ;;  %v2548_v34 = vrot.slane %v5011_v36, 1 }
 0x185   : > { %v1565_v53 = vsel %vm462_vm2, %v1559_v60, %v1564_v9  ;;  %v2628_v60 = vrot.slane %v2626_v23, 1  ;;  %v2629_v8 = vrot.slane %v2497_v7, 2  ;;  %v2499_v43 = vrot.slane %v2497_v7, 1 }
 0x186   : > { %2691 = vrot.lane.b32.xlu0 %v2674_v61, %s3632_s29  ;;  %v4990_v56 = vpop.permute.xlu2 %1621  ;;  %v2494_v61 = vrot.slane %v2492_v20, 1  ;;  %v2623_v12 = vrot.slane %v2490_v42, 1  ;;  %v2549_v58 = vsel %vm421_vm1, %v2547_v0, %v2548_v34  ;;  %v2675_v1 = vrot.slane %v5004_v22, 2 }
 0x187   : > { %1459 = vrot.lane.b32.xlu1 %v1434_v55, %s3630_s27  ;;  %v1342_v55 = vunpack.c.l.b16 %v3274_v24  ;;  %v2630_v9 = vor.u32 %v2629_v8, %v2628_v60  ;;  %v2676_v38 = vrot.slane %v5011_v36, 2  ;;  %v1484_v20 = vrot.slane %v5032_v30, 1 }
 0x188   : > { %v2025_v39 = vpop.permute.xlu0 %2024  ;;  %v2495_v16 = vor.u32 %v2494_v61, %v2490_v42 }
 0x189   : > { %v2185_v49 = vsel %vm609_vm5, %v2169_v13, %v2025_v39  ;;  %v2113_v4 = vpop.permute.xlu1 %2112  ;;  %v2677_v7 = vsel %vm551_vm3, %v2675_v1, %v2676_v38 }
 0x18a   : > { %v2201_v54 = vsel %vm626_vm6, %v2185_v49, %v2113_v4  ;;  %v5044_v49 = vpack.c.b16 %v1342_v55, %v1342_v55  ;;  %v1438_v4 = vshll.u32 %v5032_v30, 16  ;;  %v2500_v52 = vsel %vm308_vm0, %v2495_v16, %v2499_v43 }
 0x18b   : > { %v2217_v48 = vsel %vm643_vm7, %v2201_v54, %v4913_v2 }
 0x18c   : > { %3389 = vmatmul.msk.bf16.gmra.mxu3 %vm1112_vm9, %v2217_v48  ;;  %1627 = vrot.lane.b32.xlu2 %v1611_v14, %s3632_s29  ;;  %v3347_v14 = vld [vmem:[%s3693_s25 + $0x80] sm:$0x3]  ;;  %v1440_v46 = vrot.slane %v1438_v4, 1  ;;  %v1443_v11 = vshll.u32 %v5044_v49, 16  ;;  %v1569_v44 = vshrl.u32 %v5044_v49, 16  ;;  %v1567_v61 = vrot.slane %v1438_v4, 2 }
 0x18d   : > { %v1875_v31 = vunpack.c.l.b16 %v3347_v14 }
 0x18e   : > { %1587 = vrot.lane.b32.xlu0 %v1565_v53, %s3631_s28  ;;  %v5013_v2 = vpop.permute.xlu2 %2154  ;;  %v1571_v55 = vrot.slane %v1569_v44, 1 }
 0x18f   : > { %1992 = vrot.lane.b32.xlu1 %v1967_v57, %s3630_s27  ;;  %v1436_v57 = vshrl.u32 %v5032_v30, 16  ;;  %v5070_v24 = vpack.c.b16 %v1875_v31, %v1875_v31 }
 0x190   : > { %v2518_v6 = vpop.permute.xlu0 %2517 }
 0x191   : > { %v2558_v45 = vpop.permute.xlu1 %2557  ;;  %v2702_v59 = vsel %vm592_vm4, %v3586_v50, %v2518_v6  ;;  %v1485_v6 = vrot.slane %v5044_v49, 1  ;;  %v1441_v50 = vor.u32 %v1440_v46, %v1436_v57  ;;  %v1976_v8 = vshll.u32 %v5070_v24, 16 }
 0x192   : > { %v2718_v13 = vsel %vm609_vm5, %v2702_v59, %v2558_v45  ;;  %v1445_v59 = vrot.slane %v1443_v11, 1  ;;  %v2102_v14 = vshrl.u32 %v5070_v24, 16 }
 0x193   : > { %3246 = vmatmul.msk.bf16.gmra.mxu1 %vm1112_vm9, %v4342_v62  ;;  %v2625_v62 = vor.u32 %v2624_v33, %v2623_v12  ;;  %v2734_v63 = vsel %vm626_vm6, %v2718_v13, %v4937_v3  ;;  %v5055_v3 = vld [vmem:[%s3693_s25 + $0x78] sm:$0xff]  ;;  %v1486_v23 = vsel %vm421_vm1, %v1484_v20, %v1485_v6  ;;  %v1572_v12 = vrot.slane %v1443_v11, 2 }
 0x194   : > { %2160 = vrot.lane.b32.xlu2 %v2144_v18, %s3632_s29  ;;  %v1971_v45 = vshll.u32 %v5055_v3, 16  ;;  %v1969_v33 = vshrl.u32 %v5055_v3, 16  ;;  %v1446_v13 = vsel %vm308_vm0, %v1441_v50, %v1445_v59  ;;  %v2104_v38 = vrot.slane %v2102_v14, 1 }
 0x195   : > { %v2631_v28 = vsel %vm462_vm2, %v2625_v62, %v2630_v9  ;;  %v1613_v9 = vrot.slane %v5044_v49, 2  ;;  %v1573_v0 = vor.u32 %v1572_v12, %v1571_v55  ;;  %v2018_v20 = vrot.slane %v5070_v24, 1 }
 0x196   : > { %2032 = vrot.lane.b32.xlu0 %v2016_v40, %s3629_s26  ;;  %v5039_v19 = vpop.permute.xlu2 %2647  ;;  %v1973_v60 = vrot.slane %v1971_v45, 1  ;;  %v2099_v11 = vrot.slane %v1969_v33, 1  ;;  %v2100_v1 = vrot.slane %v1971_v45, 2  ;;  %v5113_v44 = vpop.f32.mrf.mxu3  ;;  %v2145_v45 = vrot.slane %v5055_v3, 2 }
 0x197   : > { %2120 = vrot.lane.b32.xlu1 %v2098_v25, %s3631_s28  ;;  %v1566_v25 = vrot.slane %v1436_v57, 1  ;;  %v5092_v16 = vpop.f32.mrf.mxu1  ;;  %v5109_v57 = vld [vmem:[%s3693_s25 + $0x84] sm:$0xff]  ;;  %v2146_v50 = vrot.slane %v5070_v24, 2 }
 0x198   : > { %v2686_v39 = vpop.permute.xlu0 %2685  ;;  %v2502_v24 = vshrl.u32 %v5109_v57, 16 }
 0x199   : > { %v1454_v54 = vpop.permute.xlu1 %1453  ;;  %v2750_v53 = vsel %vm643_vm7, %v2734_v63, %v2686_v39  ;;  %v1568_v43 = vor.u32 %v1567_v61, %v1566_v25  ;;  %v1974_v39 = vor.u32 %v1973_v60, %v1969_v33  ;;  %v1978_v63 = vrot.slane %v1976_v8, 1  ;;  %v5132_v12 = vpop.f32.mrf.mxu0 }
 0x19a   : > { %3462 = vmatmul.msk.bf16.gmra.mxu0 %vm1112_vm9, %v2750_v53  ;;  %v1638_v48 = vsel %vm592_vm4, %v3587_v37, %v1454_v54  ;;  %v3420_v54 = vld [vmem:[%s3693_s25 + $0x8c] sm:$0x3]  ;;  %v2147_v61 = vsel %vm551_vm3, %v2145_v45, %v2146_v50 }
 0x19b   : > { %v1654_v32 = vsel %vm609_vm5, %v1638_v48, %v4965_v15  ;;  %v5102_v48 = vpop.f32.mrf.mxu2  ;;  %v1574_v31 = vsel %vm462_vm2, %v1568_v43, %v1573_v0  ;;  %v2408_v46 = vunpack.c.l.b16 %v3420_v54 }
 0x19c   : > { %2653 = vrot.lane.b32.xlu2 %v2631_v28, %s3631_s28 }
 0x19d   : > { %v5119_v6 = vpack.c.b16 %v2408_v46, %v2408_v46 }
 0x19e   : > { %2525 = vrot.lane.b32.xlu0 %v2500_v52, %s3630_s27  ;;  %v5073_v18 = vpop.permute.xlu2 %1495 }
 0x19f   : > { %2565 = vrot.lane.b32.xlu1 %v2549_v58, %s3629_s26  ;;  %v1979_v58 = vsel %vm308_vm0, %v1974_v39, %v1978_v63  ;;  %v2509_v60 = vshll.u32 %v5119_v6, 16 }
 0x1a0   : > { %v1582_v36 = vpop.permute.xlu0 %1581 }
 0x1a1   : > { %v1670_v42 = vsel %vm626_vm6, %v1654_v32, %v1582_v36  ;;  %v1987_v15 = vpop.permute.xlu1 %1986  ;;  %v2105_v32 = vrot.slane %v1976_v8, 2  ;;  %v2504_v36 = vshll.u32 %v5109_v57, 16  ;;  %v2635_v8 = vshrl.u32 %v5119_v6, 16 }
 0x1a2   : > { %v1686_v40 = vsel %vm643_vm7, %v1670_v42, %v4990_v56  ;;  %v3588_v56 = vld [vmem:[%s3693_s25 + $0x48] sm:$0xff]  ;;  %v2101_v42 = vor.u32 %v2100_v1, %v2099_v11  ;;  %v2638_v43 = vrot.slane %v2509_v60, 2  ;;  %v2511_v39 = vrot.slane %v2509_v60, 1  ;;  %v1144_v1 = vpop.f32.mrf.mxu0  ;;  %s3124_s25 = sshll.u32 %s3615_s13, 1 }
 0x1a3   : > { %3247 = vmatmul.msk.bf16.gmra.mxu1 %vm1112_vm9, %v4435_v47  ;;  %3317 = vmatmul.msk.bf16.gmra.mxu2 %vm1112_vm9, %v1686_v40  ;;  %v2171_v62 = vsel %vm592_vm4, %v3588_v56, %v1987_v15  ;;  %v1612_v47 = vrot.slane %v5032_v30, 2  ;;  %v2106_v15 = vor.u32 %v2105_v32, %v2104_v38  ;;  %v2506_v33 = vrot.slane %v2504_v36, 1  ;;  %v5142_v56 = vpop.f32.mrf.mxu2 }
 0x1a4   : > { %1501 = vrot.lane.b32.xlu2 %v1486_v23, %s3629_s26  ;;  %v5126_v23 = vpop.f32.mrf.mxu1 }
 0x1a5   : > { %v1614_v49 = vsel %vm551_vm3, %v1612_v47, %v1613_v9  ;;  %v2633_v47 = vrot.slane %v2504_v36, 2  ;;  %v2637_v9 = vrot.slane %v2635_v8, 1  ;;  %v2507_v0 = vor.u32 %v2506_v33, %v2502_v24 }
 0x1a6   : > { %2693 = vrot.lane.b32.xlu0 %v2677_v7, %s3632_s29  ;;  %v5095_v34 = vpop.permute.xlu2 %1623 }
 0x1a7   : > { %1461 = vrot.lane.b32.xlu1 %v1446_v13, %s3630_s27  ;;  %v2512_v11 = vsel %vm308_vm0, %v2507_v0, %v2511_v39 }
 0x1a8   : > { %v2027_v4 = vpop.permute.xlu0 %2026 }
 0x1a9   : > { %v2187_v53 = vsel %vm609_vm5, %v2171_v62, %v2027_v4  ;;  %v2115_v28 = vpop.permute.xlu1 %2114  ;;  %v2632_v62 = vrot.slane %v2502_v24, 1  ;;  %v2639_v4 = vor.u32 %v2638_v43, %v2637_v9 }
 0x1aa   : > { %v2203_v37 = vsel %vm626_vm6, %v2187_v53, %v2115_v28  ;;  %v2550_v53 = vrot.slane %v5109_v57, 1  ;;  %v2551_v28 = vrot.slane %v5119_v6, 1 }
 0x1ab   : > { %v2219_v52 = vsel %vm643_vm7, %v2203_v37, %v5013_v2  ;;  %v2017_v2 = vrot.slane %v5055_v3, 1  ;;  %v2634_v63 = vor.u32 %v2633_v47, %v2632_v62 }
 0x1ac   : > { %3390 = vmatmul.msk.bf16.gmra.mxu3 %vm1112_vm9, %v2219_v52  ;;  %1629 = vrot.lane.b32.xlu2 %v1614_v49, %s3632_s29 }
 0x1ad   : > { %v2019_v55 = vsel %vm421_vm1, %v2017_v2, %v2018_v20  ;;  %v5162_v38 = vpop.f32.mrf.mxu2  ;;  %v2679_v20 = vrot.slane %v5119_v6, 2 }
 0x1ae   : > { %1589 = vrot.lane.b32.xlu0 %v1574_v31, %s3631_s28  ;;  %v5124_v7 = vpop.permute.xlu2 %2156  ;;  %v2640_v31 = vsel %vm462_vm2, %v2634_v63, %v2639_v4 }
 0x1af   : > { %1994 = vrot.lane.b32.xlu1 %v1979_v58, %s3630_s27 }
 0x1b0   : > { %v2520_v59 = vpop.permute.xlu0 %2519  ;;  %v5152_v49 = vpop.f32.mrf.mxu1 }
 0x1b1   : > { %v2704_v40 = vsel %vm592_vm4, %v4689_v5, %v2520_v59  ;;  %v2560_v25 = vpop.permute.xlu1 %2559  ;;  %v2107_v5 = vsel %vm462_vm2, %v2101_v42, %v2106_v15 }
 0x1b2   : > { %v2720_v13 = vsel %vm609_vm5, %v2704_v40, %v2560_v25 }
 0x1b3   : > { %3248 = vmatmul.msk.bf16.gmra.mxu1 %vm1112_vm9, %v4439_v29  ;;  %v5145_v29 = vpop.f32.mrf.mxu3  ;;  %v2736_v54 = vsel %vm626_vm6, %v2720_v13, %v5039_v19  ;;  %v2552_v19 = vsel %vm421_vm1, %v2550_v53, %v2551_v28 }
 0x1b4   : > { %2162 = vrot.lane.b32.xlu2 %v2147_v61, %s3632_s29 }
 0x1b5   : > { %v5185_v25 = vpop.f32.mrf.mxu2 }
 0x1b6   : > { %2034 = vrot.lane.b32.xlu0 %v2019_v55, %s3629_s26  ;;  %v2650_v58 = vpop.permute.xlu2 %2649 }
 0x1b7   : > { %2122 = vrot.lane.b32.xlu1 %v2107_v5, %s3631_s28  ;;  %v5179_v40 = vpop.f32.mrf.mxu0 }
 0x1b8   : > { %v2688_v14 = vpop.permute.xlu0 %2687  ;;  %v5175_v42 = vpop.f32.mrf.mxu1 }
 0x1b9   : > { %v1456_v37 = vpop.permute.xlu1 %1455  ;;  %v2752_v52 = vsel %vm643_vm7, %v2736_v54, %v2688_v14 }
 0x1ba   : > { %3463 = vmatmul.msk.bf16.gmra.mxu0 %vm1112_vm9, %v2752_v52  ;;  %v1640_v46 = vsel %vm592_vm4, %v4727_v51, %v1456_v37  ;;  %v2678_v51 = vrot.slane %v5109_v57, 2 }
 0x1bb   : > { %v1656_v32 = vsel %vm609_vm5, %v1640_v46, %v5073_v18  ;;  %v5167_v2 = vpop.f32.mrf.mxu3 }
 0x1bc   : > { %2655 = vrot.lane.b32.xlu2 %v2640_v31, %s3631_s28  ;;  %v2680_v18 = vsel %vm551_vm3, %v2678_v51, %v2679_v20 }
 0x1be   : > { %2527 = vrot.lane.b32.xlu0 %v2512_v11, %s3630_s27  ;;  %v1498_v15 = vpop.permute.xlu2 %1497 }
 0x1bf   : > { %2567 = vrot.lane.b32.xlu1 %v2552_v19, %s3629_s26  ;;  %s5188_s26 = sadd.s32 %s3611_s12, %s3124_s25  ;;  %v5198_v13 = vpop.f32.mrf.mxu0 }
 0x1c0   : > { %v1584_v36 = vpop.permute.xlu0 %1583  ;;  %s3125_s13 = sshll.u32 %s5188_s26, 4  ;;  %p209_p7 = scmp.lt.s32.totalorder %s5188_s26, 3 }
 0x1c1   : > { %v1672_v45 = vsel %vm626_vm6, %v1656_v32, %v1584_v36  ;;  %v1989_v50 = vpop.permute.xlu1 %1988  ;;  %p200_p6 = scmp.lt.s32.totalorder %s3125_s13, 63 }
 0x1c2   : > { %v1688_v59 = vsel %vm643_vm7, %v1672_v45, %v5095_v34  ;;  %v2173_v6 = vsel %vm592_vm4, %v4758_v35, %v1989_v50  ;;  %v1219_v35 = vpop.f32.mrf.mxu1  ;;  %s5386_s26 = smov (!%p209_p7, %s5188_s26), 3 }
 0x1c3   : > { %3318 = vmatmul.msk.bf16.gmra.mxu2 %vm1112_vm9, %v1688_v59  ;;  %v5190_v34 = vpop.f32.mrf.mxu3  ;;  %v1220_v43 = vadd.f32 %v1219_v35, %v5132_v12  ;;  %s5384_s13 = smov (!%p200_p6, %s3125_s13), 63  ;;  %s3128_s8 = sshll.u32 %s5386_s26, 1 }
 0x1c4   : > { %s3126_s12 = sshll.u32 %s5384_s13, 2  ;;  %s212_s11 = scalar_lea.vmem %s5370_s3, %s3128_s8 }
 0x1c6   : > { %2695 = vrot.lane.b32.xlu0 %v2680_v18, %s3632_s29  ;;  %v1626_v8 = vpop.permute.xlu2 %1625  ;;  %v1736_v5 = vpop.f32.mrf.mxu2  ;;  %s5208_s29 = scalar_lea.vmem %s5369_s2, %s3126_s12 }
 0x1c7   : > { %v1776_v39 = vadd.f32 %v1736_v5, %v1220_v43 }
 0x1c8   : > { %v2029_v61 = vpop.permute.xlu0 %2028 }
 0x1c9   : > { %v2189_v55 = vsel %vm609_vm5, %v2173_v6, %v2029_v61  ;;  %v2117_v24 = vpop.permute.xlu1 %2116 }
 0x1ca   : > { %v2205_v33 = vsel %vm626_vm6, %v2189_v55, %v2117_v24  ;;  %v1221_v4 = vpop.f32.mrf.mxu1 }
 0x1cb   : > { %v2221_v60 = vsel %vm643_vm7, %v2205_v33, %v5124_v7  ;;  %v1222_v31 = vadd.f32 %v1221_v4, %v1144_v1 }
 0x1cc   : > { %3391 = vmatmul.msk.bf16.gmra.mxu3 %vm1112_vm9, %v2221_v60 }
 0x1ce   : > { %v2159_v37 = vpop.permute.xlu2 %2158  ;;  %v1738_v52 = vpop.f32.mrf.mxu2 }
 0x1cf   : > { %v2269_v47 = vpop.f32.mrf.mxu3  ;;  %v1777_v19 = vadd.f32 %v1738_v52, %v1222_v31 }
 0x1d0   : > { %v2522_v62 = vpop.permute.xlu0 %2521  ;;  %v2309_v63 = vadd.f32 %v2269_v47, %v1776_v39 }
 0x1d1   : > { %v2562_v9 = vpop.permute.xlu1 %2561  ;;  %v2706_v0 = vsel %vm592_vm4, %v4804_v41, %v2522_v62 }
 0x1d2   : > { %v2722_v7 = vsel %vm609_vm5, %v2706_v0, %v2562_v9  ;;  %v1224_v39 = vpop.f32.mrf.mxu1 }
 0x1d3   : > { %v2738_v28 = vsel %vm626_vm6, %v2722_v7, %v2650_v58 }
 0x1d6   : > { %v2652_v55 = vpop.permute.xlu2 %2651 }
 0x1d7   : > { %v2802_v14 = vpop.f32.mrf.mxu0  ;;  %v2271_v11 = vpop.f32.mrf.mxu3 }
 0x1d8   : > { %v2842_v54 = vadd.f32 %v2802_v14, %v2309_v63  ;;  %v2690_v53 = vpop.permute.xlu0 %2689  ;;  %v2310_v32 = vadd.f32 %v2271_v11, %v1777_v19 }
 0x1d9   : > { %v1458_v41 = vpop.permute.xlu1 %1457  ;;  %v2754_v12 = vsel %vm643_vm7, %v2738_v28, %v2690_v53 }
 0x1da   : > { %v2858_v46 = vpack.c.bf16 %v2842_v54, %v2842_v54  ;;  %3464 = vmatmul.msk.bf16.gmra.mxu0 %vm1112_vm9, %v2754_v12  ;;  %v1642_v58 = vsel %vm592_vm4, %v4832_v27, %v1458_v41  ;;  %v2928_v36 = vmul.f32 %v2842_v54, %v2842_v54  ;;  %v2891_v18 = vsel %vm609_vm5, %v2842_v54, 0.0  ;;  %v1226_v12 = vpop.f32.mrf.mxu1 }
 0x1db   : > { %v1658_v51 = vsel %vm609_vm5, %v1642_v58, %v1498_v15  ;;  %v1225_v54 = vadd.f32 %v1224_v39, %v5179_v40  ;;  %v1227_v40 = vadd.f32 %v1226_v12, %v5198_v13 }
 0x1dc   : > { %2875 = vst.msk [vmem:[%s5208_s29] sm:$0xf] %vm2874_vm10, %v2858_v46  ;;  %v2944_v60 = vsel %vm609_vm5, %v2928_v36, 0.0 }
 0x1de   : > { %v1500_v0 = vpop.permute.xlu2 %1499 }
 0x1df   : > { %v2804_v20 = vpop.f32.mrf.mxu0 }
 0x1e0   : > { %v2843_v45 = vadd.f32 %v2804_v20, %v2310_v32  ;;  %v1586_v50 = vpop.permute.xlu0 %1585 }
 0x1e1   : > { %v1674_v1 = vsel %vm626_vm6, %v1658_v51, %v1586_v50  ;;  %v1991_v59 = vpop.permute.xlu1 %1990 }
 0x1e2   : > { %v2859_v6 = vpack.c.bf16 %v2843_v45, %v2843_v45  ;;  %v2892_v61 = vsel %vm609_vm5, %v2843_v45, 0.0  ;;  %v2929_v27 = vmul.f32 %v2843_v45, %v2843_v45  ;;  %v1690_v33 = vsel %vm643_vm7, %v1674_v1, %v1626_v8 }
 0x1e3   : > { %v2893_v24 = vadd.f32 %v2892_v61, %v2891_v18  ;;  %3319 = vmatmul.msk.bf16.gmra.mxu2 %vm1112_vm9, %v1690_v33  ;;  %v2175_v5 = vsel %vm592_vm4, %v4858_v26, %v1991_v59 }
 0x1e4   : > { %2876 = vst.msk [vmem:[%s5208_s29 + $0x4] sm:$0xf] %vm2874_vm10, %v2859_v6  ;;  %v2945_v15 = vsel %vm609_vm5, %v2929_v27, 0.0 }
 0x1e5   : > { %v2946_v35 = vadd.f32 %v2945_v15, %v2944_v60 }
 0x1e6   : > { %v1741_v7 = vpop.f32.mrf.mxu2  ;;  %v1628_v41 = vpop.permute.xlu2 %1627 }
 0x1e7   : > { %v1778_v53 = vadd.f32 %v1741_v7, %v1225_v54 }
 0x1e8   : > { %v2031_v62 = vpop.permute.xlu0 %2030 }
 0x1e9   : > { %v2191_v47 = vsel %vm609_vm5, %v2175_v5, %v2031_v62  ;;  %v2119_v9 = vpop.permute.xlu1 %2118 }
 0x1ea   : > { %v2207_v43 = vsel %vm626_vm6, %v2191_v47, %v2119_v9 }
 0x1eb   : > { %v2223_v8 = vsel %vm643_vm7, %v2207_v43, %v2159_v37 }
 0x1ec   : > { %3392 = vmatmul.msk.bf16.gmra.mxu3 %vm1112_vm9, %v2223_v8 }
 0x1ee   : > { %v1743_v58 = vpop.f32.mrf.mxu2  ;;  %v2161_v33 = vpop.permute.xlu2 %2160 }
 0x1ef   : > { %v2274_v4 = vpop.f32.mrf.mxu3  ;;  %v1779_v1 = vadd.f32 %v1743_v58, %v1227_v40 }
 0x1f0   : > { %v2524_v63 = vpop.permute.xlu0 %2523  ;;  %v2311_v52 = vadd.f32 %v2274_v4, %v1778_v53 }
 0x1f1   : > { %v2564_v14 = vpop.permute.xlu1 %2563  ;;  %v2708_v26 = vsel %vm592_vm4, %v4904_v21, %v2524_v63 }
 0x1f2   : > { %v2724_v28 = vsel %vm609_vm5, %v2708_v26, %v2564_v14  ;;  %v1229_v14 = vpop.f32.mrf.mxu1 }
 0x1f3   : > { %v2740_v11 = vsel %vm626_vm6, %v2724_v28, %v2652_v55 }
 0x1f6   : > { %v2654_v63 = vpop.permute.xlu2 %2653 }
 0x1f7   : > { %v2807_v37 = vpop.f32.mrf.mxu0  ;;  %v2276_v36 = vpop.f32.mrf.mxu3 }
 0x1f8   : > { %v2844_v31 = vadd.f32 %v2807_v37, %v2311_v52  ;;  %v2692_v46 = vpop.permute.xlu0 %2691  ;;  %v2312_v6 = vadd.f32 %v2276_v36, %v1779_v1  ;;  %v1230_v52 = vadd.f32 %v1229_v14, %v5092_v16 }
 0x1f9   : > { %v1460_v19 = vpop.permute.xlu1 %1459  ;;  %v2756_v32 = vsel %vm643_vm7, %v2740_v11, %v2692_v46 }
 0x1fa   : > { %v2860_v51 = vpack.c.bf16 %v2844_v31, %v2844_v31  ;;  %v2894_v21 = vsel %vm609_vm5, %v2844_v31, 0.0  ;;  %v2930_v20 = vmul.f32 %v2844_v31, %v2844_v31  ;;  %3465 = vmatmul.msk.bf16.gmra.mxu0 %vm1112_vm9, %v2756_v32  ;;  %v1644_v50 = vsel %vm592_vm4, %v4932_v17, %v1460_v19  ;;  %v1231_v46 = vpop.f32.mrf.mxu1 }
 0x1fb   : > { %v2895_v45 = vadd.f32 %v2894_v21, %v2893_v24  ;;  %v1660_v13 = vsel %vm609_vm5, %v1644_v50, %v1500_v0  ;;  %v1232_v16 = vadd.f32 %v1231_v46, %v5126_v23 }
 0x1fc   : > { %2877 = vst.msk [vmem:[%s5208_s29 + $0x8] sm:$0xf] %vm2874_vm10, %v2860_v51  ;;  %v2947_v59 = vsel %vm609_vm5, %v2930_v20, 0.0 }
 0x1fd   : > { %v2948_v18 = vadd.f32 %v2947_v59, %v2946_v35 }
 0x1fe   : > { %v1502_v12 = vpop.permute.xlu2 %1501 }
 0x1ff   : > { %v2809_v61 = vpop.f32.mrf.mxu0 }
 0x200   : > { %v2845_v27 = vadd.f32 %v2809_v61, %v2312_v6  ;;  %v1588_v55 = vpop.permute.xlu0 %1587 }
 0x201   : > { %v1676_v60 = vsel %vm626_vm6, %v1660_v13, %v1588_v55  ;;  %v1993_v24 = vpop.permute.xlu1 %1992 }
 0x202   : > { %v2861_v15 = vpack.c.bf16 %v2845_v27, %v2845_v27  ;;  %v2896_v17 = vsel %vm609_vm5, %v2845_v27, 0.0  ;;  %v2931_v5 = vmul.f32 %v2845_v27, %v2845_v27  ;;  %v1692_v47 = vsel %vm643_vm7, %v1676_v60, %v1628_v41 }
 0x203   : > { %v2897_v62 = vadd.f32 %v2896_v17, %v2895_v45  ;;  %3320 = vmatmul.msk.bf16.gmra.mxu2 %vm1112_vm9, %v1692_v47  ;;  %v2177_v43 = vsel %vm592_vm4, %v4958_v10, %v1993_v24 }
 0x204   : > { %2878 = vst.msk [vmem:[%s5208_s29 + $0xc] sm:$0xf] %vm2874_vm10, %v2861_v15  ;;  %v2949_v35 = vsel %vm609_vm5, %v2931_v5, 0.0 }
 0x205   : > { %v2950_v9 = vadd.f32 %v2949_v35, %v2948_v18 }
 0x206   : > { %v1746_v54 = vpop.f32.mrf.mxu2  ;;  %v1630_v61 = vpop.permute.xlu2 %1629 }
 0x207   : > { %v1780_v41 = vadd.f32 %v1746_v54, %v1230_v52 }
 0x208   : > { %v2033_v8 = vpop.permute.xlu0 %2032 }
 0x209   : > { %v2193_v0 = vsel %vm609_vm5, %v2177_v43, %v2033_v8  ;;  %v2121_v39 = vpop.permute.xlu1 %2120 }
 0x20a   : > { %v2209_v7 = vsel %vm626_vm6, %v2193_v0, %v2121_v39 }
 0x20b   : > { %v2225_v4 = vsel %vm643_vm7, %v2209_v7, %v2161_v33 }
 0x20c   : > { %3393 = vmatmul.msk.bf16.gmra.mxu3 %vm1112_vm9, %v2225_v4  ;;  %v1234_v4 = vpop.f32.mrf.mxu1 }
 0x20e   : > { %v1748_v40 = vpop.f32.mrf.mxu2  ;;  %v2163_v8 = vpop.permute.xlu2 %2162 }
 0x20f   : > { %v2279_v53 = vpop.f32.mrf.mxu3  ;;  %v1781_v59 = vadd.f32 %v1748_v40, %v1232_v16 }
 0x210   : > { %v2526_v26 = vpop.permute.xlu0 %2525  ;;  %v2313_v31 = vadd.f32 %v2279_v53, %v1780_v41  ;;  %v1235_v53 = vadd.f32 %v1234_v4, %v5152_v49 }
 0x211   : > { %v2566_v28 = vpop.permute.xlu1 %2565  ;;  %v2710_v10 = vsel %vm592_vm4, %v5004_v22, %v2526_v26 }
 0x212   : > { %v2726_v37 = vsel %vm609_vm5, %v2710_v10, %v2566_v28 }
 0x213   : > { %v2742_v32 = vsel %vm626_vm6, %v2726_v37, %v2654_v63 }
 0x214   : > { %v1236_v37 = vpop.f32.mrf.mxu1 }
 0x215   : > { %v1237_v49 = vadd.f32 %v1236_v37, %v5175_v42 }
 0x216   : > { %v2656_v41 = vpop.permute.xlu2 %2655 }
 0x217   : > { %v2812_v11 = vpop.f32.mrf.mxu0  ;;  %v2281_v45 = vpop.f32.mrf.mxu3 }
 0x218   : > { %v2846_v58 = vadd.f32 %v2812_v11, %v2313_v31  ;;  %v2694_v19 = vpop.permute.xlu0 %2693  ;;  %v2314_v13 = vadd.f32 %v2281_v45, %v1781_v59 }
 0x219   : > { %v1462_v51 = vpop.permute.xlu1 %1461  ;;  %v2758_v21 = vsel %vm643_vm7, %v2742_v32, %v2694_v19 }
 0x21a   : > { %v2862_v20 = vpack.c.bf16 %v2846_v58, %v2846_v58  ;;  %v2898_v22 = vsel %vm609_vm5, %v2846_v58, 0.0  ;;  %v2932_v36 = vmul.f32 %v2846_v58, %v2846_v58  ;;  %3466 = vmatmul.msk.bf16.gmra.mxu0 %vm1112_vm9, %v2758_v21  ;;  %v1646_v1 = vsel %vm592_vm4, %v5032_v30, %v1462_v51 }
 0x21b   : > { %v2899_v50 = vadd.f32 %v2898_v22, %v2897_v62  ;;  %v1662_v23 = vsel %vm609_vm5, %v1646_v1, %v1502_v12 }
 0x21c   : > { %2879 = vst.msk [vmem:[%s5208_s29 + $0x10] sm:$0xf] %vm2874_vm10, %v2862_v20  ;;  %v2951_v18 = vsel %vm609_vm5, %v2932_v36, 0.0 }
 0x21d   : > { %v2952_v6 = vadd.f32 %v2951_v18, %v2950_v9 }
 0x21f   : > { %v2814_v27 = vpop.f32.mrf.mxu0 }
 0x220   : > { %v2847_v55 = vadd.f32 %v2814_v27, %v2314_v13  ;;  %v1590_v33 = vpop.permute.xlu0 %1589 }
 0x221   : > { %v1678_v60 = vsel %vm626_vm6, %v1662_v23, %v1590_v33  ;;  %v1995_v24 = vpop.permute.xlu1 %1994 }
 0x222   : > { %v2863_v15 = vpack.c.bf16 %v2847_v55, %v2847_v55  ;;  %v2900_v30 = vsel %vm609_vm5, %v2847_v55, 0.0  ;;  %v2933_v17 = vmul.f32 %v2847_v55, %v2847_v55  ;;  %v1694_v62 = vsel %vm643_vm7, %v1678_v60, %v1630_v61  ;;  %v1239_v61 = vpop.f32.mrf.mxu1 }
 0x223   : > { %v2901_v5 = vadd.f32 %v2900_v30, %v2899_v50  ;;  %3321 = vmatmul.msk.bf16.gmra.mxu2 %vm1112_vm9, %v1694_v62  ;;  %v2179_v9 = vsel %vm592_vm4, %v5055_v3, %v1995_v24  ;;  %v1240_v33 = vadd.f32 %v1239_v61, %v5102_v48 }
 0x224   : > { %2880 = vst.msk [vmem:[%s5208_s29 + $0x14] sm:$0xf] %vm2874_vm10, %v2863_v15  ;;  %v2953_v47 = vsel %vm609_vm5, %v2933_v17, 0.0 }
 0x225   : > { %v2954_v35 = vadd.f32 %v2953_v47, %v2952_v6 }
 0x226   : > { %v1751_v14 = vpop.f32.mrf.mxu2 }
 0x227   : > { %v1782_v52 = vadd.f32 %v1751_v14, %v1235_v53 }
 0x228   : > { %v2035_v43 = vpop.permute.xlu0 %2034 }
 0x229   : > { %v2195_v0 = vsel %vm609_vm5, %v2179_v9, %v2035_v43  ;;  %v2123_v39 = vpop.permute.xlu1 %2122 }
 0x22a   : > { %v2211_v7 = vsel %vm626_vm6, %v2195_v0, %v2123_v39  ;;  %v1241_v15 = vpop.f32.mrf.mxu1 }
 0x22b   : > { %v2227_v63 = vsel %vm643_vm7, %v2211_v7, %v2163_v8  ;;  %v1242_v62 = vadd.f32 %v1241_v15, %v5142_v56 }
 0x22c   : > { %3394 = vmatmul.msk.bf16.gmra.mxu3 %vm1112_vm9, %v2227_v63 }
 0x22e   : > { %v1753_v19 = vpop.f32.mrf.mxu2 }
 0x22f   : > { %v2284_v26 = vpop.f32.mrf.mxu3  ;;  %v1783_v20 = vadd.f32 %v1753_v19, %v1237_v49 }
 0x230   : > { %v2528_v54 = vpop.permute.xlu0 %2527  ;;  %v2315_v12 = vadd.f32 %v2284_v26, %v1782_v52 }
 0x231   : > { %v2712_v3 = vsel %vm592_vm4, %v5109_v57, %v2528_v54  ;;  %v2568_v28 = vpop.permute.xlu1 %2567 }
 0x232   : > { %v2728_v10 = vsel %vm609_vm5, %v2712_v3, %v2568_v28  ;;  %v1244_v28 = vpop.f32.mrf.mxu1 }
 0x233   : > { %v2744_v46 = vsel %vm626_vm6, %v2728_v10, %v2656_v41  ;;  %v1245_v41 = vadd.f32 %v1244_v28, %v5162_v38 }
 0x237   : > { %v2817_v31 = vpop.f32.mrf.mxu0  ;;  %v2286_v21 = vpop.f32.mrf.mxu3 }
 0x238   : > { %v2848_v11 = vadd.f32 %v2817_v31, %v2315_v12  ;;  %v2696_v58 = vpop.permute.xlu0 %2695  ;;  %v2316_v45 = vadd.f32 %v2286_v21, %v1783_v20 }
 0x239   : > { %v2760_v32 = vsel %vm643_vm7, %v2744_v46, %v2696_v58 }
 0x23a   : > { %v2864_v40 = vpack.c.bf16 %v2848_v11, %v2848_v11  ;;  %v2902_v57 = vsel %vm609_vm5, %v2848_v11, 0.0  ;;  %v2934_v51 = vmul.f32 %v2848_v11, %v2848_v11  ;;  %3467 = vmatmul.msk.bf16.gmra.mxu0 %vm1112_vm9, %v2760_v32  ;;  %v1246_v31 = vpop.f32.mrf.mxu1 }
 0x23b   : > { %v2903_v16 = vadd.f32 %v2902_v57, %v2901_v5  ;;  %v1247_v19 = vadd.f32 %v1246_v31, %v5185_v25 }
 0x23c   : > { %2881 = vst.msk [vmem:[%s5208_s29 + $0x18] sm:$0xf] %vm2874_vm10, %v2864_v40  ;;  %v2955_v22 = vsel %vm609_vm5, %v2934_v51, 0.0 }
 0x23d   : > { %v2956_v36 = vadd.f32 %v2955_v22, %v2954_v35 }
 0x23f   : > { %v2819_v50 = vpop.f32.mrf.mxu0 }
 0x240   : > { %v2849_v1 = vadd.f32 %v2819_v50, %v2316_v45 }
 0x242   : > { %v2865_v59 = vpack.c.bf16 %v2849_v1, %v2849_v1  ;;  %v2904_v42 = vsel %vm609_vm5, %v2849_v1, 0.0  ;;  %v2935_v18 = vmul.f32 %v2849_v1, %v2849_v1  ;;  %v1249_v22 = vpop.f32.mrf.mxu1 }
 0x243   : > { %v2905_v6 = vadd.f32 %v2904_v42, %v2903_v16  ;;  %v1250_v25 = vadd.f32 %v1249_v22, %v5113_v44 }
 0x244   : > { %2882 = vst.msk [vmem:[%s5208_s29 + $0x1c] sm:$0xf] %vm2874_vm10, %v2865_v59  ;;  %v2957_v13 = vsel %vm609_vm5, %v2935_v18, 0.0 }
 0x245   : > { %v2958_v23 = vadd.f32 %v2957_v13, %v2956_v36 }
 0x246   : > { %v1756_v27 = vpop.f32.mrf.mxu2 }
 0x247   : > { %v1784_v60 = vadd.f32 %v1756_v27, %v1240_v33 }
 0x24a   : > { %v1251_v59 = vpop.f32.mrf.mxu1 }
 0x24b   : > { %v1252_v13 = vadd.f32 %v1251_v59, %v5145_v29 }
 0x24e   : > { %v1758_v5 = vpop.f32.mrf.mxu2 }
 0x24f   : > { %v2289_v55 = vpop.f32.mrf.mxu3  ;;  %v1785_v0 = vadd.f32 %v1758_v5, %v1242_v62 }
 0x250   : > { %v2317_v24 = vadd.f32 %v2289_v55, %v1784_v60 }
 0x252   : > { %v1254_v44 = vpop.f32.mrf.mxu1 }
 0x257   : > { %v2822_v30 = vpop.f32.mrf.mxu0  ;;  %v2291_v43 = vpop.f32.mrf.mxu3 }
 0x258   : > { %v2850_v17 = vadd.f32 %v2822_v30, %v2317_v24  ;;  %v2318_v7 = vadd.f32 %v2291_v43, %v1785_v0 }
 0x25a   : > { %v2866_v47 = vpack.c.bf16 %v2850_v17, %v2850_v17  ;;  %v2906_v35 = vsel %vm609_vm5, %v2850_v17, 0.0  ;;  %v2936_v9 = vmul.f32 %v2850_v17, %v2850_v17  ;;  %v1255_v17 = vadd.f32 %v1254_v44, %v5167_v2 }
 0x25b   : > { %v2907_v8 = vadd.f32 %v2906_v35, %v2905_v6 }
 0x25c   : > { %2883 = vst.msk [vmem:[%s5208_s29 + $0x20] sm:$0xf] %vm2874_vm10, %v2866_v47  ;;  %v2959_v48 = vsel %vm609_vm5, %v2936_v9, 0.0  ;;  %v1256_v47 = vpop.f32.mrf.mxu1 }
 0x25d   : > { %v2960_v39 = vadd.f32 %v2959_v48, %v2958_v23 }
 0x25f   : > { %v2824_v63 = vpop.f32.mrf.mxu0 }
 0x260   : > { %v2851_v4 = vadd.f32 %v2824_v63, %v2318_v7 }
 0x262   : > { %v2867_v14 = vpack.c.bf16 %v2851_v4, %v2851_v4  ;;  %v2908_v54 = vsel %vm609_vm5, %v2851_v4, 0.0  ;;  %v2937_v56 = vmul.f32 %v2851_v4, %v2851_v4 }
 0x263   : > { %v2909_v26 = vadd.f32 %v2908_v54, %v2907_v8 }
 0x264   : > { %2884 = vst.msk [vmem:[%s5208_s29 + $0x24] sm:$0xf] %vm2874_vm10, %v2867_v14  ;;  %v2961_v53 = vsel %vm609_vm5, %v2937_v56, 0.0 }
 0x265   : > { %v5314_v3 = vadd.f32 %v2961_v53, %v2960_v39  ;;  %v1257_v39 = vadd.f32 %v1256_v47, %v5190_v34 }
 0x266   : > { %v1761_v52 = vpop.f32.mrf.mxu2 }
 0x267   : > { %v1786_v12 = vadd.f32 %v1761_v52, %v1245_v41 }
 0x26e   : > { %v1763_v58 = vpop.f32.mrf.mxu2 }
 0x26f   : > { %v2294_v10 = vpop.f32.mrf.mxu3  ;;  %v1787_v51 = vadd.f32 %v1763_v58, %v1247_v19 }
 0x270   : > { %v2319_v37 = vadd.f32 %v2294_v10, %v1786_v12 }
 0x277   : > { %v2827_v46 = vpop.f32.mrf.mxu0  ;;  %v2296_v40 = vpop.f32.mrf.mxu3 }
 0x278   : > { %v2852_v11 = vadd.f32 %v2827_v46, %v2319_v37  ;;  %v2320_v21 = vadd.f32 %v2296_v40, %v1787_v51 }
 0x27a   : > { %v2868_v32 = vpack.c.bf16 %v2852_v11, %v2852_v11  ;;  %v2910_v49 = vsel %vm609_vm5, %v2852_v11, 0.0  ;;  %v2938_v5 = vmul.f32 %v2852_v11, %v2852_v11 }
 0x27b   : > { %v2911_v57 = vadd.f32 %v2910_v49, %v2909_v26 }
 0x27c   : > { %2885 = vst.msk [vmem:[%s5208_s29 + $0x28] sm:$0xf] %vm2874_vm10, %v2868_v32  ;;  %v2963_v43 = vsel %vm609_vm5, %v2938_v5, 0.0 }
 0x27d   : > { %v2964_v54 = vadd.f32 %v2963_v43, %v5314_v3 }
 0x27f   : > { %v2829_v16 = vpop.f32.mrf.mxu0 }
 0x280   : > { %v2853_v38 = vadd.f32 %v2829_v16, %v2320_v21 }
 0x282   : > { %v2869_v20 = vpack.c.bf16 %v2853_v38, %v2853_v38  ;;  %v2939_v29 = vmul.f32 %v2853_v38, %v2853_v38  ;;  %v2912_v8 = vsel %vm609_vm5, %v2853_v38, 0.0 }
 0x283   : > { %v2913_v56 = vadd.f32 %v2912_v8, %v2911_v57 }
 0x284   : > { %2886 = vst.msk [vmem:[%s5208_s29 + $0x2c] sm:$0xf] %vm2874_vm10, %v2869_v20  ;;  %v2965_v63 = vsel %vm609_vm5, %v2939_v29, 0.0 }
 0x285   : > { %v2966_v34 = vadd.f32 %v2965_v63, %v2964_v54 }
 0x286   : > { %v1766_v36 = vpop.f32.mrf.mxu2 }
 0x287   : > { %v1788_v50 = vadd.f32 %v1766_v36, %v1250_v25 }
 0x28e   : > { %v1768_v6 = vpop.f32.mrf.mxu2 }
 0x28f   : > { %v2299_v45 = vpop.f32.mrf.mxu3  ;;  %v1789_v27 = vadd.f32 %v1768_v6, %v1252_v13 }
 0x290   : > { %v2321_v1 = vadd.f32 %v2299_v45, %v1788_v50 }
 0x297   : > { %v2832_v42 = vpop.f32.mrf.mxu0  ;;  %v2301_v61 = vpop.f32.mrf.mxu3 }
 0x298   : > { %v2854_v18 = vadd.f32 %v2832_v42, %v2321_v1  ;;  %v2322_v55 = vadd.f32 %v2301_v61, %v1789_v27 }
 0x29a   : > { %v2870_v23 = vpack.c.bf16 %v2854_v18, %v2854_v18  ;;  %v2940_v0 = vmul.f32 %v2854_v18, %v2854_v18  ;;  %v2914_v2 = vsel %vm609_vm5, %v2854_v18, 0.0 }
 0x29b   : > { %v2915_v41 = vadd.f32 %v2914_v2, %v2913_v56 }
 0x29c   : > { %2887 = vst.msk [vmem:[%s5208_s29 + $0x30] sm:$0xf] %vm2874_vm10, %v2870_v23  ;;  %v2967_v53 = vsel %vm609_vm5, %v2940_v0, 0.0 }
 0x29d   : > { %v2968_v46 = vadd.f32 %v2967_v53, %v2966_v34 }
 0x29f   : > { %v2834_v33 = vpop.f32.mrf.mxu0 }
 0x2a0   : > { %v2855_v60 = vadd.f32 %v2834_v33, %v2322_v55 }
 0x2a2   : > { %v2871_v24 = vpack.c.bf16 %v2855_v60, %v2855_v60  ;;  %v2941_v4 = vmul.f32 %v2855_v60, %v2855_v60  ;;  %v2916_v28 = vsel %vm609_vm5, %v2855_v60, 0.0 }
 0x2a3   : > { %v2917_v3 = vadd.f32 %v2916_v28, %v2915_v41 }
 0x2a4   : > { %2888 = vst.msk [vmem:[%s5208_s29 + $0x34] sm:$0xf] %vm2874_vm10, %v2871_v24  ;;  %v2969_v12 = vsel %vm609_vm5, %v2941_v4, 0.0 }
 0x2a5   : > { %v2970_v32 = vadd.f32 %v2969_v12, %v2968_v46 }
 0x2a6   : > { %v1771_v15 = vpop.f32.mrf.mxu2 }
 0x2a7   : > { %v1790_v62 = vadd.f32 %v1771_v15, %v1255_v17 }
 0x2ae   : > { %v1773_v7 = vpop.f32.mrf.mxu2 }
 0x2af   : > { %v2304_v30 = vpop.f32.mrf.mxu3  ;;  %v1791_v52 = vadd.f32 %v1773_v7, %v1257_v39 }
 0x2b0   : > { %v2323_v35 = vadd.f32 %v2304_v30, %v1790_v62 }
 0x2b7   : > { %v2837_v9 = vpop.f32.mrf.mxu0  ;;  %v2306_v26 = vpop.f32.mrf.mxu3 }
 0x2b8   : > { %v2856_v48 = vadd.f32 %v2837_v9, %v2323_v35  ;;  %v2324_v37 = vadd.f32 %v2306_v26, %v1791_v52 }
 0x2ba   : > { %v2872_v14 = vpack.c.bf16 %v2856_v48, %v2856_v48  ;;  %v2942_v10 = vmul.f32 %v2856_v48, %v2856_v48  ;;  %v2918_v31 = vsel %vm609_vm5, %v2856_v48, 0.0 }
 0x2bb   : > { %v2919_v49 = vadd.f32 %v2918_v31, %v2917_v3 }
 0x2bc   : > { %2889 = vst.msk [vmem:[%s5208_s29 + $0x38] sm:$0xf] %vm2874_vm10, %v2872_v14  ;;  %v2971_v58 = vsel %vm609_vm5, %v2942_v10, 0.0 }
 0x2bd   : > { %v2972_v21 = vadd.f32 %v2971_v58, %v2970_v32 }
 0x2bf   : > { %v2839_v11 = vpop.f32.mrf.mxu0 }
 0x2c0   : > { %v2857_v19 = vadd.f32 %v2839_v11, %v2324_v37 }
 0x2c2   : > { %v2873_v40 = vpack.c.bf16 %v2857_v19, %v2857_v19  ;;  %v2920_v57 = vsel %vm609_vm5, %v2857_v19, 0.0  ;;  %v2943_v51 = vmul.f32 %v2857_v19, %v2857_v19 }
 0x2c3   : > { %v2921_v16 = vadd.f32 %v2920_v57, %v2919_v49 }
 0x2c4   : > { %2890 = vst.msk [vmem:[%s5208_s29 + $0x3c] sm:$0xf] %vm2874_vm10, %v2873_v40  ;;  %v2973_v38 = vsel %vm609_vm5, %v2943_v51, 0.0 }
 0x2c5   : > { %v2922_v20 = vrot.slane %v2921_v16, 4  ;;  %v2974_v22 = vadd.f32 %v2973_v38, %v2972_v21 }
 0x2c7   : > { %v2923_v36 = vadd.f32 %v2922_v20, %v2921_v16  ;;  %v2975_v45 = vrot.slane %v2974_v22, 4 }
 0x2c9   : > { %v2924_v25 = vrot.slane %v2923_v36, 2  ;;  %v2976_v50 = vadd.f32 %v2975_v45, %v2974_v22 }
 0x2cb   : > { %v2925_v1 = vadd.f32 %v2924_v25, %v2923_v36  ;;  %v2977_v59 = vrot.slane %v2976_v50, 2 }
 0x2cd   : > { %v2926_v42 = vrot.slane %v2925_v1, 1  ;;  %v2978_v18 = vadd.f32 %v2977_v59, %v2976_v50 }
 0x2cf   : > { %v2979_v6 = vrot.slane %v2978_v18, 1  ;;  %v2927_v13 = vadd.f32 %v2926_v42, %v2925_v1 }
 0x2d1   : > { %v2980_v23 = vadd.f32 %v2979_v6, %v2978_v18 }
 0x2d3   : > { %v2982_v61 = vsel %vm2981_vm11, %v2927_v13, %v2980_v23 }
 0x2d4   : > { %2984 = vst.msk [vmem:[%s212_s11] sm:$0x3] %vm2983_vm12, %v2982_v61 }
 0x2d5 PF: > { %s14_s16 = sadd.s32 1, %s3627_s16   ;;  %s5373_s12 = smov %s3619_s14 }
 0x2d6   : > { %p11_p8 = scmp.ge.s32.totalorder %s14_s16, 6   ;;  %s5374_s13 = smov %s3623_s15 }
 0x2d7   : > { %s5375_s14 = smov %s5378_s17  ;;  %s5376_s15 = smov %s5382_s18 }
 0x2d8   :  { %13 = sbr.rel (!%p11_p8) target bundleno = 3 (0x3), region = 79 }

</bundles_post_ra>
